<compile_context>
chip_gen: v6e
topology: v6e:2x2x1
jax: 0.10.0
libtpu: 0.0.40
codegen_flags: <defaults>
</compile_context>

<pallas_src>
import functools

import jax
import jax.numpy as jnp
from jax.experimental import pallas as pl
from jax.experimental.pallas import tpu as pltpu


_NEG_SLOPE = 0.01     # torch nn.LeakyReLU() default
_OUT_PAD = 128        # logits padded to one full lane tile (num_classes+1 <= 128)


def _leaky(x):
    return jnp.where(x >= 0.0, x, _NEG_SLOPE * x)


# ---------------------------------------------------------------------------
# Fused kernel: conv1 + LeakyReLU + conv2 + LeakyReLU + flatten + fc for a
# block of `bsz` images per grid step.
#
# Row layout (position-major): row m = p * bsz + b, where p = 8*r + c indexes
# the 8x8 polyphase grid of the zero-padded 16x16 conv1 activation (split into
# 4 parity planes of 8x8) and b is the image within the block.  All four
# planes sit side by side in lanes: lane = q*64 + c1 (q = parity plane).
#
# With this layout:
#   * conv1 is one matmul against a block-diagonal (64, 256) weight,
#   * the 16 conv2 taps collapse to 4 groups selected by row shifts of
#     {0, 1, 8, 9} * bsz rows (all multiples of 8 -> aligned) concatenated on
#     256-lane boundaries -> a single (64*bsz, 1024) @ (1024, 128) dot,
#   * the fc flatten is 64 aligned (bsz, 128) row slices concatenated on
#     128-lane boundaries -> a single (bsz, 8192) @ (8192, 128) dot.
# Rows with r == 7 or c == 7 are don't-care positions: the fc weight rows for
# them are zero, so they never reach the output.
# ---------------------------------------------------------------------------
def _disc_fused_kernel(p1_ref, w1_ref, w2_ref, wfc_ref, b_ref, out_ref):
    mb = p1_ref.shape[0]        # 64 * bsz rows
    bsz = out_ref.shape[0]      # images per block

    # ---- conv1 (+ LeakyReLU), all 4 polyphase planes in one dot -------------
    a1 = jnp.dot(p1_ref[...], w1_ref[...],
                 preferred_element_type=jnp.float32)          # (64*bsz, 256)
    a1 = _leaky(a1).astype(jnp.bfloat16)

    # ---- conv2 im2col via aligned row shifts, then one MXU matmul -----------
    a1_ext = jnp.concatenate(
        [a1, jnp.zeros((9 * bsz, a1.shape[1]), a1.dtype)], axis=0)

    def tap(shift):             # conv1 activation shifted by `shift` positions
        s = shift * bsz
        return a1_ext[s:s + mb]

    lhs = jnp.concatenate([a1, tap(1), tap(8), tap(9)], axis=1)  # (64*bsz, 1024)
    a2 = jnp.dot(lhs, w2_ref[...],
                 preferred_element_type=jnp.float32)             # (64*bsz, 128)
    a2 = _leaky(a2)

    # ---- flatten + fc on the MXU --------------------------------------------
    # Position-major rows make the flatten 64 contiguous (bsz, 128) slices.
    zflat = jnp.concatenate(
        [a2[p * bsz:(p + 1) * bsz, :] for p in range(64)], axis=1)  # (bsz, 8192)
    logits = jnp.dot(zflat.astype(jnp.bfloat16), wfc_ref[...],
                     preferred_element_type=jnp.float32)            # (bsz, 128)
    out_ref[...] = logits + b_ref[...]


# ---------------------------------------------------------------------------
# One-time weight preparation (hoisted out of the jitted forward)
# ---------------------------------------------------------------------------
def prepare_params(w1, w2, wfc, bfc):
    """w1: (64,1,4,4), w2: (128,64,4,4), wfc: (K, 6272), bfc: (K,) torch layout."""
    K = wfc.shape[0]
    assert K <= _OUT_PAD

    # conv1: block-diagonal (64, 256); rows = q*16 + (4u+v), cols = q*64 + c1.
    w1flat = jnp.transpose(w1.reshape(64, 16))                    # (16, 64)
    w1bd = jnp.zeros((64, 256), jnp.float32)
    for q in range(4):
        w1bd = w1bd.at[q * 16:(q + 1) * 16, q * 64:(q + 1) * 64].set(w1flat)
    w1bd = w1bd.astype(jnp.bfloat16)

    # conv2: (1024, 128); row = (2di+dj)*256 + (2pi+pj)*64 + c1, matching the
    # kernel's lane-concat of the {0,1,8,9}-shifted conv1 activations.
    w2t = jnp.transpose(w2, (2, 3, 1, 0))                         # (s, t, c1, c2)
    blocks = []
    for di in range(2):
        for dj in range(2):
            for pi in range(2):
                for pj in range(2):
                    blocks.append(w2t[2 * di + pi, 2 * dj + pj])  # (64, 128)
    w2full = jnp.concatenate(blocks, axis=0).astype(jnp.bfloat16)  # (1024, 128)

    # fc: (8192, 128); row = (8*oh + ow)*128 + c2, zero rows for the unused
    # oh==7 / ow==7 positions, columns padded K -> 128 with zeros.
    wfc4 = wfc.reshape(K, 128, 7, 7)                              # (k, c2, oh, ow)
    wfc_t = jnp.transpose(wfc4, (2, 3, 1, 0))                     # (oh, ow, c2, k)
    wfc_t = jnp.pad(wfc_t, ((0, 1), (0, 1), (0, 0), (0, _OUT_PAD - K)))
    wfc_r = wfc_t.reshape(64 * 128, _OUT_PAD).astype(jnp.bfloat16)

    bias_pad = jnp.zeros((1, _OUT_PAD), jnp.float32).at[0, :K].set(bfc)
    return w1bd, w2full, wfc_r, bias_pad


# ---------------------------------------------------------------------------
# Input-side glue: conv1 im2col patches in conv2-polyphase, position-major order
# ---------------------------------------------------------------------------
def _build_patches(x, block_b):
    """Returns (N*64, 64) bf16: row = (block*64 + p)*block_b + b,
    lane = q*16 + (4u+v)."""
    N = x.shape[0]
    xpad = jnp.pad(x[:, 0], ((0, 0), (1, 1), (1, 1)))             # (N, 30, 30)
    taps = [xpad[:, u:u + 28:2, v:v + 28:2]
            for u in range(4) for v in range(4)]
    p = jnp.stack(taps, axis=-1)                                  # (N, 14, 14, 16)
    pp = jnp.pad(p, ((0, 0), (1, 1), (1, 1), (0, 0)))             # (N, 16, 16, 16)
    planes = [pp[:, pi::2, pj::2, :] for pi in range(2) for pj in range(2)]
    pq = jnp.stack(planes, axis=3).reshape(N, 64, 64)             # (N, pos, q*16+k)
    nb = N // block_b
    pq = pq.reshape(nb, block_b, 64, 64).transpose(0, 2, 1, 3)    # position-major
    return pq.reshape(nb * 64 * block_b, 64).astype(jnp.bfloat16)


# ---------------------------------------------------------------------------
# Forward pass
# ---------------------------------------------------------------------------
def discriminator_forward(x, w1bd, w2full, wfc_r, bias_pad, num_out, block_b=16):
    """x: (N, 1, 28, 28) NCHW float32 -> logits (N, num_out) float32."""
    N = x.shape[0]
    nb = -(-N // block_b)
    n_pad = nb * block_b
    if n_pad != N:                                    # pad batch to a block multiple
        x = jnp.concatenate(
            [x, jnp.zeros((n_pad - N,) + x.shape[1:], x.dtype)], axis=0)

    p1 = _build_patches(x, block_b)                   # (n_pad*64, 64) bf16
    mb = 64 * block_b

    out_pad = pl.pallas_call(
        _disc_fused_kernel,
        out_shape=jax.ShapeDtypeStruct((n_pad, _OUT_PAD), jnp.float32),
        grid=(nb,),
        in_specs=[
            pl.BlockSpec((mb, 64), lambda i: (i, 0)),             # streamed patches
            pl.BlockSpec((64, 256), lambda i: (0, 0)),            # resident weights
            pl.BlockSpec((1024, 128), lambda i: (0, 0)),
            pl.BlockSpec((64 * 128, _OUT_PAD), lambda i: (0, 0)),
            pl.BlockSpec((1, _OUT_PAD), lambda i: (0, 0)),
        ],
        out_specs=pl.BlockSpec((block_b, _OUT_PAD), lambda i: (i, 0)),
        compiler_params=pltpu.CompilerParams(
            dimension_semantics=("parallel",),
            vmem_limit_bytes=32 * 1024 * 1024),
    )(p1, w1bd, w2full, wfc_r, bias_pad)

    return out_pad[:N, :num_out]


# ---------------------------------------------------------------------------
# Main
# ---------------------------------------------------------------------------
if __name__ == "__main__":
    num_classes = 10

    key = jax.random.PRNGKey(0)
    k1, k2, k3, k4, kx = jax.random.split(key, 5)

    # Deterministic synthetic parameters, shapes per the module __init__.
    w1 = jax.random.normal(k1, (64, 1, 4, 4), jnp.float32) * 0.1
    w2 = jax.random.normal(k2, (128, 64, 4, 4), jnp.float32) * 0.05
    wfc = jax.random.normal(k3, (num_classes + 1, 128 * 7 * 7), jnp.float32) * 0.01
    bfc = jax.random.normal(k4, (num_classes + 1,), jnp.float32) * 0.01

    # MNIST-shaped input (28x28 is required to reach the 7x7 fc input).
    x = jax.random.normal(kx, (2, 1, 28, 28), jnp.float32)

    params = prepare_params(w1, w2, wfc, bfc)          # one-time weight prep

    fwd = jax.jit(functools.partial(discriminator_forward,
                                    num_out=num_classes + 1, block_b=16))
    out = jax.block_until_ready(fwd(x, *params))

    assert out.shape == (2, num_classes + 1), out.shape
    assert out.dtype == jnp.float32
    print("KERNEL_OK")
</pallas_src>

<mosaic_0001>
module attributes {stable_mosaic.version = 11 : i64} {
  func.func @_disc_fused_kernel(%arg0: i32, %arg1: memref<1024x64xbf16, #tpu.memory_space<vmem>>, %arg2: memref<64x256xbf16, #tpu.memory_space<vmem>>, %arg3: memref<1024x128xbf16, #tpu.memory_space<vmem>>, %arg4: memref<8192x128xbf16, #tpu.memory_space<vmem>>, %arg5: memref<1x128xf32, #tpu.memory_space<vmem>>, %arg6: memref<16x128xf32, #tpu.memory_space<vmem>>) attributes {dimension_semantics = [#tpu.dimension_semantics<parallel>], iteration_bounds = array<i64: 1>, scalar_prefetch = 0 : i64, scratch_operands = 0 : i64, tpu.core_type = #tpu.core_type<tc>, window_params = [{transform_indices = @transform_0, window_bounds = array<i64: 1024, 64>}, {pipeline_mode = #tpu.pipeline_mode<synchronous>, transform_indices = @transform_1, window_bounds = array<i64: 64, 256>}, {pipeline_mode = #tpu.pipeline_mode<synchronous>, transform_indices = @transform_2, window_bounds = array<i64: 1024, 128>}, {pipeline_mode = #tpu.pipeline_mode<synchronous>, transform_indices = @transform_3, window_bounds = array<i64: 8192, 128>}, {pipeline_mode = #tpu.pipeline_mode<synchronous>, transform_indices = @transform_4, window_bounds = array<i64: 1, 128>}, {transform_indices = @transform_5, window_bounds = array<i64: 16, 128>}]} {
    %c0 = arith.constant 0 : index
    %c0_0 = arith.constant 0 : index
    %0 = vector.load %arg1[%c0, %c0_0] : memref<1024x64xbf16, #tpu.memory_space<vmem>>, vector<1024x64xbf16>
    %c0_1 = arith.constant 0 : index
    %c0_2 = arith.constant 0 : index
    %1 = vector.load %arg2[%c0_1, %c0_2] : memref<64x256xbf16, #tpu.memory_space<vmem>>, vector<64x256xbf16>
    %cst = arith.constant dense<0.000000e+00> : vector<1024x256xf32>
    %2 = tpu.matmul %0, %1, %cst {dimension_numbers = #tpu.dot_dimension_numbers<[1], [0], [0], [1], [0, 0, 1, 1], [], []>} : vector<1024x64xbf16>, vector<64x256xbf16>, vector<1024x256xf32> -> vector<1024x256xf32>
    %cst_3 = arith.constant 0.000000e+00 : f32
    %3 = vector.broadcast %cst_3 : f32 to vector<1024x256xf32>
    %4 = arith.cmpf oge, %2, %3 : vector<1024x256xf32>
    %cst_4 = arith.constant 0.00999999977 : f32
    %5 = vector.broadcast %cst_4 : f32 to vector<1024x256xf32>
    %6 = arith.mulf %5, %2 : vector<1024x256xf32>
    %7 = arith.select %4, %2, %6 : vector<1024x256xi1>, vector<1024x256xf32>
    %8 = arith.truncf %7 : vector<1024x256xf32> to vector<1024x256xbf16>
    %cst_5 = arith.constant 0.000000e+00 : bf16
    %9 = vector.broadcast %cst_5 : bf16 to vector<144x256xbf16>
    %10 = tpu.concatenate %8, %9 in 0 : vector<1024x256xbf16>, vector<144x256xbf16> -> vector<1168x256xbf16>
    %11 = vector.extract_strided_slice %10 {offsets = [16, 0], sizes = [1024, 256], strides = [1, 1]} : vector<1168x256xbf16> to vector<1024x256xbf16>
    %12 = vector.extract_strided_slice %10 {offsets = [128, 0], sizes = [1024, 256], strides = [1, 1]} : vector<1168x256xbf16> to vector<1024x256xbf16>
    %13 = vector.extract_strided_slice %10 {offsets = [144, 0], sizes = [1024, 256], strides = [1, 1]} : vector<1168x256xbf16> to vector<1024x256xbf16>
    %14 = tpu.concatenate %8, %11, %12, %13 in 1 : vector<1024x256xbf16>, vector<1024x256xbf16>, vector<1024x256xbf16>, vector<1024x256xbf16> -> vector<1024x1024xbf16>
    %c0_6 = arith.constant 0 : index
    %c0_7 = arith.constant 0 : index
    %15 = vector.load %arg3[%c0_6, %c0_7] : memref<1024x128xbf16, #tpu.memory_space<vmem>>, vector<1024x128xbf16>
    %cst_8 = arith.constant dense<0.000000e+00> : vector<1024x128xf32>
    %16 = tpu.matmul %14, %15, %cst_8 {dimension_numbers = #tpu.dot_dimension_numbers<[1], [0], [0], [1], [0, 0, 1, 1], [], []>} : vector<1024x1024xbf16>, vector<1024x128xbf16>, vector<1024x128xf32> -> vector<1024x128xf32>
    %cst_9 = arith.constant 0.000000e+00 : f32
    %17 = vector.broadcast %cst_9 : f32 to vector<1024x128xf32>
    %18 = arith.cmpf oge, %16, %17 : vector<1024x128xf32>
    %cst_10 = arith.constant 0.00999999977 : f32
    %19 = vector.broadcast %cst_10 : f32 to vector<1024x128xf32>
    %20 = arith.mulf %19, %16 : vector<1024x128xf32>
    %21 = arith.select %18, %16, %20 : vector<1024x128xi1>, vector<1024x128xf32>
    %22 = vector.extract_strided_slice %21 {offsets = [0, 0], sizes = [16, 128], strides = [1, 1]} : vector<1024x128xf32> to vector<16x128xf32>
    %23 = vector.extract_strided_slice %21 {offsets = [16, 0], sizes = [16, 128], strides = [1, 1]} : vector<1024x128xf32> to vector<16x128xf32>
    %24 = vector.extract_strided_slice %21 {offsets = [32, 0], sizes = [16, 128], strides = [1, 1]} : vector<1024x128xf32> to vector<16x128xf32>
    %25 = vector.extract_strided_slice %21 {offsets = [48, 0], sizes = [16, 128], strides = [1, 1]} : vector<1024x128xf32> to vector<16x128xf32>
    %26 = vector.extract_strided_slice %21 {offsets = [64, 0], sizes = [16, 128], strides = [1, 1]} : vector<1024x128xf32> to vector<16x128xf32>
    %27 = vector.extract_strided_slice %21 {offsets = [80, 0], sizes = [16, 128], strides = [1, 1]} : vector<1024x128xf32> to vector<16x128xf32>
    %28 = vector.extract_strided_slice %21 {offsets = [96, 0], sizes = [16, 128], strides = [1, 1]} : vector<1024x128xf32> to vector<16x128xf32>
    %29 = vector.extract_strided_slice %21 {offsets = [112, 0], sizes = [16, 128], strides = [1, 1]} : vector<1024x128xf32> to vector<16x128xf32>
    %30 = vector.extract_strided_slice %21 {offsets = [128, 0], sizes = [16, 128], strides = [1, 1]} : vector<1024x128xf32> to vector<16x128xf32>
    %31 = vector.extract_strided_slice %21 {offsets = [144, 0], sizes = [16, 128], strides = [1, 1]} : vector<1024x128xf32> to vector<16x128xf32>
    %32 = vector.extract_strided_slice %21 {offsets = [160, 0], sizes = [16, 128], strides = [1, 1]} : vector<1024x128xf32> to vector<16x128xf32>
    %33 = vector.extract_strided_slice %21 {offsets = [176, 0], sizes = [16, 128], strides = [1, 1]} : vector<1024x128xf32> to vector<16x128xf32>
    %34 = vector.extract_strided_slice %21 {offsets = [192, 0], sizes = [16, 128], strides = [1, 1]} : vector<1024x128xf32> to vector<16x128xf32>
    %35 = vector.extract_strided_slice %21 {offsets = [208, 0], sizes = [16, 128], strides = [1, 1]} : vector<1024x128xf32> to vector<16x128xf32>
    %36 = vector.extract_strided_slice %21 {offsets = [224, 0], sizes = [16, 128], strides = [1, 1]} : vector<1024x128xf32> to vector<16x128xf32>
    %37 = vector.extract_strided_slice %21 {offsets = [240, 0], sizes = [16, 128], strides = [1, 1]} : vector<1024x128xf32> to vector<16x128xf32>
    %38 = vector.extract_strided_slice %21 {offsets = [256, 0], sizes = [16, 128], strides = [1, 1]} : vector<1024x128xf32> to vector<16x128xf32>
    %39 = vector.extract_strided_slice %21 {offsets = [272, 0], sizes = [16, 128], strides = [1, 1]} : vector<1024x128xf32> to vector<16x128xf32>
    %40 = vector.extract_strided_slice %21 {offsets = [288, 0], sizes = [16, 128], strides = [1, 1]} : vector<1024x128xf32> to vector<16x128xf32>
    %41 = vector.extract_strided_slice %21 {offsets = [304, 0], sizes = [16, 128], strides = [1, 1]} : vector<1024x128xf32> to vector<16x128xf32>
    %42 = vector.extract_strided_slice %21 {offsets = [320, 0], sizes = [16, 128], strides = [1, 1]} : vector<1024x128xf32> to vector<16x128xf32>
    %43 = vector.extract_strided_slice %21 {offsets = [336, 0], sizes = [16, 128], strides = [1, 1]} : vector<1024x128xf32> to vector<16x128xf32>
    %44 = vector.extract_strided_slice %21 {offsets = [352, 0], sizes = [16, 128], strides = [1, 1]} : vector<1024x128xf32> to vector<16x128xf32>
    %45 = vector.extract_strided_slice %21 {offsets = [368, 0], sizes = [16, 128], strides = [1, 1]} : vector<1024x128xf32> to vector<16x128xf32>
    %46 = vector.extract_strided_slice %21 {offsets = [384, 0], sizes = [16, 128], strides = [1, 1]} : vector<1024x128xf32> to vector<16x128xf32>
    %47 = vector.extract_strided_slice %21 {offsets = [400, 0], sizes = [16, 128], strides = [1, 1]} : vector<1024x128xf32> to vector<16x128xf32>
    %48 = vector.extract_strided_slice %21 {offsets = [416, 0], sizes = [16, 128], strides = [1, 1]} : vector<1024x128xf32> to vector<16x128xf32>
    %49 = vector.extract_strided_slice %21 {offsets = [432, 0], sizes = [16, 128], strides = [1, 1]} : vector<1024x128xf32> to vector<16x128xf32>
    %50 = vector.extract_strided_slice %21 {offsets = [448, 0], sizes = [16, 128], strides = [1, 1]} : vector<1024x128xf32> to vector<16x128xf32>
    %51 = vector.extract_strided_slice %21 {offsets = [464, 0], sizes = [16, 128], strides = [1, 1]} : vector<1024x128xf32> to vector<16x128xf32>
    %52 = vector.extract_strided_slice %21 {offsets = [480, 0], sizes = [16, 128], strides = [1, 1]} : vector<1024x128xf32> to vector<16x128xf32>
    %53 = vector.extract_strided_slice %21 {offsets = [496, 0], sizes = [16, 128], strides = [1, 1]} : vector<1024x128xf32> to vector<16x128xf32>
    %54 = vector.extract_strided_slice %21 {offsets = [512, 0], sizes = [16, 128], strides = [1, 1]} : vector<1024x128xf32> to vector<16x128xf32>
    %55 = vector.extract_strided_slice %21 {offsets = [528, 0], sizes = [16, 128], strides = [1, 1]} : vector<1024x128xf32> to vector<16x128xf32>
    %56 = vector.extract_strided_slice %21 {offsets = [544, 0], sizes = [16, 128], strides = [1, 1]} : vector<1024x128xf32> to vector<16x128xf32>
    %57 = vector.extract_strided_slice %21 {offsets = [560, 0], sizes = [16, 128], strides = [1, 1]} : vector<1024x128xf32> to vector<16x128xf32>
    %58 = vector.extract_strided_slice %21 {offsets = [576, 0], sizes = [16, 128], strides = [1, 1]} : vector<1024x128xf32> to vector<16x128xf32>
    %59 = vector.extract_strided_slice %21 {offsets = [592, 0], sizes = [16, 128], strides = [1, 1]} : vector<1024x128xf32> to vector<16x128xf32>
    %60 = vector.extract_strided_slice %21 {offsets = [608, 0], sizes = [16, 128], strides = [1, 1]} : vector<1024x128xf32> to vector<16x128xf32>
    %61 = vector.extract_strided_slice %21 {offsets = [624, 0], sizes = [16, 128], strides = [1, 1]} : vector<1024x128xf32> to vector<16x128xf32>
    %62 = vector.extract_strided_slice %21 {offsets = [640, 0], sizes = [16, 128], strides = [1, 1]} : vector<1024x128xf32> to vector<16x128xf32>
    %63 = vector.extract_strided_slice %21 {offsets = [656, 0], sizes = [16, 128], strides = [1, 1]} : vector<1024x128xf32> to vector<16x128xf32>
    %64 = vector.extract_strided_slice %21 {offsets = [672, 0], sizes = [16, 128], strides = [1, 1]} : vector<1024x128xf32> to vector<16x128xf32>
    %65 = vector.extract_strided_slice %21 {offsets = [688, 0], sizes = [16, 128], strides = [1, 1]} : vector<1024x128xf32> to vector<16x128xf32>
    %66 = vector.extract_strided_slice %21 {offsets = [704, 0], sizes = [16, 128], strides = [1, 1]} : vector<1024x128xf32> to vector<16x128xf32>
    %67 = vector.extract_strided_slice %21 {offsets = [720, 0], sizes = [16, 128], strides = [1, 1]} : vector<1024x128xf32> to vector<16x128xf32>
    %68 = vector.extract_strided_slice %21 {offsets = [736, 0], sizes = [16, 128], strides = [1, 1]} : vector<1024x128xf32> to vector<16x128xf32>
    %69 = vector.extract_strided_slice %21 {offsets = [752, 0], sizes = [16, 128], strides = [1, 1]} : vector<1024x128xf32> to vector<16x128xf32>
    %70 = vector.extract_strided_slice %21 {offsets = [768, 0], sizes = [16, 128], strides = [1, 1]} : vector<1024x128xf32> to vector<16x128xf32>
    %71 = vector.extract_strided_slice %21 {offsets = [784, 0], sizes = [16, 128], strides = [1, 1]} : vector<1024x128xf32> to vector<16x128xf32>
    %72 = vector.extract_strided_slice %21 {offsets = [800, 0], sizes = [16, 128], strides = [1, 1]} : vector<1024x128xf32> to vector<16x128xf32>
    %73 = vector.extract_strided_slice %21 {offsets = [816, 0], sizes = [16, 128], strides = [1, 1]} : vector<1024x128xf32> to vector<16x128xf32>
    %74 = vector.extract_strided_slice %21 {offsets = [832, 0], sizes = [16, 128], strides = [1, 1]} : vector<1024x128xf32> to vector<16x128xf32>
    %75 = vector.extract_strided_slice %21 {offsets = [848, 0], sizes = [16, 128], strides = [1, 1]} : vector<1024x128xf32> to vector<16x128xf32>
    %76 = vector.extract_strided_slice %21 {offsets = [864, 0], sizes = [16, 128], strides = [1, 1]} : vector<1024x128xf32> to vector<16x128xf32>
    %77 = vector.extract_strided_slice %21 {offsets = [880, 0], sizes = [16, 128], strides = [1, 1]} : vector<1024x128xf32> to vector<16x128xf32>
    %78 = vector.extract_strided_slice %21 {offsets = [896, 0], sizes = [16, 128], strides = [1, 1]} : vector<1024x128xf32> to vector<16x128xf32>
    %79 = vector.extract_strided_slice %21 {offsets = [912, 0], sizes = [16, 128], strides = [1, 1]} : vector<1024x128xf32> to vector<16x128xf32>
    %80 = vector.extract_strided_slice %21 {offsets = [928, 0], sizes = [16, 128], strides = [1, 1]} : vector<1024x128xf32> to vector<16x128xf32>
    %81 = vector.extract_strided_slice %21 {offsets = [944, 0], sizes = [16, 128], strides = [1, 1]} : vector<1024x128xf32> to vector<16x128xf32>
    %82 = vector.extract_strided_slice %21 {offsets = [960, 0], sizes = [16, 128], strides = [1, 1]} : vector<1024x128xf32> to vector<16x128xf32>
    %83 = vector.extract_strided_slice %21 {offsets = [976, 0], sizes = [16, 128], strides = [1, 1]} : vector<1024x128xf32> to vector<16x128xf32>
    %84 = vector.extract_strided_slice %21 {offsets = [992, 0], sizes = [16, 128], strides = [1, 1]} : vector<1024x128xf32> to vector<16x128xf32>
    %85 = vector.extract_strided_slice %21 {offsets = [1008, 0], sizes = [16, 128], strides = [1, 1]} : vector<1024x128xf32> to vector<16x128xf32>
    %86 = tpu.concatenate %22, %23, %24, %25, %26, %27, %28, %29, %30, %31, %32, %33, %34, %35, %36, %37 in 1 : vector<16x128xf32>, vector<16x128xf32>, vector<16x128xf32>, vector<16x128xf32>, vector<16x128xf32>, vector<16x128xf32>, vector<16x128xf32>, vector<16x128xf32>, vector<16x128xf32>, vector<16x128xf32>, vector<16x128xf32>, vector<16x128xf32>, vector<16x128xf32>, vector<16x128xf32>, vector<16x128xf32>, vector<16x128xf32> -> vector<16x2048xf32>
    %87 = tpu.concatenate %38, %39, %40, %41, %42, %43, %44, %45, %46, %47, %48, %49, %50, %51, %52, %53 in 1 : vector<16x128xf32>, vector<16x128xf32>, vector<16x128xf32>, vector<16x128xf32>, vector<16x128xf32>, vector<16x128xf32>, vector<16x128xf32>, vector<16x128xf32>, vector<16x128xf32>, vector<16x128xf32>, vector<16x128xf32>, vector<16x128xf32>, vector<16x128xf32>, vector<16x128xf32>, vector<16x128xf32>, vector<16x128xf32> -> vector<16x2048xf32>
    %88 = tpu.concatenate %54, %55, %56, %57, %58, %59, %60, %61, %62, %63, %64, %65, %66, %67, %68, %69 in 1 : vector<16x128xf32>, vector<16x128xf32>, vector<16x128xf32>, vector<16x128xf32>, vector<16x128xf32>, vector<16x128xf32>, vector<16x128xf32>, vector<16x128xf32>, vector<16x128xf32>, vector<16x128xf32>, vector<16x128xf32>, vector<16x128xf32>, vector<16x128xf32>, vector<16x128xf32>, vector<16x128xf32>, vector<16x128xf32> -> vector<16x2048xf32>
    %89 = tpu.concatenate %70, %71, %72, %73, %74, %75, %76, %77, %78, %79, %80, %81, %82, %83, %84, %85 in 1 : vector<16x128xf32>, vector<16x128xf32>, vector<16x128xf32>, vector<16x128xf32>, vector<16x128xf32>, vector<16x128xf32>, vector<16x128xf32>, vector<16x128xf32>, vector<16x128xf32>, vector<16x128xf32>, vector<16x128xf32>, vector<16x128xf32>, vector<16x128xf32>, vector<16x128xf32>, vector<16x128xf32>, vector<16x128xf32> -> vector<16x2048xf32>
    %90 = tpu.concatenate %86, %87, %88, %89 in 1 : vector<16x2048xf32>, vector<16x2048xf32>, vector<16x2048xf32>, vector<16x2048xf32> -> vector<16x8192xf32>
    %91 = arith.truncf %90 : vector<16x8192xf32> to vector<16x8192xbf16>
    %c0_11 = arith.constant 0 : index
    %c0_12 = arith.constant 0 : index
    %92 = vector.load %arg4[%c0_11, %c0_12] : memref<8192x128xbf16, #tpu.memory_space<vmem>>, vector<8192x128xbf16>
    %cst_13 = arith.constant dense<0.000000e+00> : vector<16x128xf32>
    %93 = tpu.matmul %91, %92, %cst_13 {dimension_numbers = #tpu.dot_dimension_numbers<[1], [0], [0], [1], [0, 0, 1, 1], [], []>} : vector<16x8192xbf16>, vector<8192x128xbf16>, vector<16x128xf32> -> vector<16x128xf32>
    %c0_14 = arith.constant 0 : index
    %c0_15 = arith.constant 0 : index
    %94 = vector.load %arg5[%c0_14, %c0_15] : memref<1x128xf32, #tpu.memory_space<vmem>>, vector<1x128xf32>
    %95 = vector.broadcast %94 : vector<1x128xf32> to vector<16x128xf32>
    %96 = arith.addf %93, %95 : vector<16x128xf32>
    %c0_16 = arith.constant 0 : index
    %c0_17 = arith.constant 0 : index
    %97 = vector.load %arg6[%c0_16, %c0_17] : memref<16x128xf32, #tpu.memory_space<vmem>>, vector<16x128xf32>
    tpu.vector_store %arg6[%c0_16, %c0_17], %96 {strides = array<i32>} : memref<16x128xf32, #tpu.memory_space<vmem>>, vector<16x128xf32>,
    return
  }
  func.func @transform_0(%arg0: i32) -> (i32, i32) {
    %c0_i32 = arith.constant 0 : i32
    %c0_i32_0 = arith.constant 0 : i32
    return %arg0, %c0_i32 : i32, i32
  }
  func.func @transform_1(%arg0: i32) -> (i32, i32) {
    %c0_i32 = arith.constant 0 : i32
    %c0_i32_0 = arith.constant 0 : i32
    %c0_i32_1 = arith.constant 0 : i32
    return %c0_i32, %c0_i32_0 : i32, i32
  }
  func.func @transform_2(%arg0: i32) -> (i32, i32) {
    %c0_i32 = arith.constant 0 : i32
    %c0_i32_0 = arith.constant 0 : i32
    %c0_i32_1 = arith.constant 0 : i32
    return %c0_i32, %c0_i32_0 : i32, i32
  }
  func.func @transform_3(%arg0: i32) -> (i32, i32) {
    %c0_i32 = arith.constant 0 : i32
    %c0_i32_0 = arith.constant 0 : i32
    %c0_i32_1 = arith.constant 0 : i32
    return %c0_i32, %c0_i32_0 : i32, i32
  }
  func.func @transform_4(%arg0: i32) -> (i32, i32) {
    %c0_i32 = arith.constant 0 : i32
    %c0_i32_0 = arith.constant 0 : i32
    %c0_i32_1 = arith.constant 0 : i32
    return %c0_i32, %c0_i32_0 : i32, i32
  }
  func.func @transform_5(%arg0: i32) -> (i32, i32) {
    %c0_i32 = arith.constant 0 : i32
    %c0_i32_0 = arith.constant 0 : i32
    return %arg0, %c0_i32 : i32, i32
  }
}

</mosaic_0001>

<bundles_post_ra>
// kernel: discriminator_forward.1
= control target key start
LH: loop header
LB: loop body
LE: loop exit
PB: predicated region body
PF: predicated region fallthrough
CT: control target
= control target key end

     0   :  { %v17747_v1 = vmov 0   ;;  %vm517_vm0 = vcmask 523264   ;;  %s17681_s1 = inlined_call_operand.vmem [shape: bf16[64,256], index: 1, kind: input, shape index: {}]   ;;  %s17682_s0 = inlined_call_operand.vmem [shape: bf16[1024,64], index: 0, kind: input, shape index: {}]   ;;  %s17683_s2 = inlined_call_operand.vmem [shape: bf16[1024,128], index: 2, kind: input, shape index: {}]   ;;  %s17684_s3 = inlined_call_operand.vmem [shape: bf16[8192,128], index: 3, kind: input, shape index: {}]   ;;  %s17685_s4 = inlined_call_operand.vmem [shape: f32[1,128], index: 4, kind: input, shape index: {}]   ;;  %s17686_s5 = inlined_call_operand.vmem [shape: f32[16,128], index: 5, kind: output, shape index: {}]  }
   0x1   :  { %v12258_v0 = vld [vmem:[%s17681_s1 + $0x34] ss:$8 sps:$4 sm:$0xff]   ;;  %742 = vmatprep.mubr.bf16.mxu0 %v17747_v1  ;;  %2791 = vmatprep.subr.bf16.mxu1 %v17747_v1  ;;  %v12260_v2 = vld [vmem:[%s17681_s1 + $0x30] ss:$8 sps:$4 sm:$0xff]   ;;  %v12261_v3 = vld [vmem:[%s17681_s1 + $0x24] ss:$8 sps:$4 sm:$0xff]  }
   0x2   :  { %718 = vmatprep.subr.bf16.mxu0 %v12258_v0  ;;  %v12263_v4 = vld [vmem:[%s17681_s1 + $0x20] ss:$8 sps:$4 sm:$0xff]   ;;  %v12264_v5 = vld [vmem:[%s17681_s1 + $0x14] ss:$8 sps:$4 sm:$0xff]   ;;  %v12266_v6 = vld [vmem:[%s17681_s1 + $0x10] ss:$8 sps:$4 sm:$0xff]  }
   0x3   :  { %719 = vmatpush1.bf16.msra.mxu0 %v12260_v2  ;;  %v12267_v7 = vld [vmem:[%s17681_s1 + $0x4] ss:$8 sps:$4 sm:$0xff]   ;;  %v12269_v8 = vld [vmem:[%s17681_s1] ss:$8 sps:$4 sm:$0xff]   ;;  %v12271_v10 = vld [vmem:[%s17683_s2 + $0xb8] sm:$0xff]  }
   0x4   :  { %720 = vmatprep.subr.bf16.mxu0 %v12261_v3  ;;  %v12270_v9 = vld [vmem:[%s17682_s0] sm:$0xff]   ;;  %v12276_v11 = vld [vmem:[%s17683_s2 + $0xb0] sm:$0xff]   ;;  %v12272_v12 = vld [vmem:[%s17682_s0 + $0x8] sm:$0xff]  }
   0x5   :  { %v12281_v13 = vld [vmem:[%s17683_s2 + $0xa8] sm:$0xff]   ;;  %v12286_v14 = vld [vmem:[%s17683_s2 + $0xa0] sm:$0xff]   ;;  %v12273_v15 = vld [vmem:[%s17682_s0 + $0x10] sm:$0xff]  }
   0x6   :  { %v12293_v16 = vld [vmem:[%s17683_s2 + $0x38] sm:$0xff]   ;;  %v12295_v18 = vld [vmem:[%s17683_s2 + $0x30] sm:$0xff]   ;;  %v12296_v19 = vld [vmem:[%s17683_s2 + $0x28] sm:$0xff]  }
   0x7   :  { %721 = vmatpush1.bf16.msra.mxu0 %v12263_v4  ;;  %v12291_v17 = vld [vmem:[%s17683_s2 + $0x98] sm:$0xff]   ;;  %2792 = vmatpush1.bf16.msra.mxu1 %v12293_v16  ;;  %v12298_v21 = vld [vmem:[%s17683_s2 + $0x20] sm:$0xff]   ;;  %v12301_v24 = vld [vmem:[%s17683_s2 + $0x90] sm:$0xff]  }
   0x8   :  { %722 = vmatprep.subr.bf16.mxu0 %v12264_v5  ;;  %2793 = vmatprep.subr.bf16.mxu1 %v17747_v1  ;;  %v12274_v20 = vld [vmem:[%s17682_s0 + $0x18] sm:$0xff]   ;;  %v12275_v23 = vld [vmem:[%s17682_s0 + $0x20] sm:$0xff]   ;;  %v12302_v25 = vld [vmem:[%s17683_s2 + $0x10] sm:$0xff]  }
   0x9   :  { %v12299_v22 = vld [vmem:[%s17683_s2 + $0x18] sm:$0xff]   ;;  %v12303_v26 = vld [vmem:[%s17683_s2 + $0x8] sm:$0xff]   ;;  %v12305_v28 = vld [vmem:[%s17683_s2] sm:$0xff]  }
   0xa   :  { %v12277_v27 = vld [vmem:[%s17682_s0 + $0x28] sm:$0xff]   ;;  %v12306_v29 = vld [vmem:[%s17683_s2 + $0x78] sm:$0xff]   ;;  %v12278_v30 = vld [vmem:[%s17682_s0 + $0x30] sm:$0xff]  }
   0xb   :  { %723 = vmatpush1.bf16.msra.mxu0 %v12266_v6  ;;  %2794 = vmatpush1.bf16.msra.mxu1 %v12295_v18  ;;  %v12308_v31 = vld [vmem:[%s17683_s2 + $0x70] sm:$0xff]   ;;  %v12309_v32 = vld [vmem:[%s17683_s2 + $0x68] sm:$0xff]   ;;  %v12279_v33 = vld [vmem:[%s17682_s0 + $0x38] sm:$0xff]  }
   0xc   :  { %724 = vmatprep.subr.bf16.mxu0 %v12267_v7  ;;  %2795 = vmatprep.subr.bf16.mxu1 %v17747_v1  ;;  %v12311_v34 = vld [vmem:[%s17683_s2 + $0x60] sm:$0xff]   ;;  %v12312_v35 = vld [vmem:[%s17683_s2 + $0x58] sm:$0xff]   ;;  %v12315_v37 = vld [vmem:[%s17683_s2 + $0x50] sm:$0xff]  }
   0xd   :  { %v12280_v36 = vld [vmem:[%s17682_s0 + $0x40] sm:$0xff]   ;;  %v12282_v38 = vld [vmem:[%s17682_s0 + $0x48] sm:$0xff]   ;;  %v12283_v42 = vld [vmem:[%s17682_s0 + $0x50] sm:$0xff]  }
   0xe   :  { %v12314_v39 = vld [vmem:[%s17683_s2 + $0x88] sm:$0xff]   ;;  %v12318_v41 = vld [vmem:[%s17683_s2 + $0x40] sm:$0xff]   ;;  %v12284_v43 = vld [vmem:[%s17682_s0 + $0x58] sm:$0xff]  }
   0xf   :  { %725 = vmatpush1.bf16.msra.mxu0 %v12269_v8  ;;  %2796 = vmatpush1.bf16.msra.mxu1 %v12296_v19  ;;  %v12316_v40 = vld [vmem:[%s17683_s2 + $0x48] sm:$0xff]   ;;  %v12285_v44 = vld [vmem:[%s17682_s0 + $0x60] sm:$0xff]   ;;  %v12288_v47 = vld [vmem:[%s17682_s0 + $0x70] sm:$0xff]  }
  0x10   :  { %3336 = vmatprep.subr.bf16.mxu0 %v17747_v1  ;;  %2797 = vmatprep.subr.bf16.mxu1 %v17747_v1  ;;  %v12323_v45 = vld [vmem:[%s17683_s2 + $0x80] sm:$0xff]   ;;  %v12287_v46 = vld [vmem:[%s17682_s0 + $0x68] sm:$0xff]   ;;  %v12289_v48 = vld [vmem:[%s17682_s0 + $0x78] sm:$0xff]  }
  0x11   :  { %v12290_v49 = vld [vmem:[%s17682_s0 + $0x80] sm:$0xff]   ;;  %v12329_v50 = vld [vmem:[%s17683_s2 + $0xf8] sm:$0xff]   ;;  %v12292_v51 = vld [vmem:[%s17682_s0 + $0x88] sm:$0xff]  }
  0x12   :  { %10912 = vmatmul.mubr.msk.bf16.vlgmr.msra.gmra.mxu0 %vm517_vm0, %v12270_v9  ;;  %v12294_v52 = vld [vmem:[%s17682_s0 + $0x90] sm:$0xff]   ;;  %v12297_v53 = vld [vmem:[%s17682_s0 + $0x98] sm:$0xff]   ;;  %v12300_v54 = vld [vmem:[%s17682_s0 + $0xa0] sm:$0xff]  }
  0x13   :  { %3337 = vmatpush1.bf16.msra.mxu0 %v12271_v10  ;;  %752 = vmatprep.mubr.bf16.mxu0 %v17747_v1  ;;  %v12335_v55 = vld [vmem:[%s17683_s2 + $0xf0] sm:$0xff]   ;;  %v12304_v56 = vld [vmem:[%s17682_s0 + $0xa8] sm:$0xff]   ;;  %v12310_v58 = vld [vmem:[%s17682_s0 + $0xb8] sm:$0xff]  }
  0x14   :  { %3338 = vmatprep.subr.bf16.mxu0 %v17747_v1  ;;  %2798 = vmatpush1.bf16.msra.mxu1 %v12298_v21  ;;  %v12307_v57 = vld [vmem:[%s17682_s0 + $0xb0] sm:$0xff]   ;;  %v12313_v59 = vld [vmem:[%s17682_s0 + $0xc0] sm:$0xff]   ;;  %v12341_v62 = vld [vmem:[%s17683_s2 + $0xe8] sm:$0xff]  }
  0x15   :  { %2799 = vmatprep.subr.bf16.mxu1 %v17747_v1  ;;  %v12317_v0 = vld [vmem:[%s17682_s0 + $0xc8] sm:$0xff]  }
  0x17   :  { %3339 = vmatpush1.bf16.msra.mxu0 %v12276_v11 }
  0x18   :  { %3340 = vmatprep.subr.bf16.mxu0 %v17747_v1  ;;  %2800 = vmatpush1.bf16.msra.mxu1 %v12299_v22  ;;  %v12326_v22 = vld [vmem:[%s17683_s2 + $0x130] sm:$0xff]  }
  0x19   :  { %2801 = vmatprep.subr.bf16.mxu1 %v17747_v1 }
  0x1a   :  { %10913 = vmatmul.mubr.msk.bf16.gmra.mxu0 %vm517_vm0, %v12272_v12 }
  0x1b   :  { %762 = vmatprep.mubr.bf16.mxu0 %v17747_v1  ;;  %3341 = vmatpush1.bf16.msra.mxu0 %v12281_v13 }
  0x1c   :  { %3342 = vmatprep.subr.bf16.mxu0 %v17747_v1  ;;  %2802 = vmatpush1.bf16.msra.mxu1 %v12302_v25 }
  0x1d   :  { %2803 = vmatprep.subr.bf16.mxu1 %v17747_v1 }
  0x1f   :  { %3343 = vmatpush1.bf16.msra.mxu0 %v12286_v14  ;;  %v12320_v14 = vld [vmem:[%s17683_s2 + $0x138] sm:$0xff]  }
  0x20   :  { %3344 = vmatprep.subr.bf16.mxu0 %v17747_v1  ;;  %2804 = vmatpush1.bf16.msra.mxu1 %v12303_v26 }
  0x21   :  { %2805 = vmatprep.subr.bf16.mxu1 %v17747_v1 }
  0x22   :  { %10914 = vmatmul.mubr.msk.bf16.gmra.mxu0 %vm517_vm0, %v12273_v15 }
  0x23   :  { %772 = vmatprep.mubr.bf16.mxu0 %v17747_v1  ;;  %3345 = vmatpush1.bf16.msra.mxu0 %v12291_v17  ;;  %v12319_v17 = vld [vmem:[%s17682_s0 + $0xd0] sm:$0xff]  }
  0x24   :  { %3346 = vmatprep.subr.bf16.mxu0 %v17747_v1  ;;  %2806 = vmatpush1.bf16.msra.mxu1 %v12305_v28 }
  0x25   :  { %2807 = vmatprep.subr.bf16.mxu1 %v17747_v1 }
  0x27   :  { %3347 = vmatpush1.bf16.msra.mxu0 %v12301_v24 }
  0x28   :  { %3348 = vmatprep.subr.bf16.mxu0 %v17747_v1  ;;  %2808 = vmatpush2.bf16.msra.mxu1 %v12306_v29 }
  0x29   :  { %2809 = vmatprep.subr.bf16.mxu1 %v17747_v1 }
  0x2a   :  { %10915 = vmatmul.mubr.msk.bf16.gmra.mxu0 %vm517_vm0, %v12274_v20 }
  0x2b   :  { %782 = vmatprep.mubr.bf16.mxu0 %v17747_v1  ;;  %3349 = vmatpush1.bf16.msra.mxu0 %v12314_v39  ;;  %v12338_v39 = vld [vmem:[%s17683_s2 + $0x120] sm:$0xff]  }
  0x2c   :  { %2810 = vmatpush2.bf16.msra.mxu1 %v12308_v31  ;;  %3350 = vmatprep.subr.bf16.mxu0 %v17747_v1  ;;  %v12332_v31 = vld [vmem:[%s17683_s2 + $0x128] sm:$0xff]  }
  0x2d   :  { %2811 = vmatprep.subr.bf16.mxu1 %v17747_v1 }
  0x2f   :  { %3351 = vmatpush1.bf16.msra.mxu0 %v12323_v45 }
  0x30   :  { %2812 = vmatpush2.bf16.msra.mxu1 %v12309_v32  ;;  %3352 = vmatprep.subr.bf16.mxu0 %v17747_v1 }
  0x31   :  { %2813 = vmatprep.subr.bf16.mxu1 %v17747_v1 }
  0x32   :  { %10916 = vmatmul.mubr.msk.bf16.gmra.mxu0 %vm517_vm0, %v12275_v23 }
  0x33   :  { %792 = vmatprep.mubr.bf16.mxu0 %v17747_v1  ;;  %3353 = vmatpush2.bf16.msra.mxu0 %v12329_v50 }
  0x34   :  { %2814 = vmatpush2.bf16.msra.mxu1 %v12311_v34  ;;  %3354 = vmatprep.subr.bf16.mxu0 %v17747_v1  ;;  %v12321_v34 = vld [vmem:[%s17682_s0 + $0xd8] sm:$0xff]  }
  0x35   :  { %2815 = vmatprep.subr.bf16.mxu1 %v17747_v1 }
  0x37   :  { %3355 = vmatpush2.bf16.msra.mxu0 %v12335_v55 }
  0x38   :  { %2816 = vmatpush2.bf16.msra.mxu1 %v12312_v35  ;;  %3356 = vmatprep.subr.bf16.mxu0 %v17747_v1 }
  0x39   :  { %2817 = vmatprep.subr.bf16.mxu1 %v17747_v1 }
  0x3a   :  { %10917 = vmatmul.mubr.msk.bf16.gmra.mxu0 %vm517_vm0, %v12277_v27 }
  0x3b   :  { %802 = vmatprep.mubr.bf16.mxu0 %v17747_v1  ;;  %3357 = vmatpush2.bf16.msra.mxu0 %v12341_v62 }
  0x3c   :  { %2818 = vmatpush2.bf16.msra.mxu1 %v12315_v37  ;;  %3358 = vmatprep.subr.bf16.mxu0 %v17747_v1 }
  0x3d   :  { %2819 = vmatprep.subr.bf16.mxu1 %v17747_v1 }
  0x40   :  { %2820 = vmatpush2.bf16.msra.mxu1 %v12316_v40 }
  0x41   :  { %2821 = vmatprep.subr.bf16.mxu1 %v17747_v1 }
  0x42   :  { %10918 = vmatmul.mubr.msk.bf16.gmra.mxu0 %vm517_vm0, %v12278_v30 }
  0x43   :  { %812 = vmatprep.mubr.bf16.mxu0 %v17747_v1 }
  0x44   :  { %2822 = vmatpush2.bf16.msra.mxu1 %v12318_v41 }
  0x45   :  { %3881 = vmatprep.subr.bf16.mxu1 %v17747_v1 }
  0x4a   :  { %10919 = vmatmul.mubr.msk.bf16.gmra.mxu0 %vm517_vm0, %v12279_v33 }
  0x4b   :  { %822 = vmatprep.mubr.bf16.mxu0 %v17747_v1 }
  0x52   :  { %10920 = vmatmul.mubr.msk.bf16.gmra.mxu0 %vm517_vm0, %v12280_v36 }
  0x53   :  { %832 = vmatprep.mubr.bf16.mxu0 %v17747_v1 }
  0x5a   :  { %10921 = vmatmul.mubr.msk.bf16.gmra.mxu0 %vm517_vm0, %v12282_v38 }
  0x5b   :  { %842 = vmatprep.mubr.bf16.mxu0 %v17747_v1 }
  0x62   :  { %10922 = vmatmul.mubr.msk.bf16.gmra.mxu0 %vm517_vm0, %v12283_v42 }
  0x63   :  { %852 = vmatprep.mubr.bf16.mxu0 %v17747_v1 }
  0x6a   :  { %10923 = vmatmul.mubr.msk.bf16.gmra.mxu0 %vm517_vm0, %v12284_v43 }
  0x6b   :  { %862 = vmatprep.mubr.bf16.mxu0 %v17747_v1 }
  0x72   :  { %10924 = vmatmul.mubr.msk.bf16.gmra.mxu0 %vm517_vm0, %v12285_v44 }
  0x73   :  { %872 = vmatprep.mubr.bf16.mxu0 %v17747_v1 }
  0x7a   :  { %10925 = vmatmul.mubr.msk.bf16.gmra.mxu0 %vm517_vm0, %v12287_v46 }
  0x7b   :  { %882 = vmatprep.mubr.bf16.mxu0 %v17747_v1 }
  0x82   :  { %10926 = vmatmul.mubr.msk.bf16.gmra.mxu0 %vm517_vm0, %v12288_v47 }
  0x83   :  { %892 = vmatprep.mubr.bf16.mxu0 %v17747_v1 }
  0x8a   :  { %10927 = vmatmul.mubr.msk.bf16.gmra.mxu0 %vm517_vm0, %v12289_v48  ;;  %v12344_v48 = vld [vmem:[%s17683_s2 + $0x118] sm:$0xff]  }
  0x8b   :  { %902 = vmatprep.mubr.bf16.mxu0 %v17747_v1 }
  0x92   :  { %10928 = vmatmul.mubr.msk.bf16.gmra.mxu0 %vm517_vm0, %v12290_v49 }
  0x93   :  { %912 = vmatprep.mubr.bf16.mxu0 %v17747_v1 }
  0x9a   :  { %10929 = vmatmul.mubr.msk.bf16.gmra.mxu0 %vm517_vm0, %v12292_v51  ;;  %v12322_v51 = vld [vmem:[%s17682_s0 + $0xe0] sm:$0xff]  }
  0x9b   :  { %922 = vmatprep.mubr.bf16.mxu0 %v17747_v1 }
  0xa2   :  { %10930 = vmatmul.mubr.msk.bf16.gmra.mxu0 %vm517_vm0, %v12294_v52 }
  0xa3   :  { %932 = vmatprep.mubr.bf16.mxu0 %v17747_v1 }
  0xaa   :  { %10931 = vmatmul.mubr.msk.bf16.gmra.mxu0 %vm517_vm0, %v12297_v53 }
  0xab   :  { %942 = vmatprep.mubr.bf16.mxu0 %v17747_v1 }
  0xb2   :  { %10932 = vmatmul.mubr.msk.bf16.gmra.mxu0 %vm517_vm0, %v12300_v54 }
  0xb3   :  { %952 = vmatprep.mubr.bf16.mxu0 %v17747_v1 }
  0xba   :  { %10933 = vmatmul.mubr.msk.bf16.gmra.mxu0 %vm517_vm0, %v12304_v56 }
  0xbb   :  { %962 = vmatprep.mubr.bf16.mxu0 %v17747_v1 }
  0xc2   :  { %10934 = vmatmul.mubr.msk.bf16.gmra.mxu0 %vm517_vm0, %v12307_v57 }
  0xc3   :  { %972 = vmatprep.mubr.bf16.mxu0 %v17747_v1 }
  0xca   :  { %10935 = vmatmul.mubr.msk.bf16.gmra.mxu0 %vm517_vm0, %v12310_v58 }
  0xcb   :  { %982 = vmatprep.mubr.bf16.mxu0 %v17747_v1 }
  0xd2   :  { %v744_v60 = vpop.f32.mrf.mxu0  ;;  %10936 = vmatmul.mubr.msk.bf16.gmra.mxu0 %vm517_vm0, %v12313_v59 }
  0xd3   :  { %992 = vmatprep.mubr.bf16.mxu0 %v17747_v1  ;;  %v1639_v4 = vmul.f32 0.01, %v744_v60  ;;  %vm1383_vm3 = vcmp.ge.f32.partialorder %v744_v60, 0.0 }
  0xd4   :  { %v746_v61 = vpop.f32.mrf.mxu0 }
  0xd5   :  { %v1640_v2 = vmul.f32 0.01, %v746_v61  ;;  %vm1384_vm2 = vcmp.ge.f32.partialorder %v746_v61, 0.0  ;;  %v1895_v11 = vsel %vm1383_vm3, %v744_v60, %v1639_v4  ;;  %v12324_v4 = vld [vmem:[%s17682_s0 + $0xe8] sm:$0xff]  }
  0xd6   :  { %v748_v63 = vpop.f32.mrf.mxu0 }
  0xd7   :  { %vm1385_vm1 = vcmp.ge.f32.partialorder %v748_v63, 0.0  ;;  %v1641_v3 = vmul.f32 0.01, %v748_v63  ;;  %v1896_v9 = vsel %vm1384_vm2, %v746_v61, %v1640_v2  ;;  %v12347_v2 = vld [vmem:[%s17683_s2 + $0xe0] sm:$0xff]  }
  0xd8   :  { %v750_v5 = vpop.f32.mrf.mxu0  ;;  %3359 = vmatpush2.bf16.msra.mxu0 %v12347_v2 }
  0xd9   :  { %vm1386_vm4 = vcmp.ge.f32.partialorder %v750_v5, 0.0  ;;  %v1642_v6 = vmul.f32 0.01, %v750_v5  ;;  %v1897_v7 = vsel %vm1385_vm1, %v748_v63, %v1641_v3  ;;  %3360 = vmatprep.subr.bf16.mxu0 %v17747_v1 }
  0xda   :  { %v754_v8 = vpop.f32.mrf.mxu0  ;;  %10937 = vmatmul.mubr.msk.bf16.gmra.mxu0 %vm517_vm0, %v12317_v0  ;;  %v2151_v15 = vpack.c.bf16 %v1897_v7, %v1895_v11 }
  0xdb   :  { %v1898_v10 = vsel %vm1386_vm4, %v750_v5, %v1642_v6  ;;  %1002 = vmatprep.mubr.bf16.mxu0 %v17747_v1  ;;  %v1643_v20 = vmul.f32 0.01, %v754_v8  ;;  %vm1387_vm7 = vcmp.ge.f32.partialorder %v754_v8, 0.0 }
  0xdc   :  { %v756_v12 = vpop.f32.mrf.mxu0  ;;  %v2152_v13 = vpack.c.bf16 %v1898_v10, %v1896_v9 }
  0xdd   :  { %v1644_v18 = vmul.f32 0.01, %v756_v12  ;;  %vm1388_vm6 = vcmp.ge.f32.partialorder %v756_v12, 0.0  ;;  %v1899_v28 = vsel %vm1387_vm7, %v754_v8, %v1643_v20 }
  0xde   :  { %v758_v16 = vpop.f32.mrf.mxu0  ;;  %2823 = vmatprep.mubr.bf16.mxu1 %v2152_v13 }
  0xdf   :  { %vm1389_vm5 = vcmp.ge.f32.partialorder %v758_v16, 0.0  ;;  %v1645_v19 = vmul.f32 0.01, %v758_v16  ;;  %2824 = vmatmul.mubr.bf16.vlgmr.msra.gmra.mxu1 %v2151_v15  ;;  %v1900_v26 = vsel %vm1388_vm6, %v756_v12, %v1644_v18 }
  0xe0   :  { %v760_v21 = vpop.f32.mrf.mxu0  ;;  %3882 = vmatpush1.bf16.msra.mxu1 %v12320_v14 }
  0xe1   :  { %vm1390_vm8 = vcmp.ge.f32.partialorder %v760_v21, 0.0  ;;  %v1646_v23 = vmul.f32 0.01, %v760_v21  ;;  %3883 = vmatprep.subr.bf16.mxu1 %v17747_v1  ;;  %v1901_v24 = vsel %vm1389_vm5, %v758_v16, %v1645_v19  ;;  %v12325_v19 = vld [vmem:[%s17682_s0 + $0xf0] sm:$0xff]  }
  0xe2   :  { %v764_v25 = vpop.f32.mrf.mxu0  ;;  %10938 = vmatmul.mubr.msk.bf16.gmra.mxu0 %vm517_vm0, %v12319_v17  ;;  %v13223_v32 = vpack.c.bf16 %v1901_v24, %v1899_v28 }
  0xe3   :  { %v1902_v27 = vsel %vm1390_vm8, %v760_v21, %v1646_v23  ;;  %1012 = vmatprep.mubr.bf16.mxu0 %v17747_v1  ;;  %v1647_v37 = vmul.f32 0.01, %v764_v25  ;;  %vm1391_vm11 = vcmp.ge.f32.partialorder %v764_v25, 0.0 }
  0xe4   :  { %v766_v29 = vpop.f32.mrf.mxu0  ;;  %v13218_v30 = vpack.c.bf16 %v1902_v27, %v1900_v26  ;;  %3884 = vmatpush1.bf16.msra.mxu1 %v12326_v22 }
  0xe5   :  { %3885 = vmatprep.subr.bf16.mxu1 %v17747_v1  ;;  %v1648_v35 = vmul.f32 0.01, %v766_v29  ;;  %vm1392_vm10 = vcmp.ge.f32.partialorder %v766_v29, 0.0  ;;  %v1903_v45 = vsel %vm1391_vm11, %v764_v25, %v1647_v37 }
  0xe6   :  { %v768_v33 = vpop.f32.mrf.mxu0  ;;  %2831 = vmatprep.mubr.bf16.mxu1 %v13218_v30 }
  0xe7   :  { %vm1393_vm9 = vcmp.ge.f32.partialorder %v768_v33, 0.0  ;;  %v1649_v36 = vmul.f32 0.01, %v768_v33  ;;  %2832 = vmatmul.mubr.bf16.gmra.mxu1 %v13223_v32  ;;  %v1904_v43 = vsel %vm1392_vm10, %v766_v29, %v1648_v35 }
  0xe8   :  { %v770_v38 = vpop.f32.mrf.mxu0  ;;  %3886 = vmatpush1.bf16.msra.mxu1 %v12332_v31 }
  0xe9   :  { %vm1394_vm12 = vcmp.ge.f32.partialorder %v770_v38, 0.0  ;;  %v1650_v40 = vmul.f32 0.01, %v770_v38  ;;  %3887 = vmatprep.subr.bf16.mxu1 %v17747_v1  ;;  %v1905_v41 = vsel %vm1393_vm9, %v768_v33, %v1649_v36  ;;  %v12327_v36 = vld [vmem:[%s17682_s0 + $0xf8] sm:$0xff]  }
  0xea   :  { %v774_v42 = vpop.f32.mrf.mxu0  ;;  %10939 = vmatmul.mubr.msk.bf16.gmra.mxu0 %vm517_vm0, %v12321_v34  ;;  %v13242_v49 = vpack.c.bf16 %v1905_v41, %v1903_v45 }
  0xeb   :  { %v1906_v44 = vsel %vm1394_vm12, %v770_v38, %v1650_v40  ;;  %1022 = vmatprep.mubr.bf16.mxu0 %v17747_v1  ;;  %v1651_v54 = vmul.f32 0.01, %v774_v42  ;;  %vm1395_vm15 = vcmp.ge.f32.partialorder %v774_v42, 0.0 }
  0xec   :  { %v776_v46 = vpop.f32.mrf.mxu0  ;;  %v13237_v47 = vpack.c.bf16 %v1906_v44, %v1904_v43  ;;  %3888 = vmatpush1.bf16.msra.mxu1 %v12338_v39 }
  0xed   :  { %3889 = vmatprep.subr.bf16.mxu1 %v17747_v1  ;;  %v1652_v52 = vmul.f32 0.01, %v776_v46  ;;  %vm1396_vm14 = vcmp.ge.f32.partialorder %v776_v46, 0.0  ;;  %v1907_v61 = vsel %vm1395_vm15, %v774_v42, %v1651_v54  ;;  %v12328_v54 = vld [vmem:[%s17682_s0 + $0x100] sm:$0xff]  }
  0xee   :  { %v778_v50 = vpop.f32.mrf.mxu0  ;;  %2839 = vmatprep.mubr.bf16.mxu1 %v13237_v47 }
  0xef   :  { %vm1397_vm13 = vcmp.ge.f32.partialorder %v778_v50, 0.0  ;;  %v1653_v53 = vmul.f32 0.01, %v778_v50  ;;  %2840 = vmatmul.mubr.bf16.gmra.mxu1 %v13242_v49  ;;  %v1908_v59 = vsel %vm1396_vm14, %v776_v46, %v1652_v52 }
  0xf0   :  { %v780_v55 = vpop.f32.mrf.mxu0  ;;  %3890 = vmatpush1.bf16.msra.mxu1 %v12344_v48 }
  0xf1   :  { %vm1398_vm1 = vcmp.ge.f32.partialorder %v780_v55, 0.0  ;;  %v1654_v56 = vmul.f32 0.01, %v780_v55  ;;  %3891 = vmatprep.subr.bf16.mxu1 %v17747_v1  ;;  %v1909_v57 = vsel %vm1397_vm13, %v778_v50, %v1653_v53 }
  0xf2   :  { %v784_v58 = vpop.f32.mrf.mxu0  ;;  %10940 = vmatmul.mubr.msk.bf16.gmra.mxu0 %vm517_vm0, %v12322_v51  ;;  %v13255_v0 = vpack.c.bf16 %v1909_v57, %v1907_v61  ;;  %v12350_v51 = vld [vmem:[%s17683_s2 + $0x110] sm:$0xff]  }
  0xf3   :  { %v1910_v60 = vsel %vm1398_vm1, %v780_v55, %v1654_v56  ;;  %1032 = vmatprep.mubr.bf16.mxu0 %v17747_v1  ;;  %v1655_v7 = vmul.f32 0.01, %v784_v58  ;;  %vm1399_vm4 = vcmp.ge.f32.partialorder %v784_v58, 0.0 }
  0xf4   :  { %v786_v62 = vpop.f32.mrf.mxu0  ;;  %v13253_v63 = vpack.c.bf16 %v1910_v60, %v1908_v59  ;;  %3892 = vmatpush1.bf16.msra.mxu1 %v12350_v51 }
  0xf5   :  { %v1656_v5 = vmul.f32 0.01, %v786_v62  ;;  %vm1400_vm3 = vcmp.ge.f32.partialorder %v786_v62, 0.0  ;;  %v1911_v14 = vsel %vm1399_vm4, %v784_v58, %v1655_v7  ;;  %3893 = vmatprep.subr.bf16.mxu1 %v17747_v1  ;;  %v12353_v7 = vld [vmem:[%s17683_s2 + $0xd8] sm:$0xff]  }
  0xf6   :  { %v788_v3 = vpop.f32.mrf.mxu0  ;;  %2847 = vmatprep.mubr.bf16.mxu1 %v13253_v63  ;;  %3361 = vmatpush2.bf16.msra.mxu0 %v12353_v7 }
  0xf7   :  { %vm1401_vm2 = vcmp.ge.f32.partialorder %v788_v3, 0.0  ;;  %v1657_v6 = vmul.f32 0.01, %v788_v3  ;;  %2848 = vmatmul.mubr.bf16.gmra.mxu1 %v13255_v0  ;;  %v1912_v12 = vsel %vm1400_vm3, %v786_v62, %v1656_v5  ;;  %3362 = vmatprep.subr.bf16.mxu0 %v17747_v1 }
  0xf8   :  { %v790_v8 = vpop.f32.mrf.mxu0 }
  0xf9   :  { %vm1402_vm5 = vcmp.ge.f32.partialorder %v790_v8, 0.0  ;;  %v1658_v9 = vmul.f32 0.01, %v790_v8  ;;  %v1913_v10 = vsel %vm1401_vm2, %v788_v3, %v1657_v6 }
  0xfa   :  { %v794_v11 = vpop.f32.mrf.mxu0  ;;  %10941 = vmatmul.mubr.msk.bf16.gmra.mxu0 %vm517_vm0, %v12324_v4  ;;  %v13270_v17 = vpack.c.bf16 %v1913_v10, %v1911_v14 }
  0xfb   :  { %v1914_v13 = vsel %vm1402_vm5, %v790_v8, %v1658_v9  ;;  %1042 = vmatprep.mubr.bf16.mxu0 %v17747_v1  ;;  %v1659_v22 = vmul.f32 0.01, %v794_v11  ;;  %vm1403_vm8 = vcmp.ge.f32.partialorder %v794_v11, 0.0  ;;  %v12330_v9 = vld [vmem:[%s17682_s0 + $0x108] sm:$0xff]  }
  0xfc   :  { %v796_v15 = vpop.f32.mrf.mxu0  ;;  %v13268_v16 = vpack.c.bf16 %v1914_v13, %v1912_v12 }
  0xfd   :  { %v1660_v20 = vmul.f32 0.01, %v796_v15  ;;  %vm1404_vm7 = vcmp.ge.f32.partialorder %v796_v15, 0.0  ;;  %v1915_v29 = vsel %vm1403_vm8, %v794_v11, %v1659_v22 }
  0xfe   :  { %v798_v18 = vpop.f32.mrf.mxu0  ;;  %2855 = vmatprep.mubr.bf16.mxu1 %v13268_v16 }
  0xff   :  { %vm1405_vm6 = vcmp.ge.f32.partialorder %v798_v18, 0.0  ;;  %v1661_v21 = vmul.f32 0.01, %v798_v18  ;;  %2856 = vmatmul.mubr.bf16.gmra.mxu1 %v13270_v17  ;;  %v1916_v27 = vsel %vm1404_vm7, %v796_v15, %v1660_v20 }
 0x100   :  { %v800_v23 = vpop.f32.mrf.mxu0 }
 0x101   :  { %vm1406_vm9 = vcmp.ge.f32.partialorder %v800_v23, 0.0  ;;  %v1662_v24 = vmul.f32 0.01, %v800_v23  ;;  %v1917_v25 = vsel %vm1405_vm6, %v798_v18, %v1661_v21 }
 0x102   :  { %v804_v26 = vpop.f32.mrf.mxu0  ;;  %10942 = vmatmul.mubr.msk.bf16.gmra.mxu0 %vm517_vm0, %v12325_v19  ;;  %v13281_v34 = vpack.c.bf16 %v1917_v25, %v1915_v29 }
 0x103   :  { %v1918_v28 = vsel %vm1406_vm9, %v800_v23, %v1662_v24  ;;  %1052 = vmatprep.mubr.bf16.mxu0 %v17747_v1  ;;  %v1663_v39 = vmul.f32 0.01, %v804_v26  ;;  %vm1407_vm12 = vcmp.ge.f32.partialorder %v804_v26, 0.0 }
 0x104   :  { %v806_v31 = vpop.f32.mrf.mxu0  ;;  %v13279_v33 = vpack.c.bf16 %v1918_v28, %v1916_v27 }
 0x105   :  { %v1664_v37 = vmul.f32 0.01, %v806_v31  ;;  %vm1408_vm11 = vcmp.ge.f32.partialorder %v806_v31, 0.0  ;;  %v1919_v46 = vsel %vm1407_vm12, %v804_v26, %v1663_v39  ;;  %v12331_v26 = vld [vmem:[%s17682_s0 + $0x110] sm:$0xff]  }
 0x106   :  { %v808_v35 = vpop.f32.mrf.mxu0  ;;  %2863 = vmatprep.mubr.bf16.mxu1 %v13279_v33 }
 0x107   :  { %vm1409_vm10 = vcmp.ge.f32.partialorder %v808_v35, 0.0  ;;  %v1665_v38 = vmul.f32 0.01, %v808_v35  ;;  %2864 = vmatmul.mubr.bf16.gmra.mxu1 %v13281_v34  ;;  %v1920_v44 = vsel %vm1408_vm11, %v806_v31, %v1664_v37 }
 0x108   :  { %v810_v40 = vpop.f32.mrf.mxu0 }
 0x109   :  { %vm1410_vm13 = vcmp.ge.f32.partialorder %v810_v40, 0.0  ;;  %v1666_v41 = vmul.f32 0.01, %v810_v40  ;;  %v1921_v42 = vsel %vm1409_vm10, %v808_v35, %v1665_v38 }
 0x10a   :  { %v814_v43 = vpop.f32.mrf.mxu0  ;;  %10943 = vmatmul.mubr.msk.bf16.gmra.mxu0 %vm517_vm0, %v12327_v36  ;;  %v13295_v52 = vpack.c.bf16 %v1921_v42, %v1919_v46 }
 0x10b   :  { %v1922_v45 = vsel %vm1410_vm13, %v810_v40, %v1666_v41  ;;  %1062 = vmatprep.mubr.bf16.mxu0 %v17747_v1  ;;  %v1667_v57 = vmul.f32 0.01, %v814_v43  ;;  %vm1411_vm1 = vcmp.ge.f32.partialorder %v814_v43, 0.0 }
 0x10c   :  { %v816_v48 = vpop.f32.mrf.mxu0  ;;  %v13290_v50 = vpack.c.bf16 %v1922_v45, %v1920_v44  ;;  %v12333_v45 = vld [vmem:[%s17682_s0 + $0x118] sm:$0xff]  }
 0x10d   :  { %v1668_v55 = vmul.f32 0.01, %v816_v48  ;;  %vm1412_vm15 = vcmp.ge.f32.partialorder %v816_v48, 0.0  ;;  %v1923_v3 = vsel %vm1411_vm1, %v814_v43, %v1667_v57 }
 0x10e   :  { %v818_v53 = vpop.f32.mrf.mxu0  ;;  %2871 = vmatprep.mubr.bf16.mxu1 %v13290_v50 }
 0x10f   :  { %vm1413_vm14 = vcmp.ge.f32.partialorder %v818_v53, 0.0  ;;  %v1669_v56 = vmul.f32 0.01, %v818_v53  ;;  %2872 = vmatmul.mubr.bf16.gmra.mxu1 %v13295_v52  ;;  %v1924_v62 = vsel %vm1412_vm15, %v816_v48, %v1668_v55 }
 0x110   :  { %v820_v58 = vpop.f32.mrf.mxu0 }
 0x111   :  { %vm1414_vm2 = vcmp.ge.f32.partialorder %v820_v58, 0.0  ;;  %v1670_v59 = vmul.f32 0.01, %v820_v58  ;;  %v1925_v60 = vsel %vm1413_vm14, %v818_v53, %v1669_v56 }
 0x112   :  { %v824_v61 = vpop.f32.mrf.mxu0  ;;  %10944 = vmatmul.mubr.msk.bf16.gmra.mxu0 %vm517_vm0, %v12328_v54  ;;  %v13307_v6 = vpack.c.bf16 %v1925_v60, %v1923_v3 }
 0x113   :  { %v1926_v2 = vsel %vm1414_vm2, %v820_v58, %v1670_v59  ;;  %1072 = vmatprep.mubr.bf16.mxu0 %v17747_v1  ;;  %v1671_v12 = vmul.f32 0.01, %v824_v61  ;;  %vm1415_vm5 = vcmp.ge.f32.partialorder %v824_v61, 0.0 }
 0x114   :  { %v826_v4 = vpop.f32.mrf.mxu0  ;;  %v13305_v5 = vpack.c.bf16 %v1926_v2, %v1924_v62  ;;  %v12356_v62 = vld [vmem:[%s17683_s2 + $0x108] sm:$0xff]  }
 0x115   :  { %v1672_v10 = vmul.f32 0.01, %v826_v4  ;;  %vm1416_vm4 = vcmp.ge.f32.partialorder %v826_v4, 0.0  ;;  %v1927_v21 = vsel %vm1415_vm5, %v824_v61, %v1671_v12  ;;  %3894 = vmatpush1.bf16.msra.mxu1 %v12356_v62 }
 0x116   :  { %v828_v8 = vpop.f32.mrf.mxu0  ;;  %2879 = vmatprep.mubr.bf16.mxu1 %v13305_v5  ;;  %3895 = vmatprep.subr.bf16.mxu1 %v17747_v1 }
 0x117   :  { %vm1417_vm3 = vcmp.ge.f32.partialorder %v828_v8, 0.0  ;;  %v1673_v11 = vmul.f32 0.01, %v828_v8  ;;  %2880 = vmatmul.mubr.bf16.gmra.mxu1 %v13307_v6  ;;  %v1928_v19 = vsel %vm1416_vm4, %v826_v4, %v1672_v10  ;;  %v12334_v4 = vld [vmem:[%s17682_s0 + $0x120] sm:$0xff]  }
 0x118   :  { %v830_v13 = vpop.f32.mrf.mxu0 }
 0x119   :  { %vm1418_vm6 = vcmp.ge.f32.partialorder %v830_v13, 0.0  ;;  %v1674_v14 = vmul.f32 0.01, %v830_v13  ;;  %v1929_v15 = vsel %vm1417_vm3, %v828_v8, %v1673_v11 }
 0x11a   :  { %v834_v18 = vpop.f32.mrf.mxu0  ;;  %10945 = vmatmul.mubr.msk.bf16.gmra.mxu0 %vm517_vm0, %v12330_v9  ;;  %v13322_v24 = vpack.c.bf16 %v1929_v15, %v1927_v21 }
 0x11b   :  { %v1930_v20 = vsel %vm1418_vm6, %v830_v13, %v1674_v14  ;;  %1082 = vmatprep.mubr.bf16.mxu0 %v17747_v1  ;;  %v1675_v29 = vmul.f32 0.01, %v834_v18  ;;  %vm1419_vm9 = vcmp.ge.f32.partialorder %v834_v18, 0.0 }
 0x11c   :  { %v836_v22 = vpop.f32.mrf.mxu0  ;;  %v13320_v23 = vpack.c.bf16 %v1930_v20, %v1928_v19 }
 0x11d   :  { %v1676_v27 = vmul.f32 0.01, %v836_v22  ;;  %vm1420_vm8 = vcmp.ge.f32.partialorder %v836_v22, 0.0  ;;  %v1931_v40 = vsel %vm1419_vm9, %v834_v18, %v1675_v29 }
 0x11e   :  { %v838_v25 = vpop.f32.mrf.mxu0  ;;  %2887 = vmatprep.mubr.bf16.mxu1 %v13320_v23 }
 0x11f   :  { %vm1421_vm7 = vcmp.ge.f32.partialorder %v838_v25, 0.0  ;;  %v1677_v28 = vmul.f32 0.01, %v838_v25  ;;  %2888 = vmatmul.mubr.bf16.gmra.mxu1 %v13322_v24  ;;  %v1932_v38 = vsel %vm1420_vm8, %v836_v22, %v1676_v27  ;;  %v12359_v22 = vld [vmem:[%s17683_s2 + $0xd0] sm:$0xff]  }
 0x120   :  { %v840_v31 = vpop.f32.mrf.mxu0  ;;  %3363 = vmatpush2.bf16.msra.mxu0 %v12359_v22 }
 0x121   :  { %vm1422_vm10 = vcmp.ge.f32.partialorder %v840_v31, 0.0  ;;  %v1678_v35 = vmul.f32 0.01, %v840_v31  ;;  %v1933_v36 = vsel %vm1421_vm7, %v838_v25, %v1677_v28  ;;  %3364 = vmatprep.subr.bf16.mxu0 %v17747_v1 }
 0x122   :  { %v844_v37 = vpop.f32.mrf.mxu0  ;;  %10946 = vmatmul.mubr.msk.bf16.gmra.mxu0 %vm517_vm0, %v12331_v26  ;;  %v13333_v43 = vpack.c.bf16 %v1933_v36, %v1931_v40  ;;  %v12336_v26 = vld [vmem:[%s17682_s0 + $0x128] sm:$0xff]  }
 0x123   :  { %v1934_v39 = vsel %vm1422_vm10, %v840_v31, %v1678_v35  ;;  %1092 = vmatprep.mubr.bf16.mxu0 %v17747_v1  ;;  %v1679_v51 = vmul.f32 0.01, %v844_v37  ;;  %vm1423_vm13 = vcmp.ge.f32.partialorder %v844_v37, 0.0 }
 0x124   :  { %v13331_v41 = vpack.c.bf16 %v1934_v39, %v1932_v38  ;;  %v846_v42 = vpop.f32.mrf.mxu0  ;;  %17960 = vst [vmem:[#allocation3_spill] sm:$0xff] %v13333_v43 }
 0x125   :  { %v1680_v46 = vmul.f32 0.01, %v846_v42  ;;  %vm1424_vm12 = vcmp.ge.f32.partialorder %v846_v42, 0.0  ;;  %v1935_v59 = vsel %vm1423_vm13, %v844_v37, %v1679_v51 }
 0x126   :  { %17959 = vst [vmem:[#allocation2_spill] sm:$0xff] %v13331_v41  ;;  %v848_v44 = vpop.f32.mrf.mxu0  ;;  %2895 = vmatprep.mubr.bf16.mxu1 %v13331_v41 }
 0x127   :  { %vm1425_vm11 = vcmp.ge.f32.partialorder %v848_v44, 0.0  ;;  %v1681_v48 = vmul.f32 0.01, %v848_v44  ;;  %2896 = vmatmul.mubr.bf16.gmra.mxu1 %v13333_v43  ;;  %v1936_v57 = vsel %vm1424_vm12, %v846_v42, %v1680_v46 }
 0x128   :  { %v850_v53 = vpop.f32.mrf.mxu0 }
 0x129   :  { %vm1426_vm14 = vcmp.ge.f32.partialorder %v850_v53, 0.0  ;;  %v1682_v54 = vmul.f32 0.01, %v850_v53  ;;  %v1937_v55 = vsel %vm1425_vm11, %v848_v44, %v1681_v48  ;;  %v12337_v48 = vld [vmem:[%s17682_s0 + $0x130] sm:$0xff]  }
 0x12a   :  { %v854_v56 = vpop.f32.mrf.mxu0  ;;  %10947 = vmatmul.mubr.msk.bf16.gmra.mxu0 %vm517_vm0, %v12333_v45  ;;  %v13347_v2 = vpack.c.bf16 %v1937_v55, %v1935_v59 }
 0x12b   :  { %v1938_v58 = vsel %vm1426_vm14, %v850_v53, %v1682_v54  ;;  %1102 = vmatprep.mubr.bf16.mxu0 %v17747_v1  ;;  %v1683_v9 = vmul.f32 0.01, %v854_v56  ;;  %vm1427_vm2 = vcmp.ge.f32.partialorder %v854_v56, 0.0 }
 0x12c   :  { %v13342_v60 = vpack.c.bf16 %v1938_v58, %v1936_v57  ;;  %v856_v61 = vpop.f32.mrf.mxu0  ;;  %17962 = vst [vmem:[#allocation5_spill] sm:$0xff] %v13347_v2 }
 0x12d   :  { %v1684_v7 = vmul.f32 0.01, %v856_v61  ;;  %vm1428_vm1 = vcmp.ge.f32.partialorder %v856_v61, 0.0  ;;  %v1939_v18 = vsel %vm1427_vm2, %v854_v56, %v1683_v9  ;;  %v12339_v9 = vld [vmem:[%s17682_s0 + $0x138] sm:$0xff]  }
 0x12e   :  { %17961 = vst [vmem:[#allocation4_spill] sm:$0xff] %v13342_v60  ;;  %v858_v3 = vpop.f32.mrf.mxu0  ;;  %2903 = vmatprep.mubr.bf16.mxu1 %v13342_v60 }
 0x12f   :  { %vm1429_vm15 = vcmp.ge.f32.partialorder %v858_v3, 0.0  ;;  %v1685_v8 = vmul.f32 0.01, %v858_v3  ;;  %2904 = vmatmul.mubr.bf16.gmra.mxu1 %v13347_v2  ;;  %v1940_v14 = vsel %vm1428_vm1, %v856_v61, %v1684_v7 }
 0x130   :  { %v860_v10 = vpop.f32.mrf.mxu0 }
 0x131   :  { %vm1430_vm3 = vcmp.ge.f32.partialorder %v860_v10, 0.0  ;;  %v1686_v11 = vmul.f32 0.01, %v860_v10  ;;  %v1941_v12 = vsel %vm1429_vm15, %v858_v3, %v1685_v8 }
 0x132   :  { %v864_v13 = vpop.f32.mrf.mxu0  ;;  %10948 = vmatmul.mubr.msk.bf16.gmra.mxu0 %vm517_vm0, %v12334_v4  ;;  %v13359_v21 = vpack.c.bf16 %v1941_v12, %v1939_v18 }
 0x133   :  { %v1942_v15 = vsel %vm1430_vm3, %v860_v10, %v1686_v11  ;;  %1112 = vmatprep.mubr.bf16.mxu0 %v17747_v1  ;;  %v1687_v29 = vmul.f32 0.01, %v864_v13  ;;  %vm1431_vm6 = vcmp.ge.f32.partialorder %v864_v13, 0.0 }
 0x134   :  { %v13357_v19 = vpack.c.bf16 %v1942_v15, %v1940_v14  ;;  %v866_v20 = vpop.f32.mrf.mxu0  ;;  %17964 = vst [vmem:[#allocation7_spill] sm:$0xff] %v13359_v21 }
 0x135   :  { %v1688_v27 = vmul.f32 0.01, %v866_v20  ;;  %vm1432_vm5 = vcmp.ge.f32.partialorder %v866_v20, 0.0  ;;  %v1943_v40 = vsel %vm1431_vm6, %v864_v13, %v1687_v29 }
 0x136   :  { %17963 = vst [vmem:[#allocation6_spill] sm:$0xff] %v13357_v19  ;;  %v868_v25 = vpop.f32.mrf.mxu0  ;;  %2911 = vmatprep.mubr.bf16.mxu1 %v13357_v19 }
 0x137   :  { %vm1433_vm4 = vcmp.ge.f32.partialorder %v868_v25, 0.0  ;;  %v1689_v28 = vmul.f32 0.01, %v868_v25  ;;  %2912 = vmatmul.mubr.bf16.gmra.mxu1 %v13359_v21  ;;  %v1944_v38 = vsel %vm1432_vm5, %v866_v20, %v1688_v27 }
 0x138   :  { %v870_v31 = vpop.f32.mrf.mxu0 }
 0x139   :  { %vm1434_vm7 = vcmp.ge.f32.partialorder %v870_v31, 0.0  ;;  %v1690_v35 = vmul.f32 0.01, %v870_v31  ;;  %v1945_v36 = vsel %vm1433_vm4, %v868_v25, %v1689_v28  ;;  %v12362_v28 = vld [vmem:[%s17683_s2 + $0x100] sm:$0xff]  }
 0x13a   :  { %v874_v37 = vpop.f32.mrf.mxu0  ;;  %10949 = vmatmul.mubr.msk.bf16.gmra.mxu0 %vm517_vm0, %v12336_v26  ;;  %v13374_v45 = vpack.c.bf16 %v1945_v36, %v1943_v40  ;;  %3896 = vmatpush1.bf16.msra.mxu1 %v12362_v28 }
 0x13b   :  { %v1946_v39 = vsel %vm1434_vm7, %v870_v31, %v1690_v35  ;;  %1122 = vmatprep.mubr.bf16.mxu0 %v17747_v1  ;;  %v1691_v54 = vmul.f32 0.01, %v874_v37  ;;  %vm1435_vm10 = vcmp.ge.f32.partialorder %v874_v37, 0.0  ;;  %v12340_v35 = vld [vmem:[%s17682_s0 + $0x140] sm:$0xff]   ;;  %3897 = vmatprep.subr.bf16.mxu1 %v17747_v1 }
 0x13c   :  { %v13372_v42 = vpack.c.bf16 %v1946_v39, %v1944_v38  ;;  %v876_v44 = vpop.f32.mrf.mxu0  ;;  %17966 = vst [vmem:[#allocation9_spill] sm:$0xff] %v13374_v45 }
 0x13d   :  { %v1692_v51 = vmul.f32 0.01, %v876_v44  ;;  %vm1436_vm9 = vcmp.ge.f32.partialorder %v876_v44, 0.0  ;;  %v1947_v62 = vsel %vm1435_vm10, %v874_v37, %v1691_v54 }
 0x13e   :  { %17965 = vst [vmem:[#allocation8_spill] sm:$0xff] %v13372_v42  ;;  %v878_v46 = vpop.f32.mrf.mxu0  ;;  %2919 = vmatprep.mubr.bf16.mxu1 %v13372_v42 }
 0x13f   :  { %vm1437_vm8 = vcmp.ge.f32.partialorder %v878_v46, 0.0  ;;  %v1693_v53 = vmul.f32 0.01, %v878_v46  ;;  %2920 = vmatmul.mubr.bf16.gmra.mxu1 %v13374_v45  ;;  %v1948_v59 = vsel %vm1436_vm9, %v876_v44, %v1692_v51 }
 0x140   :  { %v880_v55 = vpop.f32.mrf.mxu0 }
 0x141   :  { %vm1438_vm11 = vcmp.ge.f32.partialorder %v880_v55, 0.0  ;;  %v1694_v56 = vmul.f32 0.01, %v880_v55  ;;  %v1949_v57 = vsel %vm1437_vm8, %v878_v46, %v1693_v53 }
 0x142   :  { %v884_v58 = vpop.f32.mrf.mxu0  ;;  %10950 = vmatmul.mubr.msk.bf16.gmra.mxu0 %vm517_vm0, %v12337_v48  ;;  %v13385_v7 = vpack.c.bf16 %v1949_v57, %v1947_v62  ;;  %v12365_v57 = vld [vmem:[%s17683_s2 + $0xc8] sm:$0xff]  }
 0x143   :  { %v1950_v61 = vsel %vm1438_vm11, %v880_v55, %v1694_v56  ;;  %1132 = vmatprep.mubr.bf16.mxu0 %v17747_v1  ;;  %v1695_v12 = vmul.f32 0.01, %v884_v58  ;;  %vm1439_vm14 = vcmp.ge.f32.partialorder %v884_v58, 0.0  ;;  %3365 = vmatpush2.bf16.msra.mxu0 %v12365_v57 }
 0x144   :  { %v13383_v3 = vpack.c.bf16 %v1950_v61, %v1948_v59  ;;  %v886_v4 = vpop.f32.mrf.mxu0  ;;  %17968 = vst [vmem:[#allocation11_spill] sm:$0xff] %v13385_v7  ;;  %v12342_v59 = vld [vmem:[%s17682_s0 + $0x148] sm:$0xff]   ;;  %3366 = vmatprep.subr.bf16.mxu0 %v17747_v1 }
 0x145   :  { %v1696_v10 = vmul.f32 0.01, %v886_v4  ;;  %vm1440_vm13 = vcmp.ge.f32.partialorder %v886_v4, 0.0  ;;  %v1951_v25 = vsel %vm1439_vm14, %v884_v58, %v1695_v12 }
 0x146   :  { %17967 = vst [vmem:[#allocation10_spill] sm:$0xff] %v13383_v3  ;;  %v888_v8 = vpop.f32.mrf.mxu0  ;;  %2927 = vmatprep.mubr.bf16.mxu1 %v13383_v3 }
 0x147   :  { %vm1441_vm12 = vcmp.ge.f32.partialorder %v888_v8, 0.0  ;;  %v1697_v11 = vmul.f32 0.01, %v888_v8  ;;  %2928 = vmatmul.mubr.bf16.gmra.mxu1 %v13385_v7  ;;  %v1952_v20 = vsel %vm1440_vm13, %v886_v4, %v1696_v10 }
 0x148   :  { %v890_v13 = vpop.f32.mrf.mxu0 }
 0x149   :  { %vm1442_vm15 = vcmp.ge.f32.partialorder %v890_v13, 0.0  ;;  %v1698_v14 = vmul.f32 0.01, %v890_v13  ;;  %v1953_v15 = vsel %vm1441_vm12, %v888_v8, %v1697_v11 }
 0x14a   :  { %v894_v18 = vpop.f32.mrf.mxu0  ;;  %10951 = vmatmul.mubr.msk.bf16.gmra.mxu0 %vm517_vm0, %v12339_v9  ;;  %v13399_v29 = vpack.c.bf16 %v1953_v15, %v1951_v25  ;;  %v12343_v25 = vld [vmem:[%s17682_s0 + $0x150] sm:$0xff]  }
 0x14b   :  { %v1954_v22 = vsel %vm1442_vm15, %v890_v13, %v1698_v14  ;;  %1142 = vmatprep.mubr.bf16.mxu0 %v17747_v1  ;;  %v1699_v38 = vmul.f32 0.01, %v894_v18  ;;  %vm1443_vm3 = vcmp.ge.f32.partialorder %v894_v18, 0.0 }
 0x14c   :  { %v13394_v26 = vpack.c.bf16 %v1954_v22, %v1952_v20  ;;  %v896_v27 = vpop.f32.mrf.mxu0  ;;  %17970 = vst [vmem:[#allocation13_spill] sm:$0xff] %v13399_v29 }
 0x14d   :  { %v1700_v36 = vmul.f32 0.01, %v896_v27  ;;  %vm1444_vm2 = vcmp.ge.f32.partialorder %v896_v27, 0.0  ;;  %v1955_v53 = vsel %vm1443_vm3, %v894_v18, %v1699_v38 }
 0x14e   :  { %17969 = vst [vmem:[#allocation12_spill] sm:$0xff] %v13394_v26  ;;  %v898_v31 = vpop.f32.mrf.mxu0  ;;  %2935 = vmatprep.mubr.bf16.mxu1 %v13394_v26 }
 0x14f   :  { %vm1445_vm1 = vcmp.ge.f32.partialorder %v898_v31, 0.0  ;;  %v1701_v37 = vmul.f32 0.01, %v898_v31  ;;  %2936 = vmatmul.mubr.bf16.gmra.mxu1 %v13399_v29  ;;  %v1956_v48 = vsel %vm1444_vm2, %v896_v27, %v1700_v36 }
 0x150   :  { %v900_v39 = vpop.f32.mrf.mxu0 }
 0x151   :  { %vm1446_vm4 = vcmp.ge.f32.partialorder %v900_v39, 0.0  ;;  %v1702_v40 = vmul.f32 0.01, %v900_v39  ;;  %v1957_v44 = vsel %vm1445_vm1, %v898_v31, %v1701_v37 }
 0x152   :  { %v904_v46 = vpop.f32.mrf.mxu0  ;;  %10952 = vmatmul.mubr.msk.bf16.gmra.mxu0 %vm517_vm0, %v12340_v35  ;;  %v13411_v56 = vpack.c.bf16 %v1957_v44, %v1955_v53 }
 0x153   :  { %v1958_v51 = vsel %vm1446_vm4, %v900_v39, %v1702_v40  ;;  %1152 = vmatprep.mubr.bf16.mxu0 %v17747_v1  ;;  %v1703_v4 = vmul.f32 0.01, %v904_v46  ;;  %vm1447_vm7 = vcmp.ge.f32.partialorder %v904_v46, 0.0 }
 0x154   :  { %v13409_v54 = vpack.c.bf16 %v1958_v51, %v1956_v48  ;;  %v906_v55 = vpop.f32.mrf.mxu0  ;;  %17972 = vst [vmem:[#allocation15_spill] sm:$0xff] %v13411_v56 }
 0x155   :  { %v1704_v61 = vmul.f32 0.01, %v906_v55  ;;  %vm1448_vm6 = vcmp.ge.f32.partialorder %v906_v55, 0.0  ;;  %v1959_v14 = vsel %vm1447_vm7, %v904_v46, %v1703_v4 }
 0x156   :  { %17971 = vst [vmem:[#allocation14_spill] sm:$0xff] %v13409_v54  ;;  %v908_v58 = vpop.f32.mrf.mxu0  ;;  %2943 = vmatprep.mubr.bf16.mxu1 %v13409_v54 }
 0x157   :  { %vm1449_vm5 = vcmp.ge.f32.partialorder %v908_v58, 0.0  ;;  %v1705_v62 = vmul.f32 0.01, %v908_v58  ;;  %2944 = vmatmul.mubr.bf16.gmra.mxu1 %v13411_v56  ;;  %v1960_v12 = vsel %vm1448_vm6, %v906_v55, %v1704_v61  ;;  %v12345_v55 = vld [vmem:[%s17682_s0 + $0x158] sm:$0xff]  }
 0x158   :  { %v910_v8 = vpop.f32.mrf.mxu0 }
 0x159   :  { %vm1450_vm8 = vcmp.ge.f32.partialorder %v910_v8, 0.0  ;;  %v1706_v9 = vmul.f32 0.01, %v910_v8  ;;  %v1961_v10 = vsel %vm1449_vm5, %v908_v58, %v1705_v62 }
 0x15a   :  { %v914_v11 = vpop.f32.mrf.mxu0  ;;  %10953 = vmatmul.mubr.msk.bf16.gmra.mxu0 %vm517_vm0, %v12342_v59  ;;  %v13426_v20 = vpack.c.bf16 %v1961_v10, %v1959_v14  ;;  %v12368_v14 = vld [vmem:[%s17683_s2 + $0x178] sm:$0xff]  }
 0x15b   :  { %v1962_v13 = vsel %vm1450_vm8, %v910_v8, %v1706_v9  ;;  %1162 = vmatprep.mubr.bf16.mxu0 %v17747_v1  ;;  %v1707_v31 = vmul.f32 0.01, %v914_v11  ;;  %vm1451_vm11 = vcmp.ge.f32.partialorder %v914_v11, 0.0  ;;  %3898 = vmatpush2.bf16.msra.mxu1 %v12368_v14 }
 0x15c   :  { %v13424_v15 = vpack.c.bf16 %v1962_v13, %v1960_v12  ;;  %v916_v18 = vpop.f32.mrf.mxu0  ;;  %17974 = vst [vmem:[#allocation17_spill] sm:$0xff] %v13426_v20  ;;  %3899 = vmatprep.subr.bf16.mxu1 %v17747_v1 }
 0x15d   :  { %v1708_v27 = vmul.f32 0.01, %v916_v18  ;;  %vm1452_vm10 = vcmp.ge.f32.partialorder %v916_v18, 0.0  ;;  %v1963_v44 = vsel %vm1451_vm11, %v914_v11, %v1707_v31 }
 0x15e   :  { %17973 = vst [vmem:[#allocation16_spill] sm:$0xff] %v13424_v15  ;;  %v918_v22 = vpop.f32.mrf.mxu0  ;;  %2951 = vmatprep.mubr.bf16.mxu1 %v13424_v15 }
 0x15f   :  { %vm1453_vm9 = vcmp.ge.f32.partialorder %v918_v22, 0.0  ;;  %v1709_v28 = vmul.f32 0.01, %v918_v22  ;;  %2952 = vmatmul.mubr.bf16.gmra.mxu1 %v13426_v20  ;;  %v1964_v39 = vsel %vm1452_vm10, %v916_v18, %v1708_v27 }
 0x160   :  { %v920_v35 = vpop.f32.mrf.mxu0 }
 0x161   :  { %vm1454_vm12 = vcmp.ge.f32.partialorder %v920_v35, 0.0  ;;  %v1710_v36 = vmul.f32 0.01, %v920_v35  ;;  %v1965_v37 = vsel %vm1453_vm9, %v918_v22, %v1709_v28 }
 0x162   :  { %v924_v38 = vpop.f32.mrf.mxu0  ;;  %10954 = vmatmul.mubr.msk.bf16.gmra.mxu0 %vm517_vm0, %v12343_v25  ;;  %v13437_v51 = vpack.c.bf16 %v1965_v37, %v1963_v44  ;;  %v12346_v25 = vld [vmem:[%s17682_s0 + $0x160] sm:$0xff]  }
 0x163   :  { %v1966_v40 = vsel %vm1454_vm12, %v920_v35, %v1710_v36  ;;  %1172 = vmatprep.mubr.bf16.mxu0 %v17747_v1  ;;  %v1711_v59 = vmul.f32 0.01, %v924_v38  ;;  %vm1455_vm15 = vcmp.ge.f32.partialorder %v924_v38, 0.0 }
 0x164   :  { %v13435_v46 = vpack.c.bf16 %v1966_v40, %v1964_v39  ;;  %v926_v48 = vpop.f32.mrf.mxu0  ;;  %17976 = vst [vmem:[#allocation19_spill] sm:$0xff] %v13437_v51 }
 0x165   :  { %v1712_v57 = vmul.f32 0.01, %v926_v48  ;;  %vm1456_vm14 = vcmp.ge.f32.partialorder %v926_v48, 0.0  ;;  %v1967_v11 = vsel %vm1455_vm15, %v924_v38, %v1711_v59  ;;  %v12348_v59 = vld [vmem:[%s17682_s0 + $0x168] sm:$0xff]  }
 0x166   :  { %17975 = vst [vmem:[#allocation18_spill] sm:$0xff] %v13435_v46  ;;  %v928_v53 = vpop.f32.mrf.mxu0  ;;  %2959 = vmatprep.mubr.bf16.mxu1 %v13435_v46 }
 0x167   :  { %vm1457_vm13 = vcmp.ge.f32.partialorder %v928_v53, 0.0  ;;  %v1713_v58 = vmul.f32 0.01, %v928_v53  ;;  %2960 = vmatmul.mubr.bf16.gmra.mxu1 %v13437_v51  ;;  %v1968_v9 = vsel %vm1456_vm14, %v926_v48, %v1712_v57  ;;  %v12371_v57 = vld [vmem:[%s17683_s2 + $0xc0] sm:$0xff]  }
 0x168   :  { %v930_v61 = vpop.f32.mrf.mxu0  ;;  %3367 = vmatpush2.bf16.msra.mxu0 %v12371_v57 }
 0x169   :  { %vm1458_vm1 = vcmp.ge.f32.partialorder %v930_v61, 0.0  ;;  %v1714_v62 = vmul.f32 0.01, %v930_v61  ;;  %v1969_v4 = vsel %vm1457_vm13, %v928_v53, %v1713_v58  ;;  %4426 = vmatprep.subr.bf16.mxu0 %v17747_v1 }
 0x16a   :  { %v934_v8 = vpop.f32.mrf.mxu0  ;;  %10955 = vmatmul.mubr.msk.bf16.gmra.mxu0 %vm517_vm0, %v12345_v55  ;;  %v13451_v18 = vpack.c.bf16 %v1969_v4, %v1967_v11 }
 0x16b   :  { %v1970_v10 = vsel %vm1458_vm1, %v930_v61, %v1714_v62  ;;  %1182 = vmatprep.mubr.bf16.mxu0 %v17747_v1  ;;  %v1715_v31 = vmul.f32 0.01, %v934_v8  ;;  %vm1459_vm4 = vcmp.ge.f32.partialorder %v934_v8, 0.0 }
 0x16c   :  { %v13446_v12 = vpack.c.bf16 %v1970_v10, %v1968_v9  ;;  %v936_v13 = vpop.f32.mrf.mxu0  ;;  %17978 = vst [vmem:[#allocation21_spill] sm:$0xff] %v13451_v18 }
 0x16d   :  { %v1716_v27 = vmul.f32 0.01, %v936_v13  ;;  %vm1460_vm3 = vcmp.ge.f32.partialorder %v936_v13, 0.0  ;;  %v1971_v44 = vsel %vm1459_vm4, %v934_v8, %v1715_v31 }
 0x16e   :  { %17977 = vst [vmem:[#allocation20_spill] sm:$0xff] %v13446_v12  ;;  %v938_v22 = vpop.f32.mrf.mxu0  ;;  %2967 = vmatprep.mubr.bf16.mxu1 %v13446_v12 }
 0x16f   :  { %vm1461_vm2 = vcmp.ge.f32.partialorder %v938_v22, 0.0  ;;  %v1717_v28 = vmul.f32 0.01, %v938_v22  ;;  %2968 = vmatmul.mubr.bf16.gmra.mxu1 %v13451_v18  ;;  %v1972_v39 = vsel %vm1460_vm3, %v936_v13, %v1716_v27 }
 0x170   :  { %v940_v35 = vpop.f32.mrf.mxu0 }
 0x171   :  { %vm1462_vm5 = vcmp.ge.f32.partialorder %v940_v35, 0.0  ;;  %v1718_v36 = vmul.f32 0.01, %v940_v35  ;;  %v1973_v37 = vsel %vm1461_vm2, %v938_v22, %v1717_v28 }
 0x172   :  { %v944_v38 = vpop.f32.mrf.mxu0  ;;  %10956 = vmatmul.mubr.msk.bf16.gmra.mxu0 %vm517_vm0, %v12346_v25  ;;  %v13463_v55 = vpack.c.bf16 %v1973_v37, %v1971_v44 }
 0x173   :  { %v1974_v40 = vsel %vm1462_vm5, %v940_v35, %v1718_v36  ;;  %1192 = vmatprep.mubr.bf16.mxu0 %v17747_v1  ;;  %v1719_v4 = vmul.f32 0.01, %v944_v38  ;;  %vm1463_vm8 = vcmp.ge.f32.partialorder %v944_v38, 0.0  ;;  %v12349_v35 = vld [vmem:[%s17682_s0 + $0x170] sm:$0xff]  }
 0x174   :  { %v13461_v48 = vpack.c.bf16 %v1974_v40, %v1972_v39  ;;  %v946_v53 = vpop.f32.mrf.mxu0  ;;  %17980 = vst [vmem:[#allocation23_spill] sm:$0xff] %v13463_v55 }
 0x175   :  { %v1720_v61 = vmul.f32 0.01, %v946_v53  ;;  %vm1464_vm7 = vcmp.ge.f32.partialorder %v946_v53, 0.0  ;;  %v1975_v22 = vsel %vm1463_vm8, %v944_v38, %v1719_v4 }
 0x176   :  { %17979 = vst [vmem:[#allocation22_spill] sm:$0xff] %v13461_v48  ;;  %v948_v58 = vpop.f32.mrf.mxu0  ;;  %2975 = vmatprep.mubr.bf16.mxu1 %v13461_v48 }
 0x177   :  { %vm1465_vm6 = vcmp.ge.f32.partialorder %v948_v58, 0.0  ;;  %v1721_v62 = vmul.f32 0.01, %v948_v58  ;;  %2976 = vmatmul.mubr.bf16.gmra.mxu1 %v13463_v55  ;;  %v1976_v13 = vsel %vm1464_vm7, %v946_v53, %v1720_v61 }
 0x178   :  { %v950_v8 = vpop.f32.mrf.mxu0 }
 0x179   :  { %vm1466_vm9 = vcmp.ge.f32.partialorder %v950_v8, 0.0  ;;  %v1722_v9 = vmul.f32 0.01, %v950_v8  ;;  %v1977_v10 = vsel %vm1465_vm6, %v948_v58, %v1721_v62 }
 0x17a   :  { %v954_v11 = vpop.f32.mrf.mxu0  ;;  %10957 = vmatmul.mubr.msk.bf16.gmra.mxu0 %vm517_vm0, %v12348_v59  ;;  %v13478_v28 = vpack.c.bf16 %v1977_v10, %v1975_v22 }
 0x17b   :  { %v1978_v14 = vsel %vm1466_vm9, %v950_v8, %v1722_v9  ;;  %1202 = vmatprep.mubr.bf16.mxu0 %v17747_v1  ;;  %v1723_v39 = vmul.f32 0.01, %v954_v11  ;;  %vm1467_vm12 = vcmp.ge.f32.partialorder %v954_v11, 0.0  ;;  %v12351_v9 = vld [vmem:[%s17682_s0 + $0x178] sm:$0xff]  }
 0x17c   :  { %v13476_v25 = vpack.c.bf16 %v1978_v14, %v1976_v13  ;;  %v956_v27 = vpop.f32.mrf.mxu0  ;;  %17982 = vst [vmem:[#allocation25_spill] sm:$0xff] %v13478_v28 }
 0x17d   :  { %v1724_v36 = vmul.f32 0.01, %v956_v27  ;;  %vm1468_vm11 = vcmp.ge.f32.partialorder %v956_v27, 0.0  ;;  %v1979_v59 = vsel %vm1467_vm12, %v954_v11, %v1723_v39 }
 0x17e   :  { %17981 = vst [vmem:[#allocation24_spill] sm:$0xff] %v13476_v25  ;;  %v958_v31 = vpop.f32.mrf.mxu0  ;;  %2983 = vmatprep.mubr.bf16.mxu1 %v13476_v25 }
 0x17f   :  { %vm1469_vm10 = vcmp.ge.f32.partialorder %v958_v31, 0.0  ;;  %v1725_v37 = vmul.f32 0.01, %v958_v31  ;;  %2984 = vmatmul.mubr.bf16.gmra.mxu1 %v13478_v28  ;;  %v1980_v57 = vsel %vm1468_vm11, %v956_v27, %v1724_v36 }
 0x180   :  { %v960_v38 = vpop.f32.mrf.mxu0 }
 0x181   :  { %vm1470_vm13 = vcmp.ge.f32.partialorder %v960_v38, 0.0  ;;  %v1726_v40 = vmul.f32 0.01, %v960_v38  ;;  %v1981_v44 = vsel %vm1469_vm10, %v958_v31, %v1725_v37 }
 0x182   :  { %v964_v53 = vpop.f32.mrf.mxu0  ;;  %10958 = vmatmul.mubr.msk.bf16.gmra.mxu0 %vm517_vm0, %v12349_v35  ;;  %v13489_v4 = vpack.c.bf16 %v1981_v44, %v1979_v59 }
 0x183   :  { %v1982_v58 = vsel %vm1470_vm13, %v960_v38, %v1726_v40  ;;  %1212 = vmatprep.mubr.bf16.mxu0 %v17747_v1  ;;  %v1727_v14 = vmul.f32 0.01, %v964_v53  ;;  %vm1471_vm1 = vcmp.ge.f32.partialorder %v964_v53, 0.0  ;;  %v12374_v40 = vld [vmem:[%s17683_s2 + $0x170] sm:$0xff]  }
 0x184   :  { %v13487_v61 = vpack.c.bf16 %v1982_v58, %v1980_v57  ;;  %v966_v62 = vpop.f32.mrf.mxu0  ;;  %17984 = vst [vmem:[#allocation27_spill] sm:$0xff] %v13489_v4  ;;  %v12352_v58 = vld [vmem:[%s17682_s0 + $0x180] sm:$0xff]   ;;  %3900 = vmatpush2.bf16.msra.mxu1 %v12374_v40  ;;  %v12354_v40 = vld [vmem:[%s17682_s0 + $0x188] sm:$0xff]  }
 0x185   :  { %v1728_v10 = vmul.f32 0.01, %v966_v62  ;;  %vm1472_vm15 = vcmp.ge.f32.partialorder %v966_v62, 0.0  ;;  %v1983_v37 = vsel %vm1471_vm1, %v964_v53, %v1727_v14  ;;  %3901 = vmatprep.subr.bf16.mxu1 %v17747_v1 }
 0x186   :  { %17983 = vst [vmem:[#allocation26_spill] sm:$0xff] %v13487_v61  ;;  %v968_v8 = vpop.f32.mrf.mxu0  ;;  %2991 = vmatprep.mubr.bf16.mxu1 %v13487_v61 }
 0x187   :  { %vm1473_vm14 = vcmp.ge.f32.partialorder %v968_v8, 0.0  ;;  %v1729_v13 = vmul.f32 0.01, %v968_v8  ;;  %2992 = vmatmul.mubr.bf16.gmra.mxu1 %v13489_v4  ;;  %v1984_v35 = vsel %vm1472_vm15, %v966_v62, %v1728_v10 }
 0x188   :  { %v970_v11 = vpop.f32.mrf.mxu0 }
 0x189   :  { %vm1474_vm2 = vcmp.ge.f32.partialorder %v970_v11, 0.0  ;;  %v1730_v22 = vmul.f32 0.01, %v970_v11  ;;  %v1985_v27 = vsel %vm1473_vm14, %v968_v8, %v1729_v13 }
 0x18a   :  { %v974_v31 = vpop.f32.mrf.mxu0  ;;  %10959 = vmatmul.mubr.msk.bf16.gmra.mxu0 %vm517_vm0, %v12351_v9  ;;  %v13503_v44 = vpack.c.bf16 %v1985_v27, %v1983_v37 }
 0x18b   :  { %v1986_v36 = vsel %vm1474_vm2, %v970_v11, %v1730_v22  ;;  %1222 = vmatprep.mubr.bf16.mxu0 %v17747_v1  ;;  %v1731_v62 = vmul.f32 0.01, %v974_v31  ;;  %vm1475_vm5 = vcmp.ge.f32.partialorder %v974_v31, 0.0 }
 0x18c   :  { %v13498_v39 = vpack.c.bf16 %v1986_v36, %v1984_v35  ;;  %v976_v38 = vpop.f32.mrf.mxu0  ;;  %17986 = vst [vmem:[#allocation29_spill] sm:$0xff] %v13503_v44 }
 0x18d   :  { %v1732_v59 = vmul.f32 0.01, %v976_v38  ;;  %vm1476_vm4 = vcmp.ge.f32.partialorder %v976_v38, 0.0  ;;  %v1987_v22 = vsel %vm1475_vm5, %v974_v31, %v1731_v62 }
 0x18e   :  { %17985 = vst [vmem:[#allocation28_spill] sm:$0xff] %v13498_v39  ;;  %v978_v57 = vpop.f32.mrf.mxu0  ;;  %2999 = vmatprep.mubr.bf16.mxu1 %v13498_v39 }
 0x18f   :  { %vm1477_vm3 = vcmp.ge.f32.partialorder %v978_v57, 0.0  ;;  %v1733_v53 = vmul.f32 0.01, %v978_v57  ;;  %3000 = vmatmul.mubr.bf16.gmra.mxu1 %v13503_v44  ;;  %v1988_v14 = vsel %vm1476_vm4, %v976_v38, %v1732_v59 }
 0x190   :  { %v980_v8 = vpop.f32.mrf.mxu0 }
 0x191   :  { %vm1478_vm6 = vcmp.ge.f32.partialorder %v980_v8, 0.0  ;;  %v1734_v9 = vmul.f32 0.01, %v980_v8  ;;  %v1989_v10 = vsel %vm1477_vm3, %v978_v57, %v1733_v53 }
 0x192   :  { %v984_v13 = vpop.f32.mrf.mxu0  ;;  %10960 = vmatmul.mubr.msk.bf16.gmra.mxu0 %vm517_vm0, %v12352_v58  ;;  %v13515_v36 = vpack.c.bf16 %v1989_v10, %v1987_v22 }
 0x193   :  { %v1990_v11 = vsel %vm1478_vm6, %v980_v8, %v1734_v9  ;;  %1232 = vmatprep.mubr.bf16.mxu0 %v17747_v1  ;;  %v1735_v38 = vmul.f32 0.01, %v984_v13  ;;  %vm1479_vm9 = vcmp.ge.f32.partialorder %v984_v13, 0.0 }
 0x194   :  { %v13513_v27 = vpack.c.bf16 %v1990_v11, %v1988_v14  ;;  %v986_v35 = vpop.f32.mrf.mxu0  ;;  %17988 = vst [vmem:[#allocation31_spill] sm:$0xff] %v13515_v36 }
 0x195   :  { %v1736_v57 = vmul.f32 0.01, %v986_v35  ;;  %vm1480_vm8 = vcmp.ge.f32.partialorder %v986_v35, 0.0  ;;  %v1991_v10 = vsel %vm1479_vm9, %v984_v13, %v1735_v38 }
 0x196   :  { %17987 = vst [vmem:[#allocation30_spill] sm:$0xff] %v13513_v27  ;;  %v988_v37 = vpop.f32.mrf.mxu0  ;;  %3007 = vmatprep.mubr.bf16.mxu1 %v13513_v27 }
 0x197   :  { %vm1481_vm7 = vcmp.ge.f32.partialorder %v988_v37, 0.0  ;;  %v1737_v58 = vmul.f32 0.01, %v988_v37  ;;  %3008 = vmatmul.mubr.bf16.gmra.mxu1 %v13515_v36  ;;  %v1992_v8 = vsel %vm1480_vm8, %v986_v35, %v1736_v57 }
 0x198   :  { %v990_v31 = vpop.f32.mrf.mxu0 }
 0x199   :  { %vm1482_vm10 = vcmp.ge.f32.partialorder %v990_v31, 0.0  ;;  %v1738_v59 = vmul.f32 0.01, %v990_v31  ;;  %v1993_v53 = vsel %vm1481_vm7, %v988_v37, %v1737_v58  ;;  %v12355_v37 = vld [vmem:[%s17682_s0 + $0x190] sm:$0xff]  }
 0x19a   :  { %v994_v62 = vpop.f32.mrf.mxu0  ;;  %10961 = vmatmul.mubr.msk.bf16.gmra.mxu0 %vm517_vm0, %v12354_v40  ;;  %v13526_v22 = vpack.c.bf16 %v1993_v53, %v1991_v10 }
 0x19b   :  { %v1994_v9 = vsel %vm1482_vm10, %v990_v31, %v1738_v59  ;;  %1242 = vmatprep.mubr.bf16.mxu0 %v17747_v1  ;;  %v1739_v13 = vmul.f32 0.01, %v994_v62  ;;  %vm1483_vm13 = vcmp.ge.f32.partialorder %v994_v62, 0.0 }
 0x19c   :  { %v13524_v14 = vpack.c.bf16 %v1994_v9, %v1992_v8  ;;  %v996_v11 = vpop.f32.mrf.mxu0  ;;  %17990 = vst [vmem:[#allocation33_spill] sm:$0xff] %v13526_v22 }
 0x19d   :  { %v1740_v58 = vmul.f32 0.01, %v996_v11  ;;  %vm1484_vm12 = vcmp.ge.f32.partialorder %v996_v11, 0.0 }
 0x19e   :  { %17989 = vst [vmem:[#allocation32_spill] sm:$0xff] %v13524_v14  ;;  %v998_v36 = vpop.f32.mrf.mxu0  ;;  %3015 = vmatprep.mubr.bf16.mxu1 %v13524_v14 }
 0x19f   :  { %vm1485_vm11 = vcmp.ge.f32.partialorder %v998_v36, 0.0  ;;  %v1741_v40 = vmul.f32 0.01, %v998_v36  ;;  %v13532_v35 = vpop.f32.mrf.mxu1  ;;  %3016 = vmatmul.mubr.bf16.gmra.mxu1 %v13526_v22  ;;  %v1996_v8 = vsel %vm1484_vm12, %v996_v11, %v1740_v58 }
 0x1a0   :  { %17991 = vst [vmem:[#allocation34_spill] sm:$0xff] %v13532_v35  ;;  %v1000_v57 = vpop.f32.mrf.mxu0  ;;  %v1995_v35 = vsel %vm1483_vm13, %v994_v62, %v1739_v13 }
 0x1a1   :  { %vm1486_vm14 = vcmp.ge.f32.partialorder %v1000_v57, 0.0  ;;  %v1742_v38 = vmul.f32 0.01, %v1000_v57  ;;  %v2827_v31 = vpop.f32.mrf.mxu1  ;;  %v1997_v59 = vsel %vm1485_vm11, %v998_v36, %v1741_v40  ;;  %v12357_v36 = vld [vmem:[%s17682_s0 + $0x198] sm:$0xff]  }
 0x1a2   :  { %v1004_v53 = vpop.f32.mrf.mxu0  ;;  %10962 = vmatmul.mubr.msk.bf16.gmra.mxu0 %vm517_vm0, %v12355_v37  ;;  %v13541_v27 = vpack.c.bf16 %v1997_v59, %v1995_v35 }
 0x1a3   :  { %v1998_v9 = vsel %vm1486_vm14, %v1000_v57, %v1742_v38  ;;  %v13536_v10 = vpop.f32.mrf.mxu1  ;;  %1252 = vmatprep.mubr.bf16.mxu0 %v17747_v1  ;;  %v1743_v62 = vmul.f32 0.01, %v1004_v53  ;;  %vm1487_vm2 = vcmp.ge.f32.partialorder %v1004_v53, 0.0 }
 0x1a4   :  { %17992 = vst [vmem:[#allocation35_spill] sm:$0xff] %v13536_v10  ;;  %v13539_v14 = vpack.c.bf16 %v1998_v9, %v1996_v8  ;;  %v1006_v22 = vpop.f32.mrf.mxu0  ;;  %17994 = vst [vmem:[#allocation37_spill] sm:$0xff] %v13541_v27  ;;  %v12377_v10 = vld [vmem:[%s17683_s2 + $0x168] sm:$0xff]  }
 0x1a5   :  { %v2830_v44 = vpop.f32.mrf.mxu1  ;;  %v1744_v11 = vmul.f32 0.01, %v1006_v22  ;;  %vm1488_vm1 = vcmp.ge.f32.partialorder %v1006_v22, 0.0  ;;  %v1999_v8 = vsel %vm1487_vm2, %v1004_v53, %v1743_v62  ;;  %3902 = vmatpush2.bf16.msra.mxu1 %v12377_v10 }
 0x1a6   :  { %17993 = vst [vmem:[#allocation36_spill] sm:$0xff] %v13539_v14  ;;  %v1008_v39 = vpop.f32.mrf.mxu0  ;;  %3023 = vmatprep.mubr.bf16.mxu1 %v13539_v14  ;;  %3903 = vmatprep.subr.bf16.mxu1 %v17747_v1 }
 0x1a7   :  { %vm1489_vm15 = vcmp.ge.f32.partialorder %v1008_v39, 0.0  ;;  %v1745_v37 = vmul.f32 0.01, %v1008_v39  ;;  %v13547_v58 = vpop.f32.mrf.mxu1  ;;  %3024 = vmatmul.mubr.bf16.gmra.mxu1 %v13541_v27  ;;  %v2000_v38 = vsel %vm1488_vm1, %v1006_v22, %v1744_v11  ;;  %v12358_v22 = vld [vmem:[%s17682_s0 + $0x1a0] sm:$0xff]  }
 0x1a8   :  { %17995 = vst [vmem:[#allocation38_spill] sm:$0xff] %v13547_v58  ;;  %v1010_v40 = vpop.f32.mrf.mxu0 }
 0x1a9   :  { %vm1490_vm3 = vcmp.ge.f32.partialorder %v1010_v40, 0.0  ;;  %v1746_v44 = vmul.f32 0.01, %v1010_v40  ;;  %v2835_v35 = vpop.f32.mrf.mxu1  ;;  %v2001_v13 = vsel %vm1489_vm15, %v1008_v39, %v1745_v37 }
 0x1aa   :  { %v1014_v57 = vpop.f32.mrf.mxu0  ;;  %10963 = vmatmul.mubr.msk.bf16.gmra.mxu0 %vm517_vm0, %v12357_v36  ;;  %v13559_v27 = vpack.c.bf16 %v2001_v13, %v1999_v8 }
 0x1ab   :  { %v2002_v31 = vsel %vm1490_vm3, %v1010_v40, %v1746_v44  ;;  %v13551_v59 = vpop.f32.mrf.mxu1  ;;  %1262 = vmatprep.mubr.bf16.mxu0 %v17747_v1  ;;  %v1747_v62 = vmul.f32 0.01, %v1014_v57  ;;  %vm1491_vm6 = vcmp.ge.f32.partialorder %v1014_v57, 0.0 }
 0x1ac   :  { %17996 = vst [vmem:[#allocation39_spill] sm:$0xff] %v13551_v59  ;;  %v13554_v9 = vpack.c.bf16 %v2002_v31, %v2000_v38  ;;  %v1016_v58 = vpop.f32.mrf.mxu0  ;;  %17998 = vst [vmem:[#allocation41_spill] sm:$0xff] %v13559_v27 }
 0x1ad   :  { %v2838_v39 = vpop.f32.mrf.mxu1  ;;  %v1748_v36 = vmul.f32 0.01, %v1016_v58  ;;  %vm1492_vm5 = vcmp.ge.f32.partialorder %v1016_v58, 0.0 }
 0x1ae   :  { %17997 = vst [vmem:[#allocation40_spill] sm:$0xff] %v13554_v9  ;;  %v1018_v37 = vpop.f32.mrf.mxu0  ;;  %3031 = vmatprep.mubr.bf16.mxu1 %v13554_v9  ;;  %v2003_v39 = vsel %vm1491_vm6, %v1014_v57, %v1747_v62 }
 0x1af   :  { %vm1493_vm4 = vcmp.ge.f32.partialorder %v1018_v37, 0.0  ;;  %v1749_v53 = vmul.f32 0.01, %v1018_v37  ;;  %v13565_v11 = vpop.f32.mrf.mxu1  ;;  %3032 = vmatmul.mubr.bf16.gmra.mxu1 %v13559_v27  ;;  %v2004_v10 = vsel %vm1492_vm5, %v1016_v58, %v1748_v36 }
 0x1b0   :  { %17999 = vst [vmem:[#allocation42_spill] sm:$0xff] %v13565_v11  ;;  %v1020_v40 = vpop.f32.mrf.mxu0 }
 0x1b1   :  { %vm1494_vm7 = vcmp.ge.f32.partialorder %v1020_v40, 0.0  ;;  %v1750_v44 = vmul.f32 0.01, %v1020_v40  ;;  %v2843_v35 = vpop.f32.mrf.mxu1  ;;  %v2005_v13 = vsel %vm1493_vm4, %v1018_v37, %v1749_v53  ;;  %v12360_v37 = vld [vmem:[%s17682_s0 + $0x1a8] sm:$0xff]  }
 0x1b2   :  { %v1024_v38 = vpop.f32.mrf.mxu0  ;;  %10964 = vmatmul.mubr.msk.bf16.gmra.mxu0 %vm517_vm0, %v12358_v22  ;;  %v13575_v27 = vpack.c.bf16 %v2005_v13, %v2003_v39 }
 0x1b3   :  { %v2006_v31 = vsel %vm1494_vm7, %v1020_v40, %v1750_v44  ;;  %v13570_v8 = vpop.f32.mrf.mxu1  ;;  %1272 = vmatprep.mubr.bf16.mxu0 %v17747_v1  ;;  %v1751_v57 = vmul.f32 0.01, %v1024_v38  ;;  %vm1495_vm10 = vcmp.ge.f32.partialorder %v1024_v38, 0.0 }
 0x1b4   :  { %18000 = vst [vmem:[#allocation43_spill] sm:$0xff] %v13570_v8  ;;  %v13573_v11 = vpack.c.bf16 %v2006_v31, %v2004_v10  ;;  %v1026_v59 = vpop.f32.mrf.mxu0  ;;  %18002 = vst [vmem:[#allocation45_spill] sm:$0xff] %v13575_v27 }
 0x1b5   :  { %v2846_v9 = vpop.f32.mrf.mxu1  ;;  %v1752_v58 = vmul.f32 0.01, %v1026_v59  ;;  %vm1496_vm9 = vcmp.ge.f32.partialorder %v1026_v59, 0.0  ;;  %v2007_v31 = vsel %vm1495_vm10, %v1024_v38, %v1751_v57 }
 0x1b6   :  { %18001 = vst [vmem:[#allocation44_spill] sm:$0xff] %v13573_v11  ;;  %v1028_v14 = vpop.f32.mrf.mxu0  ;;  %3039 = vmatprep.mubr.bf16.mxu1 %v13573_v11 }
 0x1b7   :  { %vm1497_vm8 = vcmp.ge.f32.partialorder %v1028_v14, 0.0  ;;  %v1753_v22 = vmul.f32 0.01, %v1028_v14  ;;  %v13581_v36 = vpop.f32.mrf.mxu1  ;;  %3040 = vmatmul.mubr.bf16.gmra.mxu1 %v13575_v27  ;;  %v2008_v35 = vsel %vm1496_vm9, %v1026_v59, %v1752_v58 }
 0x1b8   :  { %18003 = vst [vmem:[#allocation46_spill] sm:$0xff] %v13581_v36  ;;  %v1030_v53 = vpop.f32.mrf.mxu0 }
 0x1b9   :  { %vm1498_vm11 = vcmp.ge.f32.partialorder %v1030_v53, 0.0  ;;  %v1754_v9 = vmul.f32 0.01, %v1030_v53  ;;  %v2851_v62 = vpop.f32.mrf.mxu1  ;;  %v2009_v40 = vsel %vm1497_vm8, %v1028_v14, %v1753_v22  ;;  %v12361_v14 = vld [vmem:[%s17682_s0 + $0x1b0] sm:$0xff]  }
 0x1ba   :  { %v1034_v44 = vpop.f32.mrf.mxu0  ;;  %10965 = vmatmul.mubr.msk.bf16.gmra.mxu0 %vm517_vm0, %v12360_v37  ;;  %v13590_v8 = vpack.c.bf16 %v2009_v40, %v2007_v31 }
 0x1bb   :  { %v2010_v13 = vsel %vm1498_vm11, %v1030_v53, %v1754_v9  ;;  %v13585_v10 = vpop.f32.mrf.mxu1  ;;  %1282 = vmatprep.mubr.bf16.mxu0 %v17747_v1  ;;  %v1755_v38 = vmul.f32 0.01, %v1034_v44  ;;  %vm1499_vm14 = vcmp.ge.f32.partialorder %v1034_v44, 0.0 }
 0x1bc   :  { %18004 = vst [vmem:[#allocation47_spill] sm:$0xff] %v13585_v10  ;;  %v13588_v39 = vpack.c.bf16 %v2010_v13, %v2008_v35  ;;  %v1036_v36 = vpop.f32.mrf.mxu0  ;;  %18006 = vst [vmem:[#allocation49_spill] sm:$0xff] %v13590_v8 }
 0x1bd   :  { %v2854_v27 = vpop.f32.mrf.mxu1  ;;  %v1756_v59 = vmul.f32 0.01, %v1036_v36  ;;  %vm1500_vm13 = vcmp.ge.f32.partialorder %v1036_v36, 0.0  ;;  %v2011_v13 = vsel %vm1499_vm14, %v1034_v44, %v1755_v38 }
 0x1be   :  { %18005 = vst [vmem:[#allocation48_spill] sm:$0xff] %v13588_v39  ;;  %v1038_v11 = vpop.f32.mrf.mxu0  ;;  %3047 = vmatprep.mubr.bf16.mxu1 %v13588_v39 }
 0x1bf   :  { %vm1501_vm12 = vcmp.ge.f32.partialorder %v1038_v11, 0.0  ;;  %v1757_v37 = vmul.f32 0.01, %v1038_v11  ;;  %v13596_v58 = vpop.f32.mrf.mxu1  ;;  %3048 = vmatmul.mubr.bf16.gmra.mxu1 %v13590_v8  ;;  %v2012_v62 = vsel %vm1500_vm13, %v1036_v36, %v1756_v59 }
 0x1c0   :  { %18007 = vst [vmem:[#allocation50_spill] sm:$0xff] %v13596_v58  ;;  %v1040_v22 = vpop.f32.mrf.mxu0 }
 0x1c1   :  { %vm1502_vm15 = vcmp.ge.f32.partialorder %v1040_v22, 0.0  ;;  %v1758_v27 = vmul.f32 0.01, %v1040_v22  ;;  %v2859_v57 = vpop.f32.mrf.mxu1  ;;  %v2013_v53 = vsel %vm1501_vm12, %v1038_v11, %v1757_v37  ;;  %v12363_v11 = vld [vmem:[%s17682_s0 + $0x1b8] sm:$0xff]  }
 0x1c2   :  { %v1044_v9 = vpop.f32.mrf.mxu0  ;;  %10966 = vmatmul.mubr.msk.bf16.gmra.mxu0 %vm517_vm0, %v12361_v14  ;;  %v13605_v10 = vpack.c.bf16 %v2013_v53, %v2011_v13 }
 0x1c3   :  { %v2014_v40 = vsel %vm1502_vm15, %v1040_v22, %v1758_v27  ;;  %v13600_v35 = vpop.f32.mrf.mxu1  ;;  %1292 = vmatprep.mubr.bf16.mxu0 %v17747_v1  ;;  %v1759_v44 = vmul.f32 0.01, %v1044_v9  ;;  %vm1503_vm3 = vcmp.ge.f32.partialorder %v1044_v9, 0.0 }
 0x1c4   :  { %18008 = vst [vmem:[#allocation51_spill] sm:$0xff] %v13600_v35  ;;  %v13603_v31 = vpack.c.bf16 %v2014_v40, %v2012_v62  ;;  %v1046_v58 = vpop.f32.mrf.mxu0  ;;  %18010 = vst [vmem:[#allocation53_spill] sm:$0xff] %v13605_v10  ;;  %v12379_v35 = vld [vmem:[%s17683_s2 + $0x160] sm:$0xff]  }
 0x1c5   :  { %v2862_v8 = vpop.f32.mrf.mxu1  ;;  %v1760_v36 = vmul.f32 0.01, %v1046_v58  ;;  %vm1504_vm2 = vcmp.ge.f32.partialorder %v1046_v58, 0.0  ;;  %v2015_v40 = vsel %vm1503_vm3, %v1044_v9, %v1759_v44  ;;  %3904 = vmatpush2.bf16.msra.mxu1 %v12379_v35 }
 0x1c6   :  { %18009 = vst [vmem:[#allocation52_spill] sm:$0xff] %v13603_v31  ;;  %v1048_v39 = vpop.f32.mrf.mxu0  ;;  %3055 = vmatprep.mubr.bf16.mxu1 %v13603_v31  ;;  %3905 = vmatprep.subr.bf16.mxu1 %v17747_v1 }
 0x1c7   :  { %vm1505_vm1 = vcmp.ge.f32.partialorder %v1048_v39, 0.0  ;;  %v1761_v14 = vmul.f32 0.01, %v1048_v39  ;;  %v13611_v59 = vpop.f32.mrf.mxu1  ;;  %3056 = vmatmul.mubr.bf16.gmra.mxu1 %v13605_v10  ;;  %v2016_v57 = vsel %vm1504_vm2, %v1046_v58, %v1760_v36  ;;  %v12364_v58 = vld [vmem:[%s17682_s0 + $0x1c0] sm:$0xff]  }
 0x1c8   :  { %18011 = vst [vmem:[#allocation54_spill] sm:$0xff] %v13611_v59  ;;  %v1050_v37 = vpop.f32.mrf.mxu0 }
 0x1c9   :  { %vm1506_vm4 = vcmp.ge.f32.partialorder %v1050_v37, 0.0  ;;  %v1762_v8 = vmul.f32 0.01, %v1050_v37  ;;  %v2867_v38 = vpop.f32.mrf.mxu1  ;;  %v2017_v22 = vsel %vm1505_vm1, %v1048_v39, %v1761_v14 }
 0x1ca   :  { %v1054_v27 = vpop.f32.mrf.mxu0  ;;  %10967 = vmatmul.mubr.msk.bf16.gmra.mxu0 %vm517_vm0, %v12363_v11  ;;  %v13623_v10 = vpack.c.bf16 %v2017_v22, %v2015_v40 }
 0x1cb   :  { %v2018_v53 = vsel %vm1506_vm4, %v1050_v37, %v1762_v8  ;;  %v13615_v62 = vpop.f32.mrf.mxu1  ;;  %1302 = vmatprep.mubr.bf16.mxu0 %v17747_v1  ;;  %v1763_v44 = vmul.f32 0.01, %v1054_v27  ;;  %vm1507_vm7 = vcmp.ge.f32.partialorder %v1054_v27, 0.0 }
 0x1cc   :  { %18012 = vst [vmem:[#allocation55_spill] sm:$0xff] %v13615_v62  ;;  %v13618_v13 = vpack.c.bf16 %v2018_v53, %v2016_v57  ;;  %v1056_v59 = vpop.f32.mrf.mxu0  ;;  %18014 = vst [vmem:[#allocation57_spill] sm:$0xff] %v13623_v10 }
 0x1cd   :  { %v2870_v39 = vpop.f32.mrf.mxu1  ;;  %v1764_v11 = vmul.f32 0.01, %v1056_v59  ;;  %vm1508_vm6 = vcmp.ge.f32.partialorder %v1056_v59, 0.0 }
 0x1ce   :  { %18013 = vst [vmem:[#allocation56_spill] sm:$0xff] %v13618_v13  ;;  %v1058_v14 = vpop.f32.mrf.mxu0  ;;  %3063 = vmatprep.mubr.bf16.mxu1 %v13618_v13  ;;  %v2019_v39 = vsel %vm1507_vm7, %v1054_v27, %v1763_v44 }
 0x1cf   :  { %vm1509_vm5 = vcmp.ge.f32.partialorder %v1058_v14, 0.0  ;;  %v1765_v9 = vmul.f32 0.01, %v1058_v14  ;;  %v13629_v36 = vpop.f32.mrf.mxu1  ;;  %3064 = vmatmul.mubr.bf16.gmra.mxu1 %v13623_v10  ;;  %v2020_v35 = vsel %vm1508_vm6, %v1056_v59, %v1764_v11 }
 0x1d0   :  { %18015 = vst [vmem:[#allocation58_spill] sm:$0xff] %v13629_v36  ;;  %v1060_v37 = vpop.f32.mrf.mxu0 }
 0x1d1   :  { %vm1510_vm8 = vcmp.ge.f32.partialorder %v1060_v37, 0.0  ;;  %v1766_v8 = vmul.f32 0.01, %v1060_v37  ;;  %v2875_v38 = vpop.f32.mrf.mxu1  ;;  %v2021_v22 = vsel %vm1509_vm5, %v1058_v14, %v1765_v9  ;;  %v12366_v14 = vld [vmem:[%s17682_s0 + $0x1c8] sm:$0xff]  }
 0x1d2   :  { %v1064_v57 = vpop.f32.mrf.mxu0  ;;  %10968 = vmatmul.mubr.msk.bf16.gmra.mxu0 %vm517_vm0, %v12364_v58  ;;  %v13639_v10 = vpack.c.bf16 %v2021_v22, %v2019_v39 }
 0x1d3   :  { %v2022_v53 = vsel %vm1510_vm8, %v1060_v37, %v1766_v8  ;;  %v13634_v40 = vpop.f32.mrf.mxu1  ;;  %1312 = vmatprep.mubr.bf16.mxu0 %v17747_v1  ;;  %v1767_v27 = vmul.f32 0.01, %v1064_v57  ;;  %vm1511_vm11 = vcmp.ge.f32.partialorder %v1064_v57, 0.0 }
 0x1d4   :  { %18016 = vst [vmem:[#allocation59_spill] sm:$0xff] %v13634_v40  ;;  %v13637_v36 = vpack.c.bf16 %v2022_v53, %v2020_v35  ;;  %v1066_v62 = vpop.f32.mrf.mxu0  ;;  %18018 = vst [vmem:[#allocation61_spill] sm:$0xff] %v13639_v10 }
 0x1d5   :  { %v2878_v13 = vpop.f32.mrf.mxu1  ;;  %v1768_v59 = vmul.f32 0.01, %v1066_v62  ;;  %vm1512_vm10 = vcmp.ge.f32.partialorder %v1066_v62, 0.0  ;;  %v2023_v53 = vsel %vm1511_vm11, %v1064_v57, %v1767_v27 }
 0x1d6   :  { %18017 = vst [vmem:[#allocation60_spill] sm:$0xff] %v13637_v36  ;;  %v1068_v31 = vpop.f32.mrf.mxu0  ;;  %3071 = vmatprep.mubr.bf16.mxu1 %v13637_v36 }
 0x1d7   :  { %vm1513_vm9 = vcmp.ge.f32.partialorder %v1068_v31, 0.0  ;;  %v1769_v58 = vmul.f32 0.01, %v1068_v31  ;;  %v13645_v11 = vpop.f32.mrf.mxu1  ;;  %3072 = vmatmul.mubr.bf16.gmra.mxu1 %v13639_v10  ;;  %v2024_v38 = vsel %vm1512_vm10, %v1066_v62, %v1768_v59 }
 0x1d8   :  { %18019 = vst [vmem:[#allocation62_spill] sm:$0xff] %v13645_v11  ;;  %v1070_v9 = vpop.f32.mrf.mxu0 }
 0x1d9   :  { %vm1514_vm12 = vcmp.ge.f32.partialorder %v1070_v9, 0.0  ;;  %v1770_v13 = vmul.f32 0.01, %v1070_v9  ;;  %v2883_v44 = vpop.f32.mrf.mxu1  ;;  %v2025_v37 = vsel %vm1513_vm9, %v1068_v31, %v1769_v58  ;;  %v12367_v31 = vld [vmem:[%s17682_s0 + $0x1d0] sm:$0xff]  }
 0x1da   :  { %v1074_v8 = vpop.f32.mrf.mxu0  ;;  %10969 = vmatmul.mubr.msk.bf16.gmra.mxu0 %vm517_vm0, %v12366_v14  ;;  %v13654_v40 = vpack.c.bf16 %v2025_v37, %v2023_v53 }
 0x1db   :  { %v2026_v22 = vsel %vm1514_vm12, %v1070_v9, %v1770_v13  ;;  %v13649_v35 = vpop.f32.mrf.mxu1  ;;  %1322 = vmatprep.mubr.bf16.mxu0 %v17747_v1  ;;  %v1771_v57 = vmul.f32 0.01, %v1074_v8  ;;  %vm1515_vm15 = vcmp.ge.f32.partialorder %v1074_v8, 0.0 }
 0x1dc   :  { %18020 = vst [vmem:[#allocation63_spill] sm:$0xff] %v13649_v35  ;;  %v13652_v39 = vpack.c.bf16 %v2026_v22, %v2024_v38  ;;  %v1076_v11 = vpop.f32.mrf.mxu0  ;;  %18022 = vst [vmem:[#allocation65_spill] sm:$0xff] %v13654_v40 }
 0x1dd   :  { %v2886_v10 = vpop.f32.mrf.mxu1  ;;  %v1772_v62 = vmul.f32 0.01, %v1076_v11  ;;  %vm1516_vm14 = vcmp.ge.f32.partialorder %v1076_v11, 0.0  ;;  %v2027_v22 = vsel %vm1515_vm15, %v1074_v8, %v1771_v57 }
 0x1de   :  { %18021 = vst [vmem:[#allocation64_spill] sm:$0xff] %v13652_v39  ;;  %v1078_v36 = vpop.f32.mrf.mxu0  ;;  %3079 = vmatprep.mubr.bf16.mxu1 %v13652_v39 }
 0x1df   :  { %vm1517_vm13 = vcmp.ge.f32.partialorder %v1078_v36, 0.0  ;;  %v1773_v14 = vmul.f32 0.01, %v1078_v36  ;;  %v13660_v59 = vpop.f32.mrf.mxu1  ;;  %3080 = vmatmul.mubr.bf16.gmra.mxu1 %v13654_v40  ;;  %v2028_v44 = vsel %vm1516_vm14, %v1076_v11, %v1772_v62 }
 0x1e0   :  { %18023 = vst [vmem:[#allocation66_spill] sm:$0xff] %v13660_v59  ;;  %v1080_v58 = vpop.f32.mrf.mxu0 }
 0x1e1   :  { %vm1518_vm1 = vcmp.ge.f32.partialorder %v1080_v58, 0.0  ;;  %v1774_v10 = vmul.f32 0.01, %v1080_v58  ;;  %v2891_v27 = vpop.f32.mrf.mxu1  ;;  %v2029_v9 = vsel %vm1517_vm13, %v1078_v36, %v1773_v14  ;;  %v12369_v36 = vld [vmem:[%s17682_s0 + $0x1d8] sm:$0xff]  }
 0x1e2   :  { %v1084_v13 = vpop.f32.mrf.mxu0  ;;  %10970 = vmatmul.mubr.msk.bf16.gmra.mxu0 %vm517_vm0, %v12367_v31  ;;  %v13669_v35 = vpack.c.bf16 %v2029_v9, %v2027_v22 }
 0x1e3   :  { %v2030_v37 = vsel %vm1518_vm1, %v1080_v58, %v1774_v10  ;;  %v13664_v38 = vpop.f32.mrf.mxu1  ;;  %1332 = vmatprep.mubr.bf16.mxu0 %v17747_v1  ;;  %v1775_v8 = vmul.f32 0.01, %v1084_v13  ;;  %vm1519_vm4 = vcmp.ge.f32.partialorder %v1084_v13, 0.0 }
 0x1e4   :  { %18024 = vst [vmem:[#allocation67_spill] sm:$0xff] %v13664_v38  ;;  %v13667_v53 = vpack.c.bf16 %v2030_v37, %v2028_v44  ;;  %v1086_v59 = vpop.f32.mrf.mxu0  ;;  %18026 = vst [vmem:[#allocation69_spill] sm:$0xff] %v13669_v35  ;;  %v12381_v38 = vld [vmem:[%s17683_s2 + $0x158] sm:$0xff]  }
 0x1e5   :  { %v2894_v40 = vpop.f32.mrf.mxu1  ;;  %v1776_v11 = vmul.f32 0.01, %v1086_v59  ;;  %vm1520_vm3 = vcmp.ge.f32.partialorder %v1086_v59, 0.0  ;;  %v2031_v37 = vsel %vm1519_vm4, %v1084_v13, %v1775_v8  ;;  %3906 = vmatpush2.bf16.msra.mxu1 %v12381_v38 }
 0x1e6   :  { %18025 = vst [vmem:[#allocation68_spill] sm:$0xff] %v13667_v53  ;;  %v1088_v39 = vpop.f32.mrf.mxu0  ;;  %3087 = vmatprep.mubr.bf16.mxu1 %v13667_v53  ;;  %3907 = vmatprep.subr.bf16.mxu1 %v17747_v1 }
 0x1e7   :  { %vm1521_vm2 = vcmp.ge.f32.partialorder %v1088_v39, 0.0  ;;  %v1777_v31 = vmul.f32 0.01, %v1088_v39  ;;  %v13675_v62 = vpop.f32.mrf.mxu1  ;;  %3088 = vmatmul.mubr.bf16.gmra.mxu1 %v13669_v35  ;;  %v2032_v27 = vsel %vm1520_vm3, %v1086_v59, %v1776_v11  ;;  %v12370_v59 = vld [vmem:[%s17682_s0 + $0x1e0] sm:$0xff]  }
 0x1e8   :  { %18027 = vst [vmem:[#allocation70_spill] sm:$0xff] %v13675_v62  ;;  %v1090_v14 = vpop.f32.mrf.mxu0 }
 0x1e9   :  { %vm1522_vm5 = vcmp.ge.f32.partialorder %v1090_v14, 0.0  ;;  %v1778_v40 = vmul.f32 0.01, %v1090_v14  ;;  %v2899_v57 = vpop.f32.mrf.mxu1  ;;  %v2033_v58 = vsel %vm1521_vm2, %v1088_v39, %v1777_v31 }
 0x1ea   :  { %v1094_v10 = vpop.f32.mrf.mxu0  ;;  %10971 = vmatmul.mubr.msk.bf16.gmra.mxu0 %vm517_vm0, %v12369_v36  ;;  %v13687_v35 = vpack.c.bf16 %v2033_v58, %v2031_v37 }
 0x1eb   :  { %v2034_v9 = vsel %vm1522_vm5, %v1090_v14, %v1778_v40  ;;  %v13679_v44 = vpop.f32.mrf.mxu1  ;;  %1342 = vmatprep.mubr.bf16.mxu0 %v17747_v1  ;;  %v1779_v8 = vmul.f32 0.01, %v1094_v10  ;;  %vm1523_vm8 = vcmp.ge.f32.partialorder %v1094_v10, 0.0 }
 0x1ec   :  { %18028 = vst [vmem:[#allocation71_spill] sm:$0xff] %v13679_v44  ;;  %v13682_v22 = vpack.c.bf16 %v2034_v9, %v2032_v27  ;;  %v1096_v62 = vpop.f32.mrf.mxu0  ;;  %18030 = vst [vmem:[#allocation73_spill] sm:$0xff] %v13687_v35 }
 0x1ed   :  { %v2902_v39 = vpop.f32.mrf.mxu1  ;;  %v1780_v36 = vmul.f32 0.01, %v1096_v62  ;;  %vm1524_vm7 = vcmp.ge.f32.partialorder %v1096_v62, 0.0 }
 0x1ee   :  { %18029 = vst [vmem:[#allocation72_spill] sm:$0xff] %v13682_v22  ;;  %v1098_v31 = vpop.f32.mrf.mxu0  ;;  %3095 = vmatprep.mubr.bf16.mxu1 %v13682_v22  ;;  %v2035_v39 = vsel %vm1523_vm8, %v1094_v10, %v1779_v8 }
 0x1ef   :  { %vm1525_vm6 = vcmp.ge.f32.partialorder %v1098_v31, 0.0  ;;  %v1781_v13 = vmul.f32 0.01, %v1098_v31  ;;  %v13693_v11 = vpop.f32.mrf.mxu1  ;;  %3096 = vmatmul.mubr.bf16.gmra.mxu1 %v13687_v35  ;;  %v2036_v38 = vsel %vm1524_vm7, %v1096_v62, %v1780_v36 }
 0x1f0   :  { %18031 = vst [vmem:[#allocation74_spill] sm:$0xff] %v13693_v11  ;;  %v1100_v14 = vpop.f32.mrf.mxu0 }
 0x1f1   :  { %vm1526_vm9 = vcmp.ge.f32.partialorder %v1100_v14, 0.0  ;;  %v1782_v40 = vmul.f32 0.01, %v1100_v14  ;;  %v2907_v57 = vpop.f32.mrf.mxu1  ;;  %v2037_v58 = vsel %vm1525_vm6, %v1098_v31, %v1781_v13  ;;  %v12372_v31 = vld [vmem:[%s17682_s0 + $0x1e8] sm:$0xff]  }
 0x1f2   :  { %v1104_v27 = vpop.f32.mrf.mxu0  ;;  %10972 = vmatmul.mubr.msk.bf16.gmra.mxu0 %vm517_vm0, %v12370_v59  ;;  %v13703_v35 = vpack.c.bf16 %v2037_v58, %v2035_v39 }
 0x1f3   :  { %v2038_v9 = vsel %vm1526_vm9, %v1100_v14, %v1782_v40  ;;  %v13698_v37 = vpop.f32.mrf.mxu1  ;;  %1352 = vmatprep.mubr.bf16.mxu0 %v17747_v1  ;;  %v1783_v10 = vmul.f32 0.01, %v1104_v27  ;;  %vm1527_vm12 = vcmp.ge.f32.partialorder %v1104_v27, 0.0 }
 0x1f4   :  { %18032 = vst [vmem:[#allocation75_spill] sm:$0xff] %v13698_v37  ;;  %v13701_v11 = vpack.c.bf16 %v2038_v9, %v2036_v38  ;;  %v1106_v44 = vpop.f32.mrf.mxu0  ;;  %18034 = vst [vmem:[#allocation77_spill] sm:$0xff] %v13703_v35 }
 0x1f5   :  { %v2910_v22 = vpop.f32.mrf.mxu1  ;;  %v1784_v62 = vmul.f32 0.01, %v1106_v44  ;;  %vm1528_vm11 = vcmp.ge.f32.partialorder %v1106_v44, 0.0  ;;  %v2039_v9 = vsel %vm1527_vm12, %v1104_v27, %v1783_v10 }
 0x1f6   :  { %18033 = vst [vmem:[#allocation76_spill] sm:$0xff] %v13701_v11  ;;  %v1108_v53 = vpop.f32.mrf.mxu0  ;;  %3103 = vmatprep.mubr.bf16.mxu1 %v13701_v11 }
 0x1f7   :  { %vm1529_vm10 = vcmp.ge.f32.partialorder %v1108_v53, 0.0  ;;  %v1785_v59 = vmul.f32 0.01, %v1108_v53  ;;  %v13709_v36 = vpop.f32.mrf.mxu1  ;;  %3104 = vmatmul.mubr.bf16.gmra.mxu1 %v13703_v35  ;;  %v2040_v57 = vsel %vm1528_vm11, %v1106_v44, %v1784_v62 }
 0x1f8   :  { %18035 = vst [vmem:[#allocation78_spill] sm:$0xff] %v13709_v36  ;;  %v1110_v13 = vpop.f32.mrf.mxu0 }
 0x1f9   :  { %vm1530_vm13 = vcmp.ge.f32.partialorder %v1110_v13, 0.0  ;;  %v1786_v22 = vmul.f32 0.01, %v1110_v13  ;;  %v2915_v8 = vpop.f32.mrf.mxu1  ;;  %v2041_v14 = vsel %vm1529_vm10, %v1108_v53, %v1785_v59  ;;  %v12373_v53 = vld [vmem:[%s17682_s0 + $0x1f0] sm:$0xff]  }
 0x1fa   :  { %v1114_v40 = vpop.f32.mrf.mxu0  ;;  %10973 = vmatmul.mubr.msk.bf16.gmra.mxu0 %vm517_vm0, %v12372_v31  ;;  %v13718_v37 = vpack.c.bf16 %v2041_v14, %v2039_v9 }
 0x1fb   :  { %v2042_v58 = vsel %vm1530_vm13, %v1110_v13, %v1786_v22  ;;  %v13713_v38 = vpop.f32.mrf.mxu1  ;;  %1362 = vmatprep.mubr.bf16.mxu0 %v17747_v1  ;;  %v1787_v27 = vmul.f32 0.01, %v1114_v40  ;;  %vm1531_vm1 = vcmp.ge.f32.partialorder %v1114_v40, 0.0 }
 0x1fc   :  { %18036 = vst [vmem:[#allocation79_spill] sm:$0xff] %v13713_v38  ;;  %v13716_v39 = vpack.c.bf16 %v2042_v58, %v2040_v57  ;;  %v1116_v36 = vpop.f32.mrf.mxu0  ;;  %18038 = vst [vmem:[#allocation81_spill] sm:$0xff] %v13718_v37 }
 0x1fd   :  { %v2918_v35 = vpop.f32.mrf.mxu1  ;;  %v1788_v44 = vmul.f32 0.01, %v1116_v36  ;;  %vm1532_vm15 = vcmp.ge.f32.partialorder %v1116_v36, 0.0  ;;  %v2043_v58 = vsel %vm1531_vm1, %v1114_v40, %v1787_v27 }
 0x1fe   :  { %18037 = vst [vmem:[#allocation80_spill] sm:$0xff] %v13716_v39  ;;  %v1118_v11 = vpop.f32.mrf.mxu0  ;;  %3111 = vmatprep.mubr.bf16.mxu1 %v13716_v39 }
 0x1ff   :  { %vm1533_vm14 = vcmp.ge.f32.partialorder %v1118_v11, 0.0  ;;  %v1789_v31 = vmul.f32 0.01, %v1118_v11  ;;  %v13724_v62 = vpop.f32.mrf.mxu1  ;;  %3112 = vmatmul.mubr.bf16.gmra.mxu1 %v13718_v37  ;;  %v2044_v8 = vsel %vm1532_vm15, %v1116_v36, %v1788_v44 }
 0x200   :  { %18039 = vst [vmem:[#allocation82_spill] sm:$0xff] %v13724_v62  ;;  %v1120_v59 = vpop.f32.mrf.mxu0 }
 0x201   :  { %vm1534_vm2 = vcmp.ge.f32.partialorder %v1120_v59, 0.0  ;;  %v1790_v35 = vmul.f32 0.01, %v1120_v59  ;;  %v2923_v10 = vpop.f32.mrf.mxu1  ;;  %v2045_v13 = vsel %vm1533_vm14, %v1118_v11, %v1789_v31  ;;  %v12375_v11 = vld [vmem:[%s17682_s0 + $0x1f8] sm:$0xff]  }
 0x202   :  { %v1124_v22 = vpop.f32.mrf.mxu0  ;;  %10974 = vmatmul.mubr.msk.bf16.gmra.mxu0 %vm517_vm0, %v12373_v53  ;;  %v13733_v38 = vpack.c.bf16 %v2045_v13, %v2043_v58 }
 0x203   :  { %v2046_v14 = vsel %vm1534_vm2, %v1120_v59, %v1790_v35  ;;  %v13728_v57 = vpop.f32.mrf.mxu1  ;;  %1372 = vmatprep.mubr.bf16.mxu0 %v17747_v1  ;;  %v1791_v40 = vmul.f32 0.01, %v1124_v22  ;;  %vm1535_vm5 = vcmp.ge.f32.partialorder %v1124_v22, 0.0 }
 0x204   :  { %18040 = vst [vmem:[#allocation83_spill] sm:$0xff] %v13728_v57  ;;  %v13731_v9 = vpack.c.bf16 %v2046_v14, %v2044_v8  ;;  %v1126_v62 = vpop.f32.mrf.mxu0  ;;  %18042 = vst [vmem:[#allocation85_spill] sm:$0xff] %v13733_v38 }
 0x205   :  { %v2926_v37 = vpop.f32.mrf.mxu1  ;;  %v1792_v36 = vmul.f32 0.01, %v1126_v62  ;;  %vm1536_vm4 = vcmp.ge.f32.partialorder %v1126_v62, 0.0  ;;  %v2047_v14 = vsel %vm1535_vm5, %v1124_v22, %v1791_v40  ;;  %v18048_v22 = vmov 0  }
 0x206   :  { %18041 = vst [vmem:[#allocation84_spill] sm:$0xff] %v13731_v9  ;;  %v1128_v39 = vpop.f32.mrf.mxu0  ;;  %3119 = vmatprep.mubr.bf16.mxu1 %v13731_v9 }
 0x207   :  { %vm1537_vm3 = vcmp.ge.f32.partialorder %v1128_v39, 0.0  ;;  %v1793_v53 = vmul.f32 0.01, %v1128_v39  ;;  %v13739_v44 = vpop.f32.mrf.mxu1  ;;  %3120 = vmatmul.mubr.bf16.gmra.mxu1 %v13733_v38  ;;  %v2048_v10 = vsel %vm1536_vm4, %v1126_v62, %v1792_v36 }
 0x208   :  { %18043 = vst [vmem:[#allocation86_spill] sm:$0xff] %v13739_v44  ;;  %v1130_v31 = vpop.f32.mrf.mxu0  ;;  %v12383_v44 = vld [vmem:[%s17683_s2 + $0x150] sm:$0xff]  }
 0x209   :  { %vm1538_vm6 = vcmp.ge.f32.partialorder %v1130_v31, 0.0  ;;  %v1794_v37 = vmul.f32 0.01, %v1130_v31  ;;  %v2931_v27 = vpop.f32.mrf.mxu1  ;;  %v2049_v59 = vsel %vm1537_vm3, %v1128_v39, %v1793_v53  ;;  %3908 = vmatpush2.bf16.msra.mxu1 %v12383_v44 }
 0x20a   :  { %v1134_v35 = vpop.f32.mrf.mxu0  ;;  %10975 = vmatmul.mubr.msk.bf16.gmra.mxu0 %vm517_vm0, %v12375_v11  ;;  %v13751_v57 = vpack.c.bf16 %v2049_v59, %v2047_v14  ;;  %3909 = vmatprep.subr.bf16.mxu1 %v18048_v22 }
 0x20b   :  { %v2050_v13 = vsel %vm1538_vm6, %v1130_v31, %v1794_v37  ;;  %v13743_v8 = vpop.f32.mrf.mxu1  ;;  %3368 = vmatprep.mubr.bf16.mxu0 %v13218_v30  ;;  %v12376_v30 = vld [vmem:[%s17683_s2 + $0x1b8] sm:$0xff]   ;;  %v1795_v40 = vmul.f32 0.01, %v1134_v35  ;;  %vm1539_vm8 = vcmp.ge.f32.partialorder %v1134_v35, 0.0 }
 0x20c   :  { %18044 = vst [vmem:[#allocation87_spill] sm:$0xff] %v13743_v8  ;;  %v13746_v58 = vpack.c.bf16 %v2050_v13, %v2048_v10  ;;  %v1136_v1 = vpop.f32.mrf.mxu0  ;;  %18046 = vst [vmem:[#allocation89_spill] sm:$0xff] %v13751_v57 }
 0x20d   :  { %v2934_v39 = vpop.f32.mrf.mxu1  ;;  %v1796_v62 = vmul.f32 0.01, %v1136_v1  ;;  %vm1540_vm7 = vcmp.ge.f32.partialorder %v1136_v1, 0.0 }
 0x20e   :  { %18045 = vst [vmem:[#allocation88_spill] sm:$0xff] %v13746_v58  ;;  %v1138_v53 = vpop.f32.mrf.mxu0  ;;  %3127 = vmatprep.mubr.bf16.mxu1 %v13746_v58  ;;  %v12378_v39 = vld [vmem:[%s17683_s2 + $0x1b0] sm:$0xff]  }
 0x20f   :  { %vm1541_vm0 = vcmp.ge.f32.partialorder %v1138_v53, 0.0  ;;  %v1797_v11 = vmul.f32 0.01, %v1138_v53  ;;  %v13754_v36 = vpop.f32.mrf.mxu1  ;;  %3128 = vmatmul.mubr.bf16.gmra.mxu1 %v13751_v57  ;;  %v2052_v10 = vsel %vm1540_vm7, %v1136_v1, %v1796_v62 }
 0x210   :  { %18047 = vst [vmem:[#allocation90_spill] sm:$0xff] %v13754_v36  ;;  %v1140_v31 = vpop.f32.mrf.mxu0  ;;  %v2051_v36 = vsel %vm1539_vm8, %v1134_v35, %v1795_v40  ;;  %v12380_v35 = vld [vmem:[%s17683_s2 + $0x1a8] sm:$0xff]  }
 0x211   :  { %vm1542_vm9 = vcmp.ge.f32.partialorder %v1140_v31, 0.0  ;;  %v1798_v37 = vmul.f32 0.01, %v1140_v31  ;;  %v2939_v44 = vpop.f32.mrf.mxu1  ;;  %v2053_v27 = vsel %vm1541_vm0, %v1138_v53, %v1797_v11 }
 0x212   :  { %v1144_v59 = vpop.f32.mrf.mxu0  ;;  %3369 = vmatmul.mubr.bf16.vlgmr.msra.gmra.mxu0 %v13223_v32  ;;  %v13771_v53 = vpack.c.bf16 %v2053_v27, %v2051_v36 }
 0x213   :  { %v2054_v13 = vsel %vm1542_vm9, %v1140_v31, %v1798_v37  ;;  %v13762_v14 = vpop.f32.mrf.mxu1  ;;  %3376 = vmatprep.mubr.bf16.mxu0 %v13237_v47  ;;  %4427 = vmatpush1.bf16.msra.mxu0 %v12376_v30  ;;  %v1799_v30 = vmul.f32 0.01, %v1144_v59  ;;  %vm1543_vm12 = vcmp.ge.f32.partialorder %v1144_v59, 0.0 }
 0x214   :  { %18049 = vst [vmem:[#allocation91_spill] sm:$0xff] %v13762_v14  ;;  %v13768_v8 = vpack.c.bf16 %v2054_v13, %v2052_v10  ;;  %v1146_v57 = vpop.f32.mrf.mxu0  ;;  %4428 = vmatprep.subr.bf16.mxu0 %v18048_v22  ;;  %18051 = vst [vmem:[#allocation93_spill] sm:$0xff] %v13771_v53 }
 0x215   :  { %v2942_v32 = vpop.f32.mrf.mxu1  ;;  %v1800_v62 = vmul.f32 0.01, %v1146_v57  ;;  %vm1544_vm11 = vcmp.ge.f32.partialorder %v1146_v57, 0.0 }
 0x216   :  { %18050 = vst [vmem:[#allocation92_spill] sm:$0xff] %v13768_v8  ;;  %v1148_v1 = vpop.f32.mrf.mxu0  ;;  %3135 = vmatprep.mubr.bf16.mxu1 %v13768_v8  ;;  %v2055_v32 = vsel %vm1543_vm12, %v1144_v59, %v1799_v30  ;;  %v12384_v59 = vld [vmem:[%s17683_s2 + $0x198] sm:$0xff]  }
 0x217   :  { %vm1545_vm10 = vcmp.ge.f32.partialorder %v1148_v1, 0.0  ;;  %v1801_v47 = vmul.f32 0.01, %v1148_v1  ;;  %v13774_v11 = vpop.f32.mrf.mxu1  ;;  %3136 = vmatmul.mubr.bf16.gmra.mxu1 %v13771_v53  ;;  %4429 = vmatpush1.bf16.msra.mxu0 %v12378_v39  ;;  %v2056_v27 = vsel %vm1544_vm11, %v1146_v57, %v1800_v62  ;;  %v12382_v39 = vld [vmem:[%s17683_s2 + $0x1a0] sm:$0xff]  }
 0x218   :  { %18052 = vst [vmem:[#allocation94_spill] sm:$0xff] %v13774_v11  ;;  %v1150_v36 = vpop.f32.mrf.mxu0  ;;  %4430 = vmatprep.subr.bf16.mxu0 %v18048_v22 }
 0x219   :  { %vm1546_vm13 = vcmp.ge.f32.partialorder %v1150_v36, 0.0  ;;  %v1802_v40 = vmul.f32 0.01, %v1150_v36  ;;  %v2947_v31 = vpop.f32.mrf.mxu1  ;;  %v2057_v37 = vsel %vm1545_vm10, %v1148_v1, %v1801_v47 }
 0x21a   :  { %v1154_v44 = vpop.f32.mrf.mxu0  ;;  %3377 = vmatmul.mubr.bf16.gmra.mxu0 %v13242_v49  ;;  %v13791_v1 = vpack.c.bf16 %v2057_v37, %v2055_v32 }
 0x21b   :  { %v2058_v10 = vsel %vm1546_vm13, %v1150_v36, %v1802_v40  ;;  %v13782_v13 = vpop.f32.mrf.mxu1  ;;  %3384 = vmatprep.mubr.bf16.mxu0 %v13253_v63  ;;  %4431 = vmatpush1.bf16.msra.mxu0 %v12380_v35  ;;  %v1803_v35 = vmul.f32 0.01, %v1154_v44  ;;  %vm1547_vm1 = vcmp.ge.f32.partialorder %v1154_v44, 0.0 }
 0x21c   :  { %18053 = vst [vmem:[#allocation95_spill] sm:$0xff] %v13782_v13  ;;  %v13788_v11 = vpack.c.bf16 %v2058_v10, %v2056_v27  ;;  %v1156_v14 = vpop.f32.mrf.mxu0  ;;  %4432 = vmatprep.subr.bf16.mxu0 %v18048_v22  ;;  %18055 = vst [vmem:[#allocation97_spill] sm:$0xff] %v13791_v1 }
 0x21d   :  { %v2950_v49 = vpop.f32.mrf.mxu1  ;;  %v1804_v62 = vmul.f32 0.01, %v1156_v14  ;;  %vm1548_vm15 = vcmp.ge.f32.partialorder %v1156_v14, 0.0  ;;  %v2059_v32 = vsel %vm1547_vm1, %v1154_v44, %v1803_v35 }
 0x21e   :  { %18054 = vst [vmem:[#allocation96_spill] sm:$0xff] %v13788_v11  ;;  %v1158_v57 = vpop.f32.mrf.mxu0  ;;  %3143 = vmatprep.mubr.bf16.mxu1 %v13788_v11 }
 0x21f   :  { %vm1549_vm14 = vcmp.ge.f32.partialorder %v1158_v57, 0.0  ;;  %v1805_v63 = vmul.f32 0.01, %v1158_v57  ;;  %v13794_v47 = vpop.f32.mrf.mxu1  ;;  %3144 = vmatmul.mubr.bf16.gmra.mxu1 %v13791_v1  ;;  %4433 = vmatpush1.bf16.msra.mxu0 %v12382_v39  ;;  %v2060_v27 = vsel %vm1548_vm15, %v1156_v14, %v1804_v62 }
 0x220   :  { %18056 = vst [vmem:[#allocation98_spill] sm:$0xff] %v13794_v47  ;;  %v1160_v30 = vpop.f32.mrf.mxu0  ;;  %4434 = vmatprep.subr.bf16.mxu0 %v18048_v22 }
 0x221   :  { %vm1550_vm2 = vcmp.ge.f32.partialorder %v1160_v30, 0.0  ;;  %v1806_v36 = vmul.f32 0.01, %v1160_v30  ;;  %v2955_v40 = vpop.f32.mrf.mxu1  ;;  %v2061_v31 = vsel %vm1549_vm14, %v1158_v57, %v1805_v63 }
 0x222   :  { %v1164_v37 = vpop.f32.mrf.mxu0  ;;  %3385 = vmatmul.mubr.bf16.gmra.mxu0 %v13255_v0  ;;  %v13808_v13 = vpack.c.bf16 %v2061_v31, %v2059_v32 }
 0x223   :  { %v2062_v10 = vsel %vm1550_vm2, %v1160_v30, %v1806_v36  ;;  %v13802_v39 = vpop.f32.mrf.mxu1  ;;  %3392 = vmatprep.mubr.bf16.mxu0 %v13268_v16  ;;  %4435 = vmatpush1.bf16.msra.mxu0 %v12384_v59  ;;  %v1807_v16 = vmul.f32 0.01, %v1164_v37  ;;  %vm1551_vm5 = vcmp.ge.f32.partialorder %v1164_v37, 0.0 }
 0x224   :  { %18057 = vst [vmem:[#allocation99_spill] sm:$0xff] %v13802_v39  ;;  %v13805_v49 = vpack.c.bf16 %v2062_v10, %v2060_v27  ;;  %v1166_v47 = vpop.f32.mrf.mxu0  ;;  %4436 = vmatprep.subr.bf16.mxu0 %v18048_v22  ;;  %18059 = vst [vmem:[#allocation101_spill] sm:$0xff] %v13808_v13 }
 0x225   :  { %v2958_v40 = vpop.f32.mrf.mxu1  ;;  %v1808_v0 = vmul.f32 0.01, %v1166_v47  ;;  %vm1552_vm4 = vcmp.ge.f32.partialorder %v1166_v47, 0.0  ;;  %v2063_v10 = vsel %vm1551_vm5, %v1164_v37, %v1807_v16 }
 0x226   :  { %18058 = vst [vmem:[#allocation100_spill] sm:$0xff] %v13805_v49  ;;  %v1168_v57 = vpop.f32.mrf.mxu0  ;;  %3151 = vmatprep.mubr.bf16.mxu1 %v13805_v49 }
 0x227   :  { %vm1553_vm3 = vcmp.ge.f32.partialorder %v1168_v57, 0.0  ;;  %v1809_v14 = vmul.f32 0.01, %v1168_v57  ;;  %v13811_v62 = vpop.f32.mrf.mxu1  ;;  %3152 = vmatmul.mubr.bf16.gmra.mxu1 %v13808_v13  ;;  %v2064_v36 = vsel %vm1552_vm4, %v1166_v47, %v1808_v0 }
 0x228   :  { %18060 = vst [vmem:[#allocation102_spill] sm:$0xff] %v13811_v62  ;;  %v1170_v44 = vpop.f32.mrf.mxu0  ;;  %v12385_v62 = vld [vmem:[%s17683_s2 + $0x148] sm:$0xff]  }
 0x229   :  { %vm1554_vm6 = vcmp.ge.f32.partialorder %v1170_v44, 0.0  ;;  %v1810_v63 = vmul.f32 0.01, %v1170_v44  ;;  %v2963_v59 = vpop.f32.mrf.mxu1  ;;  %v2065_v35 = vsel %vm1553_vm3, %v1168_v57, %v1809_v14  ;;  %3910 = vmatpush2.bf16.msra.mxu1 %v12385_v62 }
 0x22a   :  { %v1174_v30 = vpop.f32.mrf.mxu0  ;;  %3393 = vmatmul.mubr.bf16.gmra.mxu0 %v13270_v17  ;;  %v13823_v39 = vpack.c.bf16 %v2065_v35, %v2063_v10  ;;  %3911 = vmatprep.subr.bf16.mxu1 %v18048_v22 }
 0x22b   :  { %v2066_v31 = vsel %vm1554_vm6, %v1170_v44, %v1810_v63  ;;  %v13815_v27 = vpop.f32.mrf.mxu1  ;;  %3400 = vmatprep.mubr.bf16.mxu0 %v13279_v33  ;;  %v1811_v33 = vmul.f32 0.01, %v1174_v30  ;;  %vm1555_vm8 = vcmp.ge.f32.partialorder %v1174_v30, 0.0 }
 0x22c   :  { %18061 = vst [vmem:[#allocation103_spill] sm:$0xff] %v13815_v27  ;;  %v13818_v32 = vpack.c.bf16 %v2066_v31, %v2064_v36  ;;  %v1176_v40 = vpop.f32.mrf.mxu0  ;;  %18063 = vst [vmem:[#allocation105_spill] sm:$0xff] %v13823_v39 }
 0x22d   :  { %v2966_v57 = vpop.f32.mrf.mxu1  ;;  %v1812_v17 = vmul.f32 0.01, %v1176_v40  ;;  %vm1556_vm7 = vcmp.ge.f32.partialorder %v1176_v40, 0.0  ;;  %v2067_v31 = vsel %vm1555_vm8, %v1174_v30, %v1811_v33 }
 0x22e   :  { %18062 = vst [vmem:[#allocation104_spill] sm:$0xff] %v13818_v32  ;;  %v1178_v14 = vpop.f32.mrf.mxu0  ;;  %3159 = vmatprep.mubr.bf16.mxu1 %v13818_v32 }
 0x22f   :  { %vm1557_vm0 = vcmp.ge.f32.partialorder %v1178_v14, 0.0  ;;  %v1813_v47 = vmul.f32 0.01, %v1178_v14  ;;  %v13826_v0 = vpop.f32.mrf.mxu1  ;;  %3160 = vmatmul.mubr.bf16.gmra.mxu1 %v13823_v39  ;;  %v2068_v62 = vsel %vm1556_vm7, %v1176_v40, %v1812_v17 }
 0x230   :  { %18064 = vst [vmem:[#allocation106_spill] sm:$0xff] %v13826_v0  ;;  %v1180_v37 = vpop.f32.mrf.mxu0 }
 0x231   :  { %vm1558_vm9 = vcmp.ge.f32.partialorder %v1180_v37, 0.0  ;;  %v1814_v16 = vmul.f32 0.01, %v1180_v37  ;;  %v2971_v44 = vpop.f32.mrf.mxu1  ;;  %v2069_v63 = vsel %vm1557_vm0, %v1178_v14, %v1813_v47  ;;  %v12386_v14 = vld [vmem:[%s17683_s2 + $0x190] sm:$0xff]  }
 0x232   :  { %v1184_v59 = vpop.f32.mrf.mxu0  ;;  %3401 = vmatmul.mubr.bf16.gmra.mxu0 %v13281_v34  ;;  %v13836_v0 = vpack.c.bf16 %v2069_v63, %v2067_v31 }
 0x233   :  { %v2070_v35 = vsel %vm1558_vm9, %v1180_v37, %v1814_v16  ;;  %v13831_v36 = vpop.f32.mrf.mxu1  ;;  %3408 = vmatprep.mubr.bf16.mxu0 %v13290_v50  ;;  %4437 = vmatpush1.bf16.msra.mxu0 %v12386_v14  ;;  %v1815_v50 = vmul.f32 0.01, %v1184_v59  ;;  %vm1559_vm12 = vcmp.ge.f32.partialorder %v1184_v59, 0.0 }
 0x234   :  { %18065 = vst [vmem:[#allocation107_spill] sm:$0xff] %v13831_v36  ;;  %v13834_v10 = vpack.c.bf16 %v2070_v35, %v2068_v62  ;;  %v1186_v57 = vpop.f32.mrf.mxu0  ;;  %18067 = vst [vmem:[#allocation109_spill] sm:$0xff] %v13836_v0  ;;  %4438 = vmatprep.subr.bf16.mxu0 %v18048_v22 }
 0x235   :  { %v2974_v27 = vpop.f32.mrf.mxu1  ;;  %v1816_v34 = vmul.f32 0.01, %v1186_v57  ;;  %vm1560_vm11 = vcmp.ge.f32.partialorder %v1186_v57, 0.0  ;;  %v2071_v35 = vsel %vm1559_vm12, %v1184_v59, %v1815_v50 }
 0x236   :  { %18066 = vst [vmem:[#allocation108_spill] sm:$0xff] %v13834_v10  ;;  %v1188_v47 = vpop.f32.mrf.mxu0  ;;  %3167 = vmatprep.mubr.bf16.mxu1 %v13834_v10 }
 0x237   :  { %vm1561_vm10 = vcmp.ge.f32.partialorder %v1188_v47, 0.0  ;;  %v1817_v40 = vmul.f32 0.01, %v1188_v47  ;;  %v13842_v17 = vpop.f32.mrf.mxu1  ;;  %3168 = vmatmul.mubr.bf16.gmra.mxu1 %v13836_v0  ;;  %v2072_v44 = vsel %vm1560_vm11, %v1186_v57, %v1816_v34 }
 0x238   :  { %18068 = vst [vmem:[#allocation110_spill] sm:$0xff] %v13842_v17  ;;  %v1190_v30 = vpop.f32.mrf.mxu0 }
 0x239   :  { %vm1562_vm13 = vcmp.ge.f32.partialorder %v1190_v30, 0.0  ;;  %v1818_v27 = vmul.f32 0.01, %v1190_v30  ;;  %v2979_v33 = vpop.f32.mrf.mxu1  ;;  %v2073_v37 = vsel %vm1561_vm10, %v1188_v47, %v1817_v40 }
 0x23a   :  { %v1194_v16 = vpop.f32.mrf.mxu0  ;;  %3409 = vmatmul.mubr.bf16.gmra.mxu0 %v13295_v52  ;;  %v13852_v17 = vpack.c.bf16 %v2073_v37, %v2071_v35 }
 0x23b   :  { %v2074_v63 = vsel %vm1562_vm13, %v1190_v30, %v1818_v27  ;;  %v13847_v62 = vpop.f32.mrf.mxu1  ;;  %3416 = vmatprep.mubr.bf16.mxu0 %v13305_v5  ;;  %v1819_v57 = vmul.f32 0.01, %v1194_v16  ;;  %vm1563_vm1 = vcmp.ge.f32.partialorder %v1194_v16, 0.0 }
 0x23c   :  { %18069 = vst [vmem:[#allocation111_spill] sm:$0xff] %v13847_v62  ;;  %v13850_v31 = vpack.c.bf16 %v2074_v63, %v2072_v44  ;;  %v1196_v14 = vpop.f32.mrf.mxu0  ;;  %18071 = vst [vmem:[#allocation113_spill] sm:$0xff] %v13852_v17 }
 0x23d   :  { %v2982_v36 = vpop.f32.mrf.mxu1  ;;  %v1820_v47 = vmul.f32 0.01, %v1196_v14  ;;  %vm1564_vm15 = vcmp.ge.f32.partialorder %v1196_v14, 0.0  ;;  %v2075_v37 = vsel %vm1563_vm1, %v1194_v16, %v1819_v57 }
 0x23e   :  { %18070 = vst [vmem:[#allocation112_spill] sm:$0xff] %v13850_v31  ;;  %v1198_v0 = vpop.f32.mrf.mxu0  ;;  %3175 = vmatprep.mubr.bf16.mxu1 %v13850_v31 }
 0x23f   :  { %vm1565_vm14 = vcmp.ge.f32.partialorder %v1198_v0, 0.0  ;;  %v1821_v40 = vmul.f32 0.01, %v1198_v0  ;;  %v13855_v52 = vpop.f32.mrf.mxu1  ;;  %3176 = vmatmul.mubr.bf16.gmra.mxu1 %v13852_v17  ;;  %v2076_v36 = vsel %vm1564_vm15, %v1196_v14, %v1820_v47 }
 0x240   :  { %18072 = vst [vmem:[#allocation114_spill] sm:$0xff] %v13855_v52  ;;  %v1200_v5 = vpop.f32.mrf.mxu0 }
 0x241   :  { %vm1566_vm2 = vcmp.ge.f32.partialorder %v1200_v5, 0.0  ;;  %v1822_v59 = vmul.f32 0.01, %v1200_v5  ;;  %v2987_v34 = vpop.f32.mrf.mxu1  ;;  %v2077_v50 = vsel %vm1565_vm14, %v1198_v0, %v1821_v40 }
 0x242   :  { %v1204_v30 = vpop.f32.mrf.mxu0  ;;  %3417 = vmatmul.mubr.bf16.gmra.mxu0 %v13307_v6  ;;  %v13864_v35 = vpack.c.bf16 %v2077_v50, %v2075_v37 }
 0x243   :  { %v2078_v27 = vsel %vm1566_vm2, %v1200_v5, %v1822_v59  ;;  %v13859_v33 = vpop.f32.mrf.mxu1  ;;  %3424 = vmatprep.mubr.bf16.mxu0 %v13320_v23  ;;  %v1823_v14 = vmul.f32 0.01, %v1204_v30  ;;  %vm1567_vm5 = vcmp.ge.f32.partialorder %v1204_v30, 0.0 }
 0x244   :  { %18073 = vst [vmem:[#allocation115_spill] sm:$0xff] %v13859_v33  ;;  %v13862_v44 = vpack.c.bf16 %v2078_v27, %v2076_v36  ;;  %v1206_v63 = vpop.f32.mrf.mxu0  ;;  %18075 = vst [vmem:[#allocation117_spill] sm:$0xff] %v13864_v35 }
 0x245   :  { %v2990_v52 = vpop.f32.mrf.mxu1  ;;  %v1824_v0 = vmul.f32 0.01, %v1206_v63  ;;  %vm1568_vm4 = vcmp.ge.f32.partialorder %v1206_v63, 0.0  ;;  %v2079_v36 = vsel %vm1567_vm5, %v1204_v30, %v1823_v14 }
 0x246   :  { %18074 = vst [vmem:[#allocation116_spill] sm:$0xff] %v13862_v44  ;;  %v1208_v62 = vpop.f32.mrf.mxu0  ;;  %3183 = vmatprep.mubr.bf16.mxu1 %v13862_v44 }
 0x247   :  { %vm1569_vm3 = vcmp.ge.f32.partialorder %v1208_v62, 0.0  ;;  %v1825_v40 = vmul.f32 0.01, %v1208_v62  ;;  %v13867_v6 = vpop.f32.mrf.mxu1  ;;  %3184 = vmatmul.mubr.bf16.gmra.mxu1 %v13864_v35  ;;  %v2080_v52 = vsel %vm1568_vm4, %v1206_v63, %v1824_v0 }
 0x248   :  { %18076 = vst [vmem:[#allocation118_spill] sm:$0xff] %v13867_v6  ;;  %v1210_v47 = vpop.f32.mrf.mxu0  ;;  %v12387_v6 = vld [vmem:[%s17683_s2 + $0x140] sm:$0xff]  }
 0x249   :  { %vm1570_vm6 = vcmp.ge.f32.partialorder %v1210_v47, 0.0  ;;  %v1826_v16 = vmul.f32 0.01, %v1210_v47  ;;  %v2995_v57 = vpop.f32.mrf.mxu1  ;;  %v2081_v5 = vsel %vm1569_vm3, %v1208_v62, %v1825_v40  ;;  %3912 = vmatpush2.bf16.msra.mxu1 %v12387_v6 }
 0x24a   :  { %v1214_v59 = vpop.f32.mrf.mxu0  ;;  %3425 = vmatmul.mubr.bf16.gmra.mxu0 %v13322_v24  ;;  %v13879_v33 = vpack.c.bf16 %v2081_v5, %v2079_v36 }
 0x24b   :  { %v2082_v34 = vsel %vm1570_vm6, %v1210_v47, %v1826_v16  ;;  %v13871_v50 = vpop.f32.mrf.mxu1  ;;  %3432 = vmatprep.mubr.bf16.mxu0 %v13331_v41  ;;  %v1827_v30 = vmul.f32 0.01, %v1214_v59  ;;  %vm1571_vm8 = vcmp.ge.f32.partialorder %v1214_v59, 0.0 }
 0x24c   :  { %18077 = vst [vmem:[#allocation119_spill] sm:$0xff] %v13871_v50  ;;  %v13874_v27 = vpack.c.bf16 %v2082_v34, %v2080_v52  ;;  %v1216_v37 = vpop.f32.mrf.mxu0  ;;  %18079 = vst [vmem:[#allocation121_spill] sm:$0xff] %v13879_v33 }
 0x24d   :  { %v2998_v62 = vpop.f32.mrf.mxu1  ;;  %v1828_v63 = vmul.f32 0.01, %v1216_v37  ;;  %vm1572_vm7 = vcmp.ge.f32.partialorder %v1216_v37, 0.0 }
 0x24e   :  { %18078 = vst [vmem:[#allocation120_spill] sm:$0xff] %v13874_v27  ;;  %v1218_v40 = vpop.f32.mrf.mxu0  ;;  %3191 = vmatprep.mubr.bf16.mxu1 %v13874_v27  ;;  %v2083_v62 = vsel %vm1571_vm8, %v1214_v59, %v1827_v30 }
 0x24f   :  { %vm1573_vm0 = vcmp.ge.f32.partialorder %v1218_v40, 0.0  ;;  %v1829_v0 = vmul.f32 0.01, %v1218_v40  ;;  %v13882_v47 = vpop.f32.mrf.mxu1  ;;  %3192 = vmatmul.mubr.bf16.gmra.mxu1 %v13879_v33  ;;  %v2084_v34 = vsel %vm1572_vm7, %v1216_v37, %v1828_v63  ;;  %v12388_v33 = vld [vmem:[%s17683_s2 + $0x188] sm:$0xff]  }
 0x250   :  { %18080 = vst [vmem:[#allocation122_spill] sm:$0xff] %v13882_v47  ;;  %v1220_v14 = vpop.f32.mrf.mxu0  ;;  %4439 = vmatpush1.bf16.msra.mxu0 %v12388_v33 }
 0x251   :  { %vm1574_vm9 = vcmp.ge.f32.partialorder %v1220_v14, 0.0  ;;  %v1830_v16 = vmul.f32 0.01, %v1220_v14  ;;  %v3003_v57 = vpop.f32.mrf.mxu1  ;;  %v2085_v5 = vsel %vm1573_vm0, %v1218_v40, %v1829_v0  ;;  %4440 = vmatprep.subr.bf16.mxu0 %v18048_v22 }
 0x252   :  { %v1224_v52 = vpop.f32.mrf.mxu0  ;;  %3433 = vmatmul.mubr.bf16.gmra.mxu0 %v13333_v43  ;;  %v13894_v27 = vpack.c.bf16 %v2085_v5, %v2083_v62 }
 0x253   :  { %v2086_v6 = vsel %vm1574_vm9, %v1220_v14, %v1830_v16  ;;  %v13886_v36 = vpop.f32.mrf.mxu1  ;;  %3440 = vmatprep.mubr.bf16.mxu0 %v13342_v60  ;;  %v1831_v59 = vmul.f32 0.01, %v1224_v52  ;;  %vm1575_vm12 = vcmp.ge.f32.partialorder %v1224_v52, 0.0 }
 0x254   :  { %18081 = vst [vmem:[#allocation123_spill] sm:$0xff] %v13886_v36  ;;  %v13889_v47 = vpack.c.bf16 %v2086_v6, %v2084_v34  ;;  %v1226_v50 = vpop.f32.mrf.mxu0  ;;  %18083 = vst [vmem:[#allocation125_spill] sm:$0xff] %v13894_v27 }
 0x255   :  { %v3006_v40 = vpop.f32.mrf.mxu1  ;;  %v1832_v37 = vmul.f32 0.01, %v1226_v50  ;;  %vm1576_vm11 = vcmp.ge.f32.partialorder %v1226_v50, 0.0 }
 0x256   :  { %18082 = vst [vmem:[#allocation124_spill] sm:$0xff] %v13889_v47  ;;  %v1228_v0 = vpop.f32.mrf.mxu0  ;;  %3199 = vmatprep.mubr.bf16.mxu1 %v13889_v47  ;;  %v2087_v40 = vsel %vm1575_vm12, %v1224_v52, %v1831_v59 }
 0x257   :  { %vm1577_vm10 = vcmp.ge.f32.partialorder %v1228_v0, 0.0  ;;  %v1833_v63 = vmul.f32 0.01, %v1228_v0  ;;  %v13897_v14 = vpop.f32.mrf.mxu1  ;;  %3200 = vmatmul.mubr.bf16.gmra.mxu1 %v13894_v27  ;;  %v2088_v33 = vsel %vm1576_vm11, %v1226_v50, %v1832_v37 }
 0x258   :  { %18084 = vst [vmem:[#allocation126_spill] sm:$0xff] %v13897_v14  ;;  %v1230_v30 = vpop.f32.mrf.mxu0 }
 0x259   :  { %vm1578_vm13 = vcmp.ge.f32.partialorder %v1230_v30, 0.0  ;;  %v1834_v16 = vmul.f32 0.01, %v1230_v30  ;;  %v3011_v57 = vpop.f32.mrf.mxu1  ;;  %v2089_v5 = vsel %vm1577_vm10, %v1228_v0, %v1833_v63 }
 0x25a   :  { %v1234_v34 = vpop.f32.mrf.mxu0  ;;  %3441 = vmatmul.mubr.bf16.gmra.mxu0 %v13347_v2  ;;  %v13907_v27 = vpack.c.bf16 %v2089_v5, %v2087_v40 }
 0x25b   :  { %v2090_v6 = vsel %vm1578_vm13, %v1230_v30, %v1834_v16  ;;  %v13902_v62 = vpop.f32.mrf.mxu1  ;;  %3448 = vmatprep.mubr.bf16.mxu0 %v13357_v19  ;;  %v1835_v50 = vmul.f32 0.01, %v1234_v34  ;;  %vm1579_vm1 = vcmp.ge.f32.partialorder %v1234_v34, 0.0 }
 0x25c   :  { %18085 = vst [vmem:[#allocation127_spill] sm:$0xff] %v13902_v62  ;;  %v13905_v14 = vpack.c.bf16 %v2090_v6, %v2088_v33  ;;  %v1236_v36 = vpop.f32.mrf.mxu0  ;;  %18087 = vst [vmem:[#allocation129_spill] sm:$0xff] %v13907_v27 }
 0x25d   :  { %v3014_v47 = vpop.f32.mrf.mxu1  ;;  %v1836_v0 = vmul.f32 0.01, %v1236_v36  ;;  %vm1580_vm15 = vcmp.ge.f32.partialorder %v1236_v36, 0.0  ;;  %v2091_v6 = vsel %vm1579_vm1, %v1234_v34, %v1835_v50  ;;  %v12389_v34 = vld [vmem:[%s17684_s3 + $0x78] sm:$0xff]  }
 0x25e   :  { %18086 = vst [vmem:[#allocation128_spill] sm:$0xff] %v13905_v14  ;;  %v1238_v35 = vpop.f32.mrf.mxu0  ;;  %3207 = vmatprep.mubr.bf16.mxu1 %v13905_v14  ;;  %11553 = vmatprep.subr.bf16.mxu1 %v12389_v34 }
 0x25f   :  { %vm1581_vm14 = vcmp.ge.f32.partialorder %v1238_v35, 0.0  ;;  %v1837_v63 = vmul.f32 0.01, %v1238_v35  ;;  %v13910_v57 = vpop.f32.mrf.mxu1  ;;  %3208 = vmatmul.mubr.bf16.gmra.mxu1 %v13907_v27  ;;  %v2092_v47 = vsel %vm1580_vm15, %v1236_v36, %v1836_v0 }
 0x260   :  { %18088 = vst [vmem:[#allocation130_spill] sm:$0xff] %v13910_v57  ;;  %v1240_v37 = vpop.f32.mrf.mxu0 }
 0x261   :  { %vm1582_vm2 = vcmp.ge.f32.partialorder %v1240_v37, 0.0  ;;  %v1838_v52 = vmul.f32 0.01, %v1240_v37  ;;  %v3019_v59 = vpop.f32.mrf.mxu1  ;;  %v2093_v30 = vsel %vm1581_vm14, %v1238_v35, %v1837_v63 }
 0x262   :  { %v1244_v16 = vpop.f32.mrf.mxu0  ;;  %3449 = vmatmul.mubr.bf16.gmra.mxu0 %v13359_v21  ;;  %v13919_v62 = vpack.c.bf16 %v2093_v30, %v2091_v6 }
 0x263   :  { %v2094_v5 = vsel %vm1582_vm2, %v1240_v37, %v1838_v52  ;;  %v13914_v33 = vpop.f32.mrf.mxu1  ;;  %3456 = vmatprep.mubr.bf16.mxu0 %v13372_v42  ;;  %v1839_v14 = vmul.f32 0.01, %v1244_v16  ;;  %vm1583_vm5 = vcmp.ge.f32.partialorder %v1244_v16, 0.0 }
 0x264   :  { %18089 = vst [vmem:[#allocation131_spill] sm:$0xff] %v13914_v33  ;;  %v13917_v40 = vpack.c.bf16 %v2094_v5, %v2092_v47  ;;  %v1246_v57 = vpop.f32.mrf.mxu0  ;;  %18091 = vst [vmem:[#allocation133_spill] sm:$0xff] %v13919_v62 }
 0x265   :  { %v3022_v27 = vpop.f32.mrf.mxu1  ;;  %v1840_v35 = vmul.f32 0.01, %v1246_v57  ;;  %vm1584_vm4 = vcmp.ge.f32.partialorder %v1246_v57, 0.0  ;;  %v2095_v5 = vsel %vm1583_vm5, %v1244_v16, %v1839_v14 }
 0x266   :  { %18090 = vst [vmem:[#allocation132_spill] sm:$0xff] %v13917_v40  ;;  %v1248_v44 = vpop.f32.mrf.mxu0  ;;  %3215 = vmatprep.mubr.bf16.mxu1 %v13917_v40 }
 0x267   :  { %vm1585_vm3 = vcmp.ge.f32.partialorder %v1248_v44, 0.0  ;;  %v1841_v63 = vmul.f32 0.01, %v1248_v44  ;;  %v13922_v36 = vpop.f32.mrf.mxu1  ;;  %3216 = vmatmul.mubr.bf16.gmra.mxu1 %v13919_v62  ;;  %v2096_v59 = vsel %vm1584_vm4, %v1246_v57, %v1840_v35 }
 0x268   :  { %18092 = vst [vmem:[#allocation134_spill] sm:$0xff] %v13922_v36  ;;  %v1250_v0 = vpop.f32.mrf.mxu0 }
 0x269   :  { %vm1586_vm6 = vcmp.ge.f32.partialorder %v1250_v0, 0.0  ;;  %v1842_v27 = vmul.f32 0.01, %v1250_v0  ;;  %v3027_v50 = vpop.f32.mrf.mxu1  ;;  %v2097_v37 = vsel %vm1585_vm3, %v1248_v44, %v1841_v63 }
 0x26a   :  { %v1254_v52 = vpop.f32.mrf.mxu0  ;;  %3457 = vmatmul.mubr.bf16.gmra.mxu0 %v13374_v45  ;;  %v13934_v33 = vpack.c.bf16 %v2097_v37, %v2095_v5 }
 0x26b   :  { %v2098_v30 = vsel %vm1586_vm6, %v1250_v0, %v1842_v27  ;;  %v13929_v47 = vpop.f32.mrf.mxu1  ;;  %3464 = vmatprep.mubr.bf16.mxu0 %v13383_v3  ;;  %v1843_v62 = vmul.f32 0.01, %v1254_v52  ;;  %vm1587_vm8 = vcmp.ge.f32.partialorder %v1254_v52, 0.0 }
 0x26c   :  { %18093 = vst [vmem:[#allocation135_spill] sm:$0xff] %v13929_v47  ;;  %v13932_v6 = vpack.c.bf16 %v2098_v30, %v2096_v59  ;;  %v1256_v36 = vpop.f32.mrf.mxu0  ;;  %18095 = vst [vmem:[#allocation137_spill] sm:$0xff] %v13934_v33  ;;  %v12391_v30 = vld [vmem:[%s17683_s2 + $0x180] sm:$0xff]  }
 0x26d   :  { %v1844_v40 = vmul.f32 0.01, %v1256_v36  ;;  %v3030_v50 = vpop.f32.mrf.mxu1  ;;  %vm1588_vm0 = vcmp.ge.f32.partialorder %v1256_v36, 0.0  ;;  %v2099_v5 = vsel %vm1587_vm8, %v1254_v52, %v1843_v62  ;;  %4441 = vmatpush1.bf16.msra.mxu0 %v12391_v30 }
 0x26e   :  { %18094 = vst [vmem:[#allocation136_spill] sm:$0xff] %v13932_v6  ;;  %v1258_v44 = vpop.f32.mrf.mxu0  ;;  %3223 = vmatprep.mubr.bf16.mxu1 %v13932_v6  ;;  %4442 = vmatprep.subr.bf16.mxu0 %v18048_v22 }
 0x26f   :  { %vm1589_vm7 = vcmp.ge.f32.partialorder %v1258_v44, 0.0  ;;  %v1845_v57 = vmul.f32 0.01, %v1258_v44  ;;  %v13937_v35 = vpop.f32.mrf.mxu1  ;;  %3224 = vmatmul.mubr.bf16.gmra.mxu1 %v13934_v33  ;;  %v2100_v27 = vsel %vm1588_vm0, %v1256_v36, %v1844_v40 }
 0x270   :  { %18096 = vst [vmem:[#allocation138_spill] sm:$0xff] %v13937_v35  ;;  %v1260_v63 = vpop.f32.mrf.mxu0 }
 0x271   :  { %vm1590_vm9 = vcmp.ge.f32.partialorder %v1260_v63, 0.0  ;;  %v1846_v14 = vmul.f32 0.01, %v1260_v63  ;;  %v3035_v16 = vpop.f32.mrf.mxu1  ;;  %v2101_v0 = vsel %vm1589_vm7, %v1258_v44, %v1845_v57 }
 0x272   :  { %v1264_v34 = vpop.f32.mrf.mxu0  ;;  %3465 = vmatmul.mubr.bf16.gmra.mxu0 %v13385_v7  ;;  %v13949_v47 = vpack.c.bf16 %v2101_v0, %v2099_v5 }
 0x273   :  { %v2102_v37 = vsel %vm1590_vm9, %v1260_v63, %v1846_v14  ;;  %v13941_v59 = vpop.f32.mrf.mxu1  ;;  %3472 = vmatprep.mubr.bf16.mxu0 %v13394_v26  ;;  %v1847_v44 = vmul.f32 0.01, %v1264_v34  ;;  %vm1591_vm12 = vcmp.ge.f32.partialorder %v1264_v34, 0.0 }
 0x274   :  { %18097 = vst [vmem:[#allocation139_spill] sm:$0xff] %v13941_v59  ;;  %v13947_v50 = vpack.c.bf16 %v2102_v37, %v2100_v27  ;;  %v1266_v35 = vpop.f32.mrf.mxu0  ;;  %18099 = vst [vmem:[#allocation141_spill] sm:$0xff] %v13949_v47 }
 0x275   :  { %v1848_v57 = vmul.f32 0.01, %v1266_v35  ;;  %v3038_v16 = vpop.f32.mrf.mxu1  ;;  %vm1592_vm10 = vcmp.ge.f32.partialorder %v1266_v35, 0.0 }
 0x276   :  { %18098 = vst [vmem:[#allocation140_spill] sm:$0xff] %v13947_v50  ;;  %v1268_v40 = vpop.f32.mrf.mxu0  ;;  %3231 = vmatprep.mubr.bf16.mxu1 %v13947_v50  ;;  %v2103_v16 = vsel %vm1591_vm12, %v1264_v34, %v1847_v44 }
 0x277   :  { %vm1593_vm11 = vcmp.ge.f32.partialorder %v1268_v40, 0.0  ;;  %v1849_v36 = vmul.f32 0.01, %v1268_v40  ;;  %v13953_v63 = vpop.f32.mrf.mxu1  ;;  %3232 = vmatmul.mubr.bf16.gmra.mxu1 %v13949_v47  ;;  %v2104_v37 = vsel %vm1592_vm10, %v1266_v35, %v1848_v57 }
 0x278   :  { %18100 = vst [vmem:[#allocation142_spill] sm:$0xff] %v13953_v63  ;;  %v1270_v62 = vpop.f32.mrf.mxu0 }
 0x279   :  { %vm1594_vm13 = vcmp.ge.f32.partialorder %v1270_v62, 0.0  ;;  %v1850_v52 = vmul.f32 0.01, %v1270_v62  ;;  %v3043_v14 = vpop.f32.mrf.mxu1  ;;  %v2105_v0 = vsel %vm1593_vm11, %v1268_v40, %v1849_v36 }
 0x27a   :  { %v1274_v27 = vpop.f32.mrf.mxu0  ;;  %3473 = vmatmul.mubr.bf16.gmra.mxu0 %v13399_v29  ;;  %v13962_v47 = vpack.c.bf16 %v2105_v0, %v2103_v16 }
 0x27b   :  { %v2106_v30 = vsel %vm1594_vm13, %v1270_v62, %v1850_v52  ;;  %v13957_v5 = vpop.f32.mrf.mxu1  ;;  %3480 = vmatprep.mubr.bf16.mxu0 %v13409_v54  ;;  %v1851_v50 = vmul.f32 0.01, %v1274_v27  ;;  %vm1595_vm1 = vcmp.ge.f32.partialorder %v1274_v27, 0.0 }
 0x27c   :  { %18101 = vst [vmem:[#allocation143_spill] sm:$0xff] %v13957_v5  ;;  %v13960_v59 = vpack.c.bf16 %v2106_v30, %v2104_v37  ;;  %v1276_v63 = vpop.f32.mrf.mxu0  ;;  %18103 = vst [vmem:[#allocation145_spill] sm:$0xff] %v13962_v47 }
 0x27d   :  { %v1852_v33 = vmul.f32 0.01, %v1276_v63  ;;  %v3046_v6 = vpop.f32.mrf.mxu1  ;;  %vm1596_vm14 = vcmp.ge.f32.partialorder %v1276_v63, 0.0  ;;  %v2107_v37 = vsel %vm1595_vm1, %v1274_v27, %v1851_v50 }
 0x27e   :  { %18102 = vst [vmem:[#allocation144_spill] sm:$0xff] %v13960_v59  ;;  %v1278_v14 = vpop.f32.mrf.mxu0  ;;  %3239 = vmatprep.mubr.bf16.mxu1 %v13960_v59 }
 0x27f   :  { %vm1597_vm15 = vcmp.ge.f32.partialorder %v1278_v14, 0.0  ;;  %v1853_v35 = vmul.f32 0.01, %v1278_v14  ;;  %v13965_v57 = vpop.f32.mrf.mxu1  ;;  %3240 = vmatmul.mubr.bf16.gmra.mxu1 %v13962_v47  ;;  %v2108_v6 = vsel %vm1596_vm14, %v1276_v63, %v1852_v33 }
 0x280   :  { %18104 = vst [vmem:[#allocation146_spill] sm:$0xff] %v13965_v57  ;;  %v1280_v40 = vpop.f32.mrf.mxu0 }
 0x281   :  { %vm1598_vm2 = vcmp.ge.f32.partialorder %v1280_v40, 0.0  ;;  %v1854_v34 = vmul.f32 0.01, %v1280_v40  ;;  %v3051_v44 = vpop.f32.mrf.mxu1  ;;  %v2109_v36 = vsel %vm1597_vm15, %v1278_v14, %v1853_v35 }
 0x282   :  { %v1284_v62 = vpop.f32.mrf.mxu0  ;;  %3481 = vmatmul.mubr.bf16.gmra.mxu0 %v13411_v56  ;;  %v13974_v57 = vpack.c.bf16 %v2109_v36, %v2107_v37 }
 0x283   :  { %v2110_v52 = vsel %vm1598_vm2, %v1280_v40, %v1854_v34  ;;  %v13969_v0 = vpop.f32.mrf.mxu1  ;;  %3488 = vmatprep.mubr.bf16.mxu0 %v13424_v15  ;;  %v1855_v5 = vmul.f32 0.01, %v1284_v62  ;;  %vm1599_vm5 = vcmp.ge.f32.partialorder %v1284_v62, 0.0 }
 0x284   :  { %18105 = vst [vmem:[#allocation147_spill] sm:$0xff] %v13969_v0  ;;  %v13972_v30 = vpack.c.bf16 %v2110_v52, %v2108_v6  ;;  %v1286_v16 = vpop.f32.mrf.mxu0  ;;  %18107 = vst [vmem:[#allocation149_spill] sm:$0xff] %v13974_v57 }
 0x285   :  { %v1856_v47 = vmul.f32 0.01, %v1286_v16  ;;  %v3054_v59 = vpop.f32.mrf.mxu1  ;;  %vm1600_vm3 = vcmp.ge.f32.partialorder %v1286_v16, 0.0  ;;  %v2111_v6 = vsel %vm1599_vm5, %v1284_v62, %v1855_v5 }
 0x286   :  { %18106 = vst [vmem:[#allocation148_spill] sm:$0xff] %v13972_v30  ;;  %v1288_v44 = vpop.f32.mrf.mxu0  ;;  %3247 = vmatprep.mubr.bf16.mxu1 %v13972_v30 }
 0x287   :  { %vm1601_vm4 = vcmp.ge.f32.partialorder %v1288_v44, 0.0  ;;  %v1857_v33 = vmul.f32 0.01, %v1288_v44  ;;  %v13977_v63 = vpop.f32.mrf.mxu1  ;;  %3248 = vmatmul.mubr.bf16.gmra.mxu1 %v13974_v57  ;;  %v2112_v59 = vsel %vm1600_vm3, %v1286_v16, %v1856_v47 }
 0x288   :  { %18108 = vst [vmem:[#allocation150_spill] sm:$0xff] %v13977_v63  ;;  %v1290_v14 = vpop.f32.mrf.mxu0 }
 0x289   :  { %vm1602_vm6 = vcmp.ge.f32.partialorder %v1290_v14, 0.0  ;;  %v1858_v50 = vmul.f32 0.01, %v1290_v14  ;;  %v3059_v27 = vpop.f32.mrf.mxu1  ;;  %v2113_v35 = vsel %vm1601_vm4, %v1288_v44, %v1857_v33 }
 0x28a   :  { %v1294_v40 = vpop.f32.mrf.mxu0  ;;  %3489 = vmatmul.mubr.bf16.gmra.mxu0 %v13426_v20  ;;  %v13986_v63 = vpack.c.bf16 %v2113_v35, %v2111_v6 }
 0x28b   :  { %v2114_v34 = vsel %vm1602_vm6, %v1290_v14, %v1858_v50  ;;  %v13981_v36 = vpop.f32.mrf.mxu1  ;;  %3496 = vmatprep.mubr.bf16.mxu0 %v13435_v46  ;;  %v1859_v0 = vmul.f32 0.01, %v1294_v40  ;;  %vm1603_vm8 = vcmp.ge.f32.partialorder %v1294_v40, 0.0 }
 0x28c   :  { %18109 = vst [vmem:[#allocation151_spill] sm:$0xff] %v13981_v36  ;;  %v13984_v52 = vpack.c.bf16 %v2114_v34, %v2112_v59  ;;  %v1296_v37 = vpop.f32.mrf.mxu0  ;;  %18111 = vst [vmem:[#allocation153_spill] sm:$0xff] %v13986_v63  ;;  %v12392_v59 = vld [vmem:[%s17683_s2 + $0x1f8] sm:$0xff]  }
 0x28d   :  { %v1860_v57 = vmul.f32 0.01, %v1296_v37  ;;  %v3062_v30 = vpop.f32.mrf.mxu1  ;;  %vm1604_vm0 = vcmp.ge.f32.partialorder %v1296_v37, 0.0  ;;  %v2115_v34 = vsel %vm1603_vm8, %v1294_v40, %v1859_v0  ;;  %4443 = vmatpush2.bf16.msra.mxu0 %v12392_v59 }
 0x28e   :  { %18110 = vst [vmem:[#allocation152_spill] sm:$0xff] %v13984_v52  ;;  %v1298_v27 = vpop.f32.mrf.mxu0  ;;  %3255 = vmatprep.mubr.bf16.mxu1 %v13984_v52  ;;  %4444 = vmatprep.subr.bf16.mxu0 %v18048_v22 }
 0x28f   :  { %vm1605_vm7 = vcmp.ge.f32.partialorder %v1298_v27, 0.0  ;;  %v1861_v47 = vmul.f32 0.01, %v1298_v27  ;;  %v13989_v16 = vpop.f32.mrf.mxu1  ;;  %3256 = vmatmul.mubr.bf16.gmra.mxu1 %v13986_v63  ;;  %v2116_v30 = vsel %vm1604_vm0, %v1296_v37, %v1860_v57 }
 0x290   :  { %18112 = vst [vmem:[#allocation154_spill] sm:$0xff] %v13989_v16  ;;  %v1300_v44 = vpop.f32.mrf.mxu0 }
 0x291   :  { %vm1606_vm9 = vcmp.ge.f32.partialorder %v1300_v44, 0.0  ;;  %v1862_v5 = vmul.f32 0.01, %v1300_v44  ;;  %v3067_v62 = vpop.f32.mrf.mxu1  ;;  %v2117_v33 = vsel %vm1605_vm7, %v1298_v27, %v1861_v47 }
 0x292   :  { %v1304_v14 = vpop.f32.mrf.mxu0  ;;  %3497 = vmatmul.mubr.bf16.gmra.mxu0 %v13437_v51  ;;  %v14001_v36 = vpack.c.bf16 %v2117_v33, %v2115_v34 }
 0x293   :  { %v2118_v50 = vsel %vm1606_vm9, %v1300_v44, %v1862_v5  ;;  %v13993_v35 = vpop.f32.mrf.mxu1  ;;  %3504 = vmatprep.mubr.bf16.mxu0 %v13446_v12  ;;  %v1863_v27 = vmul.f32 0.01, %v1304_v14  ;;  %vm1607_vm12 = vcmp.ge.f32.partialorder %v1304_v14, 0.0 }
 0x294   :  { %18113 = vst [vmem:[#allocation155_spill] sm:$0xff] %v13993_v35  ;;  %v13999_v6 = vpack.c.bf16 %v2118_v50, %v2116_v30  ;;  %v1306_v16 = vpop.f32.mrf.mxu0  ;;  %18115 = vst [vmem:[#allocation157_spill] sm:$0xff] %v14001_v36 }
 0x295   :  { %v1864_v47 = vmul.f32 0.01, %v1306_v16  ;;  %v3070_v62 = vpop.f32.mrf.mxu1  ;;  %vm1608_vm10 = vcmp.ge.f32.partialorder %v1306_v16, 0.0 }
 0x296   :  { %18114 = vst [vmem:[#allocation156_spill] sm:$0xff] %v13999_v6  ;;  %v1308_v57 = vpop.f32.mrf.mxu0  ;;  %3263 = vmatprep.mubr.bf16.mxu1 %v13999_v6  ;;  %v2119_v62 = vsel %vm1607_vm12, %v1304_v14, %v1863_v27 }
 0x297   :  { %vm1609_vm11 = vcmp.ge.f32.partialorder %v1308_v57, 0.0  ;;  %v1865_v37 = vmul.f32 0.01, %v1308_v57  ;;  %v14005_v44 = vpop.f32.mrf.mxu1  ;;  %3264 = vmatmul.mubr.bf16.gmra.mxu1 %v14001_v36  ;;  %v2120_v50 = vsel %vm1608_vm10, %v1306_v16, %v1864_v47 }
 0x298   :  { %18116 = vst [vmem:[#allocation158_spill] sm:$0xff] %v14005_v44  ;;  %v1310_v0 = vpop.f32.mrf.mxu0 }
 0x299   :  { %vm1610_vm13 = vcmp.ge.f32.partialorder %v1310_v0, 0.0  ;;  %v1866_v40 = vmul.f32 0.01, %v1310_v0  ;;  %v3075_v5 = vpop.f32.mrf.mxu1  ;;  %v2121_v33 = vsel %vm1609_vm11, %v1308_v57, %v1865_v37 }
 0x29a   :  { %v1314_v30 = vpop.f32.mrf.mxu0  ;;  %3505 = vmatmul.mubr.bf16.gmra.mxu0 %v13451_v18  ;;  %v14014_v36 = vpack.c.bf16 %v2121_v33, %v2119_v62 }
 0x29b   :  { %v2122_v59 = vsel %vm1610_vm13, %v1310_v0, %v1866_v40  ;;  %v14009_v34 = vpop.f32.mrf.mxu1  ;;  %3512 = vmatprep.mubr.bf16.mxu0 %v13461_v48  ;;  %v1867_v6 = vmul.f32 0.01, %v1314_v30  ;;  %vm1611_vm1 = vcmp.ge.f32.partialorder %v1314_v30, 0.0 }
 0x29c   :  { %18117 = vst [vmem:[#allocation159_spill] sm:$0xff] %v14009_v34  ;;  %v14012_v35 = vpack.c.bf16 %v2122_v59, %v2120_v50  ;;  %v1316_v44 = vpop.f32.mrf.mxu0  ;;  %18119 = vst [vmem:[#allocation161_spill] sm:$0xff] %v14014_v36 }
 0x29d   :  { %v1868_v63 = vmul.f32 0.01, %v1316_v44  ;;  %v3078_v52 = vpop.f32.mrf.mxu1  ;;  %vm1612_vm14 = vcmp.ge.f32.partialorder %v1316_v44, 0.0  ;;  %v2123_v50 = vsel %vm1611_vm1, %v1314_v30, %v1867_v6 }
 0x29e   :  { %18118 = vst [vmem:[#allocation160_spill] sm:$0xff] %v14012_v35  ;;  %v1318_v5 = vpop.f32.mrf.mxu0  ;;  %3271 = vmatprep.mubr.bf16.mxu1 %v14012_v35 }
 0x29f   :  { %vm1613_vm15 = vcmp.ge.f32.partialorder %v1318_v5, 0.0  ;;  %v1869_v16 = vmul.f32 0.01, %v1318_v5  ;;  %v14017_v47 = vpop.f32.mrf.mxu1  ;;  %3272 = vmatmul.mubr.bf16.gmra.mxu1 %v14014_v36  ;;  %v2124_v52 = vsel %vm1612_vm14, %v1316_v44, %v1868_v63 }
 0x2a0   :  { %18120 = vst [vmem:[#allocation162_spill] sm:$0xff] %v14017_v47  ;;  %v1320_v57 = vpop.f32.mrf.mxu0 }
 0x2a1   :  { %vm1614_vm2 = vcmp.ge.f32.partialorder %v1320_v57, 0.0  ;;  %v1870_v14 = vmul.f32 0.01, %v1320_v57  ;;  %v3083_v27 = vpop.f32.mrf.mxu1  ;;  %v2125_v37 = vsel %vm1613_vm15, %v1318_v5, %v1869_v16 }
 0x2a2   :  { %v1324_v0 = vpop.f32.mrf.mxu0  ;;  %3513 = vmatmul.mubr.bf16.gmra.mxu0 %v13463_v55  ;;  %v14026_v47 = vpack.c.bf16 %v2125_v37, %v2123_v50 }
 0x2a3   :  { %v2126_v40 = vsel %vm1614_vm2, %v1320_v57, %v1870_v14  ;;  %v14021_v33 = vpop.f32.mrf.mxu1  ;;  %3520 = vmatprep.mubr.bf16.mxu0 %v13476_v25  ;;  %v1871_v34 = vmul.f32 0.01, %v1324_v0  ;;  %vm1615_vm5 = vcmp.ge.f32.partialorder %v1324_v0, 0.0 }
 0x2a4   :  { %18121 = vst [vmem:[#allocation163_spill] sm:$0xff] %v14021_v33  ;;  %v14024_v59 = vpack.c.bf16 %v2126_v40, %v2124_v52  ;;  %v1326_v62 = vpop.f32.mrf.mxu0  ;;  %18123 = vst [vmem:[#allocation165_spill] sm:$0xff] %v14026_v47 }
 0x2a5   :  { %v1872_v36 = vmul.f32 0.01, %v1326_v62  ;;  %v3086_v35 = vpop.f32.mrf.mxu1  ;;  %vm1616_vm4 = vcmp.ge.f32.partialorder %v1326_v62, 0.0  ;;  %v2127_v52 = vsel %vm1615_vm5, %v1324_v0, %v1871_v34 }
 0x2a6   :  { %18122 = vst [vmem:[#allocation164_spill] sm:$0xff] %v14024_v59  ;;  %v1328_v27 = vpop.f32.mrf.mxu0  ;;  %3279 = vmatprep.mubr.bf16.mxu1 %v14024_v59 }
 0x2a7   :  { %vm1617_vm3 = vcmp.ge.f32.partialorder %v1328_v27, 0.0  ;;  %v1873_v5 = vmul.f32 0.01, %v1328_v27  ;;  %v14029_v63 = vpop.f32.mrf.mxu1  ;;  %3280 = vmatmul.mubr.bf16.gmra.mxu1 %v14026_v47  ;;  %v2128_v35 = vsel %vm1616_vm4, %v1326_v62, %v1872_v36 }
 0x2a8   :  { %18124 = vst [vmem:[#allocation166_spill] sm:$0xff] %v14029_v63  ;;  %v1330_v44 = vpop.f32.mrf.mxu0 }
 0x2a9   :  { %vm1618_vm6 = vcmp.ge.f32.partialorder %v1330_v44, 0.0  ;;  %v1874_v6 = vmul.f32 0.01, %v1330_v44  ;;  %v3091_v30 = vpop.f32.mrf.mxu1  ;;  %v2129_v16 = vsel %vm1617_vm3, %v1328_v27, %v1873_v5 }
 0x2aa   :  { %v1334_v57 = vpop.f32.mrf.mxu0  ;;  %3521 = vmatmul.mubr.bf16.gmra.mxu0 %v13478_v28  ;;  %v14038_v63 = vpack.c.bf16 %v2129_v16, %v2127_v52 }
 0x2ab   :  { %v2130_v14 = vsel %vm1618_vm6, %v1330_v44, %v1874_v6  ;;  %v14033_v37 = vpop.f32.mrf.mxu1  ;;  %3528 = vmatprep.mubr.bf16.mxu0 %v13487_v61  ;;  %v1875_v33 = vmul.f32 0.01, %v1334_v57  ;;  %vm1619_vm8 = vcmp.ge.f32.partialorder %v1334_v57, 0.0 }
 0x2ac   :  { %18125 = vst [vmem:[#allocation167_spill] sm:$0xff] %v14033_v37  ;;  %v14036_v40 = vpack.c.bf16 %v2130_v14, %v2128_v35  ;;  %v1336_v50 = vpop.f32.mrf.mxu0  ;;  %18127 = vst [vmem:[#allocation169_spill] sm:$0xff] %v14038_v63  ;;  %v18130_v35 = vld [vmem:[#allocation28_spill] sm:$0xff] }
 0x2ad   :  { %v1876_v47 = vmul.f32 0.01, %v1336_v50  ;;  %v3094_v59 = vpop.f32.mrf.mxu1  ;;  %vm1620_vm0 = vcmp.ge.f32.partialorder %v1336_v50, 0.0  ;;  %v12395_v14 = vld [vmem:[%s17683_s2 + $0x1f0] sm:$0xff]   ;;  %v2131_v52 = vsel %vm1619_vm8, %v1334_v57, %v1875_v33 }
 0x2ae   :  { %18126 = vst [vmem:[#allocation168_spill] sm:$0xff] %v14036_v40  ;;  %v1338_v30 = vpop.f32.mrf.mxu0  ;;  %3287 = vmatprep.mubr.bf16.mxu1 %v14036_v40  ;;  %4445 = vmatpush2.bf16.msra.mxu0 %v12395_v14 }
 0x2af   :  { %vm1621_vm7 = vcmp.ge.f32.partialorder %v1338_v30, 0.0  ;;  %v1877_v36 = vmul.f32 0.01, %v1338_v30  ;;  %v14041_v62 = vpop.f32.mrf.mxu1  ;;  %3288 = vmatmul.mubr.bf16.gmra.mxu1 %v14038_v63  ;;  %v2132_v59 = vsel %vm1620_vm0, %v1336_v50, %v1876_v47  ;;  %4446 = vmatprep.subr.bf16.mxu0 %v18048_v22 }
 0x2b0   :  { %18128 = vst [vmem:[#allocation170_spill] sm:$0xff] %v14041_v62  ;;  %v1340_v27 = vpop.f32.mrf.mxu0 }
 0x2b1   :  { %vm1622_vm9 = vcmp.ge.f32.partialorder %v1340_v27, 0.0  ;;  %v1878_v34 = vmul.f32 0.01, %v1340_v27  ;;  %v3099_v0 = vpop.f32.mrf.mxu1  ;;  %v2133_v5 = vsel %vm1621_vm7, %v1338_v30, %v1877_v36 }
 0x2b2   :  { %v1344_v44 = vpop.f32.mrf.mxu0  ;;  %3529 = vmatmul.mubr.bf16.gmra.mxu0 %v13489_v4  ;;  %v14053_v63 = vpack.c.bf16 %v2133_v5, %v2131_v52 }
 0x2b3   :  { %v2134_v6 = vsel %vm1622_vm9, %v1340_v27, %v1878_v34  ;;  %v14045_v16 = vpop.f32.mrf.mxu1  ;;  %3536 = vmatprep.mubr.bf16.mxu0 %v18130_v35  ;;  %v1879_v30 = vmul.f32 0.01, %v1344_v44  ;;  %vm1623_vm12 = vcmp.ge.f32.partialorder %v1344_v44, 0.0 }
 0x2b4   :  { %18129 = vst [vmem:[#allocation171_spill] sm:$0xff] %v14045_v16  ;;  %v14051_v62 = vpack.c.bf16 %v2134_v6, %v2132_v59  ;;  %v1346_v37 = vpop.f32.mrf.mxu0  ;;  %18132 = vst [vmem:[#allocation173_spill] sm:$0xff] %v14053_v63  ;;  %v18134_v6 = vld [vmem:[#allocation29_spill] sm:$0xff]  ;;  %v18136_v16 = vld [vmem:[#allocation30_spill] sm:$0xff] }
 0x2b5   :  { %v1880_v36 = vmul.f32 0.01, %v1346_v37  ;;  %v3102_v0 = vpop.f32.mrf.mxu1  ;;  %vm1624_vm10 = vcmp.ge.f32.partialorder %v1346_v37, 0.0 }
 0x2b6   :  { %18131 = vst [vmem:[#allocation172_spill] sm:$0xff] %v14051_v62  ;;  %v1348_v47 = vpop.f32.mrf.mxu0  ;;  %3295 = vmatprep.mubr.bf16.mxu1 %v14051_v62  ;;  %v2135_v62 = vsel %vm1623_vm12, %v1344_v44, %v1879_v30 }
 0x2b7   :  { %vm1625_vm11 = vcmp.ge.f32.partialorder %v1348_v47, 0.0  ;;  %v1881_v50 = vmul.f32 0.01, %v1348_v47  ;;  %v14057_v27 = vpop.f32.mrf.mxu1  ;;  %3296 = vmatmul.mubr.bf16.gmra.mxu1 %v14053_v63  ;;  %v2136_v14 = vsel %vm1624_vm10, %v1346_v37, %v1880_v36 }
 0x2b8   :  { %18133 = vst [vmem:[#allocation174_spill] sm:$0xff] %v14057_v27  ;;  %v1350_v33 = vpop.f32.mrf.mxu0 }
 0x2b9   :  { %vm1626_vm13 = vcmp.ge.f32.partialorder %v1350_v33, 0.0  ;;  %v1882_v57 = vmul.f32 0.01, %v1350_v33  ;;  %v3107_v34 = vpop.f32.mrf.mxu1  ;;  %v2137_v5 = vsel %vm1625_vm11, %v1348_v47, %v1881_v50 }
 0x2ba   :  { %v1354_v59 = vpop.f32.mrf.mxu0  ;;  %3537 = vmatmul.mubr.bf16.gmra.mxu0 %v18134_v6  ;;  %v14066_v63 = vpack.c.bf16 %v2137_v5, %v2135_v62 }
 0x2bb   :  { %v2138_v52 = vsel %vm1626_vm13, %v1350_v33, %v1882_v57  ;;  %v14061_v0 = vpop.f32.mrf.mxu1  ;;  %3544 = vmatprep.mubr.bf16.mxu0 %v18136_v16  ;;  %v1883_v17 = vmul.f32 0.01, %v1354_v59  ;;  %vm1627_vm1 = vcmp.ge.f32.partialorder %v1354_v59, 0.0  ;;  %v18140_v33 = vld [vmem:[#allocation31_spill] sm:$0xff] }
 0x2bc   :  { %18135 = vst [vmem:[#allocation175_spill] sm:$0xff] %v14061_v0  ;;  %v14064_v40 = vpack.c.bf16 %v2138_v52, %v2136_v14  ;;  %v1356_v27 = vpop.f32.mrf.mxu0  ;;  %18138 = vst [vmem:[#allocation177_spill] sm:$0xff] %v14066_v63  ;;  %v18142_v14 = vld [vmem:[#allocation32_spill] sm:$0xff] }
 0x2bd   :  { %v1884_v31 = vmul.f32 0.01, %v1356_v27  ;;  %v3110_v10 = vpop.f32.mrf.mxu1  ;;  %vm1628_vm14 = vcmp.ge.f32.partialorder %v1356_v27, 0.0  ;;  %v2139_v52 = vsel %vm1627_vm1, %v1354_v59, %v1883_v17 }
 0x2be   :  { %18137 = vst [vmem:[#allocation176_spill] sm:$0xff] %v14064_v40  ;;  %v1358_v34 = vpop.f32.mrf.mxu0  ;;  %3303 = vmatprep.mubr.bf16.mxu1 %v14064_v40 }
 0x2bf   :  { %vm1629_vm15 = vcmp.ge.f32.partialorder %v1358_v34, 0.0  ;;  %v1885_v37 = vmul.f32 0.01, %v1358_v34  ;;  %v14069_v36 = vpop.f32.mrf.mxu1  ;;  %3304 = vmatmul.mubr.bf16.gmra.mxu1 %v14066_v63  ;;  %v2140_v10 = vsel %vm1628_vm14, %v1356_v27, %v1884_v31 }
 0x2c0   :  { %18139 = vst [vmem:[#allocation178_spill] sm:$0xff] %v14069_v36  ;;  %v1360_v47 = vpop.f32.mrf.mxu0 }
 0x2c1   :  { %vm1630_vm2 = vcmp.ge.f32.partialorder %v1360_v47, 0.0  ;;  %v1886_v44 = vmul.f32 0.01, %v1360_v47  ;;  %v3115_v30 = vpop.f32.mrf.mxu1  ;;  %v2141_v62 = vsel %vm1629_vm15, %v1358_v34, %v1885_v37 }
 0x2c2   :  { %v1364_v50 = vpop.f32.mrf.mxu0  ;;  %3545 = vmatmul.mubr.bf16.gmra.mxu0 %v18140_v33  ;;  %v14078_v63 = vpack.c.bf16 %v2141_v62, %v2139_v52 }
 0x2c3   :  { %v2142_v57 = vsel %vm1630_vm2, %v1360_v47, %v1886_v44  ;;  %v14073_v5 = vpop.f32.mrf.mxu1  ;;  %3552 = vmatprep.mubr.bf16.mxu0 %v18142_v14  ;;  %v1887_v40 = vmul.f32 0.01, %v1364_v50  ;;  %vm1631_vm5 = vcmp.ge.f32.partialorder %v1364_v50, 0.0  ;;  %v18146_v44 = vld [vmem:[#allocation33_spill] sm:$0xff] }
 0x2c4   :  { %18141 = vst [vmem:[#allocation179_spill] sm:$0xff] %v14073_v5  ;;  %v14076_v0 = vpack.c.bf16 %v2142_v57, %v2140_v10  ;;  %v1366_v36 = vpop.f32.mrf.mxu0  ;;  %18144 = vst [vmem:[#allocation181_spill] sm:$0xff] %v14078_v63  ;;  %v18148_v57 = vld [vmem:[#allocation36_spill] sm:$0xff] }
 0x2c5   :  { %v1888_v39 = vmul.f32 0.01, %v1366_v36  ;;  %v3118_v32 = vpop.f32.mrf.mxu1  ;;  %vm1632_vm3 = vcmp.ge.f32.partialorder %v1366_v36, 0.0  ;;  %v2143_v52 = vsel %vm1631_vm5, %v1364_v50, %v1887_v40 }
 0x2c6   :  { %18143 = vst [vmem:[#allocation180_spill] sm:$0xff] %v14076_v0  ;;  %v1368_v30 = vpop.f32.mrf.mxu0  ;;  %3311 = vmatprep.mubr.bf16.mxu1 %v14076_v0 }
 0x2c7   :  { %vm1633_vm4 = vcmp.ge.f32.partialorder %v1368_v30, 0.0  ;;  %v1889_v31 = vmul.f32 0.01, %v1368_v30  ;;  %v14081_v27 = vpop.f32.mrf.mxu1  ;;  %3312 = vmatmul.mubr.bf16.gmra.mxu1 %v14078_v63  ;;  %v2144_v32 = vsel %vm1632_vm3, %v1366_v36, %v1888_v39 }
 0x2c8   :  { %18145 = vst [vmem:[#allocation182_spill] sm:$0xff] %v14081_v27  ;;  %v1370_v34 = vpop.f32.mrf.mxu0 }
 0x2c9   :  { %vm1634_vm6 = vcmp.ge.f32.partialorder %v1370_v34, 0.0  ;;  %v1890_v17 = vmul.f32 0.01, %v1370_v34  ;;  %v3123_v59 = vpop.f32.mrf.mxu1  ;;  %v2145_v37 = vsel %vm1633_vm4, %v1368_v30, %v1889_v31 }
 0x2ca   :  { %v1374_v47 = vpop.f32.mrf.mxu0  ;;  %3553 = vmatmul.mubr.bf16.gmra.mxu0 %v18146_v44  ;;  %v14090_v63 = vpack.c.bf16 %v2145_v37, %v2143_v52  ;;  %v12396_v52 = vld [vmem:[%s17683_s2 + $0x1e8] sm:$0xff]  }
 0x2cb   :  { %v2146_v62 = vsel %vm1634_vm6, %v1370_v34, %v1890_v17  ;;  %v14085_v10 = vpop.f32.mrf.mxu1  ;;  %3560 = vmatprep.mubr.bf16.mxu0 %v18148_v57  ;;  %v1891_v0 = vmul.f32 0.01, %v1374_v47  ;;  %vm1635_vm8 = vcmp.ge.f32.partialorder %v1374_v47, 0.0  ;;  %v18152_v17 = vld [vmem:[#allocation37_spill] sm:$0xff]  ;;  %4447 = vmatpush2.bf16.msra.mxu0 %v12396_v52  ;;  %v12394_v52 = vld [vmem:[%s17684_s3 + $0x30] sm:$0xff]  }
 0x2cc   :  { %18147 = vst [vmem:[#allocation183_spill] sm:$0xff] %v14085_v10  ;;  %v14088_v5 = vpack.c.bf16 %v2146_v62, %v2144_v32  ;;  %v1376_v27 = vpop.f32.mrf.mxu0  ;;  %18150 = vst [vmem:[#allocation185_spill] sm:$0xff] %v14090_v63  ;;  %v18154_v62 = vld [vmem:[#allocation40_spill] sm:$0xff]  ;;  %4448 = vmatprep.subr.bf16.mxu0 %v18048_v22 }
 0x2cd   :  { %v1892_v14 = vmul.f32 0.01, %v1376_v27  ;;  %v3126_v33 = vpop.f32.mrf.mxu1  ;;  %vm1636_vm0 = vcmp.ge.f32.partialorder %v1376_v27, 0.0 }
 0x2ce   :  { %18149 = vst [vmem:[#allocation184_spill] sm:$0xff] %v14088_v5  ;;  %v1378_v59 = vpop.f32.mrf.mxu0  ;;  %3319 = vmatprep.mubr.bf16.mxu1 %v14088_v5  ;;  %v18178_v5 = vld [vmem:[#allocation57_spill] sm:$0xff] }
 0x2cf   :  { %vm1637_vm7 = vcmp.ge.f32.partialorder %v1378_v59, 0.0  ;;  %v1893_v39 = vmul.f32 0.01, %v1378_v59  ;;  %v14093_v36 = vpop.f32.mrf.mxu1  ;;  %3320 = vmatmul.mubr.bf16.gmra.mxu1 %v14090_v63  ;;  %v2148_v33 = vsel %vm1636_vm0, %v1376_v27, %v1892_v14 }
 0x2d0   :  { %18151 = vst [vmem:[#allocation186_spill] sm:$0xff] %v14093_v36  ;;  %v1380_v30 = vpop.f32.mrf.mxu0  ;;  %v2147_v36 = vsel %vm1635_vm8, %v1374_v47, %v1891_v0 }
 0x2d1   :  { %vm1638_vm9 = vcmp.ge.f32.partialorder %v1380_v30, 0.0  ;;  %v1894_v40 = vmul.f32 0.01, %v1380_v30  ;;  %v3131_v50 = vpop.f32.mrf.mxu1  ;;  %v2149_v31 = vsel %vm1637_vm7, %v1378_v59, %v1893_v39 }
 0x2d2   :  { %v14096_v34 = vpop.f32.mrf.mxu0  ;;  %3561 = vmatmul.mubr.bf16.gmra.mxu0 %v18152_v17  ;;  %v14107_v50 = vpack.c.bf16 %v2149_v31, %v2147_v36  ;;  %v12390_v36 = vld [vmem:[%s17684_s3 + $0x38] sm:$0xff]   ;;  %v12393_v31 = vld [vmem:[%s17684_s3 + $0x70] sm:$0xff]  }
 0x2d3   :  { %v2150_v37 = vsel %vm1638_vm9, %v1380_v30, %v1894_v40  ;;  %v14099_v32 = vpop.f32.mrf.mxu1  ;;  %3568 = vmatprep.mubr.bf16.mxu0 %v18154_v62  ;;  %v18160_v40 = vld [vmem:[#allocation44_spill] sm:$0xff] }
 0x2d4   :  { %18153 = vst [vmem:[#allocation187_spill] sm:$0xff] %v14099_v32  ;;  %v14105_v10 = vpack.c.bf16 %v2150_v37, %v2148_v33  ;;  %v3372_v63 = vpop.f32.mrf.mxu0  ;;  %18156 = vst [vmem:[#allocation189_spill] sm:$0xff] %v14107_v50 }
 0x2d5   :  { %v3134_v59 = vpop.f32.mrf.mxu1  ;;  %v18158_v63 = vld [vmem:[#allocation41_spill] sm:$0xff] }
 0x2d6   :  { %18155 = vst [vmem:[#allocation188_spill] sm:$0xff] %v14105_v10  ;;  %3327 = vmatprep.mubr.bf16.mxu1 %v14105_v10  ;;  %v14110_v14 = vpop.f32.mrf.mxu0  ;;  %v18172_v10 = vld [vmem:[#allocation53_spill] sm:$0xff] }
 0x2d7   :  { %v14113_v27 = vpop.f32.mrf.mxu1  ;;  %3328 = vmatmul.mubr.bf16.gmra.mxu1 %v14107_v50 }
 0x2d8   :  { %18157 = vst [vmem:[#allocation190_spill] sm:$0xff] %v14113_v27  ;;  %v3375_v39 = vpop.f32.mrf.mxu0  ;;  %3913 = vmatprep.mubr.bf16.mxu1 %v13320_v23  ;;  %v18164_v27 = vld [vmem:[#allocation48_spill] sm:$0xff] }
 0x2d9   :  { %v3139_v0 = vpop.f32.mrf.mxu1 }
 0x2da   :  { %v14117_v47 = vpop.f32.mrf.mxu0  ;;  %3569 = vmatmul.mubr.bf16.gmra.mxu0 %v18158_v63 }
 0x2db   :  { %v14123_v30 = vpop.f32.mrf.mxu1  ;;  %3576 = vmatprep.mubr.bf16.mxu0 %v18160_v40 }
 0x2dc   :  { %18159 = vst [vmem:[#allocation191_spill] sm:$0xff] %v14123_v30  ;;  %v3380_v33 = vpop.f32.mrf.mxu0 }
 0x2dd   :  { %v3142_v37 = vpop.f32.mrf.mxu1  ;;  %v18162_v33 = vld [vmem:[#allocation45_spill] sm:$0xff] }
 0x2de   :  { %v14129_v23 = vpop.f32.mrf.mxu0 }
 0x2df   :  { %v14134_v59 = vpop.f32.mrf.mxu1  ;;  %3914 = vmatmul.mubr.bf16.vlgmr.msra.gmra.mxu1 %v13322_v24 }
 0x2e0   :  { %18161 = vst [vmem:[#allocation192_spill] sm:$0xff] %v14134_v59  ;;  %v3383_v39 = vpop.f32.mrf.mxu0  ;;  %3921 = vmatprep.mubr.bf16.mxu1 %v13331_v41  ;;  %11554 = vmatpush3.bf16.msra.mxu1 %v12390_v36  ;;  %v12397_v36 = vld [vmem:[%s17684_s3 + $0x68] sm:$0xff]  }
 0x2e1   :  { %v3147_v0 = vpop.f32.mrf.mxu1  ;;  %11555 = vmatprep.subr.bf16.mxu1 %v12393_v31  ;;  %v12398_v39 = vld [vmem:[%s17684_s3 + $0x28] sm:$0xff]  }
 0x2e2   :  { %v14138_v30 = vpop.f32.mrf.mxu0  ;;  %3577 = vmatmul.mubr.bf16.gmra.mxu0 %v18162_v33 }
 0x2e3   :  { %v14141_v37 = vpop.f32.mrf.mxu1  ;;  %3584 = vmatprep.mubr.bf16.mxu0 %v18164_v27 }
 0x2e4   :  { %18163 = vst [vmem:[#allocation193_spill] sm:$0xff] %v14141_v37  ;;  %v3388_v32 = vpop.f32.mrf.mxu0  ;;  %11556 = vmatpush3.bf16.msra.mxu1 %v12394_v52  ;;  %v18166_v52 = vld [vmem:[#allocation49_spill] sm:$0xff] }
 0x2e5   :  { %v3150_v50 = vpop.f32.mrf.mxu1  ;;  %11557 = vmatprep.subr.bf16.mxu1 %v12397_v36 }
 0x2e6   :  { %v14144_v59 = vpop.f32.mrf.mxu0 }
 0x2e7   :  { %v14146_v24 = vpop.f32.mrf.mxu1  ;;  %3922 = vmatmul.mubr.bf16.gmra.mxu1 %v13333_v43 }
 0x2e8   :  { %18165 = vst [vmem:[#allocation194_spill] sm:$0xff] %v14146_v24  ;;  %v3391_v31 = vpop.f32.mrf.mxu0  ;;  %3929 = vmatprep.mubr.bf16.mxu1 %v13342_v60  ;;  %11558 = vmatpush3.bf16.msra.mxu1 %v12398_v39  ;;  %v18168_v24 = vld [vmem:[#allocation52_spill] sm:$0xff] }
 0x2e9   :  { %v3155_v32 = vpop.f32.mrf.mxu1 }
 0x2ea   :  { %v14156_v50 = vpop.f32.mrf.mxu0  ;;  %3585 = vmatmul.mubr.bf16.gmra.mxu0 %v18166_v52 }
 0x2eb   :  { %v14159_v0 = vpop.f32.mrf.mxu1  ;;  %3592 = vmatprep.mubr.bf16.mxu0 %v18168_v24 }
 0x2ec   :  { %18167 = vst [vmem:[#allocation195_spill] sm:$0xff] %v14159_v0  ;;  %v3396_v37 = vpop.f32.mrf.mxu0  ;;  %v18174_v0 = vld [vmem:[#allocation56_spill] sm:$0xff] }
 0x2ed   :  { %v3158_v43 = vpop.f32.mrf.mxu1 }
 0x2ee   :  { %v14162_v31 = vpop.f32.mrf.mxu0  ;;  %v12399_v43 = vld [vmem:[%s17683_s2 + $0x1e0] sm:$0xff]  }
 0x2ef   :  { %18169 = vst [vmem:[#allocation196_spill] sm:$0xff] %v14162_v31  ;;  %v14164_v60 = vpop.f32.mrf.mxu1  ;;  %3930 = vmatmul.mubr.bf16.gmra.mxu1 %v13347_v2  ;;  %4449 = vmatpush2.bf16.msra.mxu0 %v12399_v43 }
 0x2f0   :  { %18170 = vst [vmem:[#allocation197_spill] sm:$0xff] %v14164_v60  ;;  %v3399_v41 = vpop.f32.mrf.mxu0  ;;  %3937 = vmatprep.mubr.bf16.mxu1 %v13357_v19  ;;  %4450 = vmatprep.subr.bf16.mxu0 %v18048_v22 }
 0x2f1   :  { %v3163_v36 = vpop.f32.mrf.mxu1 }
 0x2f2   :  { %v14168_v32 = vpop.f32.mrf.mxu0  ;;  %3593 = vmatmul.mubr.bf16.gmra.mxu0 %v18172_v10 }
 0x2f3   :  { %18171 = vst [vmem:[#allocation198_spill] sm:$0xff] %v14168_v32  ;;  %v14171_v39 = vpop.f32.mrf.mxu1  ;;  %3600 = vmatprep.mubr.bf16.mxu0 %v18174_v0 }
 0x2f4   :  { %18173 = vst [vmem:[#allocation199_spill] sm:$0xff] %v14171_v39  ;;  %v3404_v37 = vpop.f32.mrf.mxu0 }
 0x2f5   :  { %v3166_v60 = vpop.f32.mrf.mxu1 }
 0x2f6   :  { %v14177_v2 = vpop.f32.mrf.mxu0  ;;  %v18180_v60 = vld [vmem:[#allocation60_spill] sm:$0xff] }
 0x2f7   :  { %18175 = vst [vmem:[#allocation200_spill] sm:$0xff] %v14177_v2  ;;  %v14180_v41 = vpop.f32.mrf.mxu1  ;;  %3938 = vmatmul.mubr.bf16.gmra.mxu1 %v13359_v21 }
 0x2f8   :  { %18176 = vst [vmem:[#allocation201_spill] sm:$0xff] %v14180_v41  ;;  %v3407_v36 = vpop.f32.mrf.mxu0  ;;  %3945 = vmatprep.mubr.bf16.mxu1 %v13372_v42  ;;  %v18184_v42 = vld [vmem:[#allocation61_spill] sm:$0xff] }
 0x2f9   :  { %v3171_v39 = vpop.f32.mrf.mxu1 }
 0x2fa   :  { %v14184_v19 = vpop.f32.mrf.mxu0  ;;  %3601 = vmatmul.mubr.bf16.gmra.mxu0 %v18178_v5 }
 0x2fb   :  { %18177 = vst [vmem:[#allocation202_spill] sm:$0xff] %v14184_v19  ;;  %v14187_v32 = vpop.f32.mrf.mxu1  ;;  %3608 = vmatprep.mubr.bf16.mxu0 %v18180_v60 }
 0x2fc   :  { %18179 = vst [vmem:[#allocation203_spill] sm:$0xff] %v14187_v32  ;;  %v3412_v43 = vpop.f32.mrf.mxu0  ;;  %v18186_v32 = vld [vmem:[#allocation64_spill] sm:$0xff] }
 0x2fd   :  { %v3174_v37 = vpop.f32.mrf.mxu1 }
 0x2fe   :  { %v14190_v2 = vpop.f32.mrf.mxu0 }
 0x2ff   :  { %18181 = vst [vmem:[#allocation204_spill] sm:$0xff] %v14190_v2  ;;  %v14192_v31 = vpop.f32.mrf.mxu1  ;;  %3946 = vmatmul.mubr.bf16.gmra.mxu1 %v13374_v45 }
 0x300   :  { %18182 = vst [vmem:[#allocation205_spill] sm:$0xff] %v14192_v31  ;;  %v3415_v36 = vpop.f32.mrf.mxu0  ;;  %3953 = vmatprep.mubr.bf16.mxu1 %v13383_v3  ;;  %v18190_v3 = vld [vmem:[#allocation65_spill] sm:$0xff] }
 0x301   :  { %v3179_v39 = vpop.f32.mrf.mxu1 }
 0x302   :  { %v14196_v41 = vpop.f32.mrf.mxu0  ;;  %3609 = vmatmul.mubr.bf16.gmra.mxu0 %v18184_v42 }
 0x303   :  { %18183 = vst [vmem:[#allocation206_spill] sm:$0xff] %v14196_v41  ;;  %v14199_v21 = vpop.f32.mrf.mxu1  ;;  %3616 = vmatprep.mubr.bf16.mxu0 %v18186_v32 }
 0x304   :  { %18185 = vst [vmem:[#allocation207_spill] sm:$0xff] %v14199_v21  ;;  %v3420_v43 = vpop.f32.mrf.mxu0  ;;  %v18192_v21 = vld [vmem:[#allocation68_spill] sm:$0xff] }
 0x305   :  { %v3182_v37 = vpop.f32.mrf.mxu1 }
 0x306   :  { %v14202_v19 = vpop.f32.mrf.mxu0 }
 0x307   :  { %18187 = vst [vmem:[#allocation208_spill] sm:$0xff] %v14202_v19  ;;  %v14204_v2 = vpop.f32.mrf.mxu1  ;;  %3954 = vmatmul.mubr.bf16.gmra.mxu1 %v13385_v7 }
 0x308   :  { %18188 = vst [vmem:[#allocation209_spill] sm:$0xff] %v14204_v2  ;;  %v3423_v36 = vpop.f32.mrf.mxu0  ;;  %3961 = vmatprep.mubr.bf16.mxu1 %v13394_v26  ;;  %v18196_v26 = vld [vmem:[#allocation69_spill] sm:$0xff] }
 0x309   :  { %v3187_v39 = vpop.f32.mrf.mxu1 }
 0x30a   :  { %v14208_v31 = vpop.f32.mrf.mxu0  ;;  %3617 = vmatmul.mubr.bf16.gmra.mxu0 %v18190_v3 }
 0x30b   :  { %18189 = vst [vmem:[#allocation210_spill] sm:$0xff] %v14208_v31  ;;  %v14211_v45 = vpop.f32.mrf.mxu1  ;;  %3624 = vmatprep.mubr.bf16.mxu0 %v18192_v21 }
 0x30c   :  { %18191 = vst [vmem:[#allocation211_spill] sm:$0xff] %v14211_v45  ;;  %v3428_v43 = vpop.f32.mrf.mxu0  ;;  %v18198_v45 = vld [vmem:[#allocation72_spill] sm:$0xff] }
 0x30d   :  { %v3190_v37 = vpop.f32.mrf.mxu1  ;;  %v12400_v43 = vld [vmem:[%s17683_s2 + $0x1d8] sm:$0xff]  }
 0x30e   :  { %v14214_v41 = vpop.f32.mrf.mxu0  ;;  %4451 = vmatpush2.bf16.msra.mxu0 %v12400_v43 }
 0x30f   :  { %18193 = vst [vmem:[#allocation212_spill] sm:$0xff] %v14214_v41  ;;  %v14216_v19 = vpop.f32.mrf.mxu1  ;;  %3962 = vmatmul.mubr.bf16.gmra.mxu1 %v13399_v29  ;;  %4452 = vmatprep.subr.bf16.mxu0 %v18048_v22 }
 0x310   :  { %18194 = vst [vmem:[#allocation213_spill] sm:$0xff] %v14216_v19  ;;  %v3431_v36 = vpop.f32.mrf.mxu0  ;;  %3969 = vmatprep.mubr.bf16.mxu1 %v13409_v54 }
 0x311   :  { %v3195_v39 = vpop.f32.mrf.mxu1 }
 0x312   :  { %v14220_v2 = vpop.f32.mrf.mxu0  ;;  %3625 = vmatmul.mubr.bf16.gmra.mxu0 %v18196_v26 }
 0x313   :  { %18195 = vst [vmem:[#allocation214_spill] sm:$0xff] %v14220_v2  ;;  %v14223_v7 = vpop.f32.mrf.mxu1  ;;  %3632 = vmatprep.mubr.bf16.mxu0 %v18198_v45  ;;  %v18202_v2 = vld [vmem:[#allocation73_spill] sm:$0xff] }
 0x314   :  { %18197 = vst [vmem:[#allocation215_spill] sm:$0xff] %v14223_v7  ;;  %v3436_v37 = vpop.f32.mrf.mxu0 }
 0x315   :  { %v3198_v19 = vpop.f32.mrf.mxu1 }
 0x316   :  { %v14229_v29 = vpop.f32.mrf.mxu0  ;;  %v18204_v19 = vld [vmem:[#allocation76_spill] sm:$0xff] }
 0x317   :  { %18199 = vst [vmem:[#allocation216_spill] sm:$0xff] %v14229_v29  ;;  %v14232_v36 = vpop.f32.mrf.mxu1  ;;  %3970 = vmatmul.mubr.bf16.gmra.mxu1 %v13411_v56 }
 0x318   :  { %18200 = vst [vmem:[#allocation217_spill] sm:$0xff] %v14232_v36  ;;  %v3439_v39 = vpop.f32.mrf.mxu0  ;;  %3977 = vmatprep.mubr.bf16.mxu1 %v13424_v15  ;;  %v18207_v15 = vld [vmem:[#allocation77_spill] sm:$0xff] }
 0x319   :  { %v3203_v7 = vpop.f32.mrf.mxu1 }
 0x31a   :  { %v14236_v54 = vpop.f32.mrf.mxu0  ;;  %3633 = vmatmul.mubr.bf16.gmra.mxu0 %v18202_v2 }
 0x31b   :  { %18201 = vst [vmem:[#allocation218_spill] sm:$0xff] %v14236_v54  ;;  %v14239_v41 = vpop.f32.mrf.mxu1  ;;  %3640 = vmatprep.mubr.bf16.mxu0 %v18204_v19 }
 0x31c   :  { %18203 = vst [vmem:[#allocation219_spill] sm:$0xff] %v14239_v41  ;;  %v3444_v43 = vpop.f32.mrf.mxu0  ;;  %v18209_v41 = vld [vmem:[#allocation80_spill] sm:$0xff] }
 0x31d   :  { %v3206_v37 = vpop.f32.mrf.mxu1 }
 0x31e   :  { %v14242_v29 = vpop.f32.mrf.mxu0 }
 0x31f   :  { %18205 = vst [vmem:[#allocation220_spill] sm:$0xff] %v14242_v29  ;;  %v14244_v31 = vpop.f32.mrf.mxu1  ;;  %3978 = vmatmul.mubr.bf16.gmra.mxu1 %v13426_v20 }
 0x320   :  { %18206 = vst [vmem:[#allocation221_spill] sm:$0xff] %v14244_v31  ;;  %v3447_v39 = vpop.f32.mrf.mxu0  ;;  %3985 = vmatprep.mubr.bf16.mxu1 %v13435_v46 }
 0x321   :  { %v3211_v7 = vpop.f32.mrf.mxu1 }
 0x322   :  { %v14248_v36 = vpop.f32.mrf.mxu0  ;;  %3641 = vmatmul.mubr.bf16.gmra.mxu0 %v18207_v15  ;;  %v12401_v7 = vld [vmem:[%s17684_s3 + $0x60] sm:$0xff]  }
 0x323   :  { %v14251_v56 = vpop.f32.mrf.mxu1  ;;  %3648 = vmatprep.mubr.bf16.mxu0 %v18209_v41  ;;  %11559 = vmatprep.subr.bf16.mxu1 %v12401_v7 }
 0x324   :  { %18208 = vst [vmem:[#allocation222_spill] sm:$0xff] %v14251_v56  ;;  %v3452_v43 = vpop.f32.mrf.mxu0  ;;  %v12402_v56 = vld [vmem:[%s17684_s3 + $0x20] sm:$0xff]  }
 0x325   :  { %v3214_v37 = vpop.f32.mrf.mxu1  ;;  %11560 = vmatpush3.bf16.msra.mxu1 %v12402_v56 }
 0x326   :  { %v14254_v54 = vpop.f32.mrf.mxu0  ;;  %v18212_v37 = vld [vmem:[#allocation81_spill] sm:$0xff] }
 0x327   :  { %v14256_v29 = vpop.f32.mrf.mxu1  ;;  %3986 = vmatmul.mubr.bf16.gmra.mxu1 %v13437_v51 }
 0x328   :  { %18210 = vst [vmem:[#allocation223_spill] sm:$0xff] %v14256_v29  ;;  %v3455_v39 = vpop.f32.mrf.mxu0  ;;  %3993 = vmatprep.mubr.bf16.mxu1 %v13446_v12 }
 0x329   :  { %v3219_v31 = vpop.f32.mrf.mxu1 }
 0x32a   :  { %v14266_v43 = vpop.f32.mrf.mxu0  ;;  %3649 = vmatmul.mubr.bf16.gmra.mxu0 %v18212_v37 }
 0x32b   :  { %18211 = vst [vmem:[#allocation224_spill] sm:$0xff] %v14266_v43  ;;  %v14269_v29 = vpop.f32.mrf.mxu1  ;;  %3656 = vmatprep.mubr.bf16.mxu0 %v13731_v9 }
 0x32c   :  { %18213 = vst [vmem:[#allocation225_spill] sm:$0xff] %v14269_v29  ;;  %v3460_v39 = vpop.f32.mrf.mxu0 }
 0x32d   :  { %v3222_v12 = vpop.f32.mrf.mxu1 }
 0x32e   :  { %v14272_v51 = vpop.f32.mrf.mxu0  ;;  %v12403_v12 = vld [vmem:[%s17683_s2 + $0x1d0] sm:$0xff]  }
 0x32f   :  { %v14274_v46 = vpop.f32.mrf.mxu1  ;;  %3994 = vmatmul.mubr.bf16.gmra.mxu1 %v13451_v18  ;;  %4453 = vmatpush2.bf16.msra.mxu0 %v12403_v12 }
 0x330   :  { %18214 = vst [vmem:[#allocation226_spill] sm:$0xff] %v14274_v46  ;;  %v3463_v20 = vpop.f32.mrf.mxu0  ;;  %4001 = vmatprep.mubr.bf16.mxu1 %v13461_v48  ;;  %4454 = vmatprep.subr.bf16.mxu0 %v18048_v22 }
 0x331   :  { %v3227_v31 = vpop.f32.mrf.mxu1 }
 0x332   :  { %v14278_v43 = vpop.f32.mrf.mxu0  ;;  %3657 = vmatmul.mubr.bf16.gmra.mxu0 %v13733_v38 }
 0x333   :  { %v14281_v7 = vpop.f32.mrf.mxu1  ;;  %3664 = vmatprep.mubr.bf16.mxu0 %v13746_v58 }
 0x334   :  { %18215 = vst [vmem:[#allocation227_spill] sm:$0xff] %v14281_v7  ;;  %v3468_v56 = vpop.f32.mrf.mxu0 }
 0x335   :  { %v3230_v39 = vpop.f32.mrf.mxu1  ;;  %v18217_v56 = vld [vmem:[#allocation89_spill] sm:$0xff] }
 0x336   :  { %v14287_v46 = vpop.f32.mrf.mxu0 }
 0x337   :  { %v14289_v20 = vpop.f32.mrf.mxu1  ;;  %4002 = vmatmul.mubr.bf16.gmra.mxu1 %v13463_v55 }
 0x338   :  { %18216 = vst [vmem:[#allocation228_spill] sm:$0xff] %v14289_v20  ;;  %v3471_v31 = vpop.f32.mrf.mxu0  ;;  %4009 = vmatprep.mubr.bf16.mxu1 %v13476_v25 }
 0x339   :  { %v3235_v7 = vpop.f32.mrf.mxu1 }
 0x33a   :  { %v14294_v29 = vpop.f32.mrf.mxu0  ;;  %3665 = vmatmul.mubr.bf16.gmra.mxu0 %v18217_v56 }
 0x33b   :  { %v14297_v48 = vpop.f32.mrf.mxu1  ;;  %3672 = vmatprep.mubr.bf16.mxu0 %v13768_v8 }
 0x33c   :  { %18218 = vst [vmem:[#allocation229_spill] sm:$0xff] %v14297_v48  ;;  %v3476_v39 = vpop.f32.mrf.mxu0 }
 0x33d   :  { %v3238_v12 = vpop.f32.mrf.mxu1 }
 0x33e   :  { %v14300_v18 = vpop.f32.mrf.mxu0 }
 0x33f   :  { %18219 = vst [vmem:[#allocation230_spill] sm:$0xff] %v14300_v18  ;;  %v14302_v20 = vpop.f32.mrf.mxu1  ;;  %4010 = vmatmul.mubr.bf16.gmra.mxu1 %v13478_v28 }
 0x340   :  { %18220 = vst [vmem:[#allocation231_spill] sm:$0xff] %v14302_v20  ;;  %v3479_v31 = vpop.f32.mrf.mxu0  ;;  %4017 = vmatprep.mubr.bf16.mxu1 %v13487_v61 }
 0x341   :  { %v3243_v7 = vpop.f32.mrf.mxu1 }
 0x342   :  { %v14306_v25 = vpop.f32.mrf.mxu0  ;;  %3673 = vmatmul.mubr.bf16.gmra.mxu0 %v13771_v53 }
 0x343   :  { %v14309_v55 = vpop.f32.mrf.mxu1  ;;  %3680 = vmatprep.mubr.bf16.mxu0 %v13788_v11 }
 0x344   :  { %18221 = vst [vmem:[#allocation232_spill] sm:$0xff] %v14309_v55  ;;  %v3484_v39 = vpop.f32.mrf.mxu0 }
 0x345   :  { %v3246_v12 = vpop.f32.mrf.mxu1 }
 0x346   :  { %v14312_v48 = vpop.f32.mrf.mxu0 }
 0x347   :  { %18222 = vst [vmem:[#allocation233_spill] sm:$0xff] %v14312_v48  ;;  %v14314_v18 = vpop.f32.mrf.mxu1  ;;  %4018 = vmatmul.mubr.bf16.gmra.mxu1 %v13489_v4 }
 0x348   :  { %18223 = vst [vmem:[#allocation234_spill] sm:$0xff] %v14314_v18  ;;  %v3487_v31 = vpop.f32.mrf.mxu0  ;;  %4025 = vmatprep.mubr.bf16.mxu1 %v18130_v35 }
 0x349   :  { %v3251_v7 = vpop.f32.mrf.mxu1 }
 0x34a   :  { %v14318_v20 = vpop.f32.mrf.mxu0  ;;  %3681 = vmatmul.mubr.bf16.gmra.mxu0 %v13791_v1 }
 0x34b   :  { %18224 = vst [vmem:[#allocation235_spill] sm:$0xff] %v14318_v20  ;;  %v14321_v61 = vpop.f32.mrf.mxu1  ;;  %3688 = vmatprep.mubr.bf16.mxu0 %v13805_v49 }
 0x34c   :  { %18225 = vst [vmem:[#allocation236_spill] sm:$0xff] %v14321_v61  ;;  %v3492_v39 = vpop.f32.mrf.mxu0  ;;  %v18230_v61 = vld [vmem:[#allocation104_spill] sm:$0xff] }
 0x34d   :  { %v3254_v12 = vpop.f32.mrf.mxu1 }
 0x34e   :  { %v14324_v55 = vpop.f32.mrf.mxu0  ;;  %v12404_v12 = vld [vmem:[%s17683_s2 + $0x1c8] sm:$0xff]  }
 0x34f   :  { %18226 = vst [vmem:[#allocation237_spill] sm:$0xff] %v14324_v55  ;;  %v14326_v28 = vpop.f32.mrf.mxu1  ;;  %4026 = vmatmul.mubr.bf16.gmra.mxu1 %v18134_v6  ;;  %4455 = vmatpush2.bf16.msra.mxu0 %v12404_v12  ;;  %v18234_v6 = vld [vmem:[#allocation32_spill] sm:$0xff] }
 0x350   :  { %18227 = vst [vmem:[#allocation238_spill] sm:$0xff] %v14326_v28  ;;  %v3495_v31 = vpop.f32.mrf.mxu0  ;;  %4033 = vmatprep.mubr.bf16.mxu1 %v18136_v16  ;;  %4456 = vmatprep.subr.bf16.mxu0 %v18048_v22 }
 0x351   :  { %v3259_v7 = vpop.f32.mrf.mxu1 }
 0x352   :  { %v14330_v18 = vpop.f32.mrf.mxu0  ;;  %3689 = vmatmul.mubr.bf16.gmra.mxu0 %v13808_v13  ;;  %v18233_v7 = vld [vmem:[#allocation31_spill] sm:$0xff] }
 0x353   :  { %18228 = vst [vmem:[#allocation239_spill] sm:$0xff] %v14330_v18  ;;  %v14333_v35 = vpop.f32.mrf.mxu1  ;;  %3696 = vmatprep.mubr.bf16.mxu0 %v18230_v61 }
 0x354   :  { %18229 = vst [vmem:[#allocation240_spill] sm:$0xff] %v14333_v35  ;;  %v3500_v39 = vpop.f32.mrf.mxu0 }
 0x355   :  { %v3262_v28 = vpop.f32.mrf.mxu1  ;;  %v18236_v39 = vld [vmem:[#allocation105_spill] sm:$0xff] }
 0x356   :  { %v14339_v4 = vpop.f32.mrf.mxu0  ;;  %v18238_v28 = vld [vmem:[#allocation108_spill] sm:$0xff] }
 0x357   :  { %18231 = vst [vmem:[#allocation241_spill] sm:$0xff] %v14339_v4  ;;  %v14341_v31 = vpop.f32.mrf.mxu1  ;;  %4034 = vmatmul.mubr.bf16.gmra.mxu1 %v18233_v7  ;;  %v18242_v7 = vld [vmem:[#allocation109_spill] sm:$0xff] }
 0x358   :  { %18232 = vst [vmem:[#allocation242_spill] sm:$0xff] %v14341_v31  ;;  %v3503_v16 = vpop.f32.mrf.mxu0  ;;  %4041 = vmatprep.mubr.bf16.mxu1 %v18234_v6 }
 0x359   :  { %v3267_v35 = vpop.f32.mrf.mxu1 }
 0x35a   :  { %v14346_v18 = vpop.f32.mrf.mxu0  ;;  %3697 = vmatmul.mubr.bf16.gmra.mxu0 %v18236_v39 }
 0x35b   :  { %18235 = vst [vmem:[#allocation243_spill] sm:$0xff] %v14346_v18  ;;  %v14349_v55 = vpop.f32.mrf.mxu1  ;;  %3704 = vmatprep.mubr.bf16.mxu0 %v18238_v28 }
 0x35c   :  { %18237 = vst [vmem:[#allocation244_spill] sm:$0xff] %v14349_v55  ;;  %v3508_v4 = vpop.f32.mrf.mxu0  ;;  %v18244_v55 = vld [vmem:[#allocation112_spill] sm:$0xff] }
 0x35d   :  { %v3270_v12 = vpop.f32.mrf.mxu1 }
 0x35e   :  { %v14352_v20 = vpop.f32.mrf.mxu0 }
 0x35f   :  { %18239 = vst [vmem:[#allocation245_spill] sm:$0xff] %v14352_v20  ;;  %v14354_v31 = vpop.f32.mrf.mxu1  ;;  %4042 = vmatmul.mubr.bf16.gmra.mxu1 %v18146_v44 }
 0x360   :  { %18240 = vst [vmem:[#allocation246_spill] sm:$0xff] %v14354_v31  ;;  %v3511_v16 = vpop.f32.mrf.mxu0  ;;  %4049 = vmatprep.mubr.bf16.mxu1 %v18148_v57 }
 0x361   :  { %v3275_v35 = vpop.f32.mrf.mxu1 }
 0x362   :  { %v14358_v6 = vpop.f32.mrf.mxu0  ;;  %3705 = vmatmul.mubr.bf16.gmra.mxu0 %v18242_v7  ;;  %v12405_v35 = vld [vmem:[%s17684_s3 + $0x58] sm:$0xff]  }
 0x363   :  { %18241 = vst [vmem:[#allocation247_spill] sm:$0xff] %v14358_v6  ;;  %v14361_v18 = vpop.f32.mrf.mxu1  ;;  %3712 = vmatprep.mubr.bf16.mxu0 %v18244_v55  ;;  %11561 = vmatprep.subr.bf16.mxu1 %v12405_v35  ;;  %v18254_v35 = vld [vmem:[#allocation117_spill] sm:$0xff]  ;;  %v18256_v6 = vld [vmem:[#allocation120_spill] sm:$0xff] }
 0x364   :  { %18243 = vst [vmem:[#allocation248_spill] sm:$0xff] %v14361_v18  ;;  %v3516_v4 = vpop.f32.mrf.mxu0  ;;  %v12406_v18 = vld [vmem:[%s17684_s3 + $0x18] sm:$0xff]  }
 0x365   :  { %v3278_v12 = vpop.f32.mrf.mxu1  ;;  %11562 = vmatpush3.bf16.msra.mxu1 %v12406_v18 }
 0x366   :  { %v14364_v48 = vpop.f32.mrf.mxu0  ;;  %v18248_v12 = vld [vmem:[#allocation113_spill] sm:$0xff] }
 0x367   :  { %18245 = vst [vmem:[#allocation249_spill] sm:$0xff] %v14364_v48  ;;  %v14366_v20 = vpop.f32.mrf.mxu1  ;;  %4050 = vmatmul.mubr.bf16.gmra.mxu1 %v18152_v17  ;;  %v18250_v17 = vld [vmem:[#allocation116_spill] sm:$0xff] }
 0x368   :  { %18246 = vst [vmem:[#allocation250_spill] sm:$0xff] %v14366_v20  ;;  %v3519_v16 = vpop.f32.mrf.mxu0  ;;  %4057 = vmatprep.mubr.bf16.mxu1 %v18154_v62 }
 0x369   :  { %v3283_v31 = vpop.f32.mrf.mxu1 }
 0x36a   :  { %v14376_v4 = vpop.f32.mrf.mxu0  ;;  %3713 = vmatmul.mubr.bf16.gmra.mxu0 %v18248_v12 }
 0x36b   :  { %18247 = vst [vmem:[#allocation251_spill] sm:$0xff] %v14376_v4  ;;  %v14379_v20 = vpop.f32.mrf.mxu1  ;;  %3720 = vmatprep.mubr.bf16.mxu0 %v18250_v17 }
 0x36c   :  { %18249 = vst [vmem:[#allocation252_spill] sm:$0xff] %v14379_v20  ;;  %v3524_v16 = vpop.f32.mrf.mxu0 }
 0x36d   :  { %v3286_v62 = vpop.f32.mrf.mxu1 }
 0x36e   :  { %v14382_v57 = vpop.f32.mrf.mxu0  ;;  %v12407_v62 = vld [vmem:[%s17683_s2 + $0x1c0] sm:$0xff]  }
 0x36f   :  { %18251 = vst [vmem:[#allocation253_spill] sm:$0xff] %v14382_v57  ;;  %v14384_v44 = vpop.f32.mrf.mxu1  ;;  %4058 = vmatmul.mubr.bf16.gmra.mxu1 %v18158_v63  ;;  %4457 = vmatpush2.bf16.msra.mxu0 %v12407_v62  ;;  %v18260_v63 = vld [vmem:[#allocation121_spill] sm:$0xff] }
 0x370   :  { %18252 = vst [vmem:[#allocation254_spill] sm:$0xff] %v14384_v44  ;;  %v3527_v48 = vpop.f32.mrf.mxu0  ;;  %4065 = vmatprep.mubr.bf16.mxu1 %v18160_v40 }
 0x371   :  { %v3291_v31 = vpop.f32.mrf.mxu1 }
 0x372   :  { %v14388_v4 = vpop.f32.mrf.mxu0  ;;  %3721 = vmatmul.mubr.bf16.gmra.mxu0 %v18254_v35 }
 0x373   :  { %18253 = vst [vmem:[#allocation255_spill] sm:$0xff] %v14388_v4  ;;  %v14391_v20 = vpop.f32.mrf.mxu1  ;;  %3728 = vmatprep.mubr.bf16.mxu0 %v18256_v6  ;;  %v18262_v4 = vld [vmem:[#allocation124_spill] sm:$0xff] }
 0x374   :  { %18255 = vst [vmem:[#allocation256_spill] sm:$0xff] %v14391_v20  ;;  %v3532_v18 = vpop.f32.mrf.mxu0 }
 0x375   :  { %v3294_v16 = vpop.f32.mrf.mxu1 }
 0x376   :  { %v14397_v44 = vpop.f32.mrf.mxu0 }
 0x377   :  { %18257 = vst [vmem:[#allocation257_spill] sm:$0xff] %v14397_v44  ;;  %v14399_v48 = vpop.f32.mrf.mxu1  ;;  %4066 = vmatmul.mubr.bf16.gmra.mxu1 %v18162_v33 }
 0x378   :  { %18258 = vst [vmem:[#allocation258_spill] sm:$0xff] %v14399_v48  ;;  %v3535_v31 = vpop.f32.mrf.mxu0  ;;  %4073 = vmatprep.mubr.bf16.mxu1 %v18164_v27  ;;  %v18266_v27 = vld [vmem:[#allocation125_spill] sm:$0xff] }
 0x379   :  { %v3299_v40 = vpop.f32.mrf.mxu1 }
 0x37a   :  { %v14403_v20 = vpop.f32.mrf.mxu0  ;;  %3729 = vmatmul.mubr.bf16.gmra.mxu0 %v18260_v63 }
 0x37b   :  { %18259 = vst [vmem:[#allocation259_spill] sm:$0xff] %v14403_v20  ;;  %v14406_v18 = vpop.f32.mrf.mxu1  ;;  %3736 = vmatprep.mubr.bf16.mxu0 %v18262_v4 }
 0x37c   :  { %18261 = vst [vmem:[#allocation260_spill] sm:$0xff] %v14406_v18  ;;  %v3540_v16 = vpop.f32.mrf.mxu0  ;;  %v18268_v18 = vld [vmem:[#allocation128_spill] sm:$0xff] }
 0x37d   :  { %v3302_v57 = vpop.f32.mrf.mxu1 }
 0x37e   :  { %v14409_v44 = vpop.f32.mrf.mxu0 }
 0x37f   :  { %18263 = vst [vmem:[#allocation261_spill] sm:$0xff] %v14409_v44  ;;  %v14411_v62 = vpop.f32.mrf.mxu1  ;;  %4074 = vmatmul.mubr.bf16.gmra.mxu1 %v18166_v52 }
 0x380   :  { %18264 = vst [vmem:[#allocation262_spill] sm:$0xff] %v14411_v62  ;;  %v3543_v31 = vpop.f32.mrf.mxu0  ;;  %4081 = vmatprep.mubr.bf16.mxu1 %v18168_v24  ;;  %v18272_v24 = vld [vmem:[#allocation129_spill] sm:$0xff] }
 0x381   :  { %v3307_v40 = vpop.f32.mrf.mxu1 }
 0x382   :  { %v14415_v48 = vpop.f32.mrf.mxu0  ;;  %3737 = vmatmul.mubr.bf16.gmra.mxu0 %v18266_v27 }
 0x383   :  { %18265 = vst [vmem:[#allocation263_spill] sm:$0xff] %v14415_v48  ;;  %v14418_v33 = vpop.f32.mrf.mxu1  ;;  %3744 = vmatprep.mubr.bf16.mxu0 %v18268_v18 }
 0x384   :  { %18267 = vst [vmem:[#allocation264_spill] sm:$0xff] %v14418_v33  ;;  %v3548_v16 = vpop.f32.mrf.mxu0  ;;  %v18274_v33 = vld [vmem:[#allocation132_spill] sm:$0xff] }
 0x385   :  { %v3310_v57 = vpop.f32.mrf.mxu1 }
 0x386   :  { %v14421_v20 = vpop.f32.mrf.mxu0 }
 0x387   :  { %18269 = vst [vmem:[#allocation265_spill] sm:$0xff] %v14421_v20  ;;  %v14423_v44 = vpop.f32.mrf.mxu1  ;;  %4082 = vmatmul.mubr.bf16.gmra.mxu1 %v18172_v10 }
 0x388   :  { %18270 = vst [vmem:[#allocation266_spill] sm:$0xff] %v14423_v44  ;;  %v3551_v31 = vpop.f32.mrf.mxu0  ;;  %4089 = vmatprep.mubr.bf16.mxu1 %v18174_v0  ;;  %v18278_v0 = vld [vmem:[#allocation133_spill] sm:$0xff] }
 0x389   :  { %v3315_v40 = vpop.f32.mrf.mxu1 }
 0x38a   :  { %v14427_v62 = vpop.f32.mrf.mxu0  ;;  %3745 = vmatmul.mubr.bf16.gmra.mxu0 %v18272_v24 }
 0x38b   :  { %18271 = vst [vmem:[#allocation267_spill] sm:$0xff] %v14427_v62  ;;  %v14430_v52 = vpop.f32.mrf.mxu1  ;;  %3752 = vmatprep.mubr.bf16.mxu0 %v18274_v33 }
 0x38c   :  { %18273 = vst [vmem:[#allocation268_spill] sm:$0xff] %v14430_v52  ;;  %v3556_v16 = vpop.f32.mrf.mxu0  ;;  %v18280_v52 = vld [vmem:[#allocation136_spill] sm:$0xff] }
 0x38d   :  { %v3318_v57 = vpop.f32.mrf.mxu1 }
 0x38e   :  { %v14433_v48 = vpop.f32.mrf.mxu0 }
 0x38f   :  { %18275 = vst [vmem:[#allocation269_spill] sm:$0xff] %v14433_v48  ;;  %v14435_v20 = vpop.f32.mrf.mxu1  ;;  %4090 = vmatmul.mubr.bf16.gmra.mxu1 %v18178_v5 }
 0x390   :  { %18276 = vst [vmem:[#allocation270_spill] sm:$0xff] %v14435_v20  ;;  %v3559_v31 = vpop.f32.mrf.mxu0  ;;  %4097 = vmatprep.mubr.bf16.mxu1 %v18180_v60  ;;  %v18284_v60 = vld [vmem:[#allocation137_spill] sm:$0xff] }
 0x391   :  { %v3323_v40 = vpop.f32.mrf.mxu1 }
 0x392   :  { %v14439_v44 = vpop.f32.mrf.mxu0  ;;  %3753 = vmatmul.mubr.bf16.gmra.mxu0 %v18278_v0 }
 0x393   :  { %18277 = vst [vmem:[#allocation271_spill] sm:$0xff] %v14439_v44  ;;  %v14442_v10 = vpop.f32.mrf.mxu1  ;;  %3760 = vmatprep.mubr.bf16.mxu0 %v18280_v52  ;;  %v18287_v44 = vld [vmem:[#allocation34_spill] sm:$0xff] }
 0x394   :  { %18279 = vst [vmem:[#allocation272_spill] sm:$0xff] %v14442_v10  ;;  %v3564_v16 = vpop.f32.mrf.mxu0  ;;  %v18286_v10 = vld [vmem:[#allocation140_spill] sm:$0xff] }
 0x395   :  { %v3326_v57 = vpop.f32.mrf.mxu1 }
 0x396   :  { %v14445_v62 = vpop.f32.mrf.mxu0 }
 0x397   :  { %18281 = vst [vmem:[#allocation273_spill] sm:$0xff] %v14445_v62  ;;  %v14447_v48 = vpop.f32.mrf.mxu1  ;;  %4098 = vmatmul.mubr.bf16.gmra.mxu1 %v18184_v42  ;;  %v3371_v62 = vadd.f32 %v14096_v34, %v18287_v44 }
 0x398   :  { %18282 = vst [vmem:[#allocation274_spill] sm:$0xff] %v14447_v48  ;;  %v3567_v31 = vpop.f32.mrf.mxu0  ;;  %4105 = vmatprep.mubr.bf16.mxu1 %v18186_v32 }
 0x399   :  { %v3331_v40 = vpop.f32.mrf.mxu1 }
 0x39a   :  { %v14451_v20 = vpop.f32.mrf.mxu0  ;;  %3761 = vmatmul.mubr.bf16.gmra.mxu0 %v18284_v60 }
 0x39b   :  { %18283 = vst [vmem:[#allocation275_spill] sm:$0xff] %v14451_v20  ;;  %v14454_v5 = vpop.f32.mrf.mxu1  ;;  %3768 = vmatprep.mubr.bf16.mxu0 %v18286_v10  ;;  %v18290_v20 = vld [vmem:[#allocation35_spill] sm:$0xff] }
 0x39c   :  { %18285 = vst [vmem:[#allocation276_spill] sm:$0xff] %v14454_v5  ;;  %v3572_v16 = vpop.f32.mrf.mxu0  ;;  %v3374_v5 = vadd.f32 %v14110_v14, %v18290_v20 }
 0x39d   :  { %v3334_v57 = vpop.f32.mrf.mxu1  ;;  %v18291_v16 = vld [vmem:[#allocation141_spill] sm:$0xff] }
 0x39e   :  { %v14459_v48 = vpop.f32.mrf.mxu0  ;;  %v18292_v57 = vld [vmem:[#allocation144_spill] sm:$0xff] }
 0x39f   :  { %18288 = vst [vmem:[#allocation34_spill] sm:$0xff] %v14459_v48  ;;  %v3915_v42 = vpop.f32.mrf.mxu1  ;;  %4106 = vmatmul.mubr.bf16.gmra.mxu1 %v18190_v3 }
 0x3a0   :  { %v14462_v31 = vadd.f32 %v3915_v42, %v3371_v62  ;;  %v3575_v40 = vpop.f32.mrf.mxu0  ;;  %4113 = vmatprep.mubr.bf16.mxu1 %v18192_v21  ;;  %v18294_v42 = vld [vmem:[#allocation38_spill] sm:$0xff] }
 0x3a1   :  { %v3917_v32 = vpop.f32.mrf.mxu1  ;;  %v3379_v62 = vadd.f32 %v14117_v47, %v18294_v42  ;;  %v18296_v47 = vld [vmem:[#allocation39_spill] sm:$0xff] }
 0x3a2   :  { %18289 = vst [vmem:[#allocation277_spill] sm:$0xff] %v14462_v31  ;;  %v14467_v10 = vpop.f32.mrf.mxu0  ;;  %3769 = vmatmul.mubr.bf16.gmra.mxu0 %v18291_v16  ;;  %v18301_v31 = vld [vmem:[#allocation42_spill] sm:$0xff] }
 0x3a3   :  { %3776 = vmatprep.mubr.bf16.mxu0 %v18292_v57  ;;  %v3918_v44 = vpop.f32.mrf.mxu1 }
 0x3a4   :  { %v14471_v34 = vadd.f32 %v3918_v44, %v3374_v5  ;;  %v3580_v48 = vpop.f32.mrf.mxu0  ;;  %v12408_v5 = vld [vmem:[%s17684_s3 + $0x50] sm:$0xff]   ;;  %v3382_v44 = vadd.f32 %v14129_v23, %v18296_v47 }
 0x3a5   :  { %v3920_v3 = vpop.f32.mrf.mxu1  ;;  %11563 = vmatprep.subr.bf16.mxu1 %v12408_v5 }
 0x3a6   :  { %18293 = vst [vmem:[#allocation35_spill] sm:$0xff] %v14471_v34  ;;  %v14475_v40 = vpop.f32.mrf.mxu0  ;;  %v12409_v3 = vld [vmem:[%s17684_s3 + $0x10] sm:$0xff]   ;;  %v18298_v34 = vld [vmem:[#allocation145_spill] sm:$0xff] }
 0x3a7   :  { %v3923_v32 = vpop.f32.mrf.mxu1  ;;  %4114 = vmatmul.mubr.bf16.gmra.mxu1 %v18196_v26  ;;  %v3387_v26 = vadd.f32 %v14138_v30, %v18301_v31 }
 0x3a8   :  { %v14478_v14 = vadd.f32 %v3923_v32, %v3379_v62  ;;  %v3583_v20 = vpop.f32.mrf.mxu0  ;;  %4121 = vmatprep.mubr.bf16.mxu1 %v18198_v45  ;;  %v18299_v62 = vld [vmem:[#allocation148_spill] sm:$0xff]  ;;  %11564 = vmatpush3.bf16.msra.mxu1 %v12409_v3 }
 0x3a9   :  { %v3925_v48 = vpop.f32.mrf.mxu1 }
 0x3aa   :  { %18295 = vst [vmem:[#allocation38_spill] sm:$0xff] %v14478_v14  ;;  %v14489_v42 = vpop.f32.mrf.mxu0  ;;  %3777 = vmatmul.mubr.bf16.gmra.mxu0 %v18298_v34 }
 0x3ab   :  { %18297 = vst [vmem:[#allocation39_spill] sm:$0xff] %v14489_v42  ;;  %3784 = vmatprep.mubr.bf16.mxu0 %v18299_v62  ;;  %v3926_v32 = vpop.f32.mrf.mxu1  ;;  %v18303_v42 = vld [vmem:[#allocation43_spill] sm:$0xff] }
 0x3ac   :  { %v14493_v20 = vadd.f32 %v3926_v32, %v3382_v44  ;;  %v3588_v14 = vpop.f32.mrf.mxu0  ;;  %v3390_v3 = vadd.f32 %v14144_v59, %v18303_v42 }
 0x3ad   :  { %v3928_v45 = vpop.f32.mrf.mxu1  ;;  %v18305_v14 = vld [vmem:[#allocation152_spill] sm:$0xff] }
 0x3ae   :  { %18300 = vst [vmem:[#allocation278_spill] sm:$0xff] %v14493_v20  ;;  %v14497_v48 = vpop.f32.mrf.mxu0  ;;  %v18304_v45 = vld [vmem:[#allocation149_spill] sm:$0xff] }
 0x3af   :  { %v3931_v21 = vpop.f32.mrf.mxu1  ;;  %4122 = vmatmul.mubr.bf16.gmra.mxu1 %v18202_v2  ;;  %v18311_v2 = vld [vmem:[#allocation196_spill] sm:$0xff] }
 0x3b0   :  { %v14500_v23 = vadd.f32 %v3931_v21, %v3387_v26  ;;  %v3591_v47 = vpop.f32.mrf.mxu0  ;;  %4129 = vmatprep.mubr.bf16.mxu1 %v18204_v19  ;;  %v18307_v21 = vld [vmem:[#allocation46_spill] sm:$0xff]  ;;  %v18310_v19 = vld [vmem:[#allocation47_spill] sm:$0xff] }
 0x3b1   :  { %v3933_v5 = vpop.f32.mrf.mxu1  ;;  %v3395_v26 = vadd.f32 %v14156_v50, %v18307_v21 }
 0x3b2   :  { %18302 = vst [vmem:[#allocation42_spill] sm:$0xff] %v14500_v23  ;;  %v14505_v44 = vpop.f32.mrf.mxu0  ;;  %3785 = vmatmul.mubr.bf16.gmra.mxu0 %v18304_v45 }
 0x3b3   :  { %3792 = vmatprep.mubr.bf16.mxu0 %v18305_v14  ;;  %v3934_v30 = vpop.f32.mrf.mxu1 }
 0x3b4   :  { %v14509_v31 = vadd.f32 %v3934_v30, %v3390_v3  ;;  %v3596_v32 = vpop.f32.mrf.mxu0  ;;  %v3398_v3 = vadd.f32 %v18311_v2, %v18310_v19 }
 0x3b5   :  { %v3936_v20 = vpop.f32.mrf.mxu1  ;;  %v18314_v32 = vld [vmem:[#allocation156_spill] sm:$0xff] }
 0x3b6   :  { %18306 = vst [vmem:[#allocation43_spill] sm:$0xff] %v14509_v31  ;;  %v14513_v47 = vpop.f32.mrf.mxu0  ;;  %v18313_v20 = vld [vmem:[#allocation153_spill] sm:$0xff] }
 0x3b7   :  { %18308 = vst [vmem:[#allocation46_spill] sm:$0xff] %v14513_v47  ;;  %v3939_v5 = vpop.f32.mrf.mxu1  ;;  %4130 = vmatmul.mubr.bf16.gmra.mxu1 %v18207_v15  ;;  %v18321_v47 = vld [vmem:[#allocation200_spill] sm:$0xff] }
 0x3b8   :  { %v14516_v59 = vadd.f32 %v3939_v5, %v3395_v26  ;;  %v3599_v42 = vpop.f32.mrf.mxu0  ;;  %4137 = vmatprep.mubr.bf16.mxu1 %v18209_v41  ;;  %v18316_v26 = vld [vmem:[#allocation50_spill] sm:$0xff] }
 0x3b9   :  { %v3941_v23 = vpop.f32.mrf.mxu1  ;;  %v18317_v5 = vld [vmem:[#allocation198_spill] sm:$0xff] }
 0x3ba   :  { %18309 = vst [vmem:[#allocation279_spill] sm:$0xff] %v14516_v59  ;;  %v14521_v30 = vpop.f32.mrf.mxu0  ;;  %3793 = vmatmul.mubr.bf16.gmra.mxu0 %v18313_v20  ;;  %v3403_v42 = vadd.f32 %v18317_v5, %v18316_v26 }
 0x3bb   :  { %18312 = vst [vmem:[#allocation47_spill] sm:$0xff] %v14521_v30  ;;  %3800 = vmatprep.mubr.bf16.mxu0 %v18314_v32  ;;  %v3942_v50 = vpop.f32.mrf.mxu1  ;;  %v18320_v30 = vld [vmem:[#allocation51_spill] sm:$0xff] }
 0x3bc   :  { %v14525_v21 = vadd.f32 %v3942_v50, %v3398_v3  ;;  %v3604_v31 = vpop.f32.mrf.mxu0  ;;  %v3406_v3 = vadd.f32 %v18321_v47, %v18320_v30 }
 0x3bd   :  { %v3944_v15 = vpop.f32.mrf.mxu1  ;;  %v18324_v31 = vld [vmem:[#allocation160_spill] sm:$0xff] }
 0x3be   :  { %18315 = vst [vmem:[#allocation196_spill] sm:$0xff] %v14525_v21  ;;  %v14529_v59 = vpop.f32.mrf.mxu0  ;;  %v18323_v15 = vld [vmem:[#allocation157_spill] sm:$0xff] }
 0x3bf   :  { %18318 = vst [vmem:[#allocation50_spill] sm:$0xff] %v14529_v59  ;;  %v3947_v23 = vpop.f32.mrf.mxu1  ;;  %4138 = vmatmul.mubr.bf16.gmra.mxu1 %v18212_v37  ;;  %v18331_v59 = vld [vmem:[#allocation204_spill] sm:$0xff] }
 0x3c0   :  { %v14532_v2 = vadd.f32 %v3947_v23, %v3403_v42  ;;  %v3607_v19 = vpop.f32.mrf.mxu0  ;;  %4145 = vmatprep.mubr.bf16.mxu1 %v13731_v9  ;;  %v18326_v42 = vld [vmem:[#allocation54_spill] sm:$0xff] }
 0x3c1   :  { %v3949_v41 = vpop.f32.mrf.mxu1  ;;  %v18327_v23 = vld [vmem:[#allocation202_spill] sm:$0xff] }
 0x3c2   :  { %18319 = vst [vmem:[#allocation198_spill] sm:$0xff] %v14532_v2  ;;  %v14537_v50 = vpop.f32.mrf.mxu0  ;;  %3801 = vmatmul.mubr.bf16.gmra.mxu0 %v18323_v15  ;;  %v3411_v19 = vadd.f32 %v18327_v23, %v18326_v42 }
 0x3c3   :  { %18322 = vst [vmem:[#allocation51_spill] sm:$0xff] %v14537_v50  ;;  %3808 = vmatprep.mubr.bf16.mxu0 %v18324_v31  ;;  %v3950_v26 = vpop.f32.mrf.mxu1  ;;  %v18330_v50 = vld [vmem:[#allocation55_spill] sm:$0xff] }
 0x3c4   :  { %v14541_v5 = vadd.f32 %v3950_v26, %v3406_v3  ;;  %v3612_v21 = vpop.f32.mrf.mxu0  ;;  %v3414_v3 = vadd.f32 %v18331_v59, %v18330_v50 }
 0x3c5   :  { %v3952_v37 = vpop.f32.mrf.mxu1  ;;  %v18334_v21 = vld [vmem:[#allocation164_spill] sm:$0xff] }
 0x3c6   :  { %18325 = vst [vmem:[#allocation200_spill] sm:$0xff] %v14541_v5  ;;  %v14545_v2 = vpop.f32.mrf.mxu0  ;;  %v18333_v37 = vld [vmem:[#allocation161_spill] sm:$0xff] }
 0x3c7   :  { %18328 = vst [vmem:[#allocation54_spill] sm:$0xff] %v14545_v2  ;;  %v3955_v41 = vpop.f32.mrf.mxu1  ;;  %4146 = vmatmul.mubr.bf16.gmra.mxu1 %v13733_v38  ;;  %v18341_v2 = vld [vmem:[#allocation208_spill] sm:$0xff] }
 0x3c8   :  { %v14548_v47 = vadd.f32 %v3955_v41, %v3411_v19  ;;  %v3615_v30 = vpop.f32.mrf.mxu0  ;;  %4153 = vmatprep.mubr.bf16.mxu1 %v13746_v58  ;;  %v18336_v19 = vld [vmem:[#allocation58_spill] sm:$0xff] }
 0x3c9   :  { %v3957_v9 = vpop.f32.mrf.mxu1  ;;  %v18337_v41 = vld [vmem:[#allocation206_spill] sm:$0xff] }
 0x3ca   :  { %18329 = vst [vmem:[#allocation202_spill] sm:$0xff] %v14548_v47  ;;  %v14553_v26 = vpop.f32.mrf.mxu0  ;;  %3809 = vmatmul.mubr.bf16.gmra.mxu0 %v18333_v37  ;;  %v3419_v30 = vadd.f32 %v18337_v41, %v18336_v19 }
 0x3cb   :  { %18332 = vst [vmem:[#allocation55_spill] sm:$0xff] %v14553_v26  ;;  %3816 = vmatprep.mubr.bf16.mxu0 %v18334_v21  ;;  %v3958_v42 = vpop.f32.mrf.mxu1  ;;  %v18340_v26 = vld [vmem:[#allocation59_spill] sm:$0xff] }
 0x3cc   :  { %v14557_v23 = vadd.f32 %v3958_v42, %v3414_v3  ;;  %v3620_v5 = vpop.f32.mrf.mxu0  ;;  %v3422_v3 = vadd.f32 %v18341_v2, %v18340_v26 }
 0x3cd   :  { %v3960_v38 = vpop.f32.mrf.mxu1  ;;  %v18344_v5 = vld [vmem:[#allocation168_spill] sm:$0xff] }
 0x3ce   :  { %18335 = vst [vmem:[#allocation204_spill] sm:$0xff] %v14557_v23  ;;  %v14561_v47 = vpop.f32.mrf.mxu0  ;;  %v18343_v38 = vld [vmem:[#allocation165_spill] sm:$0xff] }
 0x3cf   :  { %18338 = vst [vmem:[#allocation58_spill] sm:$0xff] %v14561_v47  ;;  %v3963_v9 = vpop.f32.mrf.mxu1  ;;  %4154 = vmatmul.mubr.bf16.gmra.mxu1 %v18217_v56  ;;  %v18351_v47 = vld [vmem:[#allocation212_spill] sm:$0xff] }
 0x3d0   :  { %v14564_v59 = vadd.f32 %v3963_v9, %v3419_v30  ;;  %v3623_v50 = vpop.f32.mrf.mxu0  ;;  %4161 = vmatprep.mubr.bf16.mxu1 %v13768_v8  ;;  %v18346_v30 = vld [vmem:[#allocation62_spill] sm:$0xff] }
 0x3d1   :  { %v3965_v58 = vpop.f32.mrf.mxu1  ;;  %v18347_v9 = vld [vmem:[#allocation210_spill] sm:$0xff] }
 0x3d2   :  { %18339 = vst [vmem:[#allocation206_spill] sm:$0xff] %v14564_v59  ;;  %v14569_v42 = vpop.f32.mrf.mxu0  ;;  %3817 = vmatmul.mubr.bf16.gmra.mxu0 %v18343_v38  ;;  %v3427_v50 = vadd.f32 %v18347_v9, %v18346_v30 }
 0x3d3   :  { %18342 = vst [vmem:[#allocation59_spill] sm:$0xff] %v14569_v42  ;;  %3824 = vmatprep.mubr.bf16.mxu0 %v18344_v5  ;;  %v3966_v19 = vpop.f32.mrf.mxu1  ;;  %v18350_v42 = vld [vmem:[#allocation63_spill] sm:$0xff] }
 0x3d4   :  { %v14573_v41 = vadd.f32 %v3966_v19, %v3422_v3  ;;  %v3628_v23 = vpop.f32.mrf.mxu0  ;;  %v3430_v3 = vadd.f32 %v18351_v47, %v18350_v42 }
 0x3d5   :  { %v3968_v56 = vpop.f32.mrf.mxu1  ;;  %v18354_v23 = vld [vmem:[#allocation172_spill] sm:$0xff] }
 0x3d6   :  { %18345 = vst [vmem:[#allocation208_spill] sm:$0xff] %v14573_v41  ;;  %v14577_v59 = vpop.f32.mrf.mxu0  ;;  %v18353_v56 = vld [vmem:[#allocation169_spill] sm:$0xff] }
 0x3d7   :  { %18348 = vst [vmem:[#allocation62_spill] sm:$0xff] %v14577_v59  ;;  %v3971_v58 = vpop.f32.mrf.mxu1  ;;  %4162 = vmatmul.mubr.bf16.gmra.mxu1 %v13771_v53  ;;  %v18360_v59 = vld [vmem:[#allocation216_spill] sm:$0xff] }
 0x3d8   :  { %v14580_v2 = vadd.f32 %v3971_v58, %v3427_v50  ;;  %v3631_v26 = vpop.f32.mrf.mxu0  ;;  %4169 = vmatprep.mubr.bf16.mxu1 %v13788_v11  ;;  %v18356_v50 = vld [vmem:[#allocation66_spill] sm:$0xff] }
 0x3d9   :  { %v3973_v8 = vpop.f32.mrf.mxu1  ;;  %v18357_v58 = vld [vmem:[#allocation214_spill] sm:$0xff] }
 0x3da   :  { %18349 = vst [vmem:[#allocation210_spill] sm:$0xff] %v14580_v2  ;;  %v14585_v19 = vpop.f32.mrf.mxu0  ;;  %3825 = vmatmul.mubr.bf16.gmra.mxu0 %v18353_v56  ;;  %v3435_v26 = vadd.f32 %v18357_v58, %v18356_v50 }
 0x3db   :  { %18352 = vst [vmem:[#allocation63_spill] sm:$0xff] %v14585_v19  ;;  %3832 = vmatprep.mubr.bf16.mxu0 %v18354_v23  ;;  %v3974_v30 = vpop.f32.mrf.mxu1  ;;  %v18359_v19 = vld [vmem:[#allocation67_spill] sm:$0xff] }
 0x3dc   :  { %v14589_v9 = vadd.f32 %v3974_v30, %v3430_v3  ;;  %v3636_v41 = vpop.f32.mrf.mxu0  ;;  %v3438_v3 = vadd.f32 %v18360_v59, %v18359_v19 }
 0x3dd   :  { %v3976_v53 = vpop.f32.mrf.mxu1  ;;  %v18363_v41 = vld [vmem:[#allocation176_spill] sm:$0xff] }
 0x3de   :  { %18355 = vst [vmem:[#allocation212_spill] sm:$0xff] %v14589_v9  ;;  %v14593_v2 = vpop.f32.mrf.mxu0  ;;  %v18362_v53 = vld [vmem:[#allocation173_spill] sm:$0xff] }
 0x3df   :  { %v3979_v8 = vpop.f32.mrf.mxu1  ;;  %4170 = vmatmul.mubr.bf16.gmra.mxu1 %v13791_v1 }
 0x3e0   :  { %v14596_v47 = vadd.f32 %v3979_v8, %v3435_v26  ;;  %v3639_v42 = vpop.f32.mrf.mxu0  ;;  %4177 = vmatprep.mubr.bf16.mxu1 %v13805_v49  ;;  %v18365_v26 = vld [vmem:[#allocation70_spill] sm:$0xff] }
 0x3e1   :  { %v3981_v11 = vpop.f32.mrf.mxu1  ;;  %v18366_v8 = vld [vmem:[#allocation218_spill] sm:$0xff] }
 0x3e2   :  { %18358 = vst [vmem:[#allocation66_spill] sm:$0xff] %v14596_v47  ;;  %v14601_v30 = vpop.f32.mrf.mxu0  ;;  %3833 = vmatmul.mubr.bf16.gmra.mxu0 %v18362_v53  ;;  %v3443_v42 = vadd.f32 %v18366_v8, %v18365_v26  ;;  %v18370_v26 = vld [vmem:[#allocation220_spill] sm:$0xff]  ;;  %v18375_v49 = vld [vmem:[#allocation74_spill] sm:$0xff] }
 0x3e3   :  { %18361 = vst [vmem:[#allocation214_spill] sm:$0xff] %v14601_v30  ;;  %3840 = vmatprep.mubr.bf16.mxu0 %v18363_v41  ;;  %v3982_v50 = vpop.f32.mrf.mxu1 }
 0x3e4   :  { %v14605_v58 = vadd.f32 %v3982_v50, %v3438_v3  ;;  %v3644_v9 = vpop.f32.mrf.mxu0  ;;  %v12410_v3 = vld [vmem:[%s17684_s3 + $0x48] sm:$0xff]  }
 0x3e5   :  { %v3984_v1 = vpop.f32.mrf.mxu1  ;;  %v18369_v50 = vld [vmem:[#allocation71_spill] sm:$0xff]  ;;  %11565 = vmatprep.subr.bf16.mxu1 %v12410_v3 }
 0x3e6   :  { %18364 = vst [vmem:[#allocation67_spill] sm:$0xff] %v14605_v58  ;;  %v14609_v47 = vpop.f32.mrf.mxu0  ;;  %v12411_v1 = vld [vmem:[%s17684_s3 + $0x8] sm:$0xff]   ;;  %v3446_v8 = vadd.f32 %v18370_v26, %v18369_v50 }
 0x3e7   :  { %18367 = vst [vmem:[#allocation216_spill] sm:$0xff] %v14609_v47  ;;  %v3987_v11 = vpop.f32.mrf.mxu1  ;;  %4178 = vmatmul.mubr.bf16.gmra.mxu1 %v13808_v13  ;;  %v18372_v13 = vld [vmem:[#allocation177_spill] sm:$0xff]  ;;  %v3451_v47 = vadd.f32 %v14248_v36, %v18375_v49 }
 0x3e8   :  { %v14612_v59 = vadd.f32 %v3987_v11, %v3443_v42  ;;  %v3647_v19 = vpop.f32.mrf.mxu0  ;;  %4185 = vmatprep.mubr.bf16.mxu1 %v18230_v61  ;;  %v18373_v42 = vld [vmem:[#allocation180_spill] sm:$0xff]  ;;  %11566 = vmatpush3.bf16.msra.mxu1 %v12411_v1 }
 0x3e9   :  { %v3989_v9 = vpop.f32.mrf.mxu1 }
 0x3ea   :  { %18368 = vst [vmem:[#allocation70_spill] sm:$0xff] %v14612_v59  ;;  %v14623_v58 = vpop.f32.mrf.mxu0  ;;  %3841 = vmatmul.mubr.bf16.gmra.mxu0 %v18372_v13 }
 0x3eb   :  { %18371 = vst [vmem:[#allocation218_spill] sm:$0xff] %v14623_v58  ;;  %3848 = vmatprep.mubr.bf16.mxu0 %v18373_v42  ;;  %v3990_v11 = vpop.f32.mrf.mxu1  ;;  %v18377_v58 = vld [vmem:[#allocation75_spill] sm:$0xff] }
 0x3ec   :  { %v14627_v19 = vadd.f32 %v3990_v11, %v3446_v8  ;;  %v3652_v59 = vpop.f32.mrf.mxu0  ;;  %v3454_v1 = vadd.f32 %v14254_v54, %v18377_v58 }
 0x3ed   :  { %v3992_v61 = vpop.f32.mrf.mxu1  ;;  %v18379_v59 = vld [vmem:[#allocation184_spill] sm:$0xff] }
 0x3ee   :  { %18374 = vst [vmem:[#allocation71_spill] sm:$0xff] %v14627_v19  ;;  %v14631_v9 = vpop.f32.mrf.mxu0  ;;  %v18378_v61 = vld [vmem:[#allocation181_spill] sm:$0xff] }
 0x3ef   :  { %v3995_v30 = vpop.f32.mrf.mxu1  ;;  %4186 = vmatmul.mubr.bf16.gmra.mxu1 %v18236_v39  ;;  %v18384_v39 = vld [vmem:[#allocation79_spill] sm:$0xff] }
 0x3f0   :  { %v14634_v50 = vadd.f32 %v3995_v30, %v3451_v47  ;;  %v3655_v26 = vpop.f32.mrf.mxu0  ;;  %4193 = vmatprep.mubr.bf16.mxu1 %v18238_v28  ;;  %v18381_v47 = vld [vmem:[#allocation78_spill] sm:$0xff]  ;;  %v18382_v30 = vld [vmem:[#allocation224_spill] sm:$0xff] }
 0x3f1   :  { %v3997_v3 = vpop.f32.mrf.mxu1  ;;  %v3459_v26 = vadd.f32 %v18382_v30, %v18381_v47 }
 0x3f2   :  { %18376 = vst [vmem:[#allocation220_spill] sm:$0xff] %v14634_v50  ;;  %v14639_v8 = vpop.f32.mrf.mxu0  ;;  %3849 = vmatmul.mubr.bf16.gmra.mxu0 %v18378_v61 }
 0x3f3   :  { %3856 = vmatprep.mubr.bf16.mxu0 %v18379_v59  ;;  %v3998_v49 = vpop.f32.mrf.mxu1 }
 0x3f4   :  { %v14643_v36 = vadd.f32 %v3998_v49, %v3454_v1  ;;  %v3660_v11 = vpop.f32.mrf.mxu0  ;;  %v3462_v1 = vadd.f32 %v14272_v51, %v18384_v39 }
 0x3f5   :  { %v4000_v19 = vpop.f32.mrf.mxu1  ;;  %v18386_v11 = vld [vmem:[#allocation188_spill] sm:$0xff] }
 0x3f6   :  { %18380 = vst [vmem:[#allocation74_spill] sm:$0xff] %v14643_v36  ;;  %v14647_v50 = vpop.f32.mrf.mxu0  ;;  %v18385_v19 = vld [vmem:[#allocation185_spill] sm:$0xff] }
 0x3f7   :  { %v4003_v3 = vpop.f32.mrf.mxu1  ;;  %4194 = vmatmul.mubr.bf16.gmra.mxu1 %v18242_v7 }
 0x3f8   :  { %v14650_v54 = vadd.f32 %v4003_v3, %v3459_v26  ;;  %v3663_v58 = vpop.f32.mrf.mxu0  ;;  %4201 = vmatprep.mubr.bf16.mxu1 %v18244_v55  ;;  %v18388_v26 = vld [vmem:[#allocation82_spill] sm:$0xff]  ;;  %v18390_v55 = vld [vmem:[#allocation83_spill] sm:$0xff] }
 0x3f9   :  { %v4005_v28 = vpop.f32.mrf.mxu1  ;;  %v3467_v3 = vadd.f32 %v14278_v43, %v18388_v26 }
 0x3fa   :  { %18383 = vst [vmem:[#allocation75_spill] sm:$0xff] %v14650_v54  ;;  %v14655_v49 = vpop.f32.mrf.mxu0  ;;  %3857 = vmatmul.mubr.bf16.gmra.mxu0 %v18385_v19 }
 0x3fb   :  { %3864 = vmatprep.mubr.bf16.mxu0 %v18386_v11  ;;  %v4006_v47 = vpop.f32.mrf.mxu1 }
 0x3fc   :  { %v14659_v30 = vadd.f32 %v4006_v47, %v3462_v1  ;;  %v3668_v36 = vpop.f32.mrf.mxu0  ;;  %v3470_v1 = vadd.f32 %v14287_v46, %v18390_v55 }
 0x3fd   :  { %v4008_v7 = vpop.f32.mrf.mxu1 }
 0x3fe   :  { %18387 = vst [vmem:[#allocation78_spill] sm:$0xff] %v14659_v30  ;;  %v14663_v58 = vpop.f32.mrf.mxu0  ;;  %v18391_v7 = vld [vmem:[#allocation189_spill] sm:$0xff] }
 0x3ff   :  { %v4011_v28 = vpop.f32.mrf.mxu1  ;;  %4202 = vmatmul.mubr.bf16.gmra.mxu1 %v18248_v12  ;;  %v18396_v12 = vld [vmem:[#allocation230_spill] sm:$0xff] }
 0x400   :  { %v14666_v51 = vadd.f32 %v4011_v28, %v3467_v3  ;;  %v3671_v39 = vpop.f32.mrf.mxu0  ;;  %4209 = vmatprep.mubr.bf16.mxu1 %v18250_v17  ;;  %v18393_v3 = vld [vmem:[#allocation86_spill] sm:$0xff]  ;;  %v18395_v17 = vld [vmem:[#allocation87_spill] sm:$0xff] }
 0x401   :  { %v4013_v54 = vpop.f32.mrf.mxu1  ;;  %v3475_v28 = vadd.f32 %v14294_v29, %v18393_v3  ;;  %v18397_v29 = vld [vmem:[#allocation2_spill] sm:$0xff] }
 0x402   :  { %18389 = vst [vmem:[#allocation224_spill] sm:$0xff] %v14666_v51  ;;  %v14671_v47 = vpop.f32.mrf.mxu0  ;;  %3865 = vmatmul.mubr.bf16.gmra.mxu0 %v18391_v7 }
 0x403   :  { %v4014_v36 = vpop.f32.mrf.mxu1  ;;  %3872 = vmatprep.mubr.bf16.mxu0 %v18048_v22 }
 0x404   :  { %v14675_v43 = vadd.f32 %v4014_v36, %v3470_v1  ;;  %v3676_v26 = vpop.f32.mrf.mxu0  ;;  %v3478_v1 = vadd.f32 %v18396_v12, %v18395_v17 }
 0x405   :  { %v4016_v30 = vpop.f32.mrf.mxu1 }
 0x406   :  { %18392 = vst [vmem:[#allocation79_spill] sm:$0xff] %v14675_v43  ;;  %v14679_v39 = vpop.f32.mrf.mxu0 }
 0x407   :  { %v4019_v54 = vpop.f32.mrf.mxu1  ;;  %4210 = vmatmul.mubr.bf16.gmra.mxu1 %v18254_v35 }
 0x408   :  { %v14682_v46 = vadd.f32 %v4019_v54, %v3475_v28  ;;  %v3679_v55 = vpop.f32.mrf.mxu0  ;;  %4217 = vmatprep.mubr.bf16.mxu1 %v18256_v6  ;;  %v18399_v28 = vld [vmem:[#allocation90_spill] sm:$0xff]  ;;  %v18401_v6 = vld [vmem:[#allocation91_spill] sm:$0xff] }
 0x409   :  { %v4021_v51 = vpop.f32.mrf.mxu1  ;;  %v3483_v54 = vadd.f32 %v14306_v25, %v18399_v28  ;;  %v18404_v25 = vld [vmem:[#allocation4_spill] sm:$0xff] }
 0x40a   :  { %18394 = vst [vmem:[#allocation82_spill] sm:$0xff] %v14682_v46  ;;  %v14687_v36 = vpop.f32.mrf.mxu0  ;;  %3873 = vmatmul.mubr.bf16.gmra.mxu0 %v18048_v22 }
 0x40b   :  { %v4022_v30 = vpop.f32.mrf.mxu1  ;;  %4458 = vmatprep.mubr.bf16.mxu0 %v18397_v29  ;;  %v18402_v29 = vld [vmem:[#allocation233_spill] sm:$0xff] }
 0x40c   :  { %v14691_v26 = vadd.f32 %v4022_v30, %v3478_v1  ;;  %v3684_v3 = vpop.f32.mrf.mxu0  ;;  %v3486_v1 = vadd.f32 %v18402_v29, %v18401_v6 }
 0x40d   :  { %v4024_v43 = vpop.f32.mrf.mxu1 }
 0x40e   :  { %18398 = vst [vmem:[#allocation83_spill] sm:$0xff] %v14691_v26  ;;  %v14695_v55 = vpop.f32.mrf.mxu0  ;;  %v18403_v43 = vld [vmem:[#allocation3_spill] sm:$0xff] }
 0x40f   :  { %v4027_v51 = vpop.f32.mrf.mxu1  ;;  %4218 = vmatmul.mubr.bf16.gmra.mxu1 %v18260_v63 }
 0x410   :  { %v14698_v17 = vadd.f32 %v4027_v51, %v3483_v54  ;;  %v3687_v12 = vpop.f32.mrf.mxu0  ;;  %4225 = vmatprep.mubr.bf16.mxu1 %v18262_v4  ;;  %v18406_v54 = vld [vmem:[#allocation94_spill] sm:$0xff]  ;;  %v18407_v51 = vld [vmem:[#allocation235_spill] sm:$0xff] }
 0x411   :  { %v4029_v46 = vpop.f32.mrf.mxu1  ;;  %v3491_v12 = vadd.f32 %v18407_v51, %v18406_v54  ;;  %v18409_v4 = vld [vmem:[#allocation95_spill] sm:$0xff]  ;;  %v18412_v54 = vld [vmem:[#allocation6_spill] sm:$0xff] }
 0x412   :  { %18400 = vst [vmem:[#allocation86_spill] sm:$0xff] %v14698_v17  ;;  %v14703_v30 = vpop.f32.mrf.mxu0  ;;  %4459 = vmatmul.mubr.bf16.vlgmr.msra.gmra.mxu0 %v18403_v43 }
 0x413   :  { %v4030_v3 = vpop.f32.mrf.mxu1  ;;  %4466 = vmatprep.mubr.bf16.mxu0 %v18404_v25  ;;  %v18410_v25 = vld [vmem:[#allocation237_spill] sm:$0xff] }
 0x414   :  { %v14707_v28 = vadd.f32 %v4030_v3, %v3486_v1  ;;  %v3692_v26 = vpop.f32.mrf.mxu0  ;;  %v3494_v1 = vadd.f32 %v18410_v25, %v18409_v4 }
 0x415   :  { %v4032_v63 = vpop.f32.mrf.mxu1 }
 0x416   :  { %18405 = vst [vmem:[#allocation87_spill] sm:$0xff] %v14707_v28  ;;  %v14711_v17 = vpop.f32.mrf.mxu0  ;;  %v18411_v63 = vld [vmem:[#allocation5_spill] sm:$0xff] }
 0x417   :  { %v4035_v46 = vpop.f32.mrf.mxu1  ;;  %4226 = vmatmul.mubr.bf16.gmra.mxu1 %v18266_v27 }
 0x418   :  { %v14714_v6 = vadd.f32 %v4035_v46, %v3491_v12  ;;  %v3695_v29 = vpop.f32.mrf.mxu0  ;;  %4233 = vmatprep.mubr.bf16.mxu1 %v18268_v18  ;;  %v18414_v12 = vld [vmem:[#allocation98_spill] sm:$0xff]  ;;  %v18415_v46 = vld [vmem:[#allocation239_spill] sm:$0xff] }
 0x419   :  { %v4037_v43 = vpop.f32.mrf.mxu1  ;;  %v3499_v29 = vadd.f32 %v18415_v46, %v18414_v12  ;;  %v18417_v18 = vld [vmem:[#allocation99_spill] sm:$0xff]  ;;  %v18420_v12 = vld [vmem:[#allocation8_spill] sm:$0xff] }
 0x41a   :  { %18408 = vst [vmem:[#allocation230_spill] sm:$0xff] %v14714_v6  ;;  %v14719_v3 = vpop.f32.mrf.mxu0  ;;  %4467 = vmatmul.mubr.bf16.gmra.mxu0 %v18411_v63 }
 0x41b   :  { %v4038_v26 = vpop.f32.mrf.mxu1  ;;  %4474 = vmatprep.mubr.bf16.mxu0 %v18412_v54  ;;  %v18418_v54 = vld [vmem:[#allocation241_spill] sm:$0xff] }
 0x41c   :  { %v14723_v51 = vadd.f32 %v4038_v26, %v3494_v1  ;;  %v3700_v28 = vpop.f32.mrf.mxu0  ;;  %v3502_v1 = vadd.f32 %v18418_v54, %v18417_v18 }
 0x41d   :  { %v4040_v27 = vpop.f32.mrf.mxu1 }
 0x41e   :  { %18413 = vst [vmem:[#allocation2_spill] sm:$0xff] %v14723_v51  ;;  %v14727_v6 = vpop.f32.mrf.mxu0  ;;  %v18419_v27 = vld [vmem:[#allocation7_spill] sm:$0xff] }
 0x41f   :  { %v4043_v43 = vpop.f32.mrf.mxu1  ;;  %4234 = vmatmul.mubr.bf16.gmra.mxu1 %v18272_v24 }
 0x420   :  { %v14730_v4 = vadd.f32 %v4043_v43, %v3499_v29  ;;  %v3703_v25 = vpop.f32.mrf.mxu0  ;;  %4241 = vmatprep.mubr.bf16.mxu1 %v18274_v33  ;;  %v18422_v29 = vld [vmem:[#allocation102_spill] sm:$0xff]  ;;  %v18423_v43 = vld [vmem:[#allocation243_spill] sm:$0xff] }
 0x421   :  { %v4045_v63 = vpop.f32.mrf.mxu1  ;;  %v3507_v25 = vadd.f32 %v18423_v43, %v18422_v29 }
 0x422   :  { %18416 = vst [vmem:[#allocation90_spill] sm:$0xff] %v14730_v4  ;;  %v14735_v26 = vpop.f32.mrf.mxu0  ;;  %4475 = vmatmul.mubr.bf16.gmra.mxu0 %v18419_v27  ;;  %v12414_v27 = vld [vmem:[%s17684_s3 + $0x7f8] sm:$0xff]  }
 0x423   :  { %v4046_v28 = vpop.f32.mrf.mxu1  ;;  %4482 = vmatprep.mubr.bf16.mxu0 %v18420_v12  ;;  %v18426_v12 = vld [vmem:[#allocation245_spill] sm:$0xff]  ;;  %11883 = vmatprep.subr.bf16.mxu0 %v12414_v27 }
 0x424   :  { %v14739_v46 = vadd.f32 %v4046_v28, %v3502_v1  ;;  %v3708_v51 = vpop.f32.mrf.mxu0  ;;  %v12412_v1 = vld [vmem:[%s17684_s3 + $0x40] sm:$0xff]   ;;  %v18425_v28 = vld [vmem:[#allocation103_spill] sm:$0xff] }
 0x425   :  { %v4048_v24 = vpop.f32.mrf.mxu1  ;;  %v3510_v29 = vadd.f32 %v18426_v12, %v18425_v28  ;;  %11567 = vmatprep.subr.bf16.mxu1 %v12412_v1  ;;  %v18430_v28 = vld [vmem:[#allocation106_spill] sm:$0xff]  ;;  %v18431_v12 = vld [vmem:[#allocation247_spill] sm:$0xff] }
 0x426   :  { %18421 = vst [vmem:[#allocation91_spill] sm:$0xff] %v14739_v46  ;;  %v14743_v4 = vpop.f32.mrf.mxu0  ;;  %v12413_v24 = vld [vmem:[%s17684_s3] sm:$0xff]  }
 0x427   :  { %v4051_v63 = vpop.f32.mrf.mxu1  ;;  %4242 = vmatmul.mubr.bf16.gmra.mxu1 %v18278_v0  ;;  %v3515_v0 = vadd.f32 %v18431_v12, %v18430_v28  ;;  %v18437_v28 = vld [vmem:[#allocation12_spill] sm:$0xff] }
 0x428   :  { %v14746_v18 = vadd.f32 %v4051_v63, %v3507_v25  ;;  %v3711_v54 = vpop.f32.mrf.mxu0  ;;  %4249 = vmatprep.mubr.bf16.mxu1 %v18280_v52  ;;  %v18427_v25 = vld [vmem:[#allocation9_spill] sm:$0xff]  ;;  %11568 = vmatpush3.bf16.msra.mxu1 %v12413_v24 }
 0x429   :  { %v4053_v51 = vpop.f32.mrf.mxu1  ;;  %v18428_v54 = vld [vmem:[#allocation10_spill] sm:$0xff] }
 0x42a   :  { %18424 = vst [vmem:[#allocation233_spill] sm:$0xff] %v14746_v18  ;;  %v14760_v43 = vpop.f32.mrf.mxu0  ;;  %4483 = vmatmul.mubr.bf16.gmra.mxu0 %v18427_v25  ;;  %v12415_v51 = vld [vmem:[%s17684_s3 + $0x7b8] sm:$0xff]  }
 0x42b   :  { %v4054_v63 = vpop.f32.mrf.mxu1  ;;  %4490 = vmatprep.mubr.bf16.mxu0 %v18428_v54  ;;  %11884 = vmatpush3.bf16.msra.mxu0 %v12415_v51  ;;  %v18433_v54 = vld [vmem:[#allocation140_spill] sm:$0xff] }
 0x42c   :  { %v14767_v18 = vadd.f32 %v4054_v63, %v3510_v29  ;;  %v3716_v46 = vpop.f32.mrf.mxu0  ;;  %v18434_v29 = vld [vmem:[#allocation107_spill] sm:$0xff]  ;;  %v18435_v63 = vld [vmem:[#allocation249_spill] sm:$0xff] }
 0x42d   :  { %v4056_v52 = vpop.f32.mrf.mxu1  ;;  %v3518_v46 = vadd.f32 %v18435_v63, %v18434_v29 }
 0x42e   :  { %18429 = vst [vmem:[#allocation3_spill] sm:$0xff] %v14767_v18  ;;  %v14771_v33 = vpop.f32.mrf.mxu0  ;;  %v18436_v52 = vld [vmem:[#allocation11_spill] sm:$0xff] }
 0x42f   :  { %v4059_v1 = vpop.f32.mrf.mxu1  ;;  %4250 = vmatmul.mubr.bf16.gmra.mxu1 %v18284_v60 }
 0x430   :  { %v14774_v25 = vadd.f32 %v4059_v1, %v3515_v0  ;;  %v3719_v24 = vpop.f32.mrf.mxu0  ;;  %4257 = vmatprep.mubr.bf16.mxu1 %v18433_v54  ;;  %v18439_v0 = vld [vmem:[#allocation110_spill] sm:$0xff]  ;;  %v18440_v1 = vld [vmem:[#allocation251_spill] sm:$0xff] }
 0x431   :  { %v4061_v35 = vpop.f32.mrf.mxu1  ;;  %v3523_v24 = vadd.f32 %v18440_v1, %v18439_v0  ;;  %v18442_v54 = vld [vmem:[#allocation111_spill] sm:$0xff]  ;;  %v18445_v0 = vld [vmem:[#allocation14_spill] sm:$0xff] }
 0x432   :  { %18432 = vst [vmem:[#allocation4_spill] sm:$0xff] %v14774_v25  ;;  %v14779_v27 = vpop.f32.mrf.mxu0  ;;  %4491 = vmatmul.mubr.bf16.gmra.mxu0 %v18436_v52 }
 0x433   :  { %v4062_v51 = vpop.f32.mrf.mxu1  ;;  %4498 = vmatprep.mubr.bf16.mxu0 %v18437_v28  ;;  %v18443_v28 = vld [vmem:[#allocation253_spill] sm:$0xff] }
 0x434   :  { %v14783_v12 = vadd.f32 %v4062_v51, %v3518_v46  ;;  %v3724_v18 = vpop.f32.mrf.mxu0  ;;  %v3526_v46 = vadd.f32 %v18443_v28, %v18442_v54 }
 0x435   :  { %v4064_v60 = vpop.f32.mrf.mxu1 }
 0x436   :  { %18438 = vst [vmem:[#allocation94_spill] sm:$0xff] %v14783_v12  ;;  %v14787_v25 = vpop.f32.mrf.mxu0  ;;  %v18444_v60 = vld [vmem:[#allocation13_spill] sm:$0xff] }
 0x437   :  { %v4067_v35 = vpop.f32.mrf.mxu1  ;;  %4258 = vmatmul.mubr.bf16.gmra.mxu1 %v18291_v16 }
 0x438   :  { %v14790_v29 = vadd.f32 %v4067_v35, %v3523_v24  ;;  %v3727_v63 = vpop.f32.mrf.mxu0  ;;  %4265 = vmatprep.mubr.bf16.mxu1 %v18292_v57  ;;  %v18447_v24 = vld [vmem:[#allocation114_spill] sm:$0xff]  ;;  %v18448_v35 = vld [vmem:[#allocation255_spill] sm:$0xff] }
 0x439   :  { %v4069_v52 = vpop.f32.mrf.mxu1  ;;  %v3531_v63 = vadd.f32 %v18448_v35, %v18447_v24  ;;  %v18450_v57 = vld [vmem:[#allocation115_spill] sm:$0xff]  ;;  %v18453_v24 = vld [vmem:[#allocation16_spill] sm:$0xff] }
 0x43a   :  { %18441 = vst [vmem:[#allocation235_spill] sm:$0xff] %v14790_v29  ;;  %v14795_v51 = vpop.f32.mrf.mxu0  ;;  %4499 = vmatmul.mubr.bf16.gmra.mxu0 %v18444_v60 }
 0x43b   :  { %v4070_v18 = vpop.f32.mrf.mxu1  ;;  %4506 = vmatprep.mubr.bf16.mxu0 %v18445_v0  ;;  %v18451_v0 = vld [vmem:[#allocation257_spill] sm:$0xff] }
 0x43c   :  { %v14799_v1 = vadd.f32 %v4070_v18, %v3526_v46  ;;  %v3732_v12 = vpop.f32.mrf.mxu0  ;;  %v3534_v46 = vadd.f32 %v18451_v0, %v18450_v57 }
 0x43d   :  { %v4072_v16 = vpop.f32.mrf.mxu1 }
 0x43e   :  { %18446 = vst [vmem:[#allocation95_spill] sm:$0xff] %v14799_v1  ;;  %v14803_v29 = vpop.f32.mrf.mxu0  ;;  %v18452_v16 = vld [vmem:[#allocation15_spill] sm:$0xff] }
 0x43f   :  { %v4075_v52 = vpop.f32.mrf.mxu1  ;;  %4266 = vmatmul.mubr.bf16.gmra.mxu1 %v18298_v34 }
 0x440   :  { %v14806_v54 = vadd.f32 %v4075_v52, %v3531_v63  ;;  %v3735_v28 = vpop.f32.mrf.mxu0  ;;  %4273 = vmatprep.mubr.bf16.mxu1 %v18299_v62  ;;  %v18455_v63 = vld [vmem:[#allocation118_spill] sm:$0xff]  ;;  %v18456_v52 = vld [vmem:[#allocation259_spill] sm:$0xff] }
 0x441   :  { %v4077_v60 = vpop.f32.mrf.mxu1  ;;  %v3539_v28 = vadd.f32 %v18456_v52, %v18455_v63  ;;  %v18458_v62 = vld [vmem:[#allocation119_spill] sm:$0xff]  ;;  %v18461_v63 = vld [vmem:[#allocation18_spill] sm:$0xff] }
 0x442   :  { %18449 = vst [vmem:[#allocation237_spill] sm:$0xff] %v14806_v54  ;;  %v14811_v18 = vpop.f32.mrf.mxu0  ;;  %4507 = vmatmul.mubr.bf16.gmra.mxu0 %v18452_v16 }
 0x443   :  { %v4078_v12 = vpop.f32.mrf.mxu1  ;;  %4514 = vmatprep.mubr.bf16.mxu0 %v18453_v24  ;;  %v18459_v24 = vld [vmem:[#allocation261_spill] sm:$0xff] }
 0x444   :  { %v14815_v35 = vadd.f32 %v4078_v12, %v3534_v46  ;;  %v3740_v1 = vpop.f32.mrf.mxu0  ;;  %v3542_v46 = vadd.f32 %v18459_v24, %v18458_v62 }
 0x445   :  { %v4080_v34 = vpop.f32.mrf.mxu1 }
 0x446   :  { %18454 = vst [vmem:[#allocation5_spill] sm:$0xff] %v14815_v35  ;;  %v14819_v54 = vpop.f32.mrf.mxu0  ;;  %v18460_v34 = vld [vmem:[#allocation17_spill] sm:$0xff] }
 0x447   :  { %v4083_v60 = vpop.f32.mrf.mxu1  ;;  %4274 = vmatmul.mubr.bf16.gmra.mxu1 %v18304_v45 }
 0x448   :  { %v14822_v57 = vadd.f32 %v4083_v60, %v3539_v28  ;;  %v3743_v0 = vpop.f32.mrf.mxu0  ;;  %4281 = vmatprep.mubr.bf16.mxu1 %v18305_v14  ;;  %v18463_v28 = vld [vmem:[#allocation122_spill] sm:$0xff]  ;;  %v18464_v60 = vld [vmem:[#allocation263_spill] sm:$0xff] }
 0x449   :  { %v4085_v16 = vpop.f32.mrf.mxu1  ;;  %v3547_v0 = vadd.f32 %v18464_v60, %v18463_v28  ;;  %v18466_v14 = vld [vmem:[#allocation123_spill] sm:$0xff]  ;;  %v18469_v28 = vld [vmem:[#allocation20_spill] sm:$0xff] }
 0x44a   :  { %18457 = vst [vmem:[#allocation6_spill] sm:$0xff] %v14822_v57  ;;  %v14827_v12 = vpop.f32.mrf.mxu0  ;;  %4515 = vmatmul.mubr.bf16.gmra.mxu0 %v18460_v34 }
 0x44b   :  { %v4086_v1 = vpop.f32.mrf.mxu1  ;;  %4522 = vmatprep.mubr.bf16.mxu0 %v18461_v63  ;;  %v18467_v63 = vld [vmem:[#allocation265_spill] sm:$0xff] }
 0x44c   :  { %v14831_v52 = vadd.f32 %v4086_v1, %v3542_v46  ;;  %v3748_v35 = vpop.f32.mrf.mxu0  ;;  %v3550_v46 = vadd.f32 %v18467_v63, %v18466_v14 }
 0x44d   :  { %v4088_v45 = vpop.f32.mrf.mxu1 }
 0x44e   :  { %18462 = vst [vmem:[#allocation98_spill] sm:$0xff] %v14831_v52  ;;  %v14835_v57 = vpop.f32.mrf.mxu0  ;;  %v18468_v45 = vld [vmem:[#allocation19_spill] sm:$0xff] }
 0x44f   :  { %v4091_v16 = vpop.f32.mrf.mxu1  ;;  %4282 = vmatmul.mubr.bf16.gmra.mxu1 %v18313_v20 }
 0x450   :  { %v14838_v62 = vadd.f32 %v4091_v16, %v3547_v0  ;;  %v3751_v24 = vpop.f32.mrf.mxu0  ;;  %4289 = vmatprep.mubr.bf16.mxu1 %v18314_v32  ;;  %v18471_v0 = vld [vmem:[#allocation126_spill] sm:$0xff]  ;;  %v18472_v16 = vld [vmem:[#allocation267_spill] sm:$0xff] }
 0x451   :  { %v4093_v34 = vpop.f32.mrf.mxu1  ;;  %v3555_v24 = vadd.f32 %v18472_v16, %v18471_v0  ;;  %v18474_v32 = vld [vmem:[#allocation127_spill] sm:$0xff]  ;;  %v18477_v0 = vld [vmem:[#allocation22_spill] sm:$0xff] }
 0x452   :  { %18465 = vst [vmem:[#allocation239_spill] sm:$0xff] %v14838_v62  ;;  %v14843_v1 = vpop.f32.mrf.mxu0  ;;  %4523 = vmatmul.mubr.bf16.gmra.mxu0 %v18468_v45 }
 0x453   :  { %v4094_v35 = vpop.f32.mrf.mxu1  ;;  %4530 = vmatprep.mubr.bf16.mxu0 %v18469_v28  ;;  %v18475_v28 = vld [vmem:[#allocation269_spill] sm:$0xff] }
 0x454   :  { %v14847_v60 = vadd.f32 %v4094_v35, %v3550_v46  ;;  %v3756_v52 = vpop.f32.mrf.mxu0  ;;  %v3558_v46 = vadd.f32 %v18475_v28, %v18474_v32 }
 0x455   :  { %v4096_v20 = vpop.f32.mrf.mxu1 }
 0x456   :  { %18470 = vst [vmem:[#allocation99_spill] sm:$0xff] %v14847_v60  ;;  %v14851_v62 = vpop.f32.mrf.mxu0  ;;  %v18476_v20 = vld [vmem:[#allocation21_spill] sm:$0xff] }
 0x457   :  { %v4099_v34 = vpop.f32.mrf.mxu1  ;;  %4290 = vmatmul.mubr.bf16.gmra.mxu1 %v18323_v15 }
 0x458   :  { %v14854_v14 = vadd.f32 %v4099_v34, %v3555_v24  ;;  %v3759_v63 = vpop.f32.mrf.mxu0  ;;  %4297 = vmatprep.mubr.bf16.mxu1 %v18324_v31  ;;  %v18479_v24 = vld [vmem:[#allocation130_spill] sm:$0xff]  ;;  %v18480_v34 = vld [vmem:[#allocation271_spill] sm:$0xff] }
 0x459   :  { %v4101_v45 = vpop.f32.mrf.mxu1  ;;  %v3563_v63 = vadd.f32 %v18480_v34, %v18479_v24  ;;  %v18482_v31 = vld [vmem:[#allocation131_spill] sm:$0xff]  ;;  %v18485_v24 = vld [vmem:[#allocation24_spill] sm:$0xff] }
 0x45a   :  { %18473 = vst [vmem:[#allocation241_spill] sm:$0xff] %v14854_v14  ;;  %v14859_v35 = vpop.f32.mrf.mxu0  ;;  %4531 = vmatmul.mubr.bf16.gmra.mxu0 %v18476_v20 }
 0x45b   :  { %v4102_v52 = vpop.f32.mrf.mxu1  ;;  %4538 = vmatprep.mubr.bf16.mxu0 %v18477_v0  ;;  %v18483_v0 = vld [vmem:[#allocation273_spill] sm:$0xff] }
 0x45c   :  { %v14863_v16 = vadd.f32 %v4102_v52, %v3558_v46  ;;  %v3764_v60 = vpop.f32.mrf.mxu0  ;;  %v3566_v46 = vadd.f32 %v18483_v0, %v18482_v31 }
 0x45d   :  { %v4104_v15 = vpop.f32.mrf.mxu1 }
 0x45e   :  { %18478 = vst [vmem:[#allocation7_spill] sm:$0xff] %v14863_v16  ;;  %v14867_v14 = vpop.f32.mrf.mxu0  ;;  %v18484_v15 = vld [vmem:[#allocation23_spill] sm:$0xff] }
 0x45f   :  { %v4107_v45 = vpop.f32.mrf.mxu1  ;;  %4298 = vmatmul.mubr.bf16.gmra.mxu1 %v18333_v37 }
 0x460   :  { %v14870_v32 = vadd.f32 %v4107_v45, %v3563_v63  ;;  %v3767_v28 = vpop.f32.mrf.mxu0  ;;  %4305 = vmatprep.mubr.bf16.mxu1 %v18334_v21  ;;  %v12416_v63 = vld [vmem:[%s17684_s3 + $0xf8] sm:$0xff]  }
 0x461   :  { %v4109_v20 = vpop.f32.mrf.mxu1  ;;  %v18487_v28 = vld [vmem:[#allocation134_spill] sm:$0xff]  ;;  %11575 = vmatprep.subr.bf16.mxu1 %v12416_v63 }
 0x462   :  { %18481 = vst [vmem:[#allocation8_spill] sm:$0xff] %v14870_v32  ;;  %v14875_v52 = vpop.f32.mrf.mxu0  ;;  %4539 = vmatmul.mubr.bf16.gmra.mxu0 %v18484_v15  ;;  %v18488_v20 = vld [vmem:[#allocation275_spill] sm:$0xff] }
 0x463   :  { %v4110_v60 = vpop.f32.mrf.mxu1  ;;  %4546 = vmatprep.mubr.bf16.mxu0 %v18485_v24  ;;  %v3571_v32 = vadd.f32 %v18488_v20, %v18487_v28  ;;  %v18493_v20 = vld [vmem:[#allocation26_spill] sm:$0xff] }
 0x464   :  { %v14879_v34 = vadd.f32 %v4110_v60, %v3566_v46  ;;  %v3772_v16 = vpop.f32.mrf.mxu0  ;;  %v18490_v46 = vld [vmem:[#allocation135_spill] sm:$0xff]  ;;  %v18491_v60 = vld [vmem:[#allocation34_spill] sm:$0xff] }
 0x465   :  { %v4112_v45 = vpop.f32.mrf.mxu1  ;;  %v3574_v24 = vadd.f32 %v18491_v60, %v18490_v46 }
 0x466   :  { %18486 = vst [vmem:[#allocation102_spill] sm:$0xff] %v14879_v34  ;;  %v14886_v21 = vpop.f32.mrf.mxu0  ;;  %v18492_v45 = vld [vmem:[#allocation25_spill] sm:$0xff] }
 0x467   :  { %v4115_v31 = vpop.f32.mrf.mxu1  ;;  %4306 = vmatmul.mubr.bf16.gmra.mxu1 %v18343_v38  ;;  %v18561_v38 = vld [vmem:[#allocation53_spill] sm:$0xff] }
 0x468   :  { %v14889_v0 = vadd.f32 %v4115_v31, %v3571_v32  ;;  %v3775_v15 = vpop.f32.mrf.mxu0  ;;  %4313 = vmatprep.mubr.bf16.mxu1 %v18344_v5  ;;  %v12418_v32 = vld [vmem:[%s17684_s3 + $0x7f0] sm:$0xff]   ;;  %v18550_v5 = vld [vmem:[#allocation167_spill] sm:$0xff] }
 0x469   :  { %v4117_v16 = vpop.f32.mrf.mxu1  ;;  %v12420_v15 = vld [vmem:[%s17684_s3 + $0x7b0] sm:$0xff]   ;;  %11885 = vmatprep.subr.bf16.mxu0 %v12418_v32 }
 0x46a   :  { %18489 = vst [vmem:[#allocation243_spill] sm:$0xff] %v14889_v0  ;;  %v14894_v34 = vpop.f32.mrf.mxu0  ;;  %4547 = vmatmul.mubr.bf16.gmra.mxu0 %v18492_v45  ;;  %v18495_v16 = vld [vmem:[#allocation138_spill] sm:$0xff]  ;;  %v18498_v0 = vld [vmem:[#allocation27_spill] sm:$0xff] }
 0x46b   :  { %v4118_v28 = vpop.f32.mrf.mxu1  ;;  %4554 = vmatprep.mubr.bf16.mxu0 %v18493_v20  ;;  %v3579_v46 = vadd.f32 %v14467_v10, %v18495_v16  ;;  %11886 = vmatpush3.bf16.msra.mxu0 %v12420_v15  ;;  %v18497_v20 = vld [vmem:[#allocation139_spill] sm:$0xff]  ;;  %v18499_v16 = vld [vmem:[#allocation28_spill] sm:$0xff] }
 0x46c   :  { %v14898_v63 = vadd.f32 %v4118_v28, %v3574_v24  ;;  %v3780_v37 = vpop.f32.mrf.mxu0 }
 0x46d   :  { %v4120_v31 = vpop.f32.mrf.mxu1 }
 0x46e   :  { %18494 = vst [vmem:[#allocation103_spill] sm:$0xff] %v14898_v63  ;;  %v14908_v60 = vpop.f32.mrf.mxu0  ;;  %v3582_v31 = vadd.f32 %v14475_v40, %v18497_v20 }
 0x46f   :  { %v4123_v45 = vpop.f32.mrf.mxu1  ;;  %4314 = vmatmul.mubr.bf16.gmra.mxu1 %v18353_v56 }
 0x470   :  { %v14911_v37 = vadd.f32 %v4123_v45, %v3579_v46  ;;  %v3783_v24 = vpop.f32.mrf.mxu0  ;;  %4321 = vmatprep.mubr.bf16.mxu1 %v18354_v23  ;;  %v18501_v46 = vld [vmem:[#allocation142_spill] sm:$0xff]  ;;  %v18502_v45 = vld [vmem:[#allocation39_spill] sm:$0xff] }
 0x471   :  { %v4125_v28 = vpop.f32.mrf.mxu1  ;;  %v3587_v24 = vadd.f32 %v18502_v45, %v18501_v46  ;;  %v18504_v23 = vld [vmem:[#allocation143_spill] sm:$0xff] }
 0x472   :  { %18496 = vst [vmem:[#allocation245_spill] sm:$0xff] %v14911_v37  ;;  %v14916_v63 = vpop.f32.mrf.mxu0  ;;  %4555 = vmatmul.mubr.bf16.gmra.mxu0 %v18498_v0 }
 0x473   :  { %v4126_v10 = vpop.f32.mrf.mxu1  ;;  %4562 = vmatprep.mubr.bf16.mxu0 %v18499_v16 }
 0x474   :  { %v14920_v32 = vadd.f32 %v4126_v10, %v3582_v31  ;;  %v3788_v56 = vpop.f32.mrf.mxu0  ;;  %v3590_v31 = vadd.f32 %v14497_v48, %v18504_v23 }
 0x475   :  { %v4128_v15 = vpop.f32.mrf.mxu1  ;;  %v18505_v56 = vld [vmem:[#allocation29_spill] sm:$0xff] }
 0x476   :  { %18500 = vst [vmem:[#allocation9_spill] sm:$0xff] %v14920_v32  ;;  %v14924_v37 = vpop.f32.mrf.mxu0  ;;  %v18506_v15 = vld [vmem:[#allocation30_spill] sm:$0xff] }
 0x477   :  { %v4131_v28 = vpop.f32.mrf.mxu1  ;;  %4322 = vmatmul.mubr.bf16.gmra.mxu1 %v18362_v53 }
 0x478   :  { %v14927_v40 = vadd.f32 %v4131_v28, %v3587_v24  ;;  %v3791_v20 = vpop.f32.mrf.mxu0  ;;  %4329 = vmatprep.mubr.bf16.mxu1 %v18363_v41  ;;  %v18508_v24 = vld [vmem:[#allocation146_spill] sm:$0xff]  ;;  %v18542_v41 = vld [vmem:[#allocation163_spill] sm:$0xff] }
 0x479   :  { %v4133_v0 = vpop.f32.mrf.mxu1  ;;  %v3595_v28 = vadd.f32 %v14505_v44, %v18508_v24  ;;  %v18513_v44 = vld [vmem:[#allocation32_spill] sm:$0xff] }
 0x47a   :  { %18503 = vst [vmem:[#allocation10_spill] sm:$0xff] %v14927_v40  ;;  %v14932_v10 = vpop.f32.mrf.mxu0  ;;  %4563 = vmatmul.mubr.bf16.gmra.mxu0 %v18505_v56  ;;  %v18510_v40 = vld [vmem:[#allocation147_spill] sm:$0xff] }
 0x47b   :  { %v4134_v16 = vpop.f32.mrf.mxu1  ;;  %4570 = vmatprep.mubr.bf16.mxu0 %v18506_v15  ;;  %v18511_v15 = vld [vmem:[#allocation46_spill] sm:$0xff] }
 0x47c   :  { %v14936_v46 = vadd.f32 %v4134_v16, %v3590_v31  ;;  %v3796_v45 = vpop.f32.mrf.mxu0  ;;  %v3598_v31 = vadd.f32 %v18511_v15, %v18510_v40 }
 0x47d   :  { %v4136_v32 = vpop.f32.mrf.mxu1 }
 0x47e   :  { %18507 = vst [vmem:[#allocation106_spill] sm:$0xff] %v14936_v46  ;;  %v14940_v20 = vpop.f32.mrf.mxu0  ;;  %v18512_v32 = vld [vmem:[#allocation31_spill] sm:$0xff] }
 0x47f   :  { %v4139_v0 = vpop.f32.mrf.mxu1  ;;  %4330 = vmatmul.mubr.bf16.gmra.mxu1 %v18372_v13 }
 0x480   :  { %v14943_v48 = vadd.f32 %v4139_v0, %v3595_v28  ;;  %v3799_v23 = vpop.f32.mrf.mxu0  ;;  %4337 = vmatprep.mubr.bf16.mxu1 %v18373_v42  ;;  %v18515_v28 = vld [vmem:[#allocation150_spill] sm:$0xff]  ;;  %v18516_v0 = vld [vmem:[#allocation47_spill] sm:$0xff] }
 0x481   :  { %v4141_v56 = vpop.f32.mrf.mxu1  ;;  %v3603_v23 = vadd.f32 %v18516_v0, %v18515_v28  ;;  %v18518_v42 = vld [vmem:[#allocation151_spill] sm:$0xff]  ;;  %v18521_v28 = vld [vmem:[#allocation36_spill] sm:$0xff] }
 0x482   :  { %18509 = vst [vmem:[#allocation247_spill] sm:$0xff] %v14943_v48  ;;  %v14948_v16 = vpop.f32.mrf.mxu0  ;;  %4571 = vmatmul.mubr.bf16.gmra.mxu0 %v18512_v32 }
 0x483   :  { %v4142_v45 = vpop.f32.mrf.mxu1  ;;  %4578 = vmatprep.mubr.bf16.mxu0 %v18513_v44  ;;  %v18519_v44 = vld [vmem:[#allocation50_spill] sm:$0xff] }
 0x484   :  { %v14952_v24 = vadd.f32 %v4142_v45, %v3598_v31  ;;  %v3804_v46 = vpop.f32.mrf.mxu0  ;;  %v3606_v31 = vadd.f32 %v18519_v44, %v18518_v42 }
 0x485   :  { %v4144_v13 = vpop.f32.mrf.mxu1 }
 0x486   :  { %18514 = vst [vmem:[#allocation107_spill] sm:$0xff] %v14952_v24  ;;  %v14956_v48 = vpop.f32.mrf.mxu0  ;;  %v18520_v13 = vld [vmem:[#allocation33_spill] sm:$0xff] }
 0x487   :  { %v4147_v56 = vpop.f32.mrf.mxu1  ;;  %4338 = vmatmul.mubr.bf16.gmra.mxu1 %v18378_v61 }
 0x488   :  { %v14959_v40 = vadd.f32 %v4147_v56, %v3603_v23  ;;  %v3807_v15 = vpop.f32.mrf.mxu0  ;;  %4345 = vmatprep.mubr.bf16.mxu1 %v18379_v59  ;;  %v18523_v23 = vld [vmem:[#allocation154_spill] sm:$0xff]  ;;  %v18524_v56 = vld [vmem:[#allocation51_spill] sm:$0xff] }
 0x489   :  { %v4149_v32 = vpop.f32.mrf.mxu1  ;;  %v3611_v15 = vadd.f32 %v18524_v56, %v18523_v23  ;;  %v18526_v59 = vld [vmem:[#allocation155_spill] sm:$0xff]  ;;  %v18529_v23 = vld [vmem:[#allocation40_spill] sm:$0xff] }
 0x48a   :  { %18517 = vst [vmem:[#allocation249_spill] sm:$0xff] %v14959_v40  ;;  %v14964_v45 = vpop.f32.mrf.mxu0  ;;  %4579 = vmatmul.mubr.bf16.gmra.mxu0 %v18520_v13 }
 0x48b   :  { %v4150_v46 = vpop.f32.mrf.mxu1  ;;  %4586 = vmatprep.mubr.bf16.mxu0 %v18521_v28  ;;  %v18527_v28 = vld [vmem:[#allocation54_spill] sm:$0xff] }
 0x48c   :  { %v14968_v0 = vadd.f32 %v4150_v46, %v3606_v31  ;;  %v3812_v24 = vpop.f32.mrf.mxu0  ;;  %v3614_v31 = vadd.f32 %v18527_v28, %v18526_v59 }
 0x48d   :  { %v4152_v61 = vpop.f32.mrf.mxu1 }
 0x48e   :  { %18522 = vst [vmem:[#allocation11_spill] sm:$0xff] %v14968_v0  ;;  %v14972_v40 = vpop.f32.mrf.mxu0  ;;  %v18528_v61 = vld [vmem:[#allocation37_spill] sm:$0xff] }
 0x48f   :  { %v4155_v32 = vpop.f32.mrf.mxu1  ;;  %4346 = vmatmul.mubr.bf16.gmra.mxu1 %v18385_v19 }
 0x490   :  { %v14975_v42 = vadd.f32 %v4155_v32, %v3611_v15  ;;  %v3815_v44 = vpop.f32.mrf.mxu0  ;;  %4353 = vmatprep.mubr.bf16.mxu1 %v18386_v11  ;;  %v18531_v15 = vld [vmem:[#allocation158_spill] sm:$0xff]  ;;  %v18532_v32 = vld [vmem:[#allocation55_spill] sm:$0xff] }
 0x491   :  { %v4157_v13 = vpop.f32.mrf.mxu1  ;;  %v3619_v44 = vadd.f32 %v18532_v32, %v18531_v15  ;;  %v18534_v11 = vld [vmem:[#allocation159_spill] sm:$0xff]  ;;  %v18537_v15 = vld [vmem:[#allocation44_spill] sm:$0xff] }
 0x492   :  { %18525 = vst [vmem:[#allocation12_spill] sm:$0xff] %v14975_v42  ;;  %v14980_v46 = vpop.f32.mrf.mxu0  ;;  %4587 = vmatmul.mubr.bf16.gmra.mxu0 %v18528_v61 }
 0x493   :  { %v4158_v24 = vpop.f32.mrf.mxu1  ;;  %4594 = vmatprep.mubr.bf16.mxu0 %v18529_v23  ;;  %v18535_v23 = vld [vmem:[#allocation58_spill] sm:$0xff] }
 0x494   :  { %v14984_v56 = vadd.f32 %v4158_v24, %v3614_v31  ;;  %v3820_v0 = vpop.f32.mrf.mxu0  ;;  %v3622_v31 = vadd.f32 %v18535_v23, %v18534_v11 }
 0x495   :  { %v4160_v19 = vpop.f32.mrf.mxu1 }
 0x496   :  { %18530 = vst [vmem:[#allocation110_spill] sm:$0xff] %v14984_v56  ;;  %v14988_v42 = vpop.f32.mrf.mxu0  ;;  %v18536_v19 = vld [vmem:[#allocation41_spill] sm:$0xff] }
 0x497   :  { %v4163_v13 = vpop.f32.mrf.mxu1  ;;  %4354 = vmatmul.mubr.bf16.gmra.mxu1 %v18391_v7 }
 0x498   :  { %v14991_v59 = vadd.f32 %v4163_v13, %v3619_v44  ;;  %v3823_v28 = vpop.f32.mrf.mxu0  ;;  %4361 = vmatprep.mubr.bf16.mxu1 %v18048_v22  ;;  %v18539_v44 = vld [vmem:[#allocation162_spill] sm:$0xff]  ;;  %v18540_v13 = vld [vmem:[#allocation59_spill] sm:$0xff] }
 0x499   :  { %v4165_v61 = vpop.f32.mrf.mxu1  ;;  %v3627_v28 = vadd.f32 %v18540_v13, %v18539_v44  ;;  %v18545_v44 = vld [vmem:[#allocation48_spill] sm:$0xff] }
 0x49a   :  { %18533 = vst [vmem:[#allocation251_spill] sm:$0xff] %v14991_v59  ;;  %v14996_v24 = vpop.f32.mrf.mxu0  ;;  %4595 = vmatmul.mubr.bf16.gmra.mxu0 %v18536_v19 }
 0x49b   :  { %v4166_v0 = vpop.f32.mrf.mxu1  ;;  %4602 = vmatprep.mubr.bf16.mxu0 %v18537_v15  ;;  %v18543_v15 = vld [vmem:[#allocation62_spill] sm:$0xff] }
 0x49c   :  { %v15000_v32 = vadd.f32 %v4166_v0, %v3622_v31  ;;  %v3828_v56 = vpop.f32.mrf.mxu0  ;;  %v3630_v31 = vadd.f32 %v18543_v15, %v18542_v41 }
 0x49d   :  { %v4168_v7 = vpop.f32.mrf.mxu1 }
 0x49e   :  { %18538 = vst [vmem:[#allocation111_spill] sm:$0xff] %v15000_v32  ;;  %v15004_v59 = vpop.f32.mrf.mxu0  ;;  %v18544_v7 = vld [vmem:[#allocation45_spill] sm:$0xff] }
 0x49f   :  { %v4171_v61 = vpop.f32.mrf.mxu1  ;;  %4362 = vmatmul.mubr.bf16.gmra.mxu1 %v18048_v22 }
 0x4a0   :  { %v15007_v11 = vadd.f32 %v4171_v61, %v3627_v28  ;;  %v3831_v23 = vpop.f32.mrf.mxu0  ;;  %4369 = vmatprep.mubr.bf16.mxu1 %v18048_v22  ;;  %v18547_v28 = vld [vmem:[#allocation166_spill] sm:$0xff]  ;;  %v18548_v61 = vld [vmem:[#allocation63_spill] sm:$0xff] }
 0x4a1   :  { %v4173_v19 = vpop.f32.mrf.mxu1  ;;  %v3635_v23 = vadd.f32 %v18548_v61, %v18547_v28 }
 0x4a2   :  { %18541 = vst [vmem:[#allocation253_spill] sm:$0xff] %v15007_v11  ;;  %v15012_v0 = vpop.f32.mrf.mxu0  ;;  %4603 = vmatmul.mubr.bf16.gmra.mxu0 %v18544_v7 }
 0x4a3   :  { %v4174_v56 = vpop.f32.mrf.mxu1  ;;  %4610 = vmatprep.mubr.bf16.mxu0 %v18545_v44  ;;  %v18552_v44 = vld [vmem:[#allocation52_spill] sm:$0xff] }
 0x4a4   :  { %v15016_v13 = vadd.f32 %v4174_v56, %v3630_v31  ;;  %v3836_v32 = vpop.f32.mrf.mxu0  ;;  %v3638_v31 = vadd.f32 %v14593_v2, %v18550_v5  ;;  %v18554_v5 = vld [vmem:[#allocation170_spill] sm:$0xff] }
 0x4a5   :  { %v4176_v53 = vpop.f32.mrf.mxu1  ;;  %v18555_v2 = vld [vmem:[#allocation214_spill] sm:$0xff] }
 0x4a6   :  { %18546 = vst [vmem:[#allocation13_spill] sm:$0xff] %v15016_v13  ;;  %v15020_v11 = vpop.f32.mrf.mxu0  ;;  %v18551_v53 = vld [vmem:[#allocation49_spill] sm:$0xff] }
 0x4a7   :  { %v4179_v19 = vpop.f32.mrf.mxu1  ;;  %4370 = vmatmul.mubr.bf16.gmra.mxu1 %v18048_v22 }
 0x4a8   :  { %v15023_v41 = vadd.f32 %v4179_v19, %v3635_v23  ;;  %v3839_v15 = vpop.f32.mrf.mxu0  ;;  %4377 = vmatprep.mubr.bf16.mxu1 %v18048_v22  ;;  %v12452_v23 = vld [vmem:[%s17684_s3 + $0x7e8] sm:$0xff]  }
 0x4a9   :  { %v4181_v7 = vpop.f32.mrf.mxu1  ;;  %v12454_v15 = vld [vmem:[%s17684_s3 + $0x7a8] sm:$0xff]   ;;  %11887 = vmatprep.subr.bf16.mxu0 %v12452_v23 }
 0x4aa   :  { %18549 = vst [vmem:[#allocation14_spill] sm:$0xff] %v15023_v41  ;;  %v15028_v56 = vpop.f32.mrf.mxu0  ;;  %4611 = vmatmul.mubr.bf16.gmra.mxu0 %v18551_v53  ;;  %v3643_v7 = vadd.f32 %v18555_v2, %v18554_v5  ;;  %v18562_v2 = vld [vmem:[#allocation56_spill] sm:$0xff] }
 0x4ab   :  { %v4182_v32 = vpop.f32.mrf.mxu1  ;;  %4618 = vmatprep.mubr.bf16.mxu0 %v18552_v44  ;;  %11888 = vmatpush3.bf16.msra.mxu0 %v12454_v15 }
 0x4ac   :  { %v15032_v28 = vadd.f32 %v4182_v32, %v3638_v31  ;;  %v3844_v61 = vpop.f32.mrf.mxu0 }
 0x4ad   :  { %v4184_v19 = vpop.f32.mrf.mxu1  ;;  %v18558_v61 = vld [vmem:[#allocation171_spill] sm:$0xff] }
 0x4ae   :  { %18553 = vst [vmem:[#allocation114_spill] sm:$0xff] %v15032_v28  ;;  %v15042_v41 = vpop.f32.mrf.mxu0  ;;  %v18559_v19 = vld [vmem:[#allocation216_spill] sm:$0xff] }
 0x4af   :  { %18556 = vst [vmem:[#allocation255_spill] sm:$0xff] %v15042_v41  ;;  %v4187_v53 = vpop.f32.mrf.mxu1  ;;  %4378 = vmatmul.mubr.bf16.gmra.mxu1 %v18048_v22  ;;  %v3646_v28 = vadd.f32 %v18559_v19, %v18558_v61 }
 0x4b0   :  { %v15045_v31 = vadd.f32 %v4187_v53, %v3643_v7  ;;  %v3847_v32 = vpop.f32.mrf.mxu0  ;;  %4385 = vmatprep.mubr.bf16.mxu1 %v18048_v22  ;;  %v18564_v7 = vld [vmem:[#allocation174_spill] sm:$0xff] }
 0x4b1   :  { %v4189_v44 = vpop.f32.mrf.mxu1  ;;  %v18565_v53 = vld [vmem:[#allocation218_spill] sm:$0xff] }
 0x4b2   :  { %18557 = vst [vmem:[#allocation115_spill] sm:$0xff] %v15045_v31  ;;  %v15050_v13 = vpop.f32.mrf.mxu0  ;;  %4619 = vmatmul.mubr.bf16.gmra.mxu0 %v18561_v38  ;;  %v3651_v32 = vadd.f32 %v18565_v53, %v18564_v7 }
 0x4b3   :  { %18560 = vst [vmem:[#allocation257_spill] sm:$0xff] %v15050_v13  ;;  %v4190_v5 = vpop.f32.mrf.mxu1  ;;  %4626 = vmatprep.mubr.bf16.mxu0 %v18562_v2  ;;  %v18567_v13 = vld [vmem:[#allocation175_spill] sm:$0xff] }
 0x4b4   :  { %v15054_v23 = vadd.f32 %v4190_v5, %v3646_v28  ;;  %v3852_v41 = vpop.f32.mrf.mxu0  ;;  %v3654_v28 = vadd.f32 %v14631_v9, %v18567_v13 }
 0x4b5   :  { %v4192_v15 = vpop.f32.mrf.mxu1  ;;  %v18568_v41 = vld [vmem:[#allocation57_spill] sm:$0xff] }
 0x4b6   :  { %18563 = vst [vmem:[#allocation15_spill] sm:$0xff] %v15054_v23  ;;  %v15058_v31 = vpop.f32.mrf.mxu0  ;;  %v18569_v15 = vld [vmem:[#allocation60_spill] sm:$0xff] }
 0x4b7   :  { %v4195_v44 = vpop.f32.mrf.mxu1  ;;  %4386 = vmatmul.mubr.bf16.gmra.mxu1 %v18048_v22 }
 0x4b8   :  { %v15061_v61 = vadd.f32 %v4195_v44, %v3651_v32  ;;  %v3855_v19 = vpop.f32.mrf.mxu0  ;;  %4393 = vmatprep.mubr.bf16.mxu1 %v18048_v22  ;;  %v18571_v32 = vld [vmem:[#allocation178_spill] sm:$0xff] }
 0x4b9   :  { %v4197_v38 = vpop.f32.mrf.mxu1  ;;  %v3659_v44 = vadd.f32 %v14639_v8, %v18571_v32  ;;  %v18577_v8 = vld [vmem:[#allocation64_spill] sm:$0xff] }
 0x4ba   :  { %18566 = vst [vmem:[#allocation16_spill] sm:$0xff] %v15061_v61  ;;  %v15066_v5 = vpop.f32.mrf.mxu0  ;;  %4627 = vmatmul.mubr.bf16.gmra.mxu0 %v18568_v41  ;;  %v18574_v61 = vld [vmem:[#allocation179_spill] sm:$0xff] }
 0x4bb   :  { %v4198_v2 = vpop.f32.mrf.mxu1  ;;  %4634 = vmatprep.mubr.bf16.mxu0 %v18569_v15 }
 0x4bc   :  { %v15070_v7 = vadd.f32 %v4198_v2, %v3654_v28  ;;  %v3860_v53 = vpop.f32.mrf.mxu0  ;;  %v3662_v28 = vadd.f32 %v14647_v50, %v18574_v61 }
 0x4bd   :  { %v4200_v23 = vpop.f32.mrf.mxu1 }
 0x4be   :  { %18570 = vst [vmem:[#allocation118_spill] sm:$0xff] %v15070_v7  ;;  %v15074_v19 = vpop.f32.mrf.mxu0  ;;  %v18576_v23 = vld [vmem:[#allocation61_spill] sm:$0xff] }
 0x4bf   :  { %18572 = vst [vmem:[#allocation259_spill] sm:$0xff] %v15074_v19  ;;  %v4203_v38 = vpop.f32.mrf.mxu1  ;;  %4394 = vmatmul.mubr.bf16.gmra.mxu1 %v18048_v22 }
 0x4c0   :  { %v15077_v9 = vadd.f32 %v4203_v38, %v3659_v44  ;;  %v3863_v13 = vpop.f32.mrf.mxu0  ;;  %4401 = vmatprep.mubr.bf16.mxu1 %v18048_v22  ;;  %v18579_v44 = vld [vmem:[#allocation182_spill] sm:$0xff] }
 0x4c1   :  { %v4205_v41 = vpop.f32.mrf.mxu1  ;;  %v3667_v38 = vadd.f32 %v14655_v49, %v18579_v44  ;;  %v18585_v49 = vld [vmem:[#allocation68_spill] sm:$0xff] }
 0x4c2   :  { %18573 = vst [vmem:[#allocation119_spill] sm:$0xff] %v15077_v9  ;;  %v15082_v2 = vpop.f32.mrf.mxu0  ;;  %4635 = vmatmul.mubr.bf16.gmra.mxu0 %v18576_v23  ;;  %v18582_v9 = vld [vmem:[#allocation183_spill] sm:$0xff] }
 0x4c3   :  { %18575 = vst [vmem:[#allocation261_spill] sm:$0xff] %v15082_v2  ;;  %v4206_v15 = vpop.f32.mrf.mxu1  ;;  %4642 = vmatprep.mubr.bf16.mxu0 %v18577_v8 }
 0x4c4   :  { %v15086_v53 = vadd.f32 %v4206_v15, %v3662_v28  ;;  %v3868_v32 = vpop.f32.mrf.mxu0  ;;  %v3670_v28 = vadd.f32 %v14663_v58, %v18582_v9 }
 0x4c5   :  { %v4208_v7 = vpop.f32.mrf.mxu1 }
 0x4c6   :  { %18578 = vst [vmem:[#allocation17_spill] sm:$0xff] %v15086_v53  ;;  %v15090_v13 = vpop.f32.mrf.mxu0  ;;  %v18584_v7 = vld [vmem:[#allocation65_spill] sm:$0xff] }
 0x4c7   :  { %18580 = vst [vmem:[#allocation18_spill] sm:$0xff] %v15090_v13  ;;  %v4211_v41 = vpop.f32.mrf.mxu1  ;;  %4402 = vmatmul.mubr.bf16.gmra.mxu1 %v18048_v22 }
 0x4c8   :  { %v15093_v50 = vadd.f32 %v4211_v41, %v3667_v38  ;;  %v3871_v61 = vpop.f32.mrf.mxu0  ;;  %4409 = vmatprep.mubr.bf16.mxu1 %v18048_v22  ;;  %v18587_v38 = vld [vmem:[#allocation186_spill] sm:$0xff] }
 0x4c9   :  { %v4213_v23 = vpop.f32.mrf.mxu1  ;;  %v3675_v41 = vadd.f32 %v14671_v47, %v18587_v38  ;;  %v18593_v38 = vld [vmem:[#allocation72_spill] sm:$0xff] }
 0x4ca   :  { %18581 = vst [vmem:[#allocation122_spill] sm:$0xff] %v15093_v50  ;;  %v15098_v15 = vpop.f32.mrf.mxu0  ;;  %4643 = vmatmul.mubr.bf16.gmra.mxu0 %v18584_v7  ;;  %v18590_v50 = vld [vmem:[#allocation187_spill] sm:$0xff] }
 0x4cb   :  { %18583 = vst [vmem:[#allocation263_spill] sm:$0xff] %v15098_v15  ;;  %v4214_v8 = vpop.f32.mrf.mxu1  ;;  %4650 = vmatprep.mubr.bf16.mxu0 %v18585_v49  ;;  %v18591_v49 = vld [vmem:[#allocation69_spill] sm:$0xff]  ;;  %v18596_v15 = vld [vmem:[#allocation35_spill] sm:$0xff] }
 0x4cc   :  { %v15102_v32 = vadd.f32 %v4214_v8, %v3670_v28  ;;  %v3876_v44 = vpop.f32.mrf.mxu0  ;;  %v3678_v28 = vadd.f32 %v14679_v39, %v18590_v50 }
 0x4cd   :  { %v4216_v53 = vpop.f32.mrf.mxu1 }
 0x4ce   :  { %18586 = vst [vmem:[#allocation123_spill] sm:$0xff] %v15102_v32  ;;  %v15106_v61 = vpop.f32.mrf.mxu0  ;;  %v18592_v53 = vld [vmem:[#allocation277_spill] sm:$0xff] }
 0x4cf   :  { %18588 = vst [vmem:[#allocation265_spill] sm:$0xff] %v15106_v61  ;;  %v4219_v23 = vpop.f32.mrf.mxu1  ;;  %4410 = vmatmul.mubr.bf16.gmra.mxu1 %v18048_v22 }
 0x4d0   :  { %v15109_v58 = vadd.f32 %v4219_v23, %v3675_v41  ;;  %v3879_v9 = vpop.f32.mrf.mxu0  ;;  %4417 = vmatprep.mubr.bf16.mxu1 %v18048_v22  ;;  %v18595_v23 = vld [vmem:[#allocation190_spill] sm:$0xff] }
 0x4d1   :  { %v4221_v7 = vpop.f32.mrf.mxu1  ;;  %v3683_v9 = vadd.f32 %v14687_v36, %v18595_v23  ;;  %v18600_v23 = vld [vmem:[#allocation38_spill] sm:$0xff] }
 0x4d2   :  { %18589 = vst [vmem:[#allocation19_spill] sm:$0xff] %v15109_v58  ;;  %v4460_v8 = vpop.f32.mrf.mxu0  ;;  %4651 = vmatmul.mubr.bf16.gmra.mxu0 %v18591_v49 }
 0x4d3   :  { %v4461_v44 = vadd.f32 %v4460_v8, %v18592_v53  ;;  %v4222_v47 = vpop.f32.mrf.mxu1  ;;  %4658 = vmatprep.mubr.bf16.mxu0 %v18593_v38  ;;  %v18598_v53 = vld [vmem:[#allocation191_spill] sm:$0xff]  ;;  %v18599_v38 = vld [vmem:[#allocation73_spill] sm:$0xff] }
 0x4d4   :  { %v15117_v32 = vadd.f32 %v4222_v47, %v3678_v28  ;;  %v4462_v61 = vpop.f32.mrf.mxu0 }
 0x4d5   :  { %v4224_v41 = vpop.f32.mrf.mxu1  ;;  %v5099_v7 = vmul.f32 0.01, %v4461_v44  ;;  %vm4971_vm10 = vcmp.ge.f32.partialorder %v4461_v44, 0.0  ;;  %v3686_v61 = vadd.f32 %v14695_v55, %v18598_v53  ;;  %v18603_v53 = vld [vmem:[#allocation278_spill] sm:$0xff] }
 0x4d6   :  { %18594 = vst [vmem:[#allocation20_spill] sm:$0xff] %v15117_v32  ;;  %v4463_v58 = vpop.f32.mrf.mxu0  ;;  %v18601_v32 = vld [vmem:[#allocation76_spill] sm:$0xff] }
 0x4d7   :  { %v4464_v13 = vadd.f32 %v4463_v58, %v18596_v15  ;;  %v4227_v39 = vpop.f32.mrf.mxu1  ;;  %4418 = vmatmul.mubr.bf16.gmra.mxu1 %v18048_v22  ;;  %v5227_v36 = vsel %vm4971_vm10, %v4461_v44, %v5099_v7 }
 0x4d8   :  { %v15123_v50 = vadd.f32 %v4227_v39, %v3683_v9  ;;  %v4465_v8 = vpop.f32.mrf.mxu0 }
 0x4d9   :  { %vm4972_vm11 = vcmp.ge.f32.partialorder %v4464_v13, 0.0  ;;  %v5100_v49 = vmul.f32 0.01, %v4464_v13  ;;  %v4229_v28 = vpop.f32.mrf.mxu1 }
 0x4da   :  { %18597 = vst [vmem:[#allocation126_spill] sm:$0xff] %v15123_v50  ;;  %v4468_v47 = vpop.f32.mrf.mxu0  ;;  %4659 = vmatmul.mubr.bf16.gmra.mxu0 %v18599_v38  ;;  %v18602_v50 = vld [vmem:[#allocation192_spill] sm:$0xff] }
 0x4db   :  { %v5228_v41 = vsel %vm4972_vm11, %v4464_v13, %v5100_v49  ;;  %v4469_v15 = vadd.f32 %v4468_v47, %v18600_v23  ;;  %v4230_v58 = vpop.f32.mrf.mxu1  ;;  %4666 = vmatprep.mubr.bf16.mxu0 %v18601_v32  ;;  %v3691_v28 = vadd.f32 %v14703_v30, %v18602_v50  ;;  %v18604_v49 = vld [vmem:[#allocation193_spill] sm:$0xff]  ;;  %v18607_v23 = vld [vmem:[#allocation80_spill] sm:$0xff] }
 0x4dc   :  { %v5355_v22 = vpack.c.bf16 %v5228_v41, %v5227_v36  ;;  %v15130_v9 = vadd.f32 %v4230_v58, %v3686_v61  ;;  %v4470_v39 = vpop.f32.mrf.mxu0  ;;  %v3694_v61 = vadd.f32 %v14711_v17, %v18604_v49  ;;  %v18605_v36 = vld [vmem:[#allocation77_spill] sm:$0xff]  ;;  %v18606_v41 = vld [vmem:[#allocation42_spill] sm:$0xff]  ;;  %v12419_v17 = vld [vmem:[%s17684_s3 + $0xf0] sm:$0xff]  }
 0x4dd   :  { %v4232_v8 = vpop.f32.mrf.mxu1  ;;  %v5101_v55 = vmul.f32 0.01, %v4469_v15  ;;  %vm4973_vm12 = vcmp.ge.f32.partialorder %v4469_v15, 0.0 }
 0x4de   :  { %v4471_v2 = vpop.f32.mrf.mxu0 }
 0x4df   :  { %v4472_v19 = vadd.f32 %v4471_v2, %v18603_v53  ;;  %v4235_v38 = vpop.f32.mrf.mxu1  ;;  %v5229_v2 = vsel %vm4973_vm12, %v4469_v15, %v5101_v55  ;;  %v12417_v53 = vld [vmem:[%s17684_s3 + $0xb8] sm:$0xff]  }
 0x4e0   :  { %v15135_v13 = vadd.f32 %v4235_v38, %v3691_v28  ;;  %v4473_v44 = vpop.f32.mrf.mxu0 }
 0x4e1   :  { %vm4974_vm13 = vcmp.ge.f32.partialorder %v4472_v19, 0.0  ;;  %v5102_v7 = vmul.f32 0.01, %v4472_v19  ;;  %v4237_v32 = vpop.f32.mrf.mxu1  ;;  %v18608_v44 = vld [vmem:[#allocation194_spill] sm:$0xff] }
 0x4e2   :  { %v4476_v47 = vpop.f32.mrf.mxu0  ;;  %4667 = vmatmul.mubr.bf16.gmra.mxu0 %v18605_v36  ;;  %v3699_v32 = vadd.f32 %v14719_v3, %v18608_v44  ;;  %v12421_v36 = vld [vmem:[%s17684_s3 + $0xb0] sm:$0xff]   ;;  %v12422_v3 = vld [vmem:[%s17684_s3 + $0xe8] sm:$0xff]  }
 0x4e3   :  { %v4477_v30 = vadd.f32 %v4476_v47, %v18606_v41  ;;  %v4238_v50 = vpop.f32.mrf.mxu1  ;;  %4674 = vmatprep.mubr.bf16.mxu0 %v18607_v23  ;;  %v5230_v58 = vsel %vm4974_vm13, %v4472_v19, %v5102_v7  ;;  %v18609_v19 = vld [vmem:[#allocation43_spill] sm:$0xff] }
 0x4e4   :  { %v15142_v39 = vadd.f32 %v4238_v50, %v3694_v61  ;;  %v4478_v8 = vpop.f32.mrf.mxu0  ;;  %v5356_v28 = vpack.c.bf16 %v5230_v58, %v5229_v2  ;;  %v18610_v23 = vld [vmem:[#allocation195_spill] sm:$0xff]  ;;  %v18611_v58 = vld [vmem:[#allocation81_spill] sm:$0xff] }
 0x4e5   :  { %v4240_v38 = vpop.f32.mrf.mxu1  ;;  %v5103_v15 = vmul.f32 0.01, %v4477_v30  ;;  %vm4975_vm14 = vcmp.ge.f32.partialorder %v4477_v30, 0.0 }
 0x4e6   :  { %v4479_v49 = vpop.f32.mrf.mxu0  ;;  %9554 = vmatprep.mubr.bf16.mxu1 %v5356_v28 }
 0x4e7   :  { %v4480_v55 = vadd.f32 %v4479_v49, %v18609_v19  ;;  %v4243_v7 = vpop.f32.mrf.mxu1  ;;  %9555 = vmatmul.mubr.bf16.vlgmr.msra.gmra.mxu1 %v5355_v22  ;;  %v3702_v22 = vadd.f32 %v14727_v6, %v18610_v23  ;;  %v15164_v8 = vsel %vm4975_vm14, %v4477_v30, %v5103_v15  ;;  %v12423_v6 = vld [vmem:[%s17684_s3 + $0xa8] sm:$0xff]   ;;  %v12486_v30 = vld [vmem:[%s17684_s3 + $0x7e0] sm:$0xff]   ;;  %v18615_v23 = vld [vmem:[#allocation196_spill] sm:$0xff] }
 0x4e8   :  { %v15153_v61 = vadd.f32 %v4243_v7, %v3699_v32  ;;  %11576 = vmatpush3.bf16.msra.mxu1 %v12417_v53  ;;  %v4481_v47 = vpop.f32.mrf.mxu0  ;;  %v18612_v53 = vld [vmem:[#allocation279_spill] sm:$0xff]  ;;  %v18613_v32 = vld [vmem:[#allocation84_spill] sm:$0xff]  ;;  %v12488_v7 = vld [vmem:[%s17684_s3 + $0x7a0] sm:$0xff]   ;;  %11889 = vmatprep.subr.bf16.mxu0 %v12486_v30 }
 0x4e9   :  { %vm4976_vm15 = vcmp.ge.f32.partialorder %v4480_v55, 0.0  ;;  %v5104_v41 = vmul.f32 0.01, %v4480_v55  ;;  %v4245_v50 = vpop.f32.mrf.mxu1  ;;  %11577 = vmatprep.subr.bf16.mxu1 %v12419_v17  ;;  %v18614_v47 = vld [vmem:[#allocation197_spill] sm:$0xff]  ;;  %11890 = vmatpush3.bf16.msra.mxu0 %v12488_v7 }
 0x4ea   :  { %v4484_v2 = vpop.f32.mrf.mxu0  ;;  %4675 = vmatmul.mubr.bf16.gmra.mxu0 %v18611_v58  ;;  %v18617_v7 = vld [vmem:[#allocation85_spill] sm:$0xff] }
 0x4eb   :  { %v15166_v28 = vsel %vm4976_vm15, %v4480_v55, %v5104_v41  ;;  %v4485_v38 = vadd.f32 %v4484_v2, %v18612_v53  ;;  %v4246_v44 = vpop.f32.mrf.mxu1  ;;  %4682 = vmatprep.mubr.bf16.mxu0 %v18613_v32  ;;  %v12424_v55 = vld [vmem:[%s17684_s3 + $0xe0] sm:$0xff]  }
 0x4ec   :  { %v15172_v49 = vadd.f32 %v4246_v44, %v3702_v22  ;;  %11578 = vmatpush3.bf16.msra.mxu1 %v12421_v36  ;;  %v4486_v19 = vpop.f32.mrf.mxu0  ;;  %v3707_v36 = vadd.f32 %v14735_v26, %v18614_v47  ;;  %v12425_v53 = vld [vmem:[%s17684_s3 + $0xa0] sm:$0xff]   ;;  %v12426_v26 = vld [vmem:[%s17684_s3 + $0xd8] sm:$0xff]  }
 0x4ed   :  { %v4248_v15 = vpop.f32.mrf.mxu1  ;;  %11579 = vmatprep.subr.bf16.mxu1 %v12422_v3  ;;  %v5105_v50 = vmul.f32 0.01, %v4485_v38  ;;  %vm4977_vm1 = vcmp.ge.f32.partialorder %v4485_v38, 0.0  ;;  %v18616_v19 = vld [vmem:[#allocation199_spill] sm:$0xff] }
 0x4ee   :  { %v4487_v41 = vpop.f32.mrf.mxu0  ;;  %v3710_v30 = vadd.f32 %v14743_v4, %v18616_v19  ;;  %v12427_v4 = vld [vmem:[%s17684_s3 + $0x98] sm:$0xff]  }
 0x4ef   :  { %v4488_v22 = vadd.f32 %v4487_v41, %v18615_v23  ;;  %v4251_v2 = vpop.f32.mrf.mxu1  ;;  %v18619_v41 = vld [vmem:[#allocation88_spill] sm:$0xff]  ;;  %v5233_v23 = vsel %vm4977_vm1, %v4485_v38, %v5105_v50 }
 0x4f0   :  { %v15189_v3 = vadd.f32 %v4251_v2, %v3707_v36  ;;  %11580 = vmatpush3.bf16.msra.mxu1 %v12423_v6  ;;  %v4489_v58 = vpop.f32.mrf.mxu0  ;;  %v18618_v6 = vld [vmem:[#allocation198_spill] sm:$0xff] }
 0x4f1   :  { %vm4978_vm2 = vcmp.ge.f32.partialorder %v4488_v22, 0.0  ;;  %v5106_v44 = vmul.f32 0.01, %v4488_v22  ;;  %v4253_v32 = vpop.f32.mrf.mxu1  ;;  %11581 = vmatprep.subr.bf16.mxu1 %v12424_v55 }
 0x4f2   :  { %v4492_v15 = vpop.f32.mrf.mxu0  ;;  %4683 = vmatmul.mubr.bf16.gmra.mxu0 %v18617_v7  ;;  %v18620_v7 = vld [vmem:[#allocation201_spill] sm:$0xff] }
 0x4f3   :  { %v4493_v47 = vadd.f32 %v4492_v15, %v18618_v6  ;;  %v4254_v36 = vpop.f32.mrf.mxu1  ;;  %4690 = vmatprep.mubr.bf16.mxu0 %v18619_v41  ;;  %v5234_v2 = vsel %vm4978_vm2, %v4488_v22, %v5106_v44  ;;  %v12428_v15 = vld [vmem:[%s17684_s3 + $0xd0] sm:$0xff]   ;;  %v3715_v6 = vadd.f32 %v14760_v43, %v18620_v7  ;;  %v12430_v43 = vld [vmem:[%s17684_s3 + $0xc8] sm:$0xff]  }
 0x4f4   :  { %v15203_v58 = vadd.f32 %v4254_v36, %v3710_v30  ;;  %11582 = vmatpush3.bf16.msra.mxu1 %v12425_v53  ;;  %v4494_v55 = vpop.f32.mrf.mxu0  ;;  %v5358_v32 = vpack.c.bf16 %v5234_v2, %v5233_v23  ;;  %v18621_v22 = vld [vmem:[#allocation200_spill] sm:$0xff]  ;;  %v18622_v2 = vld [vmem:[#allocation203_spill] sm:$0xff] }
 0x4f5   :  { %v4256_v19 = vpop.f32.mrf.mxu1  ;;  %11583 = vmatprep.subr.bf16.mxu1 %v12426_v26  ;;  %v5107_v50 = vmul.f32 0.01, %v4493_v47  ;;  %vm4979_vm3 = vcmp.ge.f32.partialorder %v4493_v47, 0.0  ;;  %v12429_v26 = vld [vmem:[%s17684_s3 + $0x90] sm:$0xff]   ;;  %v3718_v55 = vadd.f32 %v14771_v33, %v18622_v2  ;;  %v12431_v33 = vld [vmem:[%s17684_s3 + $0x88] sm:$0xff]  }
 0x4f6   :  { %v4495_v38 = vpop.f32.mrf.mxu0  ;;  %9595 = vmatprep.mubr.bf16.mxu1 %v5358_v32  ;;  %v18623_v19 = vld [vmem:[#allocation89_spill] sm:$0xff] }
 0x4f7   :  { %v4496_v53 = vadd.f32 %v4495_v38, %v18621_v22  ;;  %v4259_v44 = vpop.f32.mrf.mxu1 }
 0x4f8   :  { %v15214_v30 = vadd.f32 %v4259_v44, %v3715_v6  ;;  %11584 = vmatpush3.bf16.msra.mxu1 %v12427_v4  ;;  %v4497_v36 = vpop.f32.mrf.mxu0  ;;  %v15225_v4 = vsel %vm4979_vm3, %v4493_v47, %v5107_v50  ;;  %v18624_v6 = vld [vmem:[#allocation202_spill] sm:$0xff]  ;;  %v18625_v44 = vld [vmem:[#allocation92_spill] sm:$0xff] }
 0x4f9   :  { %vm4980_vm4 = vcmp.ge.f32.partialorder %v4496_v53, 0.0  ;;  %v5108_v41 = vmul.f32 0.01, %v4496_v53  ;;  %v4261_v23 = vpop.f32.mrf.mxu1  ;;  %11585 = vmatprep.subr.bf16.mxu1 %v12428_v15  ;;  %v12432_v50 = vld [vmem:[%s17684_s3 + $0xc0] sm:$0xff]  }
 0x4fa   :  { %v4500_v32 = vpop.f32.mrf.mxu0  ;;  %4691 = vmatmul.mubr.bf16.gmra.mxu0 %v18623_v19  ;;  %v18627_v19 = vld [vmem:[#allocation204_spill] sm:$0xff] }
 0x4fb   :  { %v15227_v7 = vsel %vm4980_vm4, %v4496_v53, %v5108_v41  ;;  %v4501_v38 = vadd.f32 %v4500_v32, %v18624_v6  ;;  %v4262_v22 = vpop.f32.mrf.mxu1  ;;  %4698 = vmatprep.mubr.bf16.mxu0 %v18625_v44  ;;  %v18626_v53 = vld [vmem:[#allocation205_spill] sm:$0xff] }
 0x4fc   :  { %v15233_v36 = vadd.f32 %v4262_v22, %v3718_v55  ;;  %11586 = vmatpush3.bf16.msra.mxu1 %v12429_v26  ;;  %v4502_v23 = vpop.f32.mrf.mxu0  ;;  %v3723_v41 = vadd.f32 %v14779_v27, %v18626_v53  ;;  %v12434_v27 = vld [vmem:[%s17684_s3 + $0x178] sm:$0xff]  }
 0x4fd   :  { %v4264_v47 = vpop.f32.mrf.mxu1  ;;  %11587 = vmatprep.subr.bf16.mxu1 %v12430_v43  ;;  %v5109_v32 = vmul.f32 0.01, %v4501_v38  ;;  %vm4981_vm5 = vcmp.ge.f32.partialorder %v4501_v38, 0.0  ;;  %v12433_v43 = vld [vmem:[%s17684_s3 + $0x80] sm:$0xff]  }
 0x4fe   :  { %v4503_v2 = vpop.f32.mrf.mxu0  ;;  %v18629_v47 = vld [vmem:[#allocation207_spill] sm:$0xff] }
 0x4ff   :  { %v4504_v55 = vadd.f32 %v4503_v2, %v18627_v19  ;;  %v4267_v6 = vpop.f32.mrf.mxu1  ;;  %v3726_v53 = vadd.f32 %v14787_v25, %v18629_v47  ;;  %v5237_v15 = vsel %vm4981_vm5, %v4501_v38, %v5109_v32 }
 0x500   :  { %v15244_v26 = vadd.f32 %v4267_v6, %v3723_v41  ;;  %11588 = vmatpush3.bf16.msra.mxu1 %v12431_v33  ;;  %v4505_v22 = vpop.f32.mrf.mxu0  ;;  %v18630_v41 = vld [vmem:[#allocation93_spill] sm:$0xff]  ;;  %v18631_v33 = vld [vmem:[#allocation206_spill] sm:$0xff] }
 0x501   :  { %vm4982_vm6 = vcmp.ge.f32.partialorder %v4504_v55, 0.0  ;;  %v5110_v44 = vmul.f32 0.01, %v4504_v55  ;;  %v4269_v23 = vpop.f32.mrf.mxu1  ;;  %11589 = vmatprep.subr.bf16.mxu1 %v12432_v50  ;;  %v18632_v22 = vld [vmem:[#allocation96_spill] sm:$0xff] }
 0x502   :  { %18628 = vst [vmem:[#allocation267_spill] sm:$0xff] %v15244_v26  ;;  %v4508_v2 = vpop.f32.mrf.mxu0  ;;  %4699 = vmatmul.mubr.bf16.gmra.mxu0 %v18630_v41  ;;  %v12435_v26 = vld [vmem:[%s17684_s3 + $0x138] sm:$0xff]  }
 0x503   :  { %v4509_v19 = vadd.f32 %v4508_v2, %v18631_v33  ;;  %v4270_v6 = vpop.f32.mrf.mxu1  ;;  %4706 = vmatprep.mubr.bf16.mxu0 %v18632_v22  ;;  %v5238_v17 = vsel %vm4982_vm6, %v4504_v55, %v5110_v44  ;;  %v12436_v2 = vld [vmem:[%s17684_s3 + $0x170] sm:$0xff]   ;;  %v18633_v41 = vld [vmem:[#allocation209_spill] sm:$0xff] }
 0x504   :  { %v15258_v23 = vadd.f32 %v4270_v6, %v3726_v53  ;;  %11590 = vmatpush3.bf16.msra.mxu1 %v12433_v43  ;;  %v4510_v50 = vpop.f32.mrf.mxu0  ;;  %v5360_v25 = vpack.c.bf16 %v5238_v17, %v5237_v15  ;;  %v3731_v33 = vadd.f32 %v14795_v51, %v18633_v41  ;;  %v18634_v55 = vld [vmem:[#allocation208_spill] sm:$0xff]  ;;  %v18635_v43 = vpack.c.bf16 %v15166_v28, %v15164_v8  ;;  %v12438_v8 = vld [vmem:[%s17684_s3 + $0x168] sm:$0xff]   ;;  %v18638_v41 = vld [vmem:[#allocation210_spill] sm:$0xff] }
 0x505   :  { %v4272_v47 = vpop.f32.mrf.mxu1  ;;  %11597 = vmatprep.subr.bf16.mxu1 %v12434_v27  ;;  %v5111_v32 = vmul.f32 0.01, %v4509_v19  ;;  %vm4983_vm0 = vcmp.ge.f32.partialorder %v4509_v19, 0.0  ;;  %v12437_v27 = vld [vmem:[%s17684_s3 + $0x130] sm:$0xff]   ;;  %v18636_v28 = vld [vmem:[#allocation211_spill] sm:$0xff] }
 0x506   :  { %v4511_v38 = vpop.f32.mrf.mxu0  ;;  %v3734_v22 = vadd.f32 %v14803_v29, %v18636_v28  ;;  %v18637_v47 = vld [vmem:[#allocation97_spill] sm:$0xff]  ;;  %v12439_v29 = vld [vmem:[%s17684_s3 + $0x128] sm:$0xff]   ;;  %v18641_v28 = vld [vmem:[#allocation212_spill] sm:$0xff] }
 0x507   :  { %v4512_v44 = vadd.f32 %v4511_v38, %v18634_v55  ;;  %9596 = vmatmul.mubr.bf16.vlgmr.msra.gmra.mxu1 %v18635_v43  ;;  %v4275_v53 = vpop.f32.mrf.mxu1  ;;  %v18639_v55 = vld [vmem:[#allocation100_spill] sm:$0xff] }
 0x508   :  { %v15272_v17 = vadd.f32 %v4275_v53, %v3731_v33  ;;  %11598 = vmatpush3.bf16.msra.mxu1 %v12435_v26  ;;  %9636 = vmatprep.mubr.bf16.mxu1 %v5360_v25  ;;  %v4513_v15 = vpop.f32.mrf.mxu0  ;;  %v15283_v26 = vsel %vm4983_vm0, %v4509_v19, %v5111_v32  ;;  %v12440_v32 = vld [vmem:[%s17684_s3 + $0x160] sm:$0xff]  }
 0x509   :  { %vm4984_vm7 = vcmp.ge.f32.partialorder %v4512_v44, 0.0  ;;  %v5112_v51 = vmul.f32 0.01, %v4512_v44  ;;  %v4277_v6 = vpop.f32.mrf.mxu1  ;;  %11599 = vmatprep.subr.bf16.mxu1 %v12436_v2 }
 0x50a   :  { %v4516_v50 = vpop.f32.mrf.mxu0  ;;  %4707 = vmatmul.mubr.bf16.gmra.mxu0 %v18637_v47 }
 0x50b   :  { %v15285_v25 = vsel %vm4984_vm7, %v4512_v44, %v5112_v51  ;;  %v4517_v33 = vadd.f32 %v4516_v50, %v18638_v41  ;;  %v4278_v38 = vpop.f32.mrf.mxu1  ;;  %4714 = vmatprep.mubr.bf16.mxu0 %v18639_v55  ;;  %v18640_v44 = vld [vmem:[#allocation213_spill] sm:$0xff]  ;;  %v18642_v55 = vld [vmem:[#allocation215_spill] sm:$0xff] }
 0x50c   :  { %v15291_v43 = vadd.f32 %v4278_v38, %v3734_v22  ;;  %11600 = vmatpush3.bf16.msra.mxu1 %v12437_v27  ;;  %v4518_v53 = vpop.f32.mrf.mxu0  ;;  %v3739_v15 = vadd.f32 %v14811_v18, %v18640_v44  ;;  %v12442_v18 = vld [vmem:[%s17684_s3 + $0x158] sm:$0xff]  }
 0x50d   :  { %v4280_v19 = vpop.f32.mrf.mxu1  ;;  %11601 = vmatprep.subr.bf16.mxu1 %v12438_v8  ;;  %v5113_v6 = vmul.f32 0.01, %v4517_v33  ;;  %vm4985_vm8 = vcmp.ge.f32.partialorder %v4517_v33, 0.0  ;;  %v12441_v8 = vld [vmem:[%s17684_s3 + $0x120] sm:$0xff]   ;;  %v3742_v53 = vadd.f32 %v14819_v54, %v18642_v55  ;;  %v18643_v44 = vld [vmem:[#allocation101_spill] sm:$0xff] }
 0x50e   :  { %v4519_v51 = vpop.f32.mrf.mxu0  ;;  %v12443_v54 = vld [vmem:[%s17684_s3 + $0x118] sm:$0xff]  }
 0x50f   :  { %v4520_v22 = vadd.f32 %v4519_v51, %v18641_v28  ;;  %v4283_v50 = vpop.f32.mrf.mxu1  ;;  %v18645_v28 = vld [vmem:[#allocation104_spill] sm:$0xff] }
 0x510   :  { %v15302_v27 = vadd.f32 %v4283_v50, %v3739_v15  ;;  %11602 = vmatpush3.bf16.msra.mxu1 %v12439_v29  ;;  %v4521_v47 = vpop.f32.mrf.mxu0  ;;  %v18644_v29 = vld [vmem:[#allocation66_spill] sm:$0xff]  ;;  %v15316_v50 = vsel %vm4985_vm8, %v4517_v33, %v5113_v6  ;;  %v12444_v33 = vld [vmem:[%s17684_s3 + $0x150] sm:$0xff]   ;;  %v18647_v6 = vld [vmem:[#allocation217_spill] sm:$0xff] }
 0x511   :  { %vm4986_vm9 = vcmp.ge.f32.partialorder %v4520_v22, 0.0  ;;  %v5114_v41 = vmul.f32 0.01, %v4520_v22  ;;  %v4285_v38 = vpop.f32.mrf.mxu1  ;;  %11603 = vmatprep.subr.bf16.mxu1 %v12440_v32 }
 0x512   :  { %v4524_v19 = vpop.f32.mrf.mxu0  ;;  %4715 = vmatmul.mubr.bf16.gmra.mxu0 %v18643_v44 }
 0x513   :  { %v4525_v15 = vadd.f32 %v4524_v19, %v18644_v29  ;;  %v4286_v51 = vpop.f32.mrf.mxu1  ;;  %4722 = vmatprep.mubr.bf16.mxu0 %v18645_v28  ;;  %v15318_v47 = vsel %vm4986_vm9, %v4520_v22, %v5114_v41  ;;  %v3747_v22 = vadd.f32 %v14827_v12, %v18647_v6  ;;  %v12446_v12 = vld [vmem:[%s17684_s3 + $0x148] sm:$0xff]  }
 0x514   :  { %v15320_v32 = vadd.f32 %v4286_v51, %v3742_v53  ;;  %11604 = vmatpush3.bf16.msra.mxu1 %v12441_v8  ;;  %v4526_v38 = vpop.f32.mrf.mxu0  ;;  %v18648_v8 = vld [vmem:[#allocation67_spill] sm:$0xff] }
 0x515   :  { %v4288_v19 = vpop.f32.mrf.mxu1  ;;  %11605 = vmatprep.subr.bf16.mxu1 %v12442_v18  ;;  %v5115_v53 = vmul.f32 0.01, %v4525_v15  ;;  %vm4987_vm10 = vcmp.ge.f32.partialorder %v4525_v15, 0.0  ;;  %v12445_v18 = vld [vmem:[%s17684_s3 + $0x110] sm:$0xff]   ;;  %v18650_v6 = vld [vmem:[#allocation219_spill] sm:$0xff] }
 0x516   :  { %18646 = vst [vmem:[#allocation127_spill] sm:$0xff] %v15320_v32  ;;  %v4527_v41 = vpop.f32.mrf.mxu0 }
 0x517   :  { %v4528_v44 = vadd.f32 %v4527_v41, %v18648_v8  ;;  %v4291_v29 = vpop.f32.mrf.mxu1  ;;  %v3750_v41 = vadd.f32 %v14835_v57, %v18650_v6  ;;  %v12447_v57 = vld [vmem:[%s17684_s3 + $0x108] sm:$0xff]  }
 0x518   :  { %v15333_v51 = vadd.f32 %v4291_v29, %v3747_v22  ;;  %11606 = vmatpush3.bf16.msra.mxu1 %v12443_v54  ;;  %v4529_v28 = vpop.f32.mrf.mxu0  ;;  %v18651_v22 = vld [vmem:[#allocation105_spill] sm:$0xff]  ;;  %v15344_v54 = vsel %vm4987_vm10, %v4525_v15, %v5115_v53  ;;  %v12448_v53 = vld [vmem:[%s17684_s3 + $0x140] sm:$0xff]  }
 0x519   :  { %vm4988_vm11 = vcmp.ge.f32.partialorder %v4528_v44, 0.0  ;;  %v5116_v38 = vmul.f32 0.01, %v4528_v44  ;;  %v4293_v19 = vpop.f32.mrf.mxu1  ;;  %11607 = vmatprep.subr.bf16.mxu1 %v12444_v33  ;;  %v18652_v28 = vld [vmem:[#allocation70_spill] sm:$0xff] }
 0x51a   :  { %18649 = vst [vmem:[#allocation269_spill] sm:$0xff] %v15333_v51  ;;  %v4532_v8 = vpop.f32.mrf.mxu0  ;;  %4723 = vmatmul.mubr.bf16.gmra.mxu0 %v18651_v22  ;;  %v18653_v51 = vld [vmem:[#allocation108_spill] sm:$0xff] }
 0x51b   :  { %v15346_v29 = vsel %vm4988_vm11, %v4528_v44, %v5116_v38  ;;  %v4533_v2 = vadd.f32 %v4532_v8, %v18652_v28  ;;  %v4294_v55 = vpop.f32.mrf.mxu1  ;;  %4730 = vmatprep.mubr.bf16.mxu0 %v18653_v51  ;;  %v18654_v44 = vld [vmem:[#allocation221_spill] sm:$0xff]  ;;  %v18655_v8 = vld [vmem:[#allocation71_spill] sm:$0xff] }
 0x51c   :  { %v15352_v19 = vadd.f32 %v4294_v55, %v3750_v41  ;;  %11608 = vmatpush3.bf16.msra.mxu1 %v12445_v18  ;;  %v4534_v32 = vpop.f32.mrf.mxu0  ;;  %v3755_v51 = vadd.f32 %v14843_v1, %v18654_v44  ;;  %v12450_v1 = vld [vmem:[%s17684_s3 + $0x1f8] sm:$0xff]  }
 0x51d   :  { %v4296_v15 = vpop.f32.mrf.mxu1  ;;  %11609 = vmatprep.subr.bf16.mxu1 %v12446_v12  ;;  %v5117_v6 = vmul.f32 0.01, %v4533_v2  ;;  %vm4989_vm12 = vcmp.ge.f32.partialorder %v4533_v2, 0.0  ;;  %v12449_v12 = vld [vmem:[%s17684_s3 + $0x100] sm:$0xff]  }
 0x51e   :  { %v4535_v38 = vpop.f32.mrf.mxu0  ;;  %v18657_v15 = vld [vmem:[#allocation222_spill] sm:$0xff] }
 0x51f   :  { %v4536_v55 = vadd.f32 %v4535_v38, %v18655_v8  ;;  %v4299_v41 = vpop.f32.mrf.mxu1  ;;  %v3758_v44 = vadd.f32 %v14851_v62, %v18657_v15  ;;  %v15377_v33 = vsel %vm4989_vm12, %v4533_v2, %v5117_v6  ;;  %v12451_v62 = vld [vmem:[%s17684_s3 + $0x1b8] sm:$0xff]   ;;  %v12453_v2 = vld [vmem:[%s17684_s3 + $0x1f0] sm:$0xff]   ;;  %v18661_v6 = vld [vmem:[#allocation223_spill] sm:$0xff] }
 0x520   :  { %v15363_v32 = vadd.f32 %v4299_v41, %v3755_v51  ;;  %11610 = vmatpush3.bf16.msra.mxu1 %v12447_v57  ;;  %v4537_v18 = vpop.f32.mrf.mxu0  ;;  %v18658_v51 = vld [vmem:[#allocation109_spill] sm:$0xff]  ;;  %v18659_v57 = vld [vmem:[#allocation220_spill] sm:$0xff] }
 0x521   :  { %vm4990_vm13 = vcmp.ge.f32.partialorder %v4536_v55, 0.0  ;;  %v5118_v22 = vmul.f32 0.01, %v4536_v55  ;;  %v4301_v28 = vpop.f32.mrf.mxu1  ;;  %11611 = vmatprep.subr.bf16.mxu1 %v12448_v53  ;;  %v18660_v18 = vld [vmem:[#allocation112_spill] sm:$0xff] }
 0x522   :  { %18656 = vst [vmem:[#allocation21_spill] sm:$0xff] %v15363_v32  ;;  %v4540_v38 = vpop.f32.mrf.mxu0  ;;  %4731 = vmatmul.mubr.bf16.gmra.mxu0 %v18658_v51  ;;  %v18663_v51 = vpack.c.bf16 %v15227_v7, %v15225_v4  ;;  %v12456_v4 = vld [vmem:[%s17684_s3 + $0x1e8] sm:$0xff]   ;;  %v18665_v7 = vld [vmem:[#allocation225_spill] sm:$0xff] }
 0x523   :  { %v4541_v8 = vadd.f32 %v4540_v38, %v18659_v57  ;;  %v4302_v41 = vpop.f32.mrf.mxu1  ;;  %4738 = vmatprep.mubr.bf16.mxu0 %v18660_v18  ;;  %v15379_v28 = vsel %vm4990_vm13, %v4536_v55, %v5118_v22  ;;  %v3763_v55 = vadd.f32 %v14859_v35, %v18661_v6  ;;  %v12455_v35 = vld [vmem:[%s17684_s3 + $0x1b0] sm:$0xff]  }
 0x524   :  { %v15381_v53 = vadd.f32 %v4302_v41, %v3758_v44  ;;  %11612 = vmatpush3.bf16.msra.mxu1 %v12449_v12  ;;  %v4542_v32 = vpop.f32.mrf.mxu0  ;;  %v18662_v12 = vld [vmem:[#allocation74_spill] sm:$0xff] }
 0x525   :  { %v4304_v38 = vpop.f32.mrf.mxu1  ;;  %11619 = vmatprep.subr.bf16.mxu1 %v12450_v1  ;;  %v5119_v44 = vmul.f32 0.01, %v4541_v8  ;;  %vm4991_vm14 = vcmp.ge.f32.partialorder %v4541_v8, 0.0  ;;  %v18664_v1 = vpack.c.bf16 %v15318_v47, %v15316_v50 }
 0x526   :  { %v4543_v22 = vpop.f32.mrf.mxu0 }
 0x527   :  { %v4544_v32 = vadd.f32 %v4543_v22, %v18662_v12  ;;  %9637 = vmatmul.mubr.bf16.vlgmr.msra.gmra.mxu1 %v18663_v51  ;;  %v4307_v57 = vpop.f32.mrf.mxu1  ;;  %v18666_v22 = vld [vmem:[#allocation113_spill] sm:$0xff]  ;;  %v15411_v50 = vsel %vm4991_vm14, %v4541_v8, %v5119_v44  ;;  %v18667_v12 = vld [vmem:[#allocation75_spill] sm:$0xff] }
 0x528   :  { %v15397_v41 = vadd.f32 %v4307_v57, %v3763_v55  ;;  %11620 = vmatpush3.bf16.msra.mxu1 %v12451_v62  ;;  %9677 = vmatprep.mubr.bf16.mxu1 %v18664_v1  ;;  %v4545_v18 = vpop.f32.mrf.mxu0  ;;  %v3766_v62 = vadd.f32 %v14867_v14, %v18665_v7  ;;  %v18668_v1 = vld [vmem:[#allocation116_spill] sm:$0xff]  ;;  %v12457_v14 = vld [vmem:[%s17684_s3 + $0x1a8] sm:$0xff]   ;;  %v12520_v8 = vld [vmem:[%s17684_s3 + $0x7d8] sm:$0xff]  }
 0x529   :  { %vm4992_vm15 = vcmp.ge.f32.partialorder %v4544_v32, 0.0  ;;  %v5120_v38 = vmul.f32 0.01, %v4544_v32  ;;  %v4309_v6 = vpop.f32.mrf.mxu1  ;;  %11621 = vmatprep.subr.bf16.mxu1 %v12453_v2  ;;  %11891 = vmatprep.subr.bf16.mxu0 %v12520_v8  ;;  %v18672_v8 = vld [vmem:[#allocation227_spill] sm:$0xff] }
 0x52a   :  { %v4548_v55 = vpop.f32.mrf.mxu0  ;;  %4739 = vmatmul.mubr.bf16.gmra.mxu0 %v18666_v22  ;;  %v18670_v22 = vld [vmem:[#allocation78_spill] sm:$0xff] }
 0x52b   :  { %v15413_v47 = vsel %vm4992_vm15, %v4544_v32, %v5120_v38  ;;  %v4549_v51 = vadd.f32 %v4548_v55, %v18667_v12  ;;  %v4310_v57 = vpop.f32.mrf.mxu1  ;;  %4746 = vmatprep.mubr.bf16.mxu0 %v18668_v1  ;;  %v12458_v32 = vld [vmem:[%s17684_s3 + $0x1e0] sm:$0xff]   ;;  %v12522_v38 = vld [vmem:[%s17684_s3 + $0x798] sm:$0xff]  }
 0x52c   :  { %v15419_v18 = vadd.f32 %v4310_v57, %v3766_v62  ;;  %11622 = vmatpush3.bf16.msra.mxu1 %v12455_v35  ;;  %v4550_v6 = vpop.f32.mrf.mxu0  ;;  %v18669_v35 = vld [vmem:[#allocation226_spill] sm:$0xff]  ;;  %11892 = vmatpush3.bf16.msra.mxu0 %v12522_v38  ;;  %v3774_v38 = vadd.f32 %v14886_v21, %v18672_v8  ;;  %v12461_v21 = vld [vmem:[%s17684_s3 + $0x198] sm:$0xff]  }
 0x52d   :  { %v4312_v44 = vpop.f32.mrf.mxu1  ;;  %11623 = vmatprep.subr.bf16.mxu1 %v12456_v4  ;;  %v3771_v7 = vadd.f32 %v14875_v52, %v18669_v35  ;;  %v5121_v55 = vmul.f32 0.01, %v4549_v51  ;;  %vm4993_vm1 = vcmp.ge.f32.partialorder %v4549_v51, 0.0  ;;  %v12459_v6 = vld [vmem:[%s17684_s3 + $0x1a0] sm:$0xff]   ;;  %v12460_v52 = vld [vmem:[%s17684_s3 + $0x1d8] sm:$0xff]  }
 0x52e   :  { %v4551_v62 = vpop.f32.mrf.mxu0 }
 0x52f   :  { %v4552_v12 = vadd.f32 %v4551_v62, %v18670_v22  ;;  %v4315_v57 = vpop.f32.mrf.mxu1 }
 0x530   :  { %v15436_v4 = vadd.f32 %v4315_v57, %v3771_v7  ;;  %11624 = vmatpush3.bf16.msra.mxu1 %v12457_v14  ;;  %v4553_v1 = vpop.f32.mrf.mxu0  ;;  %v18673_v7 = vld [vmem:[#allocation117_spill] sm:$0xff]  ;;  %v18674_v14 = vld [vmem:[#allocation224_spill] sm:$0xff] }
 0x531   :  { %vm4994_vm2 = vcmp.ge.f32.partialorder %v4552_v12, 0.0  ;;  %v5122_v44 = vmul.f32 0.01, %v4552_v12  ;;  %v4317_v2 = vpop.f32.mrf.mxu1  ;;  %11625 = vmatprep.subr.bf16.mxu1 %v12458_v32  ;;  %v18675_v57 = vld [vmem:[#allocation120_spill] sm:$0xff]  ;;  %v15450_v1 = vsel %vm4993_vm1, %v4549_v51, %v5121_v55 }
 0x532   :  { %18671 = vst [vmem:[#allocation22_spill] sm:$0xff] %v15436_v4  ;;  %v4556_v35 = vpop.f32.mrf.mxu0  ;;  %4747 = vmatmul.mubr.bf16.gmra.mxu0 %v18673_v7  ;;  %v12462_v51 = vld [vmem:[%s17684_s3 + $0x1d0] sm:$0xff]  }
 0x533   :  { %v4557_v62 = vadd.f32 %v4556_v35, %v18674_v14  ;;  %v4318_v22 = vpop.f32.mrf.mxu1  ;;  %4754 = vmatprep.mubr.bf16.mxu0 %v18675_v57  ;;  %v15452_v2 = vsel %vm4994_vm2, %v4552_v12, %v5122_v44  ;;  %v18677_v55 = vld [vmem:[#allocation228_spill] sm:$0xff] }
 0x534   :  { %v15454_v32 = vadd.f32 %v4318_v22, %v3774_v38  ;;  %11626 = vmatpush3.bf16.msra.mxu1 %v12459_v6  ;;  %v4558_v15 = vpop.f32.mrf.mxu0  ;;  %v3779_v12 = vadd.f32 %v14894_v34, %v18677_v55  ;;  %v18678_v6 = vld [vmem:[#allocation79_spill] sm:$0xff]  ;;  %v18680_v55 = vld [vmem:[#allocation229_spill] sm:$0xff] }
 0x535   :  { %v4320_v35 = vpop.f32.mrf.mxu1  ;;  %11627 = vmatprep.subr.bf16.mxu1 %v12460_v52  ;;  %v5123_v38 = vmul.f32 0.01, %v4557_v62  ;;  %vm4995_vm3 = vcmp.ge.f32.partialorder %v4557_v62, 0.0  ;;  %v12463_v52 = vld [vmem:[%s17684_s3 + $0x190] sm:$0xff]   ;;  %v12464_v34 = vld [vmem:[%s17684_s3 + $0x1c8] sm:$0xff]  }
 0x536   :  { %18676 = vst [vmem:[#allocation130_spill] sm:$0xff] %v15454_v32  ;;  %v4559_v44 = vpop.f32.mrf.mxu0  ;;  %v18683_v32 = vld [vmem:[#allocation124_spill] sm:$0xff] }
 0x537   :  { %v4560_v15 = vadd.f32 %v4559_v44, %v18678_v6  ;;  %v4323_v7 = vpop.f32.mrf.mxu1  ;;  %v3782_v44 = vadd.f32 %v14908_v60, %v18680_v55  ;;  %v12465_v60 = vld [vmem:[%s17684_s3 + $0x188] sm:$0xff]  }
 0x538   :  { %v15467_v14 = vadd.f32 %v4323_v7, %v3779_v12  ;;  %11628 = vmatpush3.bf16.msra.mxu1 %v12461_v21  ;;  %v4561_v22 = vpop.f32.mrf.mxu0  ;;  %v18681_v12 = vld [vmem:[#allocation121_spill] sm:$0xff]  ;;  %v15478_v21 = vsel %vm4995_vm3, %v4557_v62, %v5123_v38  ;;  %v12466_v38 = vld [vmem:[%s17684_s3 + $0x1c0] sm:$0xff]  }
 0x539   :  { %vm4996_vm4 = vcmp.ge.f32.partialorder %v4560_v15, 0.0  ;;  %v5124_v57 = vmul.f32 0.01, %v4560_v15  ;;  %v4325_v35 = vpop.f32.mrf.mxu1  ;;  %11629 = vmatprep.subr.bf16.mxu1 %v12462_v51  ;;  %v18682_v22 = vld [vmem:[#allocation82_spill] sm:$0xff] }
 0x53a   :  { %18679 = vst [vmem:[#allocation271_spill] sm:$0xff] %v15467_v14  ;;  %v4564_v6 = vpop.f32.mrf.mxu0  ;;  %4755 = vmatmul.mubr.bf16.gmra.mxu0 %v18681_v12 }
 0x53b   :  { %v15480_v7 = vsel %vm4996_vm4, %v4560_v15, %v5124_v57  ;;  %v4565_v8 = vadd.f32 %v4564_v6, %v18682_v22  ;;  %v4326_v14 = vpop.f32.mrf.mxu1  ;;  %4762 = vmatprep.mubr.bf16.mxu0 %v18683_v32  ;;  %v18684_v15 = vld [vmem:[#allocation231_spill] sm:$0xff] }
 0x53c   :  { %v15486_v35 = vadd.f32 %v4326_v14, %v3782_v44  ;;  %11630 = vmatpush3.bf16.msra.mxu1 %v12463_v52  ;;  %v4566_v4 = vpop.f32.mrf.mxu0  ;;  %v3787_v32 = vadd.f32 %v14916_v63, %v18684_v15  ;;  %v18685_v6 = vld [vmem:[#allocation83_spill] sm:$0xff]  ;;  %v12468_v63 = vld [vmem:[%s17684_s3 + $0x278] sm:$0xff]  }
 0x53d   :  { %v4328_v62 = vpop.f32.mrf.mxu1  ;;  %11631 = vmatprep.subr.bf16.mxu1 %v12464_v34  ;;  %v5125_v55 = vmul.f32 0.01, %v4565_v8  ;;  %vm4997_vm5 = vcmp.ge.f32.partialorder %v4565_v8, 0.0  ;;  %v12467_v34 = vld [vmem:[%s17684_s3 + $0x180] sm:$0xff]  }
 0x53e   :  { %v4567_v57 = vpop.f32.mrf.mxu0  ;;  %v18687_v62 = vld [vmem:[#allocation232_spill] sm:$0xff] }
 0x53f   :  { %v4568_v14 = vadd.f32 %v4567_v57, %v18685_v6  ;;  %v4331_v44 = vpop.f32.mrf.mxu1  ;;  %v3790_v15 = vadd.f32 %v14924_v37, %v18687_v62  ;;  %v15511_v51 = vsel %vm4997_vm5, %v4565_v8, %v5125_v55  ;;  %v12469_v37 = vld [vmem:[%s17684_s3 + $0x238] sm:$0xff]   ;;  %v12470_v8 = vld [vmem:[%s17684_s3 + $0x270] sm:$0xff]   ;;  %v18691_v55 = vld [vmem:[#allocation234_spill] sm:$0xff] }
 0x540   :  { %v15497_v4 = vadd.f32 %v4331_v44, %v3787_v32  ;;  %11632 = vmatpush3.bf16.msra.mxu1 %v12465_v60  ;;  %v4569_v52 = vpop.f32.mrf.mxu0  ;;  %v18688_v32 = vld [vmem:[#allocation125_spill] sm:$0xff]  ;;  %v18689_v60 = vld [vmem:[#allocation86_spill] sm:$0xff] }
 0x541   :  { %vm4998_vm6 = vcmp.ge.f32.partialorder %v4568_v14, 0.0  ;;  %v5126_v12 = vmul.f32 0.01, %v4568_v14  ;;  %v4333_v22 = vpop.f32.mrf.mxu1  ;;  %11633 = vmatprep.subr.bf16.mxu1 %v12466_v38  ;;  %v18690_v52 = vld [vmem:[#allocation128_spill] sm:$0xff] }
 0x542   :  { %18686 = vst [vmem:[#allocation131_spill] sm:$0xff] %v15497_v4  ;;  %v4572_v57 = vpop.f32.mrf.mxu0  ;;  %4763 = vmatmul.mubr.bf16.gmra.mxu0 %v18688_v32  ;;  %v18693_v32 = vpack.c.bf16 %v15285_v25, %v15283_v26  ;;  %v12472_v26 = vld [vmem:[%s17684_s3 + $0x268] sm:$0xff]   ;;  %v18695_v25 = vld [vmem:[#allocation236_spill] sm:$0xff] }
 0x543   :  { %v4573_v6 = vadd.f32 %v4572_v57, %v18689_v60  ;;  %v4334_v44 = vpop.f32.mrf.mxu1  ;;  %4770 = vmatprep.mubr.bf16.mxu0 %v18690_v52  ;;  %v15513_v22 = vsel %vm4998_vm6, %v4568_v14, %v5126_v12  ;;  %v3795_v14 = vadd.f32 %v14932_v10, %v18691_v55  ;;  %v12471_v10 = vld [vmem:[%s17684_s3 + $0x230] sm:$0xff]  }
 0x544   :  { %v15515_v38 = vadd.f32 %v4334_v44, %v3790_v15  ;;  %11634 = vmatpush3.bf16.msra.mxu1 %v12467_v34  ;;  %v4574_v4 = vpop.f32.mrf.mxu0  ;;  %v18692_v34 = vld [vmem:[#allocation87_spill] sm:$0xff] }
 0x545   :  { %v4336_v57 = vpop.f32.mrf.mxu1  ;;  %11641 = vmatprep.subr.bf16.mxu1 %v12468_v63  ;;  %v5127_v15 = vmul.f32 0.01, %v4573_v6  ;;  %vm4999_vm0 = vcmp.ge.f32.partialorder %v4573_v6, 0.0  ;;  %v18694_v63 = vpack.c.bf16 %v15379_v28, %v15377_v33 }
 0x546   :  { %v4575_v12 = vpop.f32.mrf.mxu0 }
 0x547   :  { %v4576_v4 = vadd.f32 %v4575_v12, %v18692_v34  ;;  %9678 = vmatmul.mubr.bf16.vlgmr.msra.gmra.mxu1 %v18693_v32  ;;  %v4339_v60 = vpop.f32.mrf.mxu1  ;;  %v18696_v12 = vld [vmem:[#allocation129_spill] sm:$0xff]  ;;  %v15545_v33 = vsel %vm4999_vm0, %v4573_v6, %v5127_v15  ;;  %v18697_v34 = vld [vmem:[#allocation230_spill] sm:$0xff] }
 0x548   :  { %v15531_v44 = vadd.f32 %v4339_v60, %v3795_v14  ;;  %11642 = vmatpush3.bf16.msra.mxu1 %v12469_v37  ;;  %9718 = vmatprep.mubr.bf16.mxu1 %v18694_v63  ;;  %v4577_v52 = vpop.f32.mrf.mxu0  ;;  %v3798_v37 = vadd.f32 %v14940_v20, %v18695_v25  ;;  %v18698_v63 = vld [vmem:[#allocation132_spill] sm:$0xff]  ;;  %v12473_v20 = vld [vmem:[%s17684_s3 + $0x228] sm:$0xff]   ;;  %v12474_v15 = vld [vmem:[%s17684_s3 + $0x260] sm:$0xff]  }
 0x549   :  { %vm5000_vm7 = vcmp.ge.f32.partialorder %v4576_v4, 0.0  ;;  %v5128_v57 = vmul.f32 0.01, %v4576_v4  ;;  %v4341_v55 = vpop.f32.mrf.mxu1  ;;  %11643 = vmatprep.subr.bf16.mxu1 %v12470_v8 }
 0x54a   :  { %v4580_v14 = vpop.f32.mrf.mxu0  ;;  %4771 = vmatmul.mubr.bf16.gmra.mxu0 %v18696_v12  ;;  %v18700_v12 = vld [vmem:[#allocation2_spill] sm:$0xff] }
 0x54b   :  { %v15547_v28 = vsel %vm5000_vm7, %v4576_v4, %v5128_v57  ;;  %v4581_v32 = vadd.f32 %v4580_v14, %v18697_v34  ;;  %v4342_v60 = vpop.f32.mrf.mxu1  ;;  %4778 = vmatprep.mubr.bf16.mxu0 %v18698_v63  ;;  %v18699_v4 = vld [vmem:[#allocation238_spill] sm:$0xff] }
 0x54c   :  { %v15553_v52 = vadd.f32 %v4342_v60, %v3798_v37  ;;  %11644 = vmatpush3.bf16.msra.mxu1 %v12471_v10  ;;  %v4582_v55 = vpop.f32.mrf.mxu0  ;;  %v3803_v57 = vadd.f32 %v14948_v16, %v18699_v4  ;;  %v12476_v16 = vld [vmem:[%s17684_s3 + $0x258] sm:$0xff]  }
 0x54d   :  { %v4344_v6 = vpop.f32.mrf.mxu1  ;;  %11645 = vmatprep.subr.bf16.mxu1 %v12472_v26  ;;  %v5129_v14 = vmul.f32 0.01, %v4581_v32  ;;  %vm5001_vm8 = vcmp.ge.f32.partialorder %v4581_v32, 0.0  ;;  %v12475_v26 = vld [vmem:[%s17684_s3 + $0x220] sm:$0xff]  }
 0x54e   :  { %v4583_v25 = vpop.f32.mrf.mxu0  ;;  %v18702_v6 = vld [vmem:[#allocation240_spill] sm:$0xff] }
 0x54f   :  { %v4584_v37 = vadd.f32 %v4583_v25, %v18700_v12  ;;  %v4347_v34 = vpop.f32.mrf.mxu1  ;;  %v3806_v4 = vadd.f32 %v14956_v48, %v18702_v6  ;;  %v15578_v8 = vsel %vm5001_vm8, %v4581_v32, %v5129_v14  ;;  %v12477_v48 = vld [vmem:[%s17684_s3 + $0x218] sm:$0xff]   ;;  %v12478_v32 = vld [vmem:[%s17684_s3 + $0x250] sm:$0xff]   ;;  %v18707_v14 = vld [vmem:[#allocation242_spill] sm:$0xff] }
 0x550   :  { %v15564_v10 = vadd.f32 %v4347_v34, %v3803_v57  ;;  %11646 = vmatpush3.bf16.msra.mxu1 %v12473_v20  ;;  %v4585_v60 = vpop.f32.mrf.mxu0  ;;  %v18703_v57 = vld [vmem:[#allocation133_spill] sm:$0xff]  ;;  %v18704_v20 = vld [vmem:[#allocation90_spill] sm:$0xff] }
 0x551   :  { %vm5002_vm9 = vcmp.ge.f32.partialorder %v4584_v37, 0.0  ;;  %v5130_v63 = vmul.f32 0.01, %v4584_v37  ;;  %v4349_v55 = vpop.f32.mrf.mxu1  ;;  %11647 = vmatprep.subr.bf16.mxu1 %v12474_v15  ;;  %v18705_v60 = vld [vmem:[#allocation136_spill] sm:$0xff] }
 0x552   :  { %18701 = vst [vmem:[#allocation273_spill] sm:$0xff] %v15564_v10  ;;  %v4588_v25 = vpop.f32.mrf.mxu0  ;;  %4779 = vmatmul.mubr.bf16.gmra.mxu0 %v18703_v57 }
 0x553   :  { %v4589_v12 = vadd.f32 %v4588_v25, %v18704_v20  ;;  %v4350_v34 = vpop.f32.mrf.mxu1  ;;  %4786 = vmatprep.mubr.bf16.mxu0 %v18705_v60  ;;  %v15580_v55 = vsel %vm5002_vm9, %v4584_v37, %v5130_v63  ;;  %v3811_v37 = vadd.f32 %v14964_v45, %v18707_v14  ;;  %v12480_v45 = vld [vmem:[%s17684_s3 + $0x248] sm:$0xff]   ;;  %v18710_v14 = vld [vmem:[#allocation244_spill] sm:$0xff] }
 0x554   :  { %v15582_v15 = vadd.f32 %v4350_v34, %v3806_v4  ;;  %11648 = vmatpush3.bf16.msra.mxu1 %v12475_v26  ;;  %v4590_v62 = vpop.f32.mrf.mxu0  ;;  %v18708_v26 = vld [vmem:[#allocation91_spill] sm:$0xff] }
 0x555   :  { %v4352_v25 = vpop.f32.mrf.mxu1  ;;  %11649 = vmatprep.subr.bf16.mxu1 %v12476_v16  ;;  %v5131_v4 = vmul.f32 0.01, %v4589_v12  ;;  %vm5003_vm10 = vcmp.ge.f32.partialorder %v4589_v12, 0.0  ;;  %v12479_v16 = vld [vmem:[%s17684_s3 + $0x210] sm:$0xff]  }
 0x556   :  { %18706 = vst [vmem:[#allocation23_spill] sm:$0xff] %v15582_v15  ;;  %v4591_v63 = vpop.f32.mrf.mxu0  ;;  %v18713_v15 = vld [vmem:[#allocation140_spill] sm:$0xff] }
 0x557   :  { %v4592_v62 = vadd.f32 %v4591_v63, %v18708_v26  ;;  %v4355_v57 = vpop.f32.mrf.mxu1  ;;  %v3814_v63 = vadd.f32 %v14972_v40, %v18710_v14  ;;  %v12481_v40 = vld [vmem:[%s17684_s3 + $0x208] sm:$0xff]  }
 0x558   :  { %v15595_v20 = vadd.f32 %v4355_v57, %v3811_v37  ;;  %11650 = vmatpush3.bf16.msra.mxu1 %v12477_v48  ;;  %v4593_v34 = vpop.f32.mrf.mxu0  ;;  %v18711_v37 = vld [vmem:[#allocation137_spill] sm:$0xff]  ;;  %v15606_v48 = vsel %vm5003_vm10, %v4589_v12, %v5131_v4  ;;  %v12482_v4 = vld [vmem:[%s17684_s3 + $0x240] sm:$0xff]  }
 0x559   :  { %vm5004_vm11 = vcmp.ge.f32.partialorder %v4592_v62, 0.0  ;;  %v5132_v60 = vmul.f32 0.01, %v4592_v62  ;;  %v4357_v25 = vpop.f32.mrf.mxu1  ;;  %11651 = vmatprep.subr.bf16.mxu1 %v12478_v32  ;;  %v18712_v34 = vld [vmem:[#allocation233_spill] sm:$0xff] }
 0x55a   :  { %18709 = vst [vmem:[#allocation24_spill] sm:$0xff] %v15595_v20  ;;  %v4596_v26 = vpop.f32.mrf.mxu0  ;;  %4787 = vmatmul.mubr.bf16.gmra.mxu0 %v18711_v37 }
 0x55b   :  { %v15608_v57 = vsel %vm5004_vm11, %v4592_v62, %v5132_v60  ;;  %v4597_v6 = vadd.f32 %v4596_v26, %v18712_v34  ;;  %v4358_v20 = vpop.f32.mrf.mxu1  ;;  %4794 = vmatprep.mubr.bf16.mxu0 %v18713_v15  ;;  %v18715_v62 = vld [vmem:[#allocation246_spill] sm:$0xff]  ;;  %v18716_v26 = vld [vmem:[#allocation3_spill] sm:$0xff] }
 0x55c   :  { %v15614_v25 = vadd.f32 %v4358_v20, %v3814_v63  ;;  %11652 = vmatpush3.bf16.msra.mxu1 %v12479_v16  ;;  %v4598_v10 = vpop.f32.mrf.mxu0  ;;  %v3819_v15 = vadd.f32 %v14980_v46, %v18715_v62  ;;  %v12484_v46 = vld [vmem:[%s17684_s3 + $0x2f8] sm:$0xff]  }
 0x55d   :  { %v4360_v12 = vpop.f32.mrf.mxu1  ;;  %11653 = vmatprep.subr.bf16.mxu1 %v12480_v45  ;;  %v5133_v14 = vmul.f32 0.01, %v4597_v6  ;;  %vm5005_vm12 = vcmp.ge.f32.partialorder %v4597_v6, 0.0  ;;  %v12483_v45 = vld [vmem:[%s17684_s3 + $0x200] sm:$0xff]  }
 0x55e   :  { %18714 = vst [vmem:[#allocation134_spill] sm:$0xff] %v15614_v25  ;;  %v4599_v60 = vpop.f32.mrf.mxu0  ;;  %v18718_v12 = vld [vmem:[#allocation248_spill] sm:$0xff] }
 0x55f   :  { %v4600_v20 = vadd.f32 %v4599_v60, %v18716_v26  ;;  %v4363_v63 = vpop.f32.mrf.mxu1  ;;  %v3822_v62 = vadd.f32 %v14988_v42, %v18718_v12  ;;  %v15639_v32 = vsel %vm5005_vm12, %v4597_v6, %v5133_v14  ;;  %v12485_v42 = vld [vmem:[%s17684_s3 + $0x2b8] sm:$0xff]   ;;  %v12487_v6 = vld [vmem:[%s17684_s3 + $0x2f0] sm:$0xff]   ;;  %v18723_v14 = vld [vmem:[#allocation250_spill] sm:$0xff] }
 0x560   :  { %v15625_v10 = vadd.f32 %v4363_v63, %v3819_v15  ;;  %11654 = vmatpush3.bf16.msra.mxu1 %v12481_v40  ;;  %v4601_v16 = vpop.f32.mrf.mxu0  ;;  %v18719_v15 = vld [vmem:[#allocation141_spill] sm:$0xff]  ;;  %v18720_v40 = vld [vmem:[#allocation4_spill] sm:$0xff] }
 0x561   :  { %vm5006_vm13 = vcmp.ge.f32.partialorder %v4600_v20, 0.0  ;;  %v5134_v37 = vmul.f32 0.01, %v4600_v20  ;;  %v4365_v34 = vpop.f32.mrf.mxu1  ;;  %11655 = vmatprep.subr.bf16.mxu1 %v12482_v4  ;;  %v18721_v16 = vld [vmem:[#allocation144_spill] sm:$0xff] }
 0x562   :  { %18717 = vst [vmem:[#allocation275_spill] sm:$0xff] %v15625_v10  ;;  %v4604_v60 = vpop.f32.mrf.mxu0  ;;  %4795 = vmatmul.mubr.bf16.gmra.mxu0 %v18719_v15  ;;  %v18725_v15 = vpack.c.bf16 %v15346_v29, %v15344_v54  ;;  %v12490_v54 = vld [vmem:[%s17684_s3 + $0x2e8] sm:$0xff]   ;;  %v18728_v29 = vld [vmem:[#allocation252_spill] sm:$0xff] }
 0x563   :  { %v4605_v26 = vadd.f32 %v4604_v60, %v18720_v40  ;;  %v4366_v63 = vpop.f32.mrf.mxu1  ;;  %4802 = vmatprep.mubr.bf16.mxu0 %v18721_v16  ;;  %v15641_v34 = vsel %vm5006_vm13, %v4600_v20, %v5134_v37  ;;  %v3827_v20 = vadd.f32 %v14996_v24, %v18723_v14  ;;  %v12489_v24 = vld [vmem:[%s17684_s3 + $0x2b0] sm:$0xff]  }
 0x564   :  { %v15643_v4 = vadd.f32 %v4366_v63, %v3822_v62  ;;  %11656 = vmatpush3.bf16.msra.mxu1 %v12483_v45  ;;  %v4606_v10 = vpop.f32.mrf.mxu0  ;;  %v18724_v45 = vld [vmem:[#allocation94_spill] sm:$0xff]  ;;  %v18813_v25 = vld [vmem:[#allocation12_spill] sm:$0xff] }
 0x565   :  { %v4368_v60 = vpop.f32.mrf.mxu1  ;;  %11663 = vmatprep.subr.bf16.mxu1 %v12484_v46  ;;  %v5135_v62 = vmul.f32 0.01, %v4605_v26  ;;  %vm5007_vm14 = vcmp.ge.f32.partialorder %v4605_v26, 0.0  ;;  %v18727_v46 = vpack.c.bf16 %v15452_v2, %v15450_v1 }
 0x566   :  { %18722 = vst [vmem:[#allocation135_spill] sm:$0xff] %v15643_v4  ;;  %v4607_v37 = vpop.f32.mrf.mxu0 }
 0x567   :  { %v4608_v10 = vadd.f32 %v4607_v37, %v18724_v45  ;;  %9719 = vmatmul.mubr.bf16.vlgmr.msra.gmra.mxu1 %v18725_v15  ;;  %v4371_v40 = vpop.f32.mrf.mxu1  ;;  %v18729_v37 = vld [vmem:[#allocation145_spill] sm:$0xff]  ;;  %v15673_v1 = vsel %vm5007_vm14, %v4605_v26, %v5135_v62  ;;  %v18730_v45 = vld [vmem:[#allocation235_spill] sm:$0xff]  ;;  %v12554_v26 = vld [vmem:[%s17684_s3 + $0x7d0] sm:$0xff]  }
 0x568   :  { %v15659_v63 = vadd.f32 %v4371_v40, %v3827_v20  ;;  %11664 = vmatpush3.bf16.msra.mxu1 %v12485_v42  ;;  %9759 = vmatprep.mubr.bf16.mxu1 %v18727_v46  ;;  %v4609_v16 = vpop.f32.mrf.mxu0  ;;  %v3830_v42 = vadd.f32 %v15004_v59, %v18728_v29  ;;  %v18731_v46 = vld [vmem:[#allocation148_spill] sm:$0xff]  ;;  %v12491_v59 = vld [vmem:[%s17684_s3 + $0x2a8] sm:$0xff]  }
 0x569   :  { %vm5008_vm15 = vcmp.ge.f32.partialorder %v4608_v10, 0.0  ;;  %v5136_v60 = vmul.f32 0.01, %v4608_v10  ;;  %v4373_v14 = vpop.f32.mrf.mxu1  ;;  %11665 = vmatprep.subr.bf16.mxu1 %v12487_v6  ;;  %11893 = vmatprep.subr.bf16.mxu0 %v12554_v26  ;;  %v18736_v26 = vld [vmem:[#allocation256_spill] sm:$0xff] }
 0x56a   :  { %18726 = vst [vmem:[#allocation34_spill] sm:$0xff] %v15659_v63  ;;  %v4612_v20 = vpop.f32.mrf.mxu0  ;;  %4803 = vmatmul.mubr.bf16.gmra.mxu0 %v18729_v37  ;;  %v18734_v37 = vld [vmem:[#allocation95_spill] sm:$0xff]  ;;  %v18788_v63 = vld [vmem:[#allocation172_spill] sm:$0xff] }
 0x56b   :  { %v15675_v2 = vsel %vm5008_vm15, %v4608_v10, %v5136_v60  ;;  %v4613_v15 = vadd.f32 %v4612_v20, %v18730_v45  ;;  %v4374_v40 = vpop.f32.mrf.mxu1  ;;  %4810 = vmatprep.mubr.bf16.mxu0 %v18731_v46  ;;  %v12492_v10 = vld [vmem:[%s17684_s3 + $0x2e0] sm:$0xff]   ;;  %v12556_v60 = vld [vmem:[%s17684_s3 + $0x790] sm:$0xff]  }
 0x56c   :  { %v15681_v16 = vadd.f32 %v4374_v40, %v3830_v42  ;;  %11666 = vmatpush3.bf16.msra.mxu1 %v12489_v24  ;;  %v4614_v14 = vpop.f32.mrf.mxu0  ;;  %v18733_v24 = vld [vmem:[#allocation254_spill] sm:$0xff]  ;;  %11894 = vmatpush3.bf16.msra.mxu0 %v12556_v60  ;;  %v3838_v60 = vadd.f32 %v15020_v11, %v18736_v26  ;;  %v12495_v11 = vld [vmem:[%s17684_s3 + $0x298] sm:$0xff]  }
 0x56d   :  { %v4376_v62 = vpop.f32.mrf.mxu1  ;;  %11667 = vmatprep.subr.bf16.mxu1 %v12490_v54  ;;  %v3835_v29 = vadd.f32 %v15012_v0, %v18733_v24  ;;  %v5137_v20 = vmul.f32 0.01, %v4613_v15  ;;  %vm5009_vm1 = vcmp.ge.f32.partialorder %v4613_v15, 0.0  ;;  %v12493_v14 = vld [vmem:[%s17684_s3 + $0x2a0] sm:$0xff]   ;;  %v12494_v0 = vld [vmem:[%s17684_s3 + $0x2d8] sm:$0xff]  }
 0x56e   :  { %18732 = vst [vmem:[#allocation25_spill] sm:$0xff] %v15681_v16  ;;  %v4615_v42 = vpop.f32.mrf.mxu0 }
 0x56f   :  { %v4616_v45 = vadd.f32 %v4615_v42, %v18734_v37  ;;  %v4379_v40 = vpop.f32.mrf.mxu1 }
 0x570   :  { %v15698_v54 = vadd.f32 %v4379_v40, %v3835_v29  ;;  %11668 = vmatpush3.bf16.msra.mxu1 %v12491_v59  ;;  %v4617_v46 = vpop.f32.mrf.mxu0  ;;  %v18737_v29 = vld [vmem:[#allocation149_spill] sm:$0xff]  ;;  %v18739_v40 = vld [vmem:[#allocation152_spill] sm:$0xff] }
 0x571   :  { %vm5010_vm2 = vcmp.ge.f32.partialorder %v4616_v45, 0.0  ;;  %v5138_v62 = vmul.f32 0.01, %v4616_v45  ;;  %v4381_v6 = vpop.f32.mrf.mxu1  ;;  %11669 = vmatprep.subr.bf16.mxu1 %v12492_v10  ;;  %v18738_v59 = vld [vmem:[#allocation237_spill] sm:$0xff]  ;;  %v15712_v46 = vsel %vm5009_vm1, %v4613_v15, %v5137_v20  ;;  %v12496_v15 = vld [vmem:[%s17684_s3 + $0x2d0] sm:$0xff]   ;;  %v18741_v20 = vld [vmem:[#allocation258_spill] sm:$0xff] }
 0x572   :  { %18735 = vst [vmem:[#allocation26_spill] sm:$0xff] %v15698_v54  ;;  %v4620_v24 = vpop.f32.mrf.mxu0  ;;  %4811 = vmatmul.mubr.bf16.gmra.mxu0 %v18737_v29  ;;  %v18748_v54 = vld [vmem:[#allocation156_spill] sm:$0xff] }
 0x573   :  { %v4621_v42 = vadd.f32 %v4620_v24, %v18738_v59  ;;  %v4382_v37 = vpop.f32.mrf.mxu1  ;;  %4818 = vmatprep.mubr.bf16.mxu0 %v18739_v40  ;;  %v15714_v6 = vsel %vm5010_vm2, %v4616_v45, %v5138_v62  ;;  %v3843_v45 = vadd.f32 %v15028_v56, %v18741_v20  ;;  %v12498_v56 = vld [vmem:[%s17684_s3 + $0x2c8] sm:$0xff]   ;;  %v18744_v20 = vld [vmem:[#allocation260_spill] sm:$0xff] }
 0x574   :  { %v15716_v10 = vadd.f32 %v4382_v37, %v3838_v60  ;;  %11670 = vmatpush3.bf16.msra.mxu1 %v12493_v14  ;;  %v4622_v12 = vpop.f32.mrf.mxu0  ;;  %v18742_v14 = vld [vmem:[#allocation5_spill] sm:$0xff] }
 0x575   :  { %v4384_v24 = vpop.f32.mrf.mxu1  ;;  %11671 = vmatprep.subr.bf16.mxu1 %v12494_v0  ;;  %v5139_v60 = vmul.f32 0.01, %v4621_v42  ;;  %vm5011_vm3 = vcmp.ge.f32.partialorder %v4621_v42, 0.0  ;;  %v12497_v0 = vld [vmem:[%s17684_s3 + $0x290] sm:$0xff]  }
 0x576   :  { %18740 = vst [vmem:[#allocation138_spill] sm:$0xff] %v15716_v10  ;;  %v4623_v62 = vpop.f32.mrf.mxu0 }
 0x577   :  { %v4624_v12 = vadd.f32 %v4623_v62, %v18742_v14  ;;  %v4387_v29 = vpop.f32.mrf.mxu1  ;;  %v18745_v62 = vld [vmem:[#allocation255_spill] sm:$0xff] }
 0x578   :  { %v15729_v59 = vadd.f32 %v4387_v29, %v3843_v45  ;;  %11672 = vmatpush3.bf16.msra.mxu1 %v12495_v11  ;;  %v4625_v37 = vpop.f32.mrf.mxu0  ;;  %v3846_v14 = vadd.f32 %v18745_v62, %v18744_v20  ;;  %v18746_v45 = vld [vmem:[#allocation153_spill] sm:$0xff]  ;;  %v15740_v11 = vsel %vm5011_vm3, %v4621_v42, %v5139_v60  ;;  %v12499_v20 = vld [vmem:[%s17684_s3 + $0x288] sm:$0xff]   ;;  %v18750_v60 = vld [vmem:[#allocation262_spill] sm:$0xff] }
 0x579   :  { %vm5012_vm4 = vcmp.ge.f32.partialorder %v4624_v12, 0.0  ;;  %v5140_v40 = vmul.f32 0.01, %v4624_v12  ;;  %v4389_v24 = vpop.f32.mrf.mxu1  ;;  %11673 = vmatprep.subr.bf16.mxu1 %v12496_v15  ;;  %v18747_v37 = vld [vmem:[#allocation6_spill] sm:$0xff]  ;;  %v18757_v15 = vld [vmem:[#allocation160_spill] sm:$0xff] }
 0x57a   :  { %18743 = vst [vmem:[#allocation139_spill] sm:$0xff] %v15729_v59  ;;  %v4628_v26 = vpop.f32.mrf.mxu0  ;;  %4819 = vmatmul.mubr.bf16.gmra.mxu0 %v18746_v45  ;;  %v18752_v45 = vld [vmem:[#allocation98_spill] sm:$0xff] }
 0x57b   :  { %v15742_v29 = vsel %vm5012_vm4, %v4624_v12, %v5140_v40  ;;  %v4629_v59 = vadd.f32 %v4628_v26, %v18747_v37  ;;  %v4390_v10 = vpop.f32.mrf.mxu1  ;;  %4826 = vmatprep.mubr.bf16.mxu0 %v18748_v54  ;;  %v12500_v26 = vld [vmem:[%s17684_s3 + $0x2c0] sm:$0xff]   ;;  %v18751_v12 = vld [vmem:[#allocation257_spill] sm:$0xff] }
 0x57c   :  { %v15748_v24 = vadd.f32 %v4390_v10, %v3846_v14  ;;  %11674 = vmatpush3.bf16.msra.mxu1 %v12497_v0  ;;  %v4630_v16 = vpop.f32.mrf.mxu0  ;;  %v3851_v54 = vadd.f32 %v18751_v12, %v18750_v60  ;;  %v12502_v60 = vld [vmem:[%s17684_s3 + $0x378] sm:$0xff]   ;;  %v18754_v12 = vld [vmem:[#allocation264_spill] sm:$0xff] }
 0x57d   :  { %v4392_v42 = vpop.f32.mrf.mxu1  ;;  %11675 = vmatprep.subr.bf16.mxu1 %v12498_v56  ;;  %v5141_v62 = vmul.f32 0.01, %v4629_v59  ;;  %vm5013_vm5 = vcmp.ge.f32.partialorder %v4629_v59, 0.0  ;;  %v12501_v56 = vld [vmem:[%s17684_s3 + $0x280] sm:$0xff]  }
 0x57e   :  { %18749 = vst [vmem:[#allocation27_spill] sm:$0xff] %v15748_v24  ;;  %v4631_v40 = vpop.f32.mrf.mxu0 }
 0x57f   :  { %v4632_v10 = vadd.f32 %v4631_v40, %v18752_v45  ;;  %v4395_v14 = vpop.f32.mrf.mxu1  ;;  %v3854_v40 = vadd.f32 %v15058_v31, %v18754_v12  ;;  %v12503_v31 = vld [vmem:[%s17684_s3 + $0x338] sm:$0xff]  }
 0x580   :  { %v15759_v16 = vadd.f32 %v4395_v14, %v3851_v54  ;;  %11676 = vmatpush3.bf16.msra.mxu1 %v12499_v20  ;;  %v4633_v0 = vpop.f32.mrf.mxu0  ;;  %v18755_v54 = vld [vmem:[#allocation157_spill] sm:$0xff]  ;;  %v18756_v20 = vld [vmem:[#allocation239_spill] sm:$0xff] }
 0x581   :  { %vm5014_vm6 = vcmp.ge.f32.partialorder %v4632_v10, 0.0  ;;  %v5142_v37 = vmul.f32 0.01, %v4632_v10  ;;  %v4397_v42 = vpop.f32.mrf.mxu1  ;;  %11677 = vmatprep.subr.bf16.mxu1 %v12500_v26 }
 0x582   :  { %18753 = vst [vmem:[#allocation28_spill] sm:$0xff] %v15759_v16  ;;  %v4636_v45 = vpop.f32.mrf.mxu0  ;;  %4827 = vmatmul.mubr.bf16.gmra.mxu0 %v18755_v54  ;;  %v15773_v16 = vsel %vm5013_vm5, %v4629_v59, %v5141_v62  ;;  %v12504_v59 = vld [vmem:[%s17684_s3 + $0x370] sm:$0xff]  }
 0x583   :  { %v4637_v14 = vadd.f32 %v4636_v45, %v18756_v20  ;;  %v4398_v0 = vpop.f32.mrf.mxu1  ;;  %4834 = vmatprep.mubr.bf16.mxu0 %v18757_v15  ;;  %v15775_v42 = vsel %vm5014_vm6, %v4632_v10, %v5142_v37  ;;  %v18759_v15 = vld [vmem:[#allocation266_spill] sm:$0xff] }
 0x584   :  { %v15777_v26 = vadd.f32 %v4398_v0, %v3854_v40  ;;  %11678 = vmatpush3.bf16.msra.mxu1 %v12501_v56  ;;  %v4638_v24 = vpop.f32.mrf.mxu0  ;;  %v3859_v62 = vadd.f32 %v15066_v5, %v18759_v15  ;;  %v18760_v56 = vld [vmem:[#allocation99_spill] sm:$0xff]  ;;  %v18761_v40 = vpack.c.bf16 %v15413_v47, %v15411_v50  ;;  %v12505_v5 = vld [vmem:[%s17684_s3 + $0x330] sm:$0xff]  }
 0x585   :  { %v4400_v45 = vpop.f32.mrf.mxu1  ;;  %11685 = vmatprep.subr.bf16.mxu1 %v12502_v60  ;;  %v5143_v37 = vmul.f32 0.01, %v4637_v14  ;;  %vm5015_vm0 = vcmp.ge.f32.partialorder %v4637_v14, 0.0  ;;  %v18763_v60 = vpack.c.bf16 %v15513_v22, %v15511_v51  ;;  %v12574_v51 = vld [vmem:[%s17684_s3 + $0x788] sm:$0xff]   ;;  %v18764_v22 = vld [vmem:[#allocation268_spill] sm:$0xff] }
 0x586   :  { %18758 = vst [vmem:[#allocation142_spill] sm:$0xff] %v15777_v26  ;;  %v4639_v10 = vpop.f32.mrf.mxu0  ;;  %v12572_v45 = vld [vmem:[%s17684_s3 + $0x7c8] sm:$0xff]  }
 0x587   :  { %v4640_v24 = vadd.f32 %v4639_v10, %v18760_v56  ;;  %9760 = vmatmul.mubr.bf16.vlgmr.msra.gmra.mxu1 %v18761_v40  ;;  %v4403_v54 = vpop.f32.mrf.mxu1  ;;  %v18765_v15 = vld [vmem:[#allocation259_spill] sm:$0xff]  ;;  %v18766_v56 = vld [vmem:[#allocation161_spill] sm:$0xff]  ;;  %11895 = vmatprep.subr.bf16.mxu0 %v12572_v45  ;;  %v15814_v40 = vsel %vm5015_vm0, %v4637_v14, %v5143_v37  ;;  %v12576_v37 = vld [vmem:[%s17684_s3 + $0x7c0] sm:$0xff]  }
 0x588   :  { %v15793_v20 = vadd.f32 %v4403_v54, %v3859_v62  ;;  %11686 = vmatpush3.bf16.msra.mxu1 %v12503_v31  ;;  %9800 = vmatprep.mubr.bf16.mxu1 %v18763_v60  ;;  %v4641_v0 = vpop.f32.mrf.mxu0  ;;  %v12506_v31 = vld [vmem:[%s17684_s3 + $0x368] sm:$0xff]   ;;  %v3862_v62 = vadd.f32 %v18765_v15, %v18764_v22  ;;  %v12508_v45 = vld [vmem:[%s17684_s3 + $0x360] sm:$0xff]  }
 0x589   :  { %vm5016_vm7 = vcmp.ge.f32.partialorder %v4640_v24, 0.0  ;;  %v5144_v50 = vmul.f32 0.01, %v4640_v24  ;;  %v4405_v47 = vpop.f32.mrf.mxu1  ;;  %11687 = vmatprep.subr.bf16.mxu1 %v12504_v59  ;;  %v18767_v59 = vld [vmem:[#allocation241_spill] sm:$0xff]  ;;  %11896 = vmatpush3.bf16.msra.mxu0 %v12574_v51  ;;  %v12507_v14 = vld [vmem:[%s17684_s3 + $0x328] sm:$0xff]  }
 0x58a   :  { %18762 = vst [vmem:[#allocation39_spill] sm:$0xff] %v15793_v20  ;;  %v4644_v10 = vpop.f32.mrf.mxu0  ;;  %4835 = vmatmul.mubr.bf16.gmra.mxu0 %v18766_v56  ;;  %v18768_v47 = vld [vmem:[#allocation164_spill] sm:$0xff]  ;;  %v18771_v51 = vld [vmem:[#allocation261_spill] sm:$0xff]  ;;  %11897 = vmatprep.subr.bf16.mxu0 %v12576_v37  ;;  %v18772_v56 = vld [vmem:[#allocation7_spill] sm:$0xff] }
 0x58b   :  { %v15816_v54 = vsel %vm5016_vm7, %v4640_v24, %v5144_v50  ;;  %v4645_v60 = vadd.f32 %v4644_v10, %v18767_v59  ;;  %v4406_v0 = vpop.f32.mrf.mxu1  ;;  %4842 = vmatprep.mubr.bf16.mxu0 %v18768_v47  ;;  %v12578_v50 = vld [vmem:[%s17684_s3 + $0x780] sm:$0xff]  }
 0x58c   :  { %v15822_v20 = vadd.f32 %v4406_v0, %v3862_v62  ;;  %11688 = vmatpush3.bf16.msra.mxu1 %v12505_v5  ;;  %v4646_v22 = vpop.f32.mrf.mxu0  ;;  %v18770_v5 = vld [vmem:[#allocation270_spill] sm:$0xff] }
 0x58d   :  { %v4408_v24 = vpop.f32.mrf.mxu1  ;;  %11689 = vmatprep.subr.bf16.mxu1 %v12506_v31  ;;  %v3867_v15 = vadd.f32 %v18771_v51, %v18770_v5  ;;  %v5145_v10 = vmul.f32 0.01, %v4645_v60  ;;  %11898 = vmatpush3.bf16.msra.mxu0 %v12578_v50  ;;  %vm5017_vm8 = vcmp.ge.f32.partialorder %v4645_v60, 0.0  ;;  %v12509_v22 = vld [vmem:[%s17684_s3 + $0x320] sm:$0xff]   ;;  %v12510_v50 = vld [vmem:[%s17684_s3 + $0x358] sm:$0xff]   ;;  %v18774_v51 = vld [vmem:[#allocation272_spill] sm:$0xff] }
 0x58e   :  { %18769 = vst [vmem:[#allocation143_spill] sm:$0xff] %v15822_v20  ;;  %v4647_v62 = vpop.f32.mrf.mxu0  ;;  %v12580_v24 = vld [vmem:[%s17684_s3 + $0x8f8] sm:$0xff]  }
 0x58f   :  { %v4648_v59 = vadd.f32 %v4647_v62, %v18772_v56  ;;  %v4411_v0 = vpop.f32.mrf.mxu1  ;;  %v18776_v56 = vld [vmem:[#allocation165_spill] sm:$0xff]  ;;  %11927 = vmatprep.subr.bf16.mxu0 %v12580_v24  ;;  %v15856_v20 = vsel %vm5017_vm8, %v4645_v60, %v5145_v10  ;;  %v12512_v60 = vld [vmem:[%s17684_s3 + $0x350] sm:$0xff]   ;;  %v18780_v10 = vld [vmem:[#allocation274_spill] sm:$0xff] }
 0x590   :  { %v15839_v31 = vadd.f32 %v4411_v0, %v3867_v15  ;;  %11690 = vmatpush3.bf16.msra.mxu1 %v12507_v14  ;;  %v4649_v47 = vpop.f32.mrf.mxu0  ;;  %v18775_v15 = vld [vmem:[#allocation18_spill] sm:$0xff]  ;;  %v18777_v0 = vld [vmem:[#allocation8_spill] sm:$0xff] }
 0x591   :  { %vm5018_vm9 = vcmp.ge.f32.partialorder %v4648_v59, 0.0  ;;  %v5146_v37 = vmul.f32 0.01, %v4648_v59  ;;  %v4413_v5 = vpop.f32.mrf.mxu1  ;;  %11691 = vmatprep.subr.bf16.mxu1 %v12508_v45  ;;  %v3870_v14 = vadd.f32 %v18775_v15, %v18774_v51  ;;  %v12511_v51 = vld [vmem:[%s17684_s3 + $0x318] sm:$0xff]  }
 0x592   :  { %18773 = vst [vmem:[#allocation29_spill] sm:$0xff] %v15839_v31  ;;  %v4652_v62 = vpop.f32.mrf.mxu0  ;;  %4843 = vmatmul.mubr.bf16.gmra.mxu0 %v18776_v56  ;;  %v18778_v31 = vld [vmem:[#allocation168_spill] sm:$0xff] }
 0x593   :  { %v4653_v47 = vadd.f32 %v4652_v62, %v18777_v0  ;;  %v4414_v12 = vpop.f32.mrf.mxu1  ;;  %4850 = vmatprep.mubr.bf16.mxu0 %v18778_v31  ;;  %v15858_v45 = vsel %vm5018_vm9, %v4648_v59, %v5146_v37  ;;  %v18781_v59 = vld [vmem:[#allocation263_spill] sm:$0xff] }
 0x594   :  { %v15860_v5 = vadd.f32 %v4414_v12, %v3870_v14  ;;  %11692 = vmatpush3.bf16.msra.mxu1 %v12509_v22  ;;  %v4654_v26 = vpop.f32.mrf.mxu0  ;;  %v3875_v31 = vadd.f32 %v18781_v59, %v18780_v10  ;;  %v18782_v22 = vld [vmem:[#allocation102_spill] sm:$0xff]  ;;  %v12514_v10 = vld [vmem:[%s17684_s3 + $0x348] sm:$0xff]   ;;  %v18784_v59 = vld [vmem:[#allocation276_spill] sm:$0xff] }
 0x595   :  { %v4416_v15 = vpop.f32.mrf.mxu1  ;;  %11693 = vmatprep.subr.bf16.mxu1 %v12510_v50  ;;  %v5147_v37 = vmul.f32 0.01, %v4653_v47  ;;  %vm5019_vm10 = vcmp.ge.f32.partialorder %v4653_v47, 0.0  ;;  %v12513_v50 = vld [vmem:[%s17684_s3 + $0x310] sm:$0xff]  }
 0x596   :  { %18779 = vst [vmem:[#allocation30_spill] sm:$0xff] %v15860_v5  ;;  %v4655_v12 = vpop.f32.mrf.mxu0 }
 0x597   :  { %v4656_v26 = vadd.f32 %v4655_v12, %v18782_v22  ;;  %v4419_v14 = vpop.f32.mrf.mxu1  ;;  %v18785_v12 = vld [vmem:[#allocation265_spill] sm:$0xff] }
 0x598   :  { %v15873_v62 = vadd.f32 %v4419_v14, %v3875_v31  ;;  %11694 = vmatpush3.bf16.msra.mxu1 %v12511_v51  ;;  %v4657_v56 = vpop.f32.mrf.mxu0  ;;  %v3878_v22 = vadd.f32 %v18785_v12, %v18784_v59  ;;  %v18786_v31 = vld [vmem:[#allocation169_spill] sm:$0xff]  ;;  %v15884_v51 = vsel %vm5019_vm10, %v4653_v47, %v5147_v37  ;;  %v12515_v59 = vld [vmem:[%s17684_s3 + $0x308] sm:$0xff]  }
 0x599   :  { %vm5020_vm11 = vcmp.ge.f32.partialorder %v4656_v26, 0.0  ;;  %v5148_v0 = vmul.f32 0.01, %v4656_v26  ;;  %v4421_v15 = vpop.f32.mrf.mxu1  ;;  %11695 = vmatprep.subr.bf16.mxu1 %v12512_v60  ;;  %v18787_v56 = vld [vmem:[#allocation243_spill] sm:$0xff] }
 0x59a   :  { %18783 = vst [vmem:[#allocation146_spill] sm:$0xff] %v15873_v62  ;;  %v4660_v24 = vpop.f32.mrf.mxu0  ;;  %4851 = vmatmul.mubr.bf16.gmra.mxu0 %v18786_v31  ;;  %v18792_v31 = vld [vmem:[#allocation245_spill] sm:$0xff] }
 0x59b   :  { %v15886_v14 = vsel %vm5020_vm11, %v4656_v26, %v5148_v0  ;;  %v4661_v62 = vadd.f32 %v4660_v24, %v18787_v56  ;;  %v4422_v5 = vpop.f32.mrf.mxu1  ;;  %4858 = vmatprep.mubr.bf16.mxu0 %v18788_v63  ;;  %v12516_v24 = vld [vmem:[%s17684_s3 + $0x340] sm:$0xff]   ;;  %v18790_v63 = vld [vmem:[#allocation103_spill] sm:$0xff] }
 0x59c   :  { %v15892_v15 = vadd.f32 %v4422_v5, %v3878_v22  ;;  %11696 = vmatpush3.bf16.msra.mxu1 %v12513_v50  ;;  %v4662_v4 = vpop.f32.mrf.mxu0  ;;  %v18791_v22 = vld [vmem:[#allocation173_spill] sm:$0xff] }
 0x59d   :  { %11697 = vmatprep.subr.bf16.mxu1 %v12514_v10  ;;  %v4424_v47 = vpop.f32.mrf.mxu1  ;;  %v5149_v26 = vmul.f32 0.01, %v4661_v62  ;;  %vm5021_vm12 = vcmp.ge.f32.partialorder %v4661_v62, 0.0  ;;  %v12517_v4 = vld [vmem:[%s17684_s3 + $0x300] sm:$0xff]   ;;  %v12518_v10 = vld [vmem:[%s17684_s3 + $0x3f8] sm:$0xff]  }
 0x59e   :  { %18789 = vst [vmem:[#allocation147_spill] sm:$0xff] %v15892_v15  ;;  %v4663_v37 = vpop.f32.mrf.mxu0  ;;  %v18793_v47 = vld [vmem:[#allocation176_spill] sm:$0xff] }
 0x59f   :  { %v4664_v0 = vadd.f32 %v4663_v37, %v18790_v63 }
 0x5a0   :  { %11698 = vmatpush3.bf16.msra.mxu1 %v12515_v59  ;;  %v4665_v5 = vpop.f32.mrf.mxu0  ;;  %v15910_v59 = vsel %vm5021_vm12, %v4661_v62, %v5149_v26  ;;  %v18794_v62 = vld [vmem:[#allocation9_spill] sm:$0xff] }
 0x5a1   :  { %vm5022_vm13 = vcmp.ge.f32.partialorder %v4664_v0, 0.0  ;;  %v5150_v50 = vmul.f32 0.01, %v4664_v0  ;;  %11699 = vmatprep.subr.bf16.mxu1 %v12516_v24  ;;  %v12519_v24 = vld [vmem:[%s17684_s3 + $0x3b8] sm:$0xff]  }
 0x5a2   :  { %v4668_v12 = vpop.f32.mrf.mxu0  ;;  %4859 = vmatmul.mubr.bf16.gmra.mxu0 %v18791_v22 }
 0x5a3   :  { %v4669_v56 = vadd.f32 %v4668_v12, %v18792_v31  ;;  %4866 = vmatprep.mubr.bf16.mxu0 %v18793_v47  ;;  %v15912_v37 = vsel %vm5022_vm13, %v4664_v0, %v5150_v50  ;;  %v12521_v12 = vld [vmem:[%s17684_s3 + $0x3f0] sm:$0xff]   ;;  %v18795_v0 = vpack.c.bf16 %v15480_v7, %v15478_v21  ;;  %v18796_v50 = vpack.c.bf16 %v15580_v55, %v15578_v8  ;;  %v12524_v21 = vld [vmem:[%s17684_s3 + $0x3e8] sm:$0xff]  }
 0x5a4   :  { %11700 = vmatpush3.bf16.msra.mxu1 %v12517_v4  ;;  %v4670_v63 = vpop.f32.mrf.mxu0  ;;  %v12523_v47 = vld [vmem:[%s17684_s3 + $0x3b0] sm:$0xff]  }
 0x5a5   :  { %11707 = vmatprep.subr.bf16.mxu1 %v12518_v10  ;;  %v5151_v31 = vmul.f32 0.01, %v4669_v56  ;;  %vm5023_vm14 = vcmp.ge.f32.partialorder %v4669_v56, 0.0 }
 0x5a6   :  { %v4671_v22 = vpop.f32.mrf.mxu0 }
 0x5a7   :  { %v4672_v26 = vadd.f32 %v4671_v22, %v18794_v62  ;;  %9801 = vmatmul.mubr.bf16.vlgmr.msra.gmra.mxu1 %v18795_v0  ;;  %v11569_v4 = vpop.f32.mrf.mxu1  ;;  %v18797_v22 = vld [vmem:[#allocation177_spill] sm:$0xff]  ;;  %v15938_v8 = vsel %vm5023_vm14, %v4669_v56, %v5151_v31  ;;  %v18799_v62 = vld [vmem:[#allocation10_spill] sm:$0xff] }
 0x5a8   :  { %11708 = vmatpush3.bf16.msra.mxu1 %v12519_v24  ;;  %9841 = vmatprep.mubr.bf16.mxu1 %v18796_v50  ;;  %v4673_v10 = vpop.f32.mrf.mxu0  ;;  %18798 = vst [vmem:[#allocation46_spill] sm:$0xff] %v15938_v8  ;;  %v18800_v50 = vld [vmem:[#allocation180_spill] sm:$0xff]  ;;  %v12526_v56 = vld [vmem:[%s17684_s3 + $0x3e0] sm:$0xff]   ;;  %v12533_v8 = vld [vmem:[%s17684_s3 + $0x388] sm:$0xff]  }
 0x5a9   :  { %vm5024_vm15 = vcmp.ge.f32.partialorder %v4672_v26, 0.0  ;;  %v5152_v63 = vmul.f32 0.01, %v4672_v26  ;;  %v11570_v60 = vpop.f32.mrf.mxu1  ;;  %11709 = vmatprep.subr.bf16.mxu1 %v12521_v12 }
 0x5aa   :  { %v15935_v7 = vadd.f32 %v11570_v60, %v11569_v4  ;;  %v4676_v24 = vpop.f32.mrf.mxu0  ;;  %4867 = vmatmul.mubr.bf16.gmra.mxu0 %v18797_v22  ;;  %v12525_v60 = vld [vmem:[%s17684_s3 + $0x3a8] sm:$0xff]  }
 0x5ab   :  { %v15940_v55 = vsel %vm5024_vm15, %v4672_v26, %v5152_v63  ;;  %v4677_v0 = vadd.f32 %v4676_v24, %v18799_v62  ;;  %4874 = vmatprep.mubr.bf16.mxu0 %v18800_v50  ;;  %v11572_v10 = vpop.f32.mrf.mxu1  ;;  %v18801_v24 = vld [vmem:[#allocation106_spill] sm:$0xff] }
 0x5ac   :  { %11710 = vmatpush3.bf16.msra.mxu1 %v12523_v47  ;;  %v4678_v5 = vpop.f32.mrf.mxu0 }
 0x5ad   :  { %v11573_v4 = vpop.f32.mrf.mxu1  ;;  %11711 = vmatprep.subr.bf16.mxu1 %v12524_v21  ;;  %v5153_v63 = vmul.f32 0.01, %v4677_v0  ;;  %vm5025_vm1 = vcmp.ge.f32.partialorder %v4677_v0, 0.0  ;;  %v12527_v5 = vld [vmem:[%s17684_s3 + $0x3a0] sm:$0xff]   ;;  %v12528_v21 = vld [vmem:[%s17684_s3 + $0x3d8] sm:$0xff]  }
 0x5ae   :  { %v15952_v31 = vadd.f32 %v11573_v4, %v11572_v10  ;;  %v4679_v26 = vpop.f32.mrf.mxu0  ;;  %v18802_v10 = vld [vmem:[#allocation181_spill] sm:$0xff]  ;;  %v18803_v4 = vld [vmem:[#allocation247_spill] sm:$0xff] }
 0x5af   :  { %v4680_v22 = vadd.f32 %v4679_v26, %v18801_v24  ;;  %v18804_v26 = vld [vmem:[#allocation184_spill] sm:$0xff] }
 0x5b0   :  { %11712 = vmatpush3.bf16.msra.mxu1 %v12525_v60  ;;  %v4681_v47 = vpop.f32.mrf.mxu0  ;;  %v15964_v60 = vsel %vm5025_vm1, %v4677_v0, %v5153_v63  ;;  %v18805_v0 = vld [vmem:[#allocation107_spill] sm:$0xff] }
 0x5b1   :  { %vm5026_vm2 = vcmp.ge.f32.partialorder %v4680_v22, 0.0  ;;  %v5154_v62 = vmul.f32 0.01, %v4680_v22  ;;  %11713 = vmatprep.subr.bf16.mxu1 %v12526_v56  ;;  %v12529_v56 = vld [vmem:[%s17684_s3 + $0x398] sm:$0xff]  }
 0x5b2   :  { %v4684_v50 = vpop.f32.mrf.mxu0  ;;  %4875 = vmatmul.mubr.bf16.gmra.mxu0 %v18802_v10 }
 0x5b3   :  { %v4685_v12 = vadd.f32 %v4684_v50, %v18803_v4  ;;  %4882 = vmatprep.mubr.bf16.mxu0 %v18804_v26  ;;  %v15966_v24 = vsel %vm5026_vm2, %v4680_v22, %v5154_v62  ;;  %v12530_v50 = vld [vmem:[%s17684_s3 + $0x3d0] sm:$0xff]  }
 0x5b4   :  { %11714 = vmatpush3.bf16.msra.mxu1 %v12527_v5  ;;  %v4686_v47 = vpop.f32.mrf.mxu0  ;;  %v12531_v5 = vld [vmem:[%s17684_s3 + $0x390] sm:$0xff]  }
 0x5b5   :  { %11715 = vmatprep.subr.bf16.mxu1 %v12528_v21  ;;  %v5155_v4 = vmul.f32 0.01, %v4685_v12  ;;  %vm5027_vm3 = vcmp.ge.f32.partialorder %v4685_v12, 0.0  ;;  %v12532_v21 = vld [vmem:[%s17684_s3 + $0x3c8] sm:$0xff]   ;;  %v18806_v47 = vld [vmem:[#allocation185_spill] sm:$0xff] }
 0x5b6   :  { %v4687_v10 = vpop.f32.mrf.mxu0 }
 0x5b7   :  { %v4688_v63 = vadd.f32 %v4687_v10, %v18805_v0  ;;  %v15984_v15 = vsel %vm5027_vm3, %v4685_v12, %v5155_v4  ;;  %v12534_v12 = vld [vmem:[%s17684_s3 + $0x3c0] sm:$0xff]  }
 0x5b8   :  { %11716 = vmatpush3.bf16.msra.mxu1 %v12529_v56  ;;  %v4689_v22 = vpop.f32.mrf.mxu0  ;;  %18807 = vst [vmem:[#allocation31_spill] sm:$0xff] %v15984_v15  ;;  %v18809_v56 = vld [vmem:[#allocation249_spill] sm:$0xff] }
 0x5b9   :  { %vm5028_vm4 = vcmp.ge.f32.partialorder %v4688_v63, 0.0  ;;  %v5156_v62 = vmul.f32 0.01, %v4688_v63  ;;  %11717 = vmatprep.subr.bf16.mxu1 %v12530_v50  ;;  %v18810_v22 = vld [vmem:[#allocation188_spill] sm:$0xff] }
 0x5ba   :  { %v4692_v26 = vpop.f32.mrf.mxu0  ;;  %4883 = vmatmul.mubr.bf16.gmra.mxu0 %v18806_v47 }
 0x5bb   :  { %v15986_v10 = vsel %vm5028_vm4, %v4688_v63, %v5156_v62  ;;  %v4693_v0 = vadd.f32 %v4692_v26, %v18809_v56  ;;  %4890 = vmatprep.mubr.bf16.mxu0 %v18810_v22  ;;  %v18811_v62 = vld [vmem:[#allocation11_spill] sm:$0xff] }
 0x5bc   :  { %18808 = vst [vmem:[#allocation32_spill] sm:$0xff] %v15986_v10  ;;  %11718 = vmatpush3.bf16.msra.mxu1 %v12531_v5  ;;  %v4694_v50 = vpop.f32.mrf.mxu0  ;;  %v12535_v5 = vld [vmem:[%s17684_s3 + $0x380] sm:$0xff]   ;;  %v12539_v10 = vld [vmem:[%s17684_s3 + $0x430] sm:$0xff]  }
 0x5bd   :  { %11719 = vmatprep.subr.bf16.mxu1 %v12532_v21  ;;  %v5157_v63 = vmul.f32 0.01, %v4693_v0  ;;  %vm5029_vm5 = vcmp.ge.f32.partialorder %v4693_v0, 0.0  ;;  %v12536_v21 = vld [vmem:[%s17684_s3 + $0x478] sm:$0xff]  }
 0x5be   :  { %v4695_v4 = vpop.f32.mrf.mxu0  ;;  %v18812_v50 = vld [vmem:[#allocation189_spill] sm:$0xff] }
 0x5bf   :  { %v4696_v26 = vadd.f32 %v4695_v4, %v18811_v62  ;;  %v18814_v4 = vmov 0  }
 0x5c0   :  { %11720 = vmatpush3.bf16.msra.mxu1 %v12533_v8  ;;  %v4697_v47 = vpop.f32.mrf.mxu0  ;;  %v16008_v8 = vsel %vm5029_vm5, %v4693_v0, %v5157_v63  ;;  %v11040_v0 = vld [vmem:[%s17685_s4] ss:$0 sm:$0xff] }
 0x5c1   :  { %vm5030_vm6 = vcmp.ge.f32.partialorder %v4696_v26, 0.0  ;;  %v5158_v56 = vmul.f32 0.01, %v4696_v26  ;;  %11721 = vmatprep.subr.bf16.mxu1 %v12534_v12  ;;  %18815 = vst [vmem:[#allocation150_spill] sm:$0xff] %v16008_v8  ;;  %v12537_v12 = vld [vmem:[%s17684_s3 + $0x438] sm:$0xff]  }
 0x5c2   :  { %v4700_v22 = vpop.f32.mrf.mxu0  ;;  %4891 = vmatmul.mubr.bf16.gmra.mxu0 %v18812_v50  ;;  %v18818_v50 = vpack.c.bf16 %v15547_v28, %v15545_v33  ;;  %v12540_v33 = vld [vmem:[%s17684_s3 + $0x468] sm:$0xff]   ;;  %v9557_v28 = vadd.f32 %v15935_v7, %v11040_v0 }
 0x5c3   :  { %v4701_v15 = vadd.f32 %v4700_v22, %v18813_v25  ;;  %4898 = vmatprep.mubr.bf16.mxu0 %v18814_v4  ;;  %v16010_v62 = vsel %vm5030_vm6, %v4696_v26, %v5158_v56  ;;  %v12538_v25 = vld [vmem:[%s17684_s3 + $0x470] sm:$0xff]   ;;  %v18817_v26 = vld [vmem:[#allocation110_spill] sm:$0xff] }
 0x5c4   :  { %18816 = vst [vmem:[#allocation47_spill] sm:$0xff] %v16010_v62  ;;  %11722 = vmatpush3.bf16.msra.mxu1 %v12535_v5  ;;  %v4702_v47 = vpop.f32.mrf.mxu0 }
 0x5c5   :  { %11729 = vmatprep.subr.bf16.mxu1 %v12536_v21  ;;  %v5159_v63 = vmul.f32 0.01, %v4701_v15  ;;  %vm5031_vm0 = vcmp.ge.f32.partialorder %v4701_v15, 0.0  ;;  %v18819_v21 = vpack.c.bf16 %v15641_v34, %v15639_v32 }
 0x5c6   :  { %v4703_v22 = vpop.f32.mrf.mxu0 }
 0x5c7   :  { %v4704_v5 = vadd.f32 %v4703_v22, %v18817_v26  ;;  %v11591_v56 = vpop.f32.mrf.mxu1  ;;  %9842 = vmatmul.mubr.bf16.vlgmr.msra.gmra.mxu1 %v18818_v50  ;;  %v16038_v32 = vsel %vm5031_vm0, %v4701_v15, %v5159_v63  ;;  %v18820_v26 = vld [vmem:[#allocation251_spill] sm:$0xff]  ;;  %v9560_v63 = vadd.f32 %v15952_v31, %v11040_v0  ;;  %v12544_v31 = vld [vmem:[%s17684_s3 + $0x458] sm:$0xff]  }
 0x5c8   :  { %11730 = vmatpush3.bf16.msra.mxu1 %v12537_v12  ;;  %9882 = vmatprep.mubr.bf16.mxu1 %v18819_v21  ;;  %v4705_v47 = vpop.f32.mrf.mxu0 }
 0x5c9   :  { %vm5032_vm7 = vcmp.ge.f32.partialorder %v4704_v5, 0.0  ;;  %v5160_v8 = vmul.f32 0.01, %v4704_v5  ;;  %v11592_v62 = vpop.f32.mrf.mxu1  ;;  %11731 = vmatprep.subr.bf16.mxu1 %v12538_v25  ;;  %v12549_v25 = vld [vmem:[%s17684_s3 + $0x408] sm:$0xff]  }
 0x5ca   :  { %v11593_v12 = vadd.f32 %v11592_v62, %v11591_v56  ;;  %v4708_v22 = vpop.f32.mrf.mxu0  ;;  %4899 = vmatmul.mubr.bf16.gmra.mxu0 %v18814_v4  ;;  %v12541_v62 = vld [vmem:[%s17684_s3 + $0x428] sm:$0xff]  }
 0x5cb   :  { %v16040_v34 = vsel %vm5032_vm7, %v4704_v5, %v5160_v8  ;;  %v4709_v50 = vadd.f32 %v4708_v22, %v18820_v26  ;;  %v11594_v21 = vpop.f32.mrf.mxu1  ;;  %4906 = vmatprep.mubr.bf16.mxu0 %v18814_v4  ;;  %v12542_v8 = vld [vmem:[%s17684_s3 + $0x460] sm:$0xff]   ;;  %v18821_v26 = vld [vmem:[#allocation111_spill] sm:$0xff] }
 0x5cc   :  { %v16046_v47 = vadd.f32 %v11593_v12, %v9557_v28  ;;  %11732 = vmatpush3.bf16.msra.mxu1 %v12539_v10  ;;  %v4710_v7 = vpop.f32.mrf.mxu0 }
 0x5cd   :  { %v11595_v15 = vpop.f32.mrf.mxu1  ;;  %11733 = vmatprep.subr.bf16.mxu1 %v12540_v33  ;;  %v5161_v22 = vmul.f32 0.01, %v4709_v50  ;;  %vm5033_vm8 = vcmp.ge.f32.partialorder %v4709_v50, 0.0  ;;  %v12543_v33 = vld [vmem:[%s17684_s3 + $0x420] sm:$0xff]  }
 0x5ce   :  { %v11596_v5 = vadd.f32 %v11595_v15, %v11594_v21  ;;  %v4711_v56 = vpop.f32.mrf.mxu0  ;;  %v18822_v21 = vld [vmem:[#allocation253_spill] sm:$0xff] }
 0x5cf   :  { %v4712_v28 = vadd.f32 %v4711_v56, %v18821_v26  ;;  %v12546_v26 = vld [vmem:[%s17684_s3 + $0x450] sm:$0xff]   ;;  %v18828_v56 = vld [vmem:[#allocation115_spill] sm:$0xff] }
 0x5d0   :  { %v16056_v10 = vadd.f32 %v11596_v5, %v9560_v63  ;;  %11734 = vmatpush3.bf16.msra.mxu1 %v12541_v62  ;;  %v4713_v12 = vpop.f32.mrf.mxu0  ;;  %v16067_v62 = vsel %vm5033_vm8, %v4709_v50, %v5161_v22  ;;  %v18823_v50 = vld [vmem:[#allocation13_spill] sm:$0xff] }
 0x5d1   :  { %vm5034_vm9 = vcmp.ge.f32.partialorder %v4712_v28, 0.0  ;;  %v5162_v7 = vmul.f32 0.01, %v4712_v28  ;;  %11735 = vmatprep.subr.bf16.mxu1 %v12542_v8  ;;  %v12545_v8 = vld [vmem:[%s17684_s3 + $0x418] sm:$0xff]  }
 0x5d2   :  { %v4716_v0 = vpop.f32.mrf.mxu0  ;;  %4907 = vmatmul.mubr.bf16.gmra.mxu0 %v18814_v4 }
 0x5d3   :  { %v4717_v15 = vadd.f32 %v4716_v0, %v18822_v21  ;;  %4914 = vmatprep.mubr.bf16.mxu0 %v18814_v4  ;;  %v16069_v63 = vsel %vm5034_vm9, %v4712_v28, %v5162_v7 }
 0x5d4   :  { %11736 = vmatpush3.bf16.msra.mxu1 %v12543_v33  ;;  %v4718_v5 = vpop.f32.mrf.mxu0  ;;  %v12547_v33 = vld [vmem:[%s17684_s3 + $0x410] sm:$0xff]  }
 0x5d5   :  { %11737 = vmatprep.subr.bf16.mxu1 %v12544_v31  ;;  %v5163_v0 = vmul.f32 0.01, %v4717_v15  ;;  %vm5035_vm10 = vcmp.ge.f32.partialorder %v4717_v15, 0.0  ;;  %v12548_v31 = vld [vmem:[%s17684_s3 + $0x448] sm:$0xff]  }
 0x5d6   :  { %v4719_v12 = vpop.f32.mrf.mxu0 }
 0x5d7   :  { %v4720_v22 = vadd.f32 %v4719_v12, %v18823_v50  ;;  %v16087_v5 = vsel %vm5035_vm10, %v4717_v15, %v5163_v0  ;;  %v12550_v15 = vld [vmem:[%s17684_s3 + $0x440] sm:$0xff]  }
 0x5d8   :  { %11738 = vmatpush3.bf16.msra.mxu1 %v12545_v8  ;;  %v4721_v28 = vpop.f32.mrf.mxu0  ;;  %18824 = vst [vmem:[#allocation151_spill] sm:$0xff] %v16087_v5  ;;  %v18826_v8 = vld [vmem:[#allocation14_spill] sm:$0xff] }
 0x5d9   :  { %vm5036_vm11 = vcmp.ge.f32.partialorder %v4720_v22, 0.0  ;;  %v5164_v7 = vmul.f32 0.01, %v4720_v22  ;;  %11739 = vmatprep.subr.bf16.mxu1 %v12546_v26 }
 0x5da   :  { %v4724_v21 = vpop.f32.mrf.mxu0  ;;  %4915 = vmatmul.mubr.bf16.gmra.mxu0 %v18814_v4 }
 0x5db   :  { %v16089_v12 = vsel %vm5036_vm11, %v4720_v22, %v5164_v7  ;;  %v4725_v50 = vadd.f32 %v4724_v21, %v18826_v8  ;;  %4922 = vmatprep.mubr.bf16.mxu0 %v18814_v4  ;;  %v18827_v7 = vld [vmem:[#allocation114_spill] sm:$0xff] }
 0x5dc   :  { %18825 = vst [vmem:[#allocation50_spill] sm:$0xff] %v16089_v12  ;;  %11740 = vmatpush3.bf16.msra.mxu1 %v12547_v33  ;;  %v4726_v26 = vpop.f32.mrf.mxu0  ;;  %v12551_v33 = vld [vmem:[%s17684_s3 + $0x400] sm:$0xff]  }
 0x5dd   :  { %11741 = vmatprep.subr.bf16.mxu1 %v12548_v31  ;;  %v5165_v22 = vmul.f32 0.01, %v4725_v50  ;;  %vm5037_vm12 = vcmp.ge.f32.partialorder %v4725_v50, 0.0  ;;  %v12552_v31 = vld [vmem:[%s17684_s3 + $0x4f8] sm:$0xff]  }
 0x5de   :  { %v4727_v0 = vpop.f32.mrf.mxu0 }
 0x5df   :  { %v4728_v21 = vadd.f32 %v4727_v0, %v18827_v7 }
 0x5e0   :  { %11742 = vmatpush3.bf16.msra.mxu1 %v12549_v25  ;;  %v4729_v8 = vpop.f32.mrf.mxu0  ;;  %v16111_v25 = vsel %vm5037_vm12, %v4725_v50, %v5165_v22  ;;  %v18831_v50 = vld [vmem:[#allocation15_spill] sm:$0xff] }
 0x5e1   :  { %vm5038_vm13 = vcmp.ge.f32.partialorder %v4728_v21, 0.0  ;;  %v5166_v26 = vmul.f32 0.01, %v4728_v21  ;;  %11743 = vmatprep.subr.bf16.mxu1 %v12550_v15  ;;  %18829 = vst [vmem:[#allocation33_spill] sm:$0xff] %v16111_v25  ;;  %v12553_v15 = vld [vmem:[%s17684_s3 + $0x4b8] sm:$0xff]  }
 0x5e2   :  { %v4732_v28 = vpop.f32.mrf.mxu0  ;;  %4923 = vmatmul.mubr.bf16.gmra.mxu0 %v18814_v4 }
 0x5e3   :  { %v4733_v5 = vadd.f32 %v4732_v28, %v18828_v56  ;;  %4930 = vmatprep.mubr.bf16.mxu0 %v18814_v4  ;;  %v16113_v0 = vsel %vm5038_vm13, %v4728_v21, %v5166_v26  ;;  %v12555_v56 = vld [vmem:[%s17684_s3 + $0x4f0] sm:$0xff]   ;;  %v18833_v26 = vpack.c.bf16 %v15714_v6, %v15712_v46 }
 0x5e4   :  { %18830 = vst [vmem:[#allocation36_spill] sm:$0xff] %v16113_v0  ;;  %11744 = vmatpush3.bf16.msra.mxu1 %v12551_v33  ;;  %v4734_v7 = vpop.f32.mrf.mxu0  ;;  %v18832_v33 = vpack.c.bf16 %v15608_v57, %v15606_v48  ;;  %v12558_v48 = vld [vmem:[%s17684_s3 + $0x4e8] sm:$0xff]   ;;  %v18834_v6 = vld [vmem:[#allocation16_spill] sm:$0xff] }
 0x5e5   :  { %11751 = vmatprep.subr.bf16.mxu1 %v12552_v31  ;;  %v5167_v12 = vmul.f32 0.01, %v4733_v5  ;;  %vm5039_vm14 = vcmp.ge.f32.partialorder %v4733_v5, 0.0  ;;  %v12557_v7 = vld [vmem:[%s17684_s3 + $0x4b0] sm:$0xff]  }
 0x5e6   :  { %v4735_v28 = vpop.f32.mrf.mxu0 }
 0x5e7   :  { %v4736_v22 = vadd.f32 %v4735_v28, %v18831_v50  ;;  %v11613_v21 = vpop.f32.mrf.mxu1  ;;  %9883 = vmatmul.mubr.bf16.vlgmr.msra.gmra.mxu1 %v18832_v33 }
 0x5e8   :  { %11752 = vmatpush3.bf16.msra.mxu1 %v12553_v15  ;;  %9923 = vmatprep.mubr.bf16.mxu1 %v18833_v26  ;;  %v4737_v31 = vpop.f32.mrf.mxu0  ;;  %v16137_v15 = vsel %vm5039_vm14, %v4733_v5, %v5167_v12  ;;  %v12559_v5 = vld [vmem:[%s17684_s3 + $0x4a8] sm:$0xff]  }
 0x5e9   :  { %vm5040_vm15 = vcmp.ge.f32.partialorder %v4736_v22, 0.0  ;;  %v5168_v8 = vmul.f32 0.01, %v4736_v22  ;;  %v11614_v25 = vpop.f32.mrf.mxu1  ;;  %11753 = vmatprep.subr.bf16.mxu1 %v12555_v56 }
 0x5ea   :  { %v11615_v57 = vadd.f32 %v11614_v25, %v11613_v21  ;;  %v4740_v28 = vpop.f32.mrf.mxu0  ;;  %4931 = vmatmul.mubr.bf16.gmra.mxu0 %v18814_v4 }
 0x5eb   :  { %v16139_v46 = vsel %vm5040_vm15, %v4736_v22, %v5168_v8  ;;  %v4741_v50 = vadd.f32 %v4740_v28, %v18834_v6  ;;  %v11616_v33 = vpop.f32.mrf.mxu1  ;;  %4938 = vmatprep.mubr.bf16.mxu0 %v18814_v4  ;;  %v12560_v8 = vld [vmem:[%s17684_s3 + $0x4e0] sm:$0xff]  }
 0x5ec   :  { %v16146_v26 = vadd.f32 %v11615_v57, %v16046_v47  ;;  %11754 = vmatpush3.bf16.msra.mxu1 %v12557_v7  ;;  %v4742_v25 = vpop.f32.mrf.mxu0  ;;  %v18835_v28 = vld [vmem:[#allocation118_spill] sm:$0xff] }
 0x5ed   :  { %v11617_v12 = vpop.f32.mrf.mxu1  ;;  %11755 = vmatprep.subr.bf16.mxu1 %v12558_v48  ;;  %v5169_v31 = vmul.f32 0.01, %v4741_v50  ;;  %vm5041_vm1 = vcmp.ge.f32.partialorder %v4741_v50, 0.0  ;;  %v12561_v57 = vld [vmem:[%s17684_s3 + $0x4a0] sm:$0xff]  }
 0x5ee   :  { %v11618_v22 = vadd.f32 %v11617_v12, %v11616_v33  ;;  %v4743_v21 = vpop.f32.mrf.mxu0  ;;  %v12562_v33 = vld [vmem:[%s17684_s3 + $0x4d8] sm:$0xff]   ;;  %v18836_v12 = vld [vmem:[#allocation119_spill] sm:$0xff] }
 0x5ef   :  { %v4744_v6 = vadd.f32 %v4743_v21, %v18835_v28  ;;  %v12567_v28 = vld [vmem:[%s17684_s3 + $0x488] sm:$0xff]  }
 0x5f0   :  { %v16156_v47 = vadd.f32 %v11618_v22, %v16056_v10  ;;  %11756 = vmatpush3.bf16.msra.mxu1 %v12559_v5  ;;  %v4745_v7 = vpop.f32.mrf.mxu0  ;;  %v16167_v10 = vsel %vm5041_vm1, %v4741_v50, %v5169_v31  ;;  %v18837_v50 = vld [vmem:[#allocation17_spill] sm:$0xff] }
 0x5f1   :  { %vm5042_vm2 = vcmp.ge.f32.partialorder %v4744_v6, 0.0  ;;  %v5170_v48 = vmul.f32 0.01, %v4744_v6  ;;  %11757 = vmatprep.subr.bf16.mxu1 %v12560_v8  ;;  %v12563_v8 = vld [vmem:[%s17684_s3 + $0x498] sm:$0xff]   ;;  %v12564_v7 = vld [vmem:[%s17684_s3 + $0x4d0] sm:$0xff]  }
 0x5f2   :  { %v4748_v25 = vpop.f32.mrf.mxu0  ;;  %4939 = vmatmul.mubr.bf16.gmra.mxu0 %v18814_v4 }
 0x5f3   :  { %v4749_v21 = vadd.f32 %v4748_v25, %v18836_v12  ;;  %4946 = vmatprep.mubr.bf16.mxu0 %v18814_v4  ;;  %v16169_v5 = vsel %vm5042_vm2, %v4744_v6, %v5170_v48 }
 0x5f4   :  { %11758 = vmatpush3.bf16.msra.mxu1 %v12561_v57  ;;  %v4750_v22 = vpop.f32.mrf.mxu0  ;;  %v12565_v57 = vld [vmem:[%s17684_s3 + $0x490] sm:$0xff]  }
 0x5f5   :  { %11759 = vmatprep.subr.bf16.mxu1 %v12562_v33  ;;  %v5171_v12 = vmul.f32 0.01, %v4749_v21  ;;  %vm5043_vm3 = vcmp.ge.f32.partialorder %v4749_v21, 0.0  ;;  %v12566_v33 = vld [vmem:[%s17684_s3 + $0x4c8] sm:$0xff]  }
 0x5f6   :  { %v4751_v25 = vpop.f32.mrf.mxu0 }
 0x5f7   :  { %v4752_v31 = vadd.f32 %v4751_v25, %v18837_v50  ;;  %v16187_v56 = vsel %vm5043_vm3, %v4749_v21, %v5171_v12  ;;  %v12568_v21 = vld [vmem:[%s17684_s3 + $0x4c0] sm:$0xff]  }
 0x5f8   :  { %11760 = vmatpush3.bf16.msra.mxu1 %v12563_v8  ;;  %v4753_v6 = vpop.f32.mrf.mxu0  ;;  %18838 = vst [vmem:[#allocation154_spill] sm:$0xff] %v16187_v56  ;;  %v18840_v8 = vld [vmem:[#allocation122_spill] sm:$0xff]  ;;  %v18842_v56 = vld [vmem:[#allocation19_spill] sm:$0xff] }
 0x5f9   :  { %vm5044_vm4 = vcmp.ge.f32.partialorder %v4752_v31, 0.0  ;;  %v5172_v48 = vmul.f32 0.01, %v4752_v31  ;;  %11761 = vmatprep.subr.bf16.mxu1 %v12564_v7 }
 0x5fa   :  { %v4756_v22 = vpop.f32.mrf.mxu0  ;;  %4947 = vmatmul.mubr.bf16.gmra.mxu0 %v18814_v4 }
 0x5fb   :  { %v16189_v25 = vsel %vm5044_vm4, %v4752_v31, %v5172_v48  ;;  %v4757_v50 = vadd.f32 %v4756_v22, %v18840_v8  ;;  %4954 = vmatprep.mubr.bf16.mxu0 %v18814_v4  ;;  %v18841_v48 = vld [vmem:[#allocation123_spill] sm:$0xff] }
 0x5fc   :  { %18839 = vst [vmem:[#allocation51_spill] sm:$0xff] %v16189_v25  ;;  %11762 = vmatpush3.bf16.msra.mxu1 %v12565_v57  ;;  %v4758_v7 = vpop.f32.mrf.mxu0  ;;  %v12569_v57 = vld [vmem:[%s17684_s3 + $0x480] sm:$0xff]  }
 0x5fd   :  { %11763 = vmatprep.subr.bf16.mxu1 %v12566_v33  ;;  %v5173_v31 = vmul.f32 0.01, %v4757_v50  ;;  %vm5045_vm5 = vcmp.ge.f32.partialorder %v4757_v50, 0.0  ;;  %v12570_v33 = vld [vmem:[%s17684_s3 + $0x578] sm:$0xff]  }
 0x5fe   :  { %v4759_v12 = vpop.f32.mrf.mxu0 }
 0x5ff   :  { %v4760_v22 = vadd.f32 %v4759_v12, %v18841_v48 }
 0x600   :  { %11764 = vmatpush3.bf16.msra.mxu1 %v12567_v28  ;;  %v4761_v8 = vpop.f32.mrf.mxu0  ;;  %v16211_v28 = vsel %vm5045_vm5, %v4757_v50, %v5173_v31  ;;  %v18844_v50 = vld [vmem:[#allocation20_spill] sm:$0xff] }
 0x601   :  { %vm5046_vm6 = vcmp.ge.f32.partialorder %v4760_v22, 0.0  ;;  %v5174_v7 = vmul.f32 0.01, %v4760_v22  ;;  %11765 = vmatprep.subr.bf16.mxu1 %v12568_v21  ;;  %18843 = vst [vmem:[#allocation155_spill] sm:$0xff] %v16211_v28  ;;  %v12571_v21 = vld [vmem:[%s17684_s3 + $0x538] sm:$0xff]  }
 0x602   :  { %v4764_v6 = vpop.f32.mrf.mxu0  ;;  %4955 = vmatmul.mubr.bf16.gmra.mxu0 %v18814_v4 }
 0x603   :  { %v4765_v25 = vadd.f32 %v4764_v6, %v18842_v56  ;;  %4962 = vmatprep.mubr.bf16.mxu0 %v18814_v4  ;;  %v16213_v12 = vsel %vm5046_vm6, %v4760_v22, %v5174_v7  ;;  %v12573_v56 = vld [vmem:[%s17684_s3 + $0x570] sm:$0xff]   ;;  %v18846_v7 = vpack.c.bf16 %v15775_v42, %v15773_v16  ;;  %v18847_v42 = vld [vmem:[#allocation126_spill] sm:$0xff] }
 0x604   :  { %11766 = vmatpush3.bf16.msra.mxu1 %v12569_v57  ;;  %v4766_v48 = vpop.f32.mrf.mxu0  ;;  %v18845_v57 = vpack.c.bf16 %v15675_v2, %v15673_v1  ;;  %v12577_v1 = vld [vmem:[%s17684_s3 + $0x568] sm:$0xff]  }
 0x605   :  { %11773 = vmatprep.subr.bf16.mxu1 %v12570_v33  ;;  %v5175_v0 = vmul.f32 0.01, %v4765_v25  ;;  %vm5047_vm0 = vcmp.ge.f32.partialorder %v4765_v25, 0.0  ;;  %v12575_v48 = vld [vmem:[%s17684_s3 + $0x530] sm:$0xff]  }
 0x606   :  { %v4767_v6 = vpop.f32.mrf.mxu0 }
 0x607   :  { %v4768_v31 = vadd.f32 %v4767_v6, %v18844_v50  ;;  %v11635_v22 = vpop.f32.mrf.mxu1  ;;  %9924 = vmatmul.mubr.bf16.vlgmr.msra.gmra.mxu1 %v18845_v57 }
 0x608   :  { %11774 = vmatpush3.bf16.msra.mxu1 %v12571_v21  ;;  %9964 = vmatprep.mubr.bf16.mxu1 %v18846_v7  ;;  %v4769_v33 = vpop.f32.mrf.mxu0  ;;  %v16237_v21 = vsel %vm5047_vm0, %v4765_v25, %v5175_v0  ;;  %v18848_v7 = vpack.c.bf16 %v16069_v63, %v16067_v62  ;;  %v12581_v25 = vld [vmem:[%s17684_s3 + $0x560] sm:$0xff]  }
 0x609   :  { %vm5048_vm7 = vcmp.ge.f32.partialorder %v4768_v31, 0.0  ;;  %v5176_v8 = vmul.f32 0.01, %v4768_v31  ;;  %v11636_v28 = vpop.f32.mrf.mxu1  ;;  %11775 = vmatprep.subr.bf16.mxu1 %v12573_v56 }
 0x60a   :  { %v11637_v2 = vadd.f32 %v11636_v28, %v11635_v22  ;;  %v4772_v6 = vpop.f32.mrf.mxu0  ;;  %4963 = vmatmul.mubr.bf16.gmra.mxu0 %v18814_v4  ;;  %v12579_v4 = vld [vmem:[%s17684_s3 + $0x528] sm:$0xff]  }
 0x60b   :  { %v16239_v16 = vsel %vm5048_vm7, %v4768_v31, %v5176_v8  ;;  %v4773_v50 = vadd.f32 %v4772_v6, %v18847_v42  ;;  %v11638_v57 = vpop.f32.mrf.mxu1  ;;  %10169 = vmatprep.mubr.bf16.mxu0 %v18848_v7  ;;  %v12585_v6 = vld [vmem:[%s17684_s3 + $0x558] sm:$0xff]   ;;  %v18850_v7 = vpack.c.bf16 %v16169_v5, %v16167_v10  ;;  %v12589_v10 = vld [vmem:[%s17684_s3 + $0x550] sm:$0xff]  }
 0x60c   :  { %v5393_v56 = vpack.c.bf16 %v16239_v16, %v16237_v21  ;;  %v16248_v33 = vadd.f32 %v11637_v2, %v16146_v26  ;;  %11776 = vmatpush3.bf16.msra.mxu1 %v12575_v48  ;;  %v4774_v28 = vpop.f32.mrf.mxu0  ;;  %v12582_v26 = vld [vmem:[%s17684_s3 + $0x8b8] sm:$0xff]   ;;  %v12584_v2 = vld [vmem:[%s17684_s3 + $0x8f0] sm:$0xff]  }
 0x60d   :  { %v11639_v0 = vpop.f32.mrf.mxu1  ;;  %11777 = vmatprep.subr.bf16.mxu1 %v12577_v1  ;;  %v5177_v8 = vmul.f32 0.01, %v4773_v50  ;;  %vm5049_vm8 = vcmp.ge.f32.partialorder %v4773_v50, 0.0  ;;  %v12583_v1 = vld [vmem:[%s17684_s3 + $0x520] sm:$0xff]   ;;  %v12586_v28 = vld [vmem:[%s17684_s3 + $0x8b0] sm:$0xff]   ;;  %v12651_v16 = vld [vmem:[%s17684_s3 + $0x618] sm:$0xff]  }
 0x60e   :  { %v11640_v62 = vadd.f32 %v11639_v0, %v11638_v57  ;;  %v4775_v63 = vpop.f32.mrf.mxu0 }
 0x60f   :  { %v4776_v31 = vadd.f32 %v4775_v63, %v15130_v9  ;;  %v12590_v63 = vld [vmem:[%s17684_s3 + $0x8a8] sm:$0xff]  }
 0x610   :  { %v16261_v22 = vadd.f32 %v11640_v62, %v16156_v47  ;;  %11778 = vmatpush3.bf16.msra.mxu1 %v12579_v4  ;;  %v4777_v48 = vpop.f32.mrf.mxu0  ;;  %v18849_v47 = vpack.c.bf16 %v16040_v34, %v16038_v32  ;;  %v16283_v4 = vsel %vm5049_vm8, %v4773_v50, %v5177_v8  ;;  %v12588_v32 = vld [vmem:[%s17684_s3 + $0x8e8] sm:$0xff]  }
 0x611   :  { %vm5050_vm9 = vcmp.ge.f32.partialorder %v4776_v31, 0.0  ;;  %v5178_v9 = vmul.f32 0.01, %v4776_v31  ;;  %11779 = vmatprep.subr.bf16.mxu1 %v12581_v25 }
 0x612   :  { %v4780_v42 = vpop.f32.mrf.mxu0  ;;  %10170 = vmatmul.mubr.bf16.vlgmr.msra.gmra.mxu0 %v18849_v47 }
 0x613   :  { %v4781_v57 = vadd.f32 %v4780_v42, %v15135_v13  ;;  %11928 = vmatpush3.bf16.msra.mxu0 %v12582_v26  ;;  %10251 = vmatprep.mubr.bf16.mxu0 %v18850_v7  ;;  %v16285_v0 = vsel %vm5050_vm9, %v4776_v31, %v5178_v9  ;;  %v12587_v13 = vld [vmem:[%s17684_s3 + $0x518] sm:$0xff]   ;;  %v12591_v31 = vld [vmem:[%s17684_s3 + $0x510] sm:$0xff]   ;;  %v12592_v26 = vld [vmem:[%s17684_s3 + $0x8e0] sm:$0xff]  }
 0x614   :  { %11780 = vmatpush3.bf16.msra.mxu1 %v12583_v1  ;;  %v4782_v25 = vpop.f32.mrf.mxu0  ;;  %11929 = vmatprep.subr.bf16.mxu0 %v12584_v2  ;;  %v5394_v34 = vpack.c.bf16 %v16285_v0, %v16283_v4  ;;  %v12594_v42 = vld [vmem:[%s17684_s3 + $0x8a0] sm:$0xff]   ;;  %v12620_v4 = vld [vmem:[%s17684_s3 + $0x9e8] sm:$0xff]  }
 0x615   :  { %11781 = vmatprep.subr.bf16.mxu1 %v12585_v6  ;;  %v5179_v50 = vmul.f32 0.01, %v4781_v57  ;;  %vm5051_vm10 = vcmp.ge.f32.partialorder %v4781_v57, 0.0 }
 0x616   :  { %v4783_v5 = vpop.f32.mrf.mxu0 }
 0x617   :  { %v4784_v62 = vadd.f32 %v4783_v5, %v15142_v39  ;;  %11930 = vmatpush3.bf16.msra.mxu0 %v12586_v28  ;;  %v12593_v39 = vld [vmem:[%s17684_s3 + $0x548] sm:$0xff]   ;;  %v16311_v2 = vsel %vm5051_vm10, %v4781_v57, %v5179_v50  ;;  %v12596_v28 = vld [vmem:[%s17684_s3 + $0x8d8] sm:$0xff]   ;;  %v12599_v50 = vld [vmem:[%s17684_s3 + $0x500] sm:$0xff]  }
 0x618   :  { %11782 = vmatpush3.bf16.msra.mxu1 %v12587_v13  ;;  %v4785_v8 = vpop.f32.mrf.mxu0  ;;  %11931 = vmatprep.subr.bf16.mxu0 %v12588_v32  ;;  %v12595_v57 = vld [vmem:[%s17684_s3 + $0x508] sm:$0xff]  }
 0x619   :  { %vm5052_vm11 = vcmp.ge.f32.partialorder %v4784_v62, 0.0  ;;  %v5180_v48 = vmul.f32 0.01, %v4784_v62  ;;  %11783 = vmatprep.subr.bf16.mxu1 %v12589_v10  ;;  %v12598_v10 = vld [vmem:[%s17684_s3 + $0x898] sm:$0xff]  }
 0x61a   :  { %v4788_v1 = vpop.f32.mrf.mxu0 }
 0x61b   :  { %v16313_v9 = vsel %vm5052_vm11, %v4784_v62, %v5180_v48  ;;  %v4789_v6 = vadd.f32 %v4788_v1, %v15153_v61  ;;  %11932 = vmatpush3.bf16.msra.mxu0 %v12590_v63  ;;  %v12597_v61 = vld [vmem:[%s17684_s3 + $0x540] sm:$0xff]   ;;  %v12600_v62 = vld [vmem:[%s17684_s3 + $0x8d0] sm:$0xff]  }
 0x61c   :  { %v5395_v47 = vpack.c.bf16 %v16313_v9, %v16311_v2  ;;  %11784 = vmatpush3.bf16.msra.mxu1 %v12591_v31  ;;  %v4790_v7 = vpop.f32.mrf.mxu0  ;;  %11933 = vmatprep.subr.bf16.mxu0 %v12592_v26  ;;  %v12602_v26 = vld [vmem:[%s17684_s3 + $0x890] sm:$0xff]   ;;  %v12833_v2 = vld [vmem:[%s17684_s3 + $0xb68] sm:$0xff]   ;;  %v12834_v9 = vld [vmem:[%s17684_s3 + $0xf80] sm:$0xff]  }
 0x61d   :  { %11785 = vmatprep.subr.bf16.mxu1 %v12593_v39  ;;  %v5181_v13 = vmul.f32 0.01, %v4789_v6  ;;  %vm5053_vm12 = vcmp.ge.f32.partialorder %v4789_v6, 0.0 }
 0x61e   :  { %v4791_v25 = vpop.f32.mrf.mxu0 }
 0x61f   :  { %v4792_v32 = vadd.f32 %v4791_v25, %v15172_v49  ;;  %11934 = vmatpush3.bf16.msra.mxu0 %v12594_v42  ;;  %v12601_v49 = vld [vmem:[%s17684_s3 + $0x5f8] sm:$0xff]   ;;  %v16347_v48 = vsel %vm5053_vm12, %v4789_v6, %v5181_v13  ;;  %v12605_v6 = vld [vmem:[%s17684_s3 + $0x5f0] sm:$0xff]   ;;  %v18851_v13 = vpack.c.bf16 %v15742_v29, %v15740_v11  ;;  %v12608_v11 = vld [vmem:[%s17684_s3 + $0x8c0] sm:$0xff]  }
 0x620   :  { %11786 = vmatpush3.bf16.msra.mxu1 %v12595_v57  ;;  %v4793_v5 = vpop.f32.mrf.mxu0  ;;  %11935 = vmatprep.subr.bf16.mxu0 %v12596_v28  ;;  %v12603_v42 = vld [vmem:[%s17684_s3 + $0x5b8] sm:$0xff]  }
 0x621   :  { %vm5054_vm13 = vcmp.ge.f32.partialorder %v4792_v32, 0.0  ;;  %v5182_v63 = vmul.f32 0.01, %v4792_v32  ;;  %11787 = vmatprep.subr.bf16.mxu1 %v12597_v61 }
 0x622   :  { %v4796_v8 = vpop.f32.mrf.mxu0 }
 0x623   :  { %v4797_v31 = vadd.f32 %v4796_v8, %v15189_v3  ;;  %11936 = vmatpush3.bf16.msra.mxu0 %v12598_v10  ;;  %v16349_v39 = vsel %vm5054_vm13, %v4792_v32, %v5182_v63  ;;  %v12604_v3 = vld [vmem:[%s17684_s3 + $0x8c8] sm:$0xff]   ;;  %v18852_v10 = vpack.c.bf16 %v15858_v45, %v15856_v20 }
 0x624   :  { %11788 = vmatpush3.bf16.msra.mxu1 %v12599_v50  ;;  %v4798_v1 = vpop.f32.mrf.mxu0  ;;  %11937 = vmatprep.subr.bf16.mxu0 %v12600_v62  ;;  %v5396_v7 = vpack.c.bf16 %v16349_v39, %v16347_v48  ;;  %v12606_v32 = vld [vmem:[%s17684_s3 + $0x888] sm:$0xff]   ;;  %v12802_v48 = vld [vmem:[%s17684_s3 + $0xe80] sm:$0xff]  }
 0x625   :  { %11795 = vmatprep.subr.bf16.mxu1 %v12601_v49  ;;  %v5183_v28 = vmul.f32 0.01, %v4797_v31  ;;  %vm5055_vm14 = vcmp.ge.f32.partialorder %v4797_v31, 0.0  ;;  %v12609_v62 = vld [vmem:[%s17684_s3 + $0x5e8] sm:$0xff]   ;;  %v12610_v1 = vld [vmem:[%s17684_s3 + $0x880] sm:$0xff]  }
 0x626   :  { %v4799_v57 = vpop.f32.mrf.mxu0  ;;  %v12803_v39 = vld [vmem:[%s17684_s3 + $0xa28] sm:$0xff]  }
 0x627   :  { %v4800_v61 = vadd.f32 %v4799_v57, %v15203_v58  ;;  %v11657_v25 = vpop.f32.mrf.mxu1  ;;  %9965 = vmatmul.mubr.bf16.vlgmr.msra.gmra.mxu1 %v18851_v13  ;;  %11938 = vmatpush3.bf16.msra.mxu0 %v12602_v26  ;;  %v12607_v58 = vld [vmem:[%s17684_s3 + $0x5b0] sm:$0xff]   ;;  %v16381_v63 = vsel %vm5055_vm14, %v4797_v31, %v5183_v28  ;;  %v12611_v31 = vld [vmem:[%s17684_s3 + $0x5a8] sm:$0xff]   ;;  %v12613_v28 = vld [vmem:[%s17684_s3 + $0x5e0] sm:$0xff]  }
 0x628   :  { %11796 = vmatpush3.bf16.msra.mxu1 %v12603_v42  ;;  %10005 = vmatprep.mubr.bf16.mxu1 %v18852_v10  ;;  %v4801_v5 = vpop.f32.mrf.mxu0 }
 0x629   :  { %vm5056_vm15 = vcmp.ge.f32.partialorder %v4800_v61, 0.0  ;;  %v5184_v29 = vmul.f32 0.01, %v4800_v61  ;;  %v11658_v50 = vpop.f32.mrf.mxu1  ;;  %11939 = vmatprep.subr.bf16.mxu0 %v12604_v3  ;;  %11797 = vmatprep.subr.bf16.mxu1 %v12605_v6 }
 0x62a   :  { %v11659_v20 = vadd.f32 %v11658_v50, %v11657_v25  ;;  %v4804_v45 = vpop.f32.mrf.mxu0 }
 0x62b   :  { %v16383_v49 = vsel %vm5056_vm15, %v4800_v61, %v5184_v29  ;;  %v4805_v8 = vadd.f32 %v4804_v45, %v15214_v30  ;;  %v11660_v26 = vpop.f32.mrf.mxu1  ;;  %11940 = vmatpush3.bf16.msra.mxu0 %v12606_v32  ;;  %v12612_v30 = vld [vmem:[%s17684_s3 + $0x9f8] sm:$0xff]   ;;  %v12618_v45 = vld [vmem:[%s17684_s3 + $0x9b0] sm:$0xff]  }
 0x62c   :  { %v5397_v42 = vpack.c.bf16 %v16383_v49, %v16381_v63  ;;  %v16392_v3 = vadd.f32 %v11659_v20, %v16248_v33  ;;  %11798 = vmatpush3.bf16.msra.mxu1 %v12607_v58  ;;  %v4806_v6 = vpop.f32.mrf.mxu0  ;;  %11941 = vmatprep.subr.bf16.mxu0 %v12608_v11  ;;  %v12614_v32 = vld [vmem:[%s17684_s3 + $0x9b8] sm:$0xff]   ;;  %v12615_v58 = vld [vmem:[%s17684_s3 + $0x5a0] sm:$0xff]  }
 0x62d   :  { %v11661_v57 = vpop.f32.mrf.mxu1  ;;  %11799 = vmatprep.subr.bf16.mxu1 %v12609_v62  ;;  %v5185_v25 = vmul.f32 0.01, %v4805_v8  ;;  %vm5057_vm1 = vcmp.ge.f32.partialorder %v4805_v8, 0.0  ;;  %v12617_v29 = vld [vmem:[%s17684_s3 + $0x5d8] sm:$0xff]   ;;  %v18854_v62 = vld [vmem:[#allocation267_spill] sm:$0xff] }
 0x62e   :  { %v11662_v61 = vadd.f32 %v11661_v57, %v11660_v26  ;;  %v4807_v33 = vpop.f32.mrf.mxu0  ;;  %v12683_v49 = vld [vmem:[%s17684_s3 + $0x698] sm:$0xff]  }
 0x62f   :  { %v4808_v13 = vadd.f32 %v4807_v33, %v15233_v36  ;;  %11942 = vmatpush3.bf16.msra.mxu0 %v12610_v1  ;;  %v12616_v36 = vld [vmem:[%s17684_s3 + $0x9f0] sm:$0xff]   ;;  %v16430_v26 = vsel %vm5057_vm1, %v4805_v8, %v5185_v25 }
 0x630   :  { %v16408_v10 = vadd.f32 %v11662_v61, %v16261_v22  ;;  %11800 = vmatpush3.bf16.msra.mxu1 %v12611_v31  ;;  %v4809_v5 = vpop.f32.mrf.mxu0  ;;  %11971 = vmatprep.subr.bf16.mxu0 %v12612_v30  ;;  %v18853_v22 = vpack.c.bf16 %v16139_v46, %v16137_v15  ;;  %v12619_v46 = vld [vmem:[%s17684_s3 + $0x598] sm:$0xff]   ;;  %v12622_v30 = vld [vmem:[%s17684_s3 + $0x9a8] sm:$0xff]   ;;  %v12624_v61 = vld [vmem:[%s17684_s3 + $0x9e0] sm:$0xff]  }
 0x631   :  { %vm5058_vm2 = vcmp.ge.f32.partialorder %v4808_v13, 0.0  ;;  %v5186_v11 = vmul.f32 0.01, %v4808_v13  ;;  %11801 = vmatprep.subr.bf16.mxu1 %v12613_v28  ;;  %v12623_v28 = vld [vmem:[%s17684_s3 + $0x590] sm:$0xff]  }
 0x632   :  { %10252 = vmatmul.mubr.bf16.vlgmr.msra.gmra.mxu0 %v18853_v22  ;;  %v4812_v50 = vpop.f32.mrf.mxu0  ;;  %v12628_v22 = vld [vmem:[%s17684_s3 + $0x9d8] sm:$0xff]  }
 0x633   :  { %v4813_v20 = vadd.f32 %v4812_v50, %v18854_v62  ;;  %11972 = vmatpush3.bf16.msra.mxu0 %v12614_v32  ;;  %10333 = vmatprep.mubr.bf16.mxu0 %v5394_v34  ;;  %v16432_v1 = vsel %vm5058_vm2, %v4808_v13, %v5186_v11  ;;  %v12621_v34 = vld [vmem:[%s17684_s3 + $0x5d0] sm:$0xff]  }
 0x634   :  { %11802 = vmatpush3.bf16.msra.mxu1 %v12615_v58  ;;  %v4814_v15 = vpop.f32.mrf.mxu0  ;;  %11973 = vmatprep.subr.bf16.mxu0 %v12616_v36  ;;  %v5398_v0 = vpack.c.bf16 %v16432_v1, %v16430_v26  ;;  %v12626_v58 = vld [vmem:[%s17684_s3 + $0x9a0] sm:$0xff]   ;;  %v12653_v1 = vld [vmem:[%s17684_s3 + $0x650] sm:$0xff]  }
 0x635   :  { %11803 = vmatprep.subr.bf16.mxu1 %v12617_v29  ;;  %v5187_v6 = vmul.f32 0.01, %v4813_v20  ;;  %vm5059_vm3 = vcmp.ge.f32.partialorder %v4813_v20, 0.0  ;;  %v12627_v29 = vld [vmem:[%s17684_s3 + $0x588] sm:$0xff]  }
 0x636   :  { %v4815_v8 = vpop.f32.mrf.mxu0 }
 0x637   :  { %v4816_v31 = vadd.f32 %v4815_v8, %v15258_v23  ;;  %11974 = vmatpush3.bf16.msra.mxu0 %v12618_v45  ;;  %v12625_v23 = vld [vmem:[%s17684_s3 + $0x5c8] sm:$0xff]   ;;  %v16458_v13 = vsel %vm5059_vm3, %v4813_v20, %v5187_v6  ;;  %v12630_v45 = vld [vmem:[%s17684_s3 + $0x998] sm:$0xff]  }
 0x638   :  { %11804 = vmatpush3.bf16.msra.mxu1 %v12619_v46  ;;  %v4817_v57 = vpop.f32.mrf.mxu0  ;;  %11975 = vmatprep.subr.bf16.mxu0 %v12620_v4  ;;  %v12631_v46 = vld [vmem:[%s17684_s3 + $0x580] sm:$0xff]   ;;  %v12632_v4 = vld [vmem:[%s17684_s3 + $0x9d0] sm:$0xff]  }
 0x639   :  { %vm5060_vm4 = vcmp.ge.f32.partialorder %v4816_v31, 0.0  ;;  %v5188_v33 = vmul.f32 0.01, %v4816_v31  ;;  %11805 = vmatprep.subr.bf16.mxu1 %v12621_v34 }
 0x63a   :  { %v4820_v25 = vpop.f32.mrf.mxu0 }
 0x63b   :  { %v16460_v32 = vsel %vm5060_vm4, %v4816_v31, %v5188_v33  ;;  %v4821_v5 = vadd.f32 %v4820_v25, %v15272_v17  ;;  %11976 = vmatpush3.bf16.msra.mxu0 %v12622_v30  ;;  %v12629_v17 = vld [vmem:[%s17684_s3 + $0x5c0] sm:$0xff]   ;;  %v12634_v31 = vld [vmem:[%s17684_s3 + $0x990] sm:$0xff]  }
 0x63c   :  { %v5399_v36 = vpack.c.bf16 %v16460_v32, %v16458_v13  ;;  %11806 = vmatpush3.bf16.msra.mxu1 %v12623_v28  ;;  %v4822_v11 = vpop.f32.mrf.mxu0  ;;  %11977 = vmatprep.subr.bf16.mxu0 %v12624_v61  ;;  %v12635_v61 = vld [vmem:[%s17684_s3 + $0x638] sm:$0xff]   ;;  %v12851_v13 = vld [vmem:[%s17684_s3 + $0xc28] sm:$0xff]   ;;  %v12852_v32 = vld [vmem:[%s17684_s3 + $0xc60] sm:$0xff]  }
 0x63d   :  { %11807 = vmatprep.subr.bf16.mxu1 %v12625_v23  ;;  %v5189_v62 = vmul.f32 0.01, %v4821_v5  ;;  %vm5061_vm5 = vcmp.ge.f32.partialorder %v4821_v5, 0.0  ;;  %v12637_v23 = vld [vmem:[%s17684_s3 + $0x670] sm:$0xff]  }
 0x63e   :  { %v4823_v50 = vpop.f32.mrf.mxu0 }
 0x63f   :  { %v4824_v20 = vadd.f32 %v4823_v50, %v15291_v43  ;;  %11978 = vmatpush3.bf16.msra.mxu0 %v12626_v58  ;;  %v12633_v43 = vld [vmem:[%s17684_s3 + $0x678] sm:$0xff]   ;;  %v16494_v30 = vsel %vm5061_vm5, %v4821_v5, %v5189_v62  ;;  %v18855_v58 = vld [vmem:[#allocation127_spill] sm:$0xff]  ;;  %v18857_v50 = vpack.c.bf16 %v15912_v37, %v15910_v59 }
 0x640   :  { %11808 = vmatpush3.bf16.msra.mxu1 %v12627_v29  ;;  %v4825_v15 = vpop.f32.mrf.mxu0  ;;  %11979 = vmatprep.subr.bf16.mxu0 %v12628_v22  ;;  %v18856_v22 = vpack.c.bf16 %v15816_v54, %v15814_v40  ;;  %v12640_v40 = vld [vmem:[%s17684_s3 + $0x9c0] sm:$0xff]  }
 0x641   :  { %vm5062_vm6 = vcmp.ge.f32.partialorder %v4824_v20, 0.0  ;;  %v5190_v34 = vmul.f32 0.01, %v4824_v20  ;;  %11809 = vmatprep.subr.bf16.mxu1 %v12629_v17  ;;  %v12638_v17 = vld [vmem:[%s17684_s3 + $0x988] sm:$0xff]  }
 0x642   :  { %v4828_v8 = vpop.f32.mrf.mxu0  ;;  %v12641_v15 = vld [vmem:[%s17684_s3 + $0x668] sm:$0xff]  }
 0x643   :  { %v4829_v6 = vadd.f32 %v4828_v8, %v15302_v27  ;;  %11980 = vmatpush3.bf16.msra.mxu0 %v12630_v45  ;;  %v16496_v57 = vsel %vm5062_vm6, %v4824_v20, %v5190_v34  ;;  %v12636_v27 = vld [vmem:[%s17684_s3 + $0x9c8] sm:$0xff]   ;;  %v12639_v20 = vld [vmem:[%s17684_s3 + $0x630] sm:$0xff]   ;;  %v18858_v34 = vld [vmem:[#allocation269_spill] sm:$0xff] }
 0x644   :  { %11810 = vmatpush3.bf16.msra.mxu1 %v12631_v46  ;;  %v4830_v28 = vpop.f32.mrf.mxu0  ;;  %11981 = vmatprep.subr.bf16.mxu0 %v12632_v4  ;;  %v5400_v33 = vpack.c.bf16 %v16496_v57, %v16494_v30  ;;  %v12836_v30 = vld [vmem:[%s17684_s3 + $0xb60] sm:$0xff]  }
 0x645   :  { %11817 = vmatprep.subr.bf16.mxu1 %v12633_v43  ;;  %v5191_v5 = vmul.f32 0.01, %v4829_v6  ;;  %vm5063_vm0 = vcmp.ge.f32.partialorder %v4829_v6, 0.0  ;;  %v12837_v57 = vld [vmem:[%s17684_s3 + $0xb20] sm:$0xff]  }
 0x646   :  { %v4831_v25 = vpop.f32.mrf.mxu0 }
 0x647   :  { %v4832_v11 = vadd.f32 %v4831_v25, %v18855_v58  ;;  %v11679_v29 = vpop.f32.mrf.mxu1  ;;  %10006 = vmatmul.mubr.bf16.vlgmr.msra.gmra.mxu1 %v18856_v22  ;;  %11982 = vmatpush3.bf16.msra.mxu0 %v12634_v31  ;;  %v16528_v46 = vsel %vm5063_vm0, %v4829_v6, %v5191_v5  ;;  %v12642_v31 = vld [vmem:[%s17684_s3 + $0x980] sm:$0xff]   ;;  %v12643_v6 = vld [vmem:[%s17684_s3 + $0x628] sm:$0xff]   ;;  %v12646_v22 = vld [vmem:[%s17684_s3 + $0xab8] sm:$0xff]  }
 0x648   :  { %11818 = vmatpush3.bf16.msra.mxu1 %v12635_v61  ;;  %10046 = vmatprep.mubr.bf16.mxu1 %v18857_v50  ;;  %v4833_v62 = vpop.f32.mrf.mxu0  ;;  %v12645_v5 = vld [vmem:[%s17684_s3 + $0x660] sm:$0xff]  }
 0x649   :  { %vm5064_vm7 = vcmp.ge.f32.partialorder %v4832_v11, 0.0  ;;  %v5192_v54 = vmul.f32 0.01, %v4832_v11  ;;  %v11680_v45 = vpop.f32.mrf.mxu1  ;;  %11983 = vmatprep.subr.bf16.mxu0 %v12636_v27  ;;  %11819 = vmatprep.subr.bf16.mxu1 %v12637_v23  ;;  %v12644_v23 = vld [vmem:[%s17684_s3 + $0xaf8] sm:$0xff]   ;;  %v12647_v62 = vld [vmem:[%s17684_s3 + $0x620] sm:$0xff]  }
 0x64a   :  { %v11681_v59 = vadd.f32 %v11680_v45, %v11679_v29  ;;  %v4836_v37 = vpop.f32.mrf.mxu0 }
 0x64b   :  { %v16530_v4 = vsel %vm5064_vm7, %v4832_v11, %v5192_v54  ;;  %v4837_v43 = vadd.f32 %v4836_v37, %v18858_v34  ;;  %v11682_v8 = vpop.f32.mrf.mxu1  ;;  %11984 = vmatpush3.bf16.msra.mxu0 %v12638_v17  ;;  %v18859_v54 = vld [vmem:[#allocation21_spill] sm:$0xff] }
 0x64c   :  { %v5401_v28 = vpack.c.bf16 %v16530_v4, %v16528_v46  ;;  %v16539_v61 = vadd.f32 %v11681_v59, %v16392_v3  ;;  %11820 = vmatpush3.bf16.msra.mxu1 %v12639_v20  ;;  %v4838_v27 = vpop.f32.mrf.mxu0  ;;  %11985 = vmatprep.subr.bf16.mxu0 %v12640_v40  ;;  %v12649_v40 = vld [vmem:[%s17684_s3 + $0x658] sm:$0xff]  }
 0x64d   :  { %v11683_v25 = vpop.f32.mrf.mxu1  ;;  %11821 = vmatprep.subr.bf16.mxu1 %v12641_v15  ;;  %v5193_v11 = vmul.f32 0.01, %v4837_v43  ;;  %vm5065_vm8 = vcmp.ge.f32.partialorder %v4837_v43, 0.0  ;;  %v12650_v15 = vld [vmem:[%s17684_s3 + $0xab0] sm:$0xff]   ;;  %v12715_v4 = vld [vmem:[%s17684_s3 + $0x718] sm:$0xff]  }
 0x64e   :  { %v11684_v58 = vadd.f32 %v11683_v25, %v11682_v8  ;;  %v4839_v3 = vpop.f32.mrf.mxu0  ;;  %v12654_v8 = vld [vmem:[%s17684_s3 + $0xaa8] sm:$0xff]   ;;  %v12655_v27 = vld [vmem:[%s17684_s3 + $0x610] sm:$0xff]  }
 0x64f   :  { %v4840_v29 = vadd.f32 %v4839_v3, %v15352_v19  ;;  %11986 = vmatpush3.bf16.msra.mxu0 %v12642_v31  ;;  %v12648_v19 = vld [vmem:[%s17684_s3 + $0xaf0] sm:$0xff]   ;;  %v16577_v59 = vsel %vm5065_vm8, %v4837_v43, %v5193_v11  ;;  %v12658_v11 = vld [vmem:[%s17684_s3 + $0xaa0] sm:$0xff]  }
 0x650   :  { %v16555_v17 = vadd.f32 %v11684_v58, %v16408_v10  ;;  %11822 = vmatpush3.bf16.msra.mxu1 %v12643_v6  ;;  %v4841_v50 = vpop.f32.mrf.mxu0  ;;  %12015 = vmatprep.subr.bf16.mxu0 %v12644_v23  ;;  %v12656_v6 = vld [vmem:[%s17684_s3 + $0xae0] sm:$0xff]  }
 0x651   :  { %vm5066_vm9 = vcmp.ge.f32.partialorder %v4840_v29, 0.0  ;;  %v5194_v20 = vmul.f32 0.01, %v4840_v29  ;;  %11823 = vmatprep.subr.bf16.mxu1 %v12645_v5  ;;  %v12659_v50 = vld [vmem:[%s17684_s3 + $0x608] sm:$0xff]  }
 0x652   :  { %10334 = vmatmul.mubr.bf16.vlgmr.msra.gmra.mxu0 %v5393_v56  ;;  %v4844_v10 = vpop.f32.mrf.mxu0  ;;  %v12652_v56 = vld [vmem:[%s17684_s3 + $0xae8] sm:$0xff]  }
 0x653   :  { %v4845_v45 = vadd.f32 %v4844_v10, %v18859_v54  ;;  %12016 = vmatpush3.bf16.msra.mxu0 %v12646_v22  ;;  %10415 = vmatprep.mubr.bf16.mxu0 %v5398_v0  ;;  %v16579_v37 = vsel %vm5066_vm9, %v4840_v29, %v5194_v20  ;;  %v12662_v10 = vld [vmem:[%s17684_s3 + $0xa98] sm:$0xff]  }
 0x654   :  { %11824 = vmatpush3.bf16.msra.mxu1 %v12647_v62  ;;  %v4846_v21 = vpop.f32.mrf.mxu0  ;;  %12017 = vmatprep.subr.bf16.mxu0 %v12648_v19  ;;  %v5402_v26 = vpack.c.bf16 %v16579_v37, %v16577_v59  ;;  %v12660_v62 = vld [vmem:[%s17684_s3 + $0xad8] sm:$0xff]   ;;  %v12685_v37 = vld [vmem:[%s17684_s3 + $0x6d0] sm:$0xff]  }
 0x655   :  { %11825 = vmatprep.subr.bf16.mxu1 %v12649_v40  ;;  %v5195_v34 = vmul.f32 0.01, %v4845_v45  ;;  %vm5067_vm10 = vcmp.ge.f32.partialorder %v4845_v45, 0.0 }
 0x656   :  { %v4847_v0 = vpop.f32.mrf.mxu0 }
 0x657   :  { %v4848_v43 = vadd.f32 %v4847_v0, %v15381_v53  ;;  %12018 = vmatpush3.bf16.msra.mxu0 %v12650_v15  ;;  %v12657_v53 = vld [vmem:[%s17684_s3 + $0x648] sm:$0xff]   ;;  %v16605_v5 = vsel %vm5067_vm10, %v4845_v45, %v5195_v34  ;;  %v12663_v45 = vld [vmem:[%s17684_s3 + $0x600] sm:$0xff]   ;;  %v12664_v15 = vld [vmem:[%s17684_s3 + $0xad0] sm:$0xff]  }
 0x658   :  { %11826 = vmatpush3.bf16.msra.mxu1 %v12651_v16  ;;  %v4849_v31 = vpop.f32.mrf.mxu0  ;;  %12019 = vmatprep.subr.bf16.mxu0 %v12652_v56  ;;  %v18860_v56 = vld [vmem:[#allocation22_spill] sm:$0xff]  ;;  %v12666_v0 = vld [vmem:[%s17684_s3 + $0xa90] sm:$0xff]  }
 0x659   :  { %vm5068_vm11 = vcmp.ge.f32.partialorder %v4848_v43, 0.0  ;;  %v5196_v23 = vmul.f32 0.01, %v4848_v43  ;;  %11827 = vmatprep.subr.bf16.mxu1 %v12653_v1  ;;  %v12667_v31 = vld [vmem:[%s17684_s3 + $0x6b8] sm:$0xff]  }
 0x65a   :  { %v4852_v25 = vpop.f32.mrf.mxu0 }
 0x65b   :  { %v16607_v58 = vsel %vm5068_vm11, %v4848_v43, %v5196_v23  ;;  %v4853_v3 = vadd.f32 %v4852_v25, %v15397_v41  ;;  %12020 = vmatpush3.bf16.msra.mxu0 %v12654_v8  ;;  %v12661_v41 = vld [vmem:[%s17684_s3 + $0x640] sm:$0xff]   ;;  %v12669_v23 = vld [vmem:[%s17684_s3 + $0x6f0] sm:$0xff]  }
 0x65c   :  { %v5403_v29 = vpack.c.bf16 %v16607_v58, %v16605_v5  ;;  %11828 = vmatpush3.bf16.msra.mxu1 %v12655_v27  ;;  %v4854_v22 = vpop.f32.mrf.mxu0  ;;  %12021 = vmatprep.subr.bf16.mxu0 %v12656_v6  ;;  %v12668_v6 = vld [vmem:[%s17684_s3 + $0xac8] sm:$0xff]   ;;  %v12868_v58 = vld [vmem:[%s17684_s3 + $0xd60] sm:$0xff]  }
 0x65d   :  { %11829 = vmatprep.subr.bf16.mxu1 %v12657_v53  ;;  %v5197_v20 = vmul.f32 0.01, %v4853_v3  ;;  %vm5069_vm12 = vcmp.ge.f32.partialorder %v4853_v3, 0.0  ;;  %v12867_v5 = vld [vmem:[%s17684_s3 + $0xd28] sm:$0xff]  }
 0x65e   :  { %v4855_v19 = vpop.f32.mrf.mxu0 }
 0x65f   :  { %v4856_v40 = vadd.f32 %v4855_v19, %v15419_v18  ;;  %12022 = vmatpush3.bf16.msra.mxu0 %v12658_v11  ;;  %v12665_v18 = vld [vmem:[%s17684_s3 + $0x6f8] sm:$0xff]   ;;  %v16641_v34 = vsel %vm5069_vm12, %v4853_v3, %v5197_v20  ;;  %v18861_v3 = vld [vmem:[#allocation130_spill] sm:$0xff]  ;;  %v12671_v20 = vld [vmem:[%s17684_s3 + $0x6b0] sm:$0xff]  }
 0x660   :  { %11830 = vmatpush3.bf16.msra.mxu1 %v12659_v50  ;;  %v4857_v54 = vpop.f32.mrf.mxu0  ;;  %12023 = vmatprep.subr.bf16.mxu0 %v12660_v62  ;;  %v18862_v50 = vpack.c.bf16 %v15886_v14, %v15884_v51  ;;  %v12670_v62 = vld [vmem:[%s17684_s3 + $0xa88] sm:$0xff]   ;;  %v12672_v51 = vld [vmem:[%s17684_s3 + $0xac0] sm:$0xff]  }
 0x661   :  { %vm5070_vm13 = vcmp.ge.f32.partialorder %v4856_v40, 0.0  ;;  %v5198_v21 = vmul.f32 0.01, %v4856_v40  ;;  %11831 = vmatprep.subr.bf16.mxu1 %v12661_v41  ;;  %v18863_v41 = vpack.c.bf16 %v15966_v24, %v15964_v60 }
 0x662   :  { %v4860_v16 = vpop.f32.mrf.mxu0 }
 0x663   :  { %v4861_v1 = vadd.f32 %v4860_v16, %v18860_v56  ;;  %12024 = vmatpush3.bf16.msra.mxu0 %v12662_v10  ;;  %v16643_v43 = vsel %vm5070_vm13, %v4856_v40, %v5198_v21  ;;  %v12673_v10 = vld [vmem:[%s17684_s3 + $0x6e8] sm:$0xff]   ;;  %v12674_v16 = vld [vmem:[%s17684_s3 + $0xa80] sm:$0xff]  }
 0x664   :  { %11832 = vmatpush3.bf16.msra.mxu1 %v12663_v45  ;;  %v4862_v8 = vpop.f32.mrf.mxu0  ;;  %12025 = vmatprep.subr.bf16.mxu0 %v12664_v15  ;;  %v5404_v27 = vpack.c.bf16 %v16643_v43, %v16641_v34  ;;  %v18864_v15 = vld [vmem:[#allocation271_spill] sm:$0xff]  ;;  %v12854_v34 = vld [vmem:[%s17684_s3 + $0xc58] sm:$0xff]  }
 0x665   :  { %11839 = vmatprep.subr.bf16.mxu1 %v12665_v18  ;;  %v5199_v25 = vmul.f32 0.01, %v4861_v1  ;;  %vm5071_vm14 = vcmp.ge.f32.partialorder %v4861_v1, 0.0  ;;  %v12855_v43 = vld [vmem:[%s17684_s3 + $0xc18] sm:$0xff]  }
 0x666   :  { %v4863_v53 = vpop.f32.mrf.mxu0 }
 0x667   :  { %v4864_v11 = vadd.f32 %v4863_v53, %v18861_v3  ;;  %v11701_v22 = vpop.f32.mrf.mxu1  ;;  %10047 = vmatmul.mubr.bf16.vlgmr.msra.gmra.mxu1 %v18862_v50  ;;  %12026 = vmatpush3.bf16.msra.mxu0 %v12666_v0  ;;  %v16675_v54 = vsel %vm5071_vm14, %v4861_v1, %v5199_v25  ;;  %v12675_v1 = vld [vmem:[%s17684_s3 + $0x6a8] sm:$0xff]  }
 0x668   :  { %11840 = vmatpush3.bf16.msra.mxu1 %v12667_v31  ;;  %10087 = vmatprep.mubr.bf16.mxu1 %v18863_v41  ;;  %v4865_v19 = vpop.f32.mrf.mxu0  ;;  %v12676_v31 = vld [vmem:[%s17684_s3 + $0xbf8] sm:$0xff]  }
 0x669   :  { %vm5072_vm15 = vcmp.ge.f32.partialorder %v4864_v11, 0.0  ;;  %v5200_v14 = vmul.f32 0.01, %v4864_v11  ;;  %v11702_v40 = vpop.f32.mrf.mxu1  ;;  %12027 = vmatprep.subr.bf16.mxu0 %v12668_v6  ;;  %11841 = vmatprep.subr.bf16.mxu1 %v12669_v23  ;;  %v12677_v23 = vld [vmem:[%s17684_s3 + $0x6e0] sm:$0xff]   ;;  %v12681_v19 = vld [vmem:[%s17684_s3 + $0x6d8] sm:$0xff]  }
 0x66a   :  { %v11703_v60 = vadd.f32 %v11702_v40, %v11701_v22  ;;  %v4868_v24 = vpop.f32.mrf.mxu0 }
 0x66b   :  { %v16677_v45 = vsel %vm5072_vm15, %v4864_v11, %v5200_v14  ;;  %v4869_v21 = vadd.f32 %v4868_v24, %v18864_v15  ;;  %v11704_v18 = vpop.f32.mrf.mxu1  ;;  %12028 = vmatpush3.bf16.msra.mxu0 %v12670_v62  ;;  %v12678_v11 = vld [vmem:[%s17684_s3 + $0xbb8] sm:$0xff]   ;;  %v12679_v62 = vld [vmem:[%s17684_s3 + $0x6a0] sm:$0xff]   ;;  %v12682_v14 = vld [vmem:[%s17684_s3 + $0xbb0] sm:$0xff]  }
 0x66c   :  { %v5405_v56 = vpack.c.bf16 %v16677_v45, %v16675_v54  ;;  %v16686_v0 = vadd.f32 %v11703_v60, %v16539_v61  ;;  %11842 = vmatpush3.bf16.msra.mxu1 %v12671_v20  ;;  %v4870_v8 = vpop.f32.mrf.mxu0  ;;  %12029 = vmatprep.subr.bf16.mxu0 %v12672_v51  ;;  %v18865_v20 = vld [vmem:[#allocation131_spill] sm:$0xff]  ;;  %v12747_v45 = vld [vmem:[%s17684_s3 + $0x818] sm:$0xff]  }
 0x66d   :  { %v11705_v6 = vpop.f32.mrf.mxu1  ;;  %11843 = vmatprep.subr.bf16.mxu1 %v12673_v10  ;;  %v5201_v25 = vmul.f32 0.01, %v4869_v21  ;;  %vm5073_vm1 = vcmp.ge.f32.partialorder %v4869_v21, 0.0  ;;  %v12686_v15 = vld [vmem:[%s17684_s3 + $0xba8] sm:$0xff]  }
 0x66e   :  { %v11706_v53 = vadd.f32 %v11705_v6, %v11704_v18  ;;  %v4871_v61 = vpop.f32.mrf.mxu0  ;;  %v12687_v18 = vld [vmem:[%s17684_s3 + $0x690] sm:$0xff]  }
 0x66f   :  { %v4872_v3 = vadd.f32 %v4871_v61, %v15486_v35  ;;  %12030 = vmatpush3.bf16.msra.mxu0 %v12674_v16  ;;  %v12680_v35 = vld [vmem:[%s17684_s3 + $0xbf0] sm:$0xff]   ;;  %v16724_v40 = vsel %vm5073_vm1, %v4869_v21, %v5201_v25  ;;  %v12688_v16 = vld [vmem:[%s17684_s3 + $0xbe0] sm:$0xff]  }
 0x670   :  { %v16702_v22 = vadd.f32 %v11706_v53, %v16555_v17  ;;  %11844 = vmatpush3.bf16.msra.mxu1 %v12675_v1  ;;  %v4873_v50 = vpop.f32.mrf.mxu0  ;;  %12059 = vmatprep.subr.bf16.mxu0 %v12676_v31  ;;  %v12690_v53 = vld [vmem:[%s17684_s3 + $0xba0] sm:$0xff]  }
 0x671   :  { %vm5074_vm2 = vcmp.ge.f32.partialorder %v4872_v3, 0.0  ;;  %v5202_v41 = vmul.f32 0.01, %v4872_v3  ;;  %11845 = vmatprep.subr.bf16.mxu1 %v12677_v23 }
 0x672   :  { %10416 = vmatmul.mubr.bf16.vlgmr.msra.gmra.mxu0 %v5397_v42  ;;  %v4876_v17 = vpop.f32.mrf.mxu0  ;;  %v12684_v42 = vld [vmem:[%s17684_s3 + $0xbe8] sm:$0xff]  }
 0x673   :  { %v4877_v51 = vadd.f32 %v4876_v17, %v18865_v20  ;;  %12060 = vmatpush3.bf16.msra.mxu0 %v12678_v11  ;;  %10497 = vmatprep.mubr.bf16.mxu0 %v5402_v26  ;;  %v16726_v10 = vsel %vm5074_vm2, %v4872_v3, %v5202_v41  ;;  %v12691_v3 = vld [vmem:[%s17684_s3 + $0x688] sm:$0xff]   ;;  %v12692_v11 = vld [vmem:[%s17684_s3 + $0xbd8] sm:$0xff]   ;;  %v12695_v17 = vld [vmem:[%s17684_s3 + $0x680] sm:$0xff]  }
 0x674   :  { %11846 = vmatpush3.bf16.msra.mxu1 %v12679_v62  ;;  %v4878_v63 = vpop.f32.mrf.mxu0  ;;  %12061 = vmatprep.subr.bf16.mxu0 %v12680_v35  ;;  %v5406_v59 = vpack.c.bf16 %v16726_v10, %v16724_v40  ;;  %v12694_v41 = vld [vmem:[%s17684_s3 + $0xb98] sm:$0xff]   ;;  %v12696_v20 = vld [vmem:[%s17684_s3 + $0xbd0] sm:$0xff]  }
 0x675   :  { %11847 = vmatprep.subr.bf16.mxu1 %v12681_v19  ;;  %v5203_v60 = vmul.f32 0.01, %v4877_v51  ;;  %vm5075_vm3 = vcmp.ge.f32.partialorder %v4877_v51, 0.0  ;;  %v18866_v63 = vld [vmem:[#allocation273_spill] sm:$0xff]  ;;  %v12717_v10 = vld [vmem:[%s17684_s3 + $0x750] sm:$0xff]  }
 0x676   :  { %v4879_v26 = vpop.f32.mrf.mxu0 }
 0x677   :  { %v4880_v24 = vadd.f32 %v4879_v26, %v15515_v38  ;;  %12062 = vmatpush3.bf16.msra.mxu0 %v12682_v14  ;;  %v12689_v38 = vld [vmem:[%s17684_s3 + $0x6c8] sm:$0xff]   ;;  %v16752_v31 = vsel %vm5075_vm3, %v4877_v51, %v5203_v60 }
 0x678   :  { %11848 = vmatpush3.bf16.msra.mxu1 %v12683_v49  ;;  %v4881_v21 = vpop.f32.mrf.mxu0  ;;  %12063 = vmatprep.subr.bf16.mxu0 %v12684_v42  ;;  %v12698_v42 = vld [vmem:[%s17684_s3 + $0xb90] sm:$0xff]  }
 0x679   :  { %vm5076_vm4 = vcmp.ge.f32.partialorder %v4880_v24, 0.0  ;;  %v5204_v8 = vmul.f32 0.01, %v4880_v24  ;;  %11849 = vmatprep.subr.bf16.mxu1 %v12685_v37  ;;  %v12700_v21 = vld [vmem:[%s17684_s3 + $0xbc8] sm:$0xff]  }
 0x67a   :  { %v4884_v1 = vpop.f32.mrf.mxu0 }
 0x67b   :  { %v16754_v6 = vsel %vm5076_vm4, %v4880_v24, %v5204_v8  ;;  %v4885_v23 = vadd.f32 %v4884_v1, %v15531_v44  ;;  %12064 = vmatpush3.bf16.msra.mxu0 %v12686_v15  ;;  %v12693_v44 = vld [vmem:[%s17684_s3 + $0x6c0] sm:$0xff]   ;;  %v12699_v24 = vld [vmem:[%s17684_s3 + $0x738] sm:$0xff]  }
 0x67c   :  { %v5407_v61 = vpack.c.bf16 %v16754_v6, %v16752_v31  ;;  %11850 = vmatpush3.bf16.msra.mxu1 %v12687_v18  ;;  %v4886_v25 = vpop.f32.mrf.mxu0  ;;  %12065 = vmatprep.subr.bf16.mxu0 %v12688_v16  ;;  %v12701_v18 = vld [vmem:[%s17684_s3 + $0x770] sm:$0xff]   ;;  %v12883_v31 = vld [vmem:[%s17684_s3 + $0xe28] sm:$0xff]   ;;  %v12884_v6 = vld [vmem:[%s17684_s3 + $0xe60] sm:$0xff]  }
 0x67d   :  { %11851 = vmatprep.subr.bf16.mxu1 %v12689_v38  ;;  %v5205_v62 = vmul.f32 0.01, %v4885_v23  ;;  %vm5077_vm5 = vcmp.ge.f32.partialorder %v4885_v23, 0.0  ;;  %v18867_v38 = vld [vmem:[#allocation23_spill] sm:$0xff] }
 0x67e   :  { %v4887_v50 = vpop.f32.mrf.mxu0 }
 0x67f   :  { %v4888_v35 = vadd.f32 %v4887_v50, %v15553_v52  ;;  %12066 = vmatpush3.bf16.msra.mxu0 %v12690_v53  ;;  %v12697_v52 = vld [vmem:[%s17684_s3 + $0x778] sm:$0xff]   ;;  %v16788_v37 = vsel %vm5077_vm5, %v4885_v23, %v5205_v62  ;;  %v18868_v53 = vld [vmem:[#allocation46_spill] sm:$0xff] }
 0x680   :  { %11852 = vmatpush3.bf16.msra.mxu1 %v12691_v3  ;;  %v4889_v19 = vpop.f32.mrf.mxu0  ;;  %12067 = vmatprep.subr.bf16.mxu0 %v12692_v11  ;;  %v18869_v25 = vpack.c.bf16 %v15940_v55, %v18868_v53  ;;  %v12702_v3 = vld [vmem:[%s17684_s3 + $0xb88] sm:$0xff]   ;;  %v12704_v55 = vld [vmem:[%s17684_s3 + $0xbc0] sm:$0xff]  }
 0x681   :  { %vm5078_vm6 = vcmp.ge.f32.partialorder %v4888_v35, 0.0  ;;  %v5206_v51 = vmul.f32 0.01, %v4888_v35  ;;  %11853 = vmatprep.subr.bf16.mxu1 %v12693_v44  ;;  %v18870_v11 = vld [vmem:[#allocation47_spill] sm:$0xff]  ;;  %v18871_v44 = vld [vmem:[#allocation150_spill] sm:$0xff] }
 0x682   :  { %v4892_v14 = vpop.f32.mrf.mxu0  ;;  %v18872_v50 = vpack.c.bf16 %v18870_v11, %v18871_v44  ;;  %v12710_v11 = vld [vmem:[%s17684_s3 + $0xcb8] sm:$0xff]  }
 0x683   :  { %v4893_v49 = vadd.f32 %v4892_v14, %v18866_v63  ;;  %12068 = vmatpush3.bf16.msra.mxu0 %v12694_v41  ;;  %v16790_v26 = vsel %vm5078_vm6, %v4888_v35, %v5206_v51  ;;  %v12703_v35 = vld [vmem:[%s17684_s3 + $0x730] sm:$0xff]  }
 0x684   :  { %11854 = vmatpush3.bf16.msra.mxu1 %v12695_v17  ;;  %v4894_v60 = vpop.f32.mrf.mxu0  ;;  %12069 = vmatprep.subr.bf16.mxu0 %v12696_v20  ;;  %v5408_v15 = vpack.c.bf16 %v16790_v26, %v16788_v37  ;;  %v12705_v17 = vld [vmem:[%s17684_s3 + $0x768] sm:$0xff]   ;;  %v18873_v63 = vld [vmem:[#allocation24_spill] sm:$0xff]  ;;  %v12870_v37 = vld [vmem:[%s17684_s3 + $0xd58] sm:$0xff]  }
 0x685   :  { %11861 = vmatprep.subr.bf16.mxu1 %v12697_v52  ;;  %v5207_v8 = vmul.f32 0.01, %v4893_v49  ;;  %vm5079_vm0 = vcmp.ge.f32.partialorder %v4893_v49, 0.0  ;;  %v12871_v26 = vld [vmem:[%s17684_s3 + $0xd18] sm:$0xff]  }
 0x686   :  { %v4895_v16 = vpop.f32.mrf.mxu0 }
 0x687   :  { %v4896_v1 = vadd.f32 %v4895_v16, %v18867_v38  ;;  %v11723_v23 = vpop.f32.mrf.mxu1  ;;  %10088 = vmatmul.mubr.bf16.vlgmr.msra.gmra.mxu1 %v18869_v25  ;;  %12070 = vmatpush3.bf16.msra.mxu0 %v12698_v42  ;;  %v16822_v52 = vsel %vm5079_vm0, %v4893_v49, %v5207_v8  ;;  %v12707_v49 = vld [vmem:[%s17684_s3 + $0x728] sm:$0xff]   ;;  %v12708_v8 = vld [vmem:[%s17684_s3 + $0xcf8] sm:$0xff]   ;;  %v18874_v25 = vld [vmem:[#allocation134_spill] sm:$0xff] }
 0x688   :  { %11862 = vmatpush3.bf16.msra.mxu1 %v12699_v24  ;;  %10128 = vmatprep.mubr.bf16.mxu1 %v18872_v50  ;;  %v4897_v62 = vpop.f32.mrf.mxu0  ;;  %v12706_v24 = vld [vmem:[%s17684_s3 + $0xb80] sm:$0xff]  }
 0x689   :  { %vm5080_vm7 = vcmp.ge.f32.partialorder %v4896_v1, 0.0  ;;  %v5208_v41 = vmul.f32 0.01, %v4896_v1  ;;  %v11724_v19 = vpop.f32.mrf.mxu1  ;;  %12071 = vmatprep.subr.bf16.mxu0 %v12700_v21  ;;  %11863 = vmatprep.subr.bf16.mxu1 %v12701_v18  ;;  %v12711_v62 = vld [vmem:[%s17684_s3 + $0x720] sm:$0xff]  }
 0x68a   :  { %v11725_v20 = vadd.f32 %v11724_v19, %v11723_v23  ;;  %v4900_v51 = vpop.f32.mrf.mxu0  ;;  %v18875_v19 = vld [vmem:[#allocation275_spill] sm:$0xff] }
 0x68b   :  { %v16824_v14 = vsel %vm5080_vm7, %v4896_v1, %v5208_v41  ;;  %v4901_v42 = vadd.f32 %v4900_v51, %v18873_v63  ;;  %v11726_v60 = vpop.f32.mrf.mxu1  ;;  %12072 = vmatpush3.bf16.msra.mxu0 %v12702_v3  ;;  %v12709_v1 = vld [vmem:[%s17684_s3 + $0x760] sm:$0xff]   ;;  %v12713_v41 = vld [vmem:[%s17684_s3 + $0x758] sm:$0xff]  }
 0x68c   :  { %v5409_v21 = vpack.c.bf16 %v16824_v14, %v16822_v52  ;;  %v16833_v18 = vadd.f32 %v11725_v20, %v16686_v0  ;;  %11864 = vmatpush3.bf16.msra.mxu1 %v12703_v35  ;;  %v4902_v16 = vpop.f32.mrf.mxu0  ;;  %12073 = vmatprep.subr.bf16.mxu0 %v12704_v55  ;;  %v12712_v35 = vld [vmem:[%s17684_s3 + $0xcf0] sm:$0xff]   ;;  %v12779_v52 = vld [vmem:[%s17684_s3 + $0x918] sm:$0xff]   ;;  %v12780_v14 = vld [vmem:[%s17684_s3 + $0xee8] sm:$0xff]  }
 0x68d   :  { %v11727_v38 = vpop.f32.mrf.mxu1  ;;  %11865 = vmatprep.subr.bf16.mxu1 %v12705_v17  ;;  %v5209_v53 = vmul.f32 0.01, %v4901_v42  ;;  %vm5081_vm8 = vcmp.ge.f32.partialorder %v4901_v42, 0.0  ;;  %v12714_v20 = vld [vmem:[%s17684_s3 + $0xcb0] sm:$0xff]   ;;  %v12718_v16 = vld [vmem:[%s17684_s3 + $0xca8] sm:$0xff]  }
 0x68e   :  { %v11728_v23 = vadd.f32 %v11727_v38, %v11726_v60  ;;  %v4903_v0 = vpop.f32.mrf.mxu0  ;;  %v18876_v60 = vld [vmem:[#allocation135_spill] sm:$0xff]  ;;  %v12720_v38 = vld [vmem:[%s17684_s3 + $0xce0] sm:$0xff]  }
 0x68f   :  { %v4904_v3 = vadd.f32 %v4903_v0, %v18874_v25  ;;  %12074 = vmatpush3.bf16.msra.mxu0 %v12706_v24  ;;  %v16871_v51 = vsel %vm5081_vm8, %v4901_v42, %v5209_v53 }
 0x690   :  { %v16849_v44 = vadd.f32 %v11728_v23, %v16702_v22  ;;  %11866 = vmatpush3.bf16.msra.mxu1 %v12707_v49  ;;  %v4905_v50 = vpop.f32.mrf.mxu0  ;;  %12103 = vmatprep.subr.bf16.mxu0 %v12708_v8  ;;  %v12719_v8 = vld [vmem:[%s17684_s3 + $0x710] sm:$0xff]   ;;  %v12721_v23 = vld [vmem:[%s17684_s3 + $0x748] sm:$0xff]  }
 0x691   :  { %vm5082_vm9 = vcmp.ge.f32.partialorder %v4904_v3, 0.0  ;;  %v5210_v55 = vmul.f32 0.01, %v4904_v3  ;;  %11867 = vmatprep.subr.bf16.mxu1 %v12709_v1  ;;  %v12722_v50 = vld [vmem:[%s17684_s3 + $0xca0] sm:$0xff]  }
 0x692   :  { %10498 = vmatmul.mubr.bf16.vlgmr.msra.gmra.mxu0 %v5401_v28  ;;  %v4908_v22 = vpop.f32.mrf.mxu0  ;;  %v12716_v28 = vld [vmem:[%s17684_s3 + $0xce8] sm:$0xff]  }
 0x693   :  { %v4909_v17 = vadd.f32 %v4908_v22, %v18875_v19  ;;  %12104 = vmatpush3.bf16.msra.mxu0 %v12710_v11  ;;  %10579 = vmatprep.mubr.bf16.mxu0 %v5406_v59  ;;  %v16873_v63 = vsel %vm5082_vm9, %v4904_v3, %v5210_v55  ;;  %v18877_v3 = vld [vmem:[#allocation34_spill] sm:$0xff]  ;;  %v12723_v55 = vld [vmem:[%s17684_s3 + $0x708] sm:$0xff]  }
 0x694   :  { %11868 = vmatpush3.bf16.msra.mxu1 %v12711_v62  ;;  %v4910_v46 = vpop.f32.mrf.mxu0  ;;  %12105 = vmatprep.subr.bf16.mxu0 %v12712_v35  ;;  %v5410_v40 = vpack.c.bf16 %v16873_v63, %v16871_v51  ;;  %v12725_v22 = vld [vmem:[%s17684_s3 + $0x740] sm:$0xff]   ;;  %v12749_v63 = vld [vmem:[%s17684_s3 + $0x850] sm:$0xff]  }
 0x695   :  { %11869 = vmatprep.subr.bf16.mxu1 %v12713_v41  ;;  %v5211_v42 = vmul.f32 0.01, %v4909_v17  ;;  %vm5083_vm10 = vcmp.ge.f32.partialorder %v4909_v17, 0.0  ;;  %v12724_v41 = vld [vmem:[%s17684_s3 + $0xcd8] sm:$0xff]   ;;  %v12770_v62 = vld [vmem:[%s17684_s3 + $0xd80] sm:$0xff]  }
 0x696   :  { %v4911_v59 = vpop.f32.mrf.mxu0 }
 0x697   :  { %v4912_v24 = vadd.f32 %v4911_v59, %v18876_v60  ;;  %12106 = vmatpush3.bf16.msra.mxu0 %v12714_v20  ;;  %v16899_v53 = vsel %vm5083_vm10, %v4909_v17, %v5211_v42  ;;  %v18878_v20 = vld [vmem:[#allocation25_spill] sm:$0xff]  ;;  %v12728_v59 = vld [vmem:[%s17684_s3 + $0xcd0] sm:$0xff]  }
 0x698   :  { %11870 = vmatpush3.bf16.msra.mxu1 %v12715_v4  ;;  %v4913_v49 = vpop.f32.mrf.mxu0  ;;  %12107 = vmatprep.subr.bf16.mxu0 %v12716_v28  ;;  %v12726_v4 = vld [vmem:[%s17684_s3 + $0xc98] sm:$0xff]  }
 0x699   :  { %vm5084_vm11 = vcmp.ge.f32.partialorder %v4912_v24, 0.0  ;;  %v5212_v1 = vmul.f32 0.01, %v4912_v24  ;;  %11871 = vmatprep.subr.bf16.mxu1 %v12717_v10  ;;  %v12727_v10 = vld [vmem:[%s17684_s3 + $0x700] sm:$0xff]   ;;  %v12729_v60 = vld [vmem:[%s17684_s3 + $0x878] sm:$0xff]  }
 0x69a   :  { %v4916_v0 = vpop.f32.mrf.mxu0 }
 0x69b   :  { %v16901_v25 = vsel %vm5084_vm11, %v4912_v24, %v5212_v1  ;;  %v4917_v11 = vadd.f32 %v4916_v0, %v18877_v3  ;;  %12108 = vmatpush3.bf16.msra.mxu0 %v12718_v16  ;;  %v18879_v16 = vld [vmem:[#allocation26_spill] sm:$0xff]  ;;  %v12731_v0 = vld [vmem:[%s17684_s3 + $0x838] sm:$0xff]  }
 0x69c   :  { %11872 = vmatpush3.bf16.msra.mxu1 %v12719_v8  ;;  %v4918_v35 = vpop.f32.mrf.mxu0  ;;  %12109 = vmatprep.subr.bf16.mxu0 %v12720_v38  ;;  %v12730_v8 = vld [vmem:[%s17684_s3 + $0xc90] sm:$0xff]  }
 0x69d   :  { %11873 = vmatprep.subr.bf16.mxu1 %v12721_v23  ;;  %v5213_v17 = vmul.f32 0.01, %v4917_v11  ;;  %vm5085_vm12 = vcmp.ge.f32.partialorder %v4917_v11, 0.0 }
 0x69e   :  { %v4919_v19 = vpop.f32.mrf.mxu0 }
 0x69f   :  { %v4920_v46 = vadd.f32 %v4919_v19, %v18878_v20  ;;  %12110 = vmatpush3.bf16.msra.mxu0 %v12722_v50  ;;  %v16935_v38 = vsel %vm5085_vm12, %v4917_v11, %v5213_v17  ;;  %v12732_v50 = vld [vmem:[%s17684_s3 + $0xcc8] sm:$0xff]   ;;  %v12733_v11 = vld [vmem:[%s17684_s3 + $0x870] sm:$0xff]  }
 0x6a0   :  { %11874 = vmatpush3.bf16.msra.mxu1 %v12723_v55  ;;  %v4921_v28 = vpop.f32.mrf.mxu0  ;;  %12111 = vmatprep.subr.bf16.mxu0 %v12724_v41  ;;  %v18880_v41 = vld [vmem:[#allocation138_spill] sm:$0xff]  ;;  %v18881_v17 = vld [vmem:[#allocation32_spill] sm:$0xff]  ;;  %v18882_v20 = vld [vmem:[#allocation31_spill] sm:$0xff] }
 0x6a1   :  { %vm5086_vm13 = vcmp.ge.f32.partialorder %v4920_v46, 0.0  ;;  %v5214_v42 = vmul.f32 0.01, %v4920_v46  ;;  %11875 = vmatprep.subr.bf16.mxu1 %v12725_v22  ;;  %v18884_v28 = vld [vmem:[#allocation36_spill] sm:$0xff] }
 0x6a2   :  { %v4924_v24 = vpop.f32.mrf.mxu0 }
 0x6a3   :  { %v4925_v49 = vadd.f32 %v4924_v24, %v18879_v16  ;;  %12112 = vmatpush3.bf16.msra.mxu0 %v12726_v4  ;;  %v16937_v1 = vsel %vm5086_vm13, %v4920_v46, %v5214_v42  ;;  %v18883_v46 = vpack.c.bf16 %v18881_v17, %v18882_v20  ;;  %v12734_v4 = vld [vmem:[%s17684_s3 + $0xc88] sm:$0xff]   ;;  %v12736_v24 = vld [vmem:[%s17684_s3 + $0xcc0] sm:$0xff]  }
 0x6a4   :  { %11876 = vmatpush3.bf16.msra.mxu1 %v12727_v10  ;;  %v4926_v23 = vpop.f32.mrf.mxu0  ;;  %12113 = vmatprep.subr.bf16.mxu0 %v12728_v59  ;;  %v5412_v3 = vpack.c.bf16 %v16937_v1, %v16935_v38  ;;  %v18885_v10 = vld [vmem:[#allocation33_spill] sm:$0xff]  ;;  %v18887_v20 = vld [vmem:[#allocation139_spill] sm:$0xff] }
 0x6a5   :  { %11905 = vmatprep.subr.bf16.mxu1 %v12729_v60  ;;  %v5215_v55 = vmul.f32 0.01, %v4925_v49  ;;  %vm5087_vm14 = vcmp.ge.f32.partialorder %v4925_v49, 0.0  ;;  %v18886_v59 = vpack.c.bf16 %v18884_v28, %v18885_v10  ;;  %v12735_v60 = vld [vmem:[%s17684_s3 + $0x830] sm:$0xff]   ;;  %v12737_v23 = vld [vmem:[%s17684_s3 + $0x868] sm:$0xff]   ;;  %v12738_v10 = vld [vmem:[%s17684_s3 + $0xc80] sm:$0xff]  }
 0x6a6   :  { %v4927_v35 = vpop.f32.mrf.mxu0  ;;  %v12886_v38 = vld [vmem:[%s17684_s3 + $0xe58] sm:$0xff]  }
 0x6a7   :  { %v4928_v22 = vadd.f32 %v4927_v35, %v18880_v41  ;;  %v11745_v19 = vpop.f32.mrf.mxu1  ;;  %10129 = vmatmul.mubr.bf16.vlgmr.msra.gmra.mxu1 %v18883_v46  ;;  %12114 = vmatpush3.bf16.msra.mxu0 %v12730_v8  ;;  %v16969_v41 = vsel %vm5087_vm14, %v4925_v49, %v5215_v55  ;;  %v12739_v49 = vld [vmem:[%s17684_s3 + $0x828] sm:$0xff]   ;;  %v12740_v55 = vld [vmem:[%s17684_s3 + $0xdf8] sm:$0xff]  }
 0x6a8   :  { %11906 = vmatpush3.bf16.msra.mxu1 %v12731_v0  ;;  %10210 = vmatprep.mubr.bf16.mxu1 %v18886_v59  ;;  %v4929_v42 = vpop.f32.mrf.mxu0  ;;  %v12887_v1 = vld [vmem:[%s17684_s3 + $0xe18] sm:$0xff]  }
 0x6a9   :  { %vm5088_vm15 = vcmp.ge.f32.partialorder %v4928_v22, 0.0  ;;  %v5216_v16 = vmul.f32 0.01, %v4928_v22  ;;  %v11746_v8 = vpop.f32.mrf.mxu1  ;;  %12115 = vmatprep.subr.bf16.mxu0 %v12732_v50  ;;  %11907 = vmatprep.subr.bf16.mxu1 %v12733_v11 }
 0x6aa   :  { %v11747_v0 = vadd.f32 %v11746_v8, %v11745_v19  ;;  %v4932_v35 = vpop.f32.mrf.mxu0 }
 0x6ab   :  { %v16971_v17 = vsel %vm5088_vm15, %v4928_v22, %v5216_v16  ;;  %v4933_v46 = vadd.f32 %v4932_v35, %v18887_v20  ;;  %v11748_v28 = vpop.f32.mrf.mxu1  ;;  %12116 = vmatpush3.bf16.msra.mxu0 %v12734_v4  ;;  %v12741_v4 = vld [vmem:[%s17684_s3 + $0x860] sm:$0xff]   ;;  %v12744_v35 = vld [vmem:[%s17684_s3 + $0xdf0] sm:$0xff]  }
 0x6ac   :  { %v5413_v50 = vpack.c.bf16 %v16971_v17, %v16969_v41  ;;  %v16980_v11 = vadd.f32 %v11747_v0, %v16833_v18  ;;  %11908 = vmatpush3.bf16.msra.mxu1 %v12735_v60  ;;  %v4934_v19 = vpop.f32.mrf.mxu0  ;;  %12117 = vmatprep.subr.bf16.mxu0 %v12736_v24  ;;  %v18888_v60 = vld [vmem:[#allocation27_spill] sm:$0xff]  ;;  %v12742_v24 = vld [vmem:[%s17684_s3 + $0xdb8] sm:$0xff]   ;;  %v12743_v0 = vld [vmem:[%s17684_s3 + $0x820] sm:$0xff]  }
 0x6ad   :  { %v11749_v22 = vpop.f32.mrf.mxu1  ;;  %11909 = vmatprep.subr.bf16.mxu1 %v12737_v23  ;;  %v5217_v42 = vmul.f32 0.01, %v4933_v46  ;;  %vm5089_vm1 = vcmp.ge.f32.partialorder %v4933_v46, 0.0  ;;  %v12813_v41 = vld [vmem:[%s17684_s3 + $0xa50] sm:$0xff]   ;;  %v12814_v17 = vld [vmem:[%s17684_s3 + $0xfa8] sm:$0xff]  }
 0x6ae   :  { %v11750_v59 = vadd.f32 %v11749_v22, %v11748_v28  ;;  %v4935_v18 = vpop.f32.mrf.mxu0  ;;  %v12745_v28 = vld [vmem:[%s17684_s3 + $0x858] sm:$0xff]  }
 0x6af   :  { %v4936_v16 = vadd.f32 %v4935_v18, %v18888_v60  ;;  %12118 = vmatpush3.bf16.msra.mxu0 %v12738_v10  ;;  %v18889_v10 = vld [vmem:[#allocation28_spill] sm:$0xff]  ;;  %v12750_v18 = vld [vmem:[%s17684_s3 + $0xda8] sm:$0xff]  }
 0x6b0   :  { %v16996_v8 = vadd.f32 %v11750_v59, %v16849_v44  ;;  %11910 = vmatpush3.bf16.msra.mxu1 %v12739_v49  ;;  %v4937_v23 = vpop.f32.mrf.mxu0  ;;  %12147 = vmatprep.subr.bf16.mxu0 %v12740_v55  ;;  %v12746_v49 = vld [vmem:[%s17684_s3 + $0xdb0] sm:$0xff]   ;;  %v17018_v55 = vsel %vm5089_vm1, %v4933_v46, %v5217_v42 }
 0x6b1   :  { %vm5090_vm2 = vcmp.ge.f32.partialorder %v4936_v16, 0.0  ;;  %v5218_v20 = vmul.f32 0.01, %v4936_v16  ;;  %11911 = vmatprep.subr.bf16.mxu1 %v12741_v4  ;;  %v18890_v4 = vld [vmem:[#allocation142_spill] sm:$0xff]  ;;  %v12751_v60 = vld [vmem:[%s17684_s3 + $0x810] sm:$0xff]   ;;  %v12753_v23 = vld [vmem:[%s17684_s3 + $0x848] sm:$0xff]  }
 0x6b2   :  { %10580 = vmatmul.mubr.bf16.vlgmr.msra.gmra.mxu0 %v5405_v56  ;;  %v4940_v44 = vpop.f32.mrf.mxu0  ;;  %v12748_v56 = vld [vmem:[%s17684_s3 + $0xde8] sm:$0xff]  }
 0x6b3   :  { %v4941_v19 = vadd.f32 %v4940_v44, %v18889_v10  ;;  %12148 = vmatpush3.bf16.msra.mxu0 %v12742_v24  ;;  %10661 = vmatprep.mubr.bf16.mxu0 %v5410_v40  ;;  %v17020_v22 = vsel %vm5090_vm2, %v4936_v16, %v5218_v20  ;;  %v12752_v16 = vld [vmem:[%s17684_s3 + $0xde0] sm:$0xff]  }
 0x6b4   :  { %11912 = vmatpush3.bf16.msra.mxu1 %v12743_v0  ;;  %v4942_v54 = vpop.f32.mrf.mxu0  ;;  %12149 = vmatprep.subr.bf16.mxu0 %v12744_v35  ;;  %v5414_v51 = vpack.c.bf16 %v17020_v22, %v17018_v55  ;;  %v12754_v10 = vld [vmem:[%s17684_s3 + $0xda0] sm:$0xff]   ;;  %v12781_v55 = vld [vmem:[%s17684_s3 + $0x950] sm:$0xff]   ;;  %v12782_v22 = vld [vmem:[%s17684_s3 + $0xea8] sm:$0xff]  }
 0x6b5   :  { %11913 = vmatprep.subr.bf16.mxu1 %v12745_v28  ;;  %v5219_v46 = vmul.f32 0.01, %v4941_v19  ;;  %vm5091_vm3 = vcmp.ge.f32.partialorder %v4941_v19, 0.0  ;;  %v18891_v28 = vld [vmem:[#allocation39_spill] sm:$0xff] }
 0x6b6   :  { %v4943_v40 = vpop.f32.mrf.mxu0 }
 0x6b7   :  { %v4944_v59 = vadd.f32 %v4943_v40, %v18890_v4  ;;  %12150 = vmatpush3.bf16.msra.mxu0 %v12746_v49  ;;  %v17046_v35 = vsel %vm5091_vm3, %v4941_v19, %v5219_v46  ;;  %v12755_v19 = vld [vmem:[%s17684_s3 + $0x808] sm:$0xff]  }
 0x6b8   :  { %11914 = vmatpush3.bf16.msra.mxu1 %v12747_v45  ;;  %v4945_v42 = vpop.f32.mrf.mxu0  ;;  %12151 = vmatprep.subr.bf16.mxu0 %v12748_v56  ;;  %v12756_v45 = vld [vmem:[%s17684_s3 + $0xdd8] sm:$0xff]   ;;  %v12757_v56 = vld [vmem:[%s17684_s3 + $0x840] sm:$0xff]   ;;  %v18892_v46 = vld [vmem:[#allocation143_spill] sm:$0xff] }
 0x6b9   :  { %vm5092_vm4 = vcmp.ge.f32.partialorder %v4944_v59, 0.0  ;;  %v5220_v24 = vmul.f32 0.01, %v4944_v59  ;;  %11915 = vmatprep.subr.bf16.mxu1 %v12749_v63  ;;  %v12759_v42 = vld [vmem:[%s17684_s3 + $0x800] sm:$0xff]  }
 0x6ba   :  { %v4948_v0 = vpop.f32.mrf.mxu0 }
 0x6bb   :  { %v17048_v20 = vsel %vm5092_vm4, %v4944_v59, %v5220_v24  ;;  %v4949_v44 = vadd.f32 %v4948_v0, %v18891_v28  ;;  %12152 = vmatpush3.bf16.msra.mxu0 %v12750_v18  ;;  %v12758_v59 = vld [vmem:[%s17684_s3 + $0xd98] sm:$0xff]  }
 0x6bc   :  { %11916 = vmatpush3.bf16.msra.mxu1 %v12751_v60  ;;  %v4950_v54 = vpop.f32.mrf.mxu0  ;;  %12153 = vmatprep.subr.bf16.mxu0 %v12752_v16  ;;  %v12760_v60 = vld [vmem:[%s17684_s3 + $0xdd0] sm:$0xff]   ;;  %v12761_v24 = vld [vmem:[%s17684_s3 + $0x978] sm:$0xff]  }
 0x6bd   :  { %11917 = vmatprep.subr.bf16.mxu1 %v12753_v23  ;;  %v5221_v40 = vmul.f32 0.01, %v4949_v44  ;;  %vm5093_vm5 = vcmp.ge.f32.partialorder %v4949_v44, 0.0  ;;  %v18893_v0 = vld [vmem:[#allocation29_spill] sm:$0xff] }
 0x6be   :  { %v4951_v63 = vpop.f32.mrf.mxu0 }
 0x6bf   :  { %v4952_v4 = vadd.f32 %v4951_v63, %v18892_v46  ;;  %12154 = vmatpush3.bf16.msra.mxu0 %v12754_v10  ;;  %v12762_v10 = vld [vmem:[%s17684_s3 + $0xd90] sm:$0xff]   ;;  %v17082_v54 = vsel %vm5093_vm5, %v4949_v44, %v5221_v40  ;;  %v12764_v46 = vld [vmem:[%s17684_s3 + $0xdc8] sm:$0xff]  }
 0x6c0   :  { %11918 = vmatpush3.bf16.msra.mxu1 %v12755_v19  ;;  %v4953_v18 = vpop.f32.mrf.mxu0  ;;  %12155 = vmatprep.subr.bf16.mxu0 %v12756_v45  ;;  %v12765_v44 = vld [vmem:[%s17684_s3 + $0x970] sm:$0xff]  }
 0x6c1   :  { %vm5094_vm6 = vcmp.ge.f32.partialorder %v4952_v4, 0.0  ;;  %v5222_v16 = vmul.f32 0.01, %v4952_v4  ;;  %11919 = vmatprep.subr.bf16.mxu1 %v12757_v56  ;;  %v12763_v56 = vld [vmem:[%s17684_s3 + $0x938] sm:$0xff]  }
 0x6c2   :  { %v4956_v23 = vpop.f32.mrf.mxu0 }
 0x6c3   :  { %v4957_v28 = vadd.f32 %v4956_v23, %v18893_v0  ;;  %12156 = vmatpush3.bf16.msra.mxu0 %v12758_v59  ;;  %v17084_v19 = vsel %vm5094_vm6, %v4952_v4, %v5222_v16  ;;  %v18894_v59 = vld [vmem:[#allocation30_spill] sm:$0xff]  ;;  %v18896_v16 = vld [vmem:[#allocation151_spill] sm:$0xff] }
 0x6c4   :  { %11920 = vmatpush3.bf16.msra.mxu1 %v12759_v42  ;;  %v4958_v45 = vpop.f32.mrf.mxu0  ;;  %12157 = vmatprep.subr.bf16.mxu0 %v12760_v60  ;;  %v18895_v60 = vld [vmem:[#allocation50_spill] sm:$0xff]  ;;  %v18898_v0 = vld [vmem:[#allocation155_spill] sm:$0xff] }
 0x6c5   :  { %11949 = vmatprep.subr.bf16.mxu1 %v12761_v24  ;;  %v5223_v4 = vmul.f32 0.01, %v4957_v28  ;;  %v18897_v23 = vpack.c.bf16 %v18895_v60, %v18896_v16  ;;  %v12766_v24 = vld [vmem:[%s17684_s3 + $0xd88] sm:$0xff]   ;;  %vm5095_vm0 = vcmp.ge.f32.partialorder %v4957_v28, 0.0  ;;  %v18899_v45 = vpack.c.bf16 %v16213_v12, %v18898_v0  ;;  %v18900_v0 = vld [vmem:[#allocation146_spill] sm:$0xff] }
 0x6c6   :  { %v4959_v40 = vpop.f32.mrf.mxu0 }
 0x6c7   :  { %v4960_v18 = vadd.f32 %v4959_v40, %v18894_v59  ;;  %v11767_v42 = vpop.f32.mrf.mxu1  ;;  %10211 = vmatmul.mubr.bf16.vlgmr.msra.gmra.mxu1 %v18897_v23  ;;  %12158 = vmatpush3.bf16.msra.mxu0 %v12762_v10  ;;  %v12767_v40 = vld [vmem:[%s17684_s3 + $0x930] sm:$0xff]   ;;  %v12768_v59 = vld [vmem:[%s17684_s3 + $0xdc0] sm:$0xff]  }
 0x6c8   :  { %11950 = vmatpush3.bf16.msra.mxu1 %v12763_v56  ;;  %10292 = vmatprep.mubr.bf16.mxu1 %v18899_v45  ;;  %v4961_v49 = vpop.f32.mrf.mxu0  ;;  %v12769_v56 = vld [vmem:[%s17684_s3 + $0x968] sm:$0xff]  }
 0x6c9   :  { %vm5096_vm7 = vcmp.ge.f32.partialorder %v4960_v18, 0.0  ;;  %v5224_v10 = vmul.f32 0.01, %v4960_v18  ;;  %v11768_v60 = vpop.f32.mrf.mxu1  ;;  %12159 = vmatprep.subr.bf16.mxu0 %v12764_v46  ;;  %11951 = vmatprep.subr.bf16.mxu1 %v12765_v44  ;;  %v17116_v49 = vsel %vm5095_vm0, %v4957_v28, %v5223_v4  ;;  %v12771_v28 = vld [vmem:[%s17684_s3 + $0x928] sm:$0xff]   ;;  %v12772_v4 = vld [vmem:[%s17684_s3 + $0xef8] sm:$0xff]  }
 0x6ca   :  { %v11769_v12 = vadd.f32 %v11768_v60, %v11767_v42  ;;  %v4964_v16 = vpop.f32.mrf.mxu0 }
 0x6cb   :  { %v17118_v23 = vsel %vm5096_vm7, %v4960_v18, %v5224_v10  ;;  %v4965_v45 = vadd.f32 %v4964_v16, %v18900_v0  ;;  %v11770_v63 = vpop.f32.mrf.mxu1  ;;  %12160 = vmatpush3.bf16.msra.mxu0 %v12766_v24  ;;  %v12773_v24 = vld [vmem:[%s17684_s3 + $0x960] sm:$0xff]   ;;  %v12776_v0 = vld [vmem:[%s17684_s3 + $0xef0] sm:$0xff]  }
 0x6cc   :  { %v5417_v46 = vpack.c.bf16 %v17118_v23, %v17116_v49  ;;  %v17127_v44 = vadd.f32 %v11769_v12, %v16980_v11  ;;  %11952 = vmatpush3.bf16.msra.mxu1 %v12767_v40  ;;  %v4966_v42 = vpop.f32.mrf.mxu0  ;;  %12161 = vmatprep.subr.bf16.mxu0 %v12768_v59  ;;  %v18901_v40 = vld [vmem:[#allocation147_spill] sm:$0xff]  ;;  %v12774_v59 = vld [vmem:[%s17684_s3 + $0xeb8] sm:$0xff]  }
 0x6cd   :  { %v11771_v18 = vpop.f32.mrf.mxu1  ;;  %11953 = vmatprep.subr.bf16.mxu1 %v12769_v56  ;;  %v5225_v60 = vmul.f32 0.01, %v4965_v45  ;;  %vm5097_vm8 = vcmp.ge.f32.partialorder %v4965_v45, 0.0  ;;  %v12777_v42 = vld [vmem:[%s17684_s3 + $0x958] sm:$0xff]   ;;  %v12842_v49 = vld [vmem:[%s17684_s3 + $0xb48] sm:$0xff]  }
 0x6ce   :  { %v11772_v10 = vadd.f32 %v11771_v18, %v11770_v63  ;;  %v4967_v11 = vpop.f32.mrf.mxu0  ;;  %v12775_v63 = vld [vmem:[%s17684_s3 + $0x920] sm:$0xff]   ;;  %v12785_v18 = vld [vmem:[%s17684_s3 + $0x948] sm:$0xff]  }
 0x6cf   :  { %v4968_v12 = vadd.f32 %v4967_v11, %v18901_v40  ;;  %12162 = vmatpush3.bf16.msra.mxu0 %v12770_v62  ;;  %v12788_v11 = vld [vmem:[%s17684_s3 + $0xed8] sm:$0xff]   ;;  %v12843_v23 = vld [vmem:[%s17684_s3 + $0xb08] sm:$0xff]  }
 0x6d0   :  { %v17143_v16 = vadd.f32 %v11772_v10, %v16996_v8  ;;  %11954 = vmatpush3.bf16.msra.mxu1 %v12771_v28  ;;  %v4969_v56 = vpop.f32.mrf.mxu0  ;;  %12191 = vmatprep.subr.bf16.mxu0 %v12772_v4  ;;  %v12778_v8 = vld [vmem:[%s17684_s3 + $0xeb0] sm:$0xff]   ;;  %v17163_v28 = vsel %vm5097_vm8, %v4965_v45, %v5225_v60  ;;  %v12784_v45 = vld [vmem:[%s17684_s3 + $0xee0] sm:$0xff]   ;;  %v12787_v10 = vld [vmem:[%s17684_s3 + $0x908] sm:$0xff]  }
 0x6d1   :  { %vm5098_vm9 = vcmp.ge.f32.partialorder %v4968_v12, 0.0  ;;  %v5226_v62 = vmul.f32 0.01, %v4968_v12  ;;  %11955 = vmatprep.subr.bf16.mxu1 %v12773_v24  ;;  %v12786_v24 = vld [vmem:[%s17684_s3 + $0xea0] sm:$0xff]   ;;  %v12790_v40 = vld [vmem:[%s17684_s3 + $0xe98] sm:$0xff]  }
 0x6d2   :  { %10662 = vmatmul.mubr.bf16.vlgmr.msra.gmra.mxu0 %v5409_v21  ;;  %v12789_v60 = vld [vmem:[%s17684_s3 + $0x940] sm:$0xff]   ;;  %v12793_v56 = vld [vmem:[%s17684_s3 + $0xa78] sm:$0xff]  }
 0x6d3   :  { %12192 = vmatpush3.bf16.msra.mxu0 %v12774_v59  ;;  %10743 = vmatprep.mubr.bf16.mxu0 %v5414_v51  ;;  %v17165_v4 = vsel %vm5098_vm9, %v4968_v12, %v5226_v62  ;;  %v12783_v51 = vld [vmem:[%s17684_s3 + $0x910] sm:$0xff]   ;;  %v12791_v12 = vld [vmem:[%s17684_s3 + $0x900] sm:$0xff]   ;;  %v12796_v62 = vld [vmem:[%s17684_s3 + $0xec8] sm:$0xff]  }
 0x6d4   :  { %11956 = vmatpush3.bf16.msra.mxu1 %v12775_v63  ;;  %12193 = vmatprep.subr.bf16.mxu0 %v12776_v0  ;;  %v5418_v21 = vpack.c.bf16 %v17165_v4, %v17163_v28  ;;  %v12792_v59 = vld [vmem:[%s17684_s3 + $0xed0] sm:$0xff]   ;;  %v12795_v0 = vld [vmem:[%s17684_s3 + $0xa38] sm:$0xff]   ;;  %v18903_v28 = vld [vmem:[#allocation154_spill] sm:$0xff] }
 0x6d5   :  { %11957 = vmatprep.subr.bf16.mxu1 %v12777_v42  ;;  %v12794_v63 = vld [vmem:[%s17684_s3 + $0xe90] sm:$0xff]  }
 0x6d6   :  { %v12797_v42 = vld [vmem:[%s17684_s3 + $0xa70] sm:$0xff]  }
 0x6d7   :  { %12194 = vmatpush3.bf16.msra.mxu0 %v12778_v8  ;;  %v18902_v8 = vld [vmem:[#allocation51_spill] sm:$0xff] }
 0x6d8   :  { %11958 = vmatpush3.bf16.msra.mxu1 %v12779_v52  ;;  %12195 = vmatprep.subr.bf16.mxu0 %v12780_v14  ;;  %v18904_v4 = vpack.c.bf16 %v18902_v8, %v18903_v28  ;;  %v12798_v52 = vld [vmem:[%s17684_s3 + $0xe88] sm:$0xff]   ;;  %v12799_v14 = vld [vmem:[%s17684_s3 + $0xa30] sm:$0xff]   ;;  %v12825_v28 = vld [vmem:[%s17684_s3 + $0xb78] sm:$0xff]  }
 0x6d9   :  { %11959 = vmatprep.subr.bf16.mxu1 %v12781_v55  ;;  %v12800_v55 = vld [vmem:[%s17684_s3 + $0xec0] sm:$0xff]   ;;  %v12824_v8 = vld [vmem:[%s17684_s3 + $0xfd0] sm:$0xff]  }
 0x6db   :  { %12196 = vmatpush3.bf16.msra.mxu0 %v12782_v22  ;;  %v12801_v22 = vld [vmem:[%s17684_s3 + $0xa68] sm:$0xff]  }
 0x6dc   :  { %11960 = vmatpush3.bf16.msra.mxu1 %v12783_v51  ;;  %12197 = vmatprep.subr.bf16.mxu0 %v12784_v45  ;;  %v12805_v51 = vld [vmem:[%s17684_s3 + $0xa60] sm:$0xff]   ;;  %v12806_v45 = vld [vmem:[%s17684_s3 + $0xfb8] sm:$0xff]  }
 0x6dd   :  { %11961 = vmatprep.subr.bf16.mxu1 %v12785_v18  ;;  %v12807_v18 = vld [vmem:[%s17684_s3 + $0xa20] sm:$0xff]  }
 0x6df   :  { %12198 = vmatpush3.bf16.msra.mxu0 %v12786_v24  ;;  %v12808_v24 = vld [vmem:[%s17684_s3 + $0xff0] sm:$0xff]  }
 0x6e0   :  { %11962 = vmatpush3.bf16.msra.mxu1 %v12787_v10  ;;  %12199 = vmatprep.subr.bf16.mxu0 %v12788_v11  ;;  %v12809_v10 = vld [vmem:[%s17684_s3 + $0xa58] sm:$0xff]   ;;  %v12810_v11 = vld [vmem:[%s17684_s3 + $0xfb0] sm:$0xff]  }
 0x6e1   :  { %11963 = vmatprep.subr.bf16.mxu1 %v12789_v60  ;;  %v12811_v60 = vld [vmem:[%s17684_s3 + $0xa18] sm:$0xff]  }
 0x6e3   :  { %12200 = vmatpush3.bf16.msra.mxu0 %v12790_v40  ;;  %v12812_v40 = vld [vmem:[%s17684_s3 + $0xfe8] sm:$0xff]  }
 0x6e4   :  { %11964 = vmatpush3.bf16.msra.mxu1 %v12791_v12  ;;  %12201 = vmatprep.subr.bf16.mxu0 %v12792_v59  ;;  %v12817_v12 = vld [vmem:[%s17684_s3 + $0xa48] sm:$0xff]   ;;  %v12818_v59 = vld [vmem:[%s17684_s3 + $0xfa0] sm:$0xff]  }
 0x6e5   :  { %11993 = vmatprep.subr.bf16.mxu1 %v12793_v56  ;;  %v12819_v56 = vld [vmem:[%s17684_s3 + $0xa08] sm:$0xff]  }
 0x6e7   :  { %10293 = vmatmul.mubr.bf16.vlgmr.msra.gmra.mxu1 %v18904_v4  ;;  %12202 = vmatpush3.bf16.msra.mxu0 %v12794_v63  ;;  %v12820_v63 = vld [vmem:[%s17684_s3 + $0xfd8] sm:$0xff]   ;;  %v12826_v4 = vld [vmem:[%s17684_s3 + $0xf90] sm:$0xff]  }
 0x6e8   :  { %11994 = vmatpush3.bf16.msra.mxu1 %v12795_v0  ;;  %10374 = vmatprep.mubr.bf16.mxu1 %v5396_v7  ;;  %v12804_v7 = vld [vmem:[%s17684_s3 + $0xff8] sm:$0xff]   ;;  %v12821_v0 = vld [vmem:[%s17684_s3 + $0xa40] sm:$0xff]  }
 0x6e9   :  { %12203 = vmatprep.subr.bf16.mxu0 %v12796_v62  ;;  %11995 = vmatprep.subr.bf16.mxu1 %v12797_v42  ;;  %v12822_v62 = vld [vmem:[%s17684_s3 + $0xf98] sm:$0xff]   ;;  %v12823_v42 = vld [vmem:[%s17684_s3 + $0xa00] sm:$0xff]  }
 0x6eb   :  { %12204 = vmatpush3.bf16.msra.mxu0 %v12798_v52  ;;  %v12827_v52 = vld [vmem:[%s17684_s3 + $0xb38] sm:$0xff]  }
 0x6ec   :  { %11996 = vmatpush3.bf16.msra.mxu1 %v12799_v14  ;;  %12205 = vmatprep.subr.bf16.mxu0 %v12800_v55  ;;  %v12828_v14 = vld [vmem:[%s17684_s3 + $0xfc8] sm:$0xff]   ;;  %v12829_v55 = vld [vmem:[%s17684_s3 + $0xb70] sm:$0xff]  }
 0x6ed   :  { %11997 = vmatprep.subr.bf16.mxu1 %v12801_v22  ;;  %v12830_v22 = vld [vmem:[%s17684_s3 + $0xf88] sm:$0xff]  }
 0x6ef   :  { %12206 = vmatpush3.bf16.msra.mxu0 %v12802_v48  ;;  %v12831_v48 = vld [vmem:[%s17684_s3 + $0xb30] sm:$0xff]  }
 0x6f0   :  { %11998 = vmatpush3.bf16.msra.mxu1 %v12803_v39  ;;  %12235 = vmatprep.subr.bf16.mxu0 %v12804_v7  ;;  %v12832_v39 = vld [vmem:[%s17684_s3 + $0xfc0] sm:$0xff]   ;;  %v12839_v7 = vld [vmem:[%s17684_s3 + $0xb18] sm:$0xff]  }
 0x6f1   :  { %11999 = vmatprep.subr.bf16.mxu1 %v12805_v51  ;;  %v12840_v51 = vld [vmem:[%s17684_s3 + $0xb50] sm:$0xff]  }
 0x6f2   :  { %10744 = vmatmul.mubr.bf16.vlgmr.msra.gmra.mxu0 %v5413_v50  ;;  %v12815_v50 = vld [vmem:[%s17684_s3 + $0xa10] sm:$0xff]  }
 0x6f3   :  { %12236 = vmatpush3.bf16.msra.mxu0 %v12806_v45  ;;  %10825 = vmatprep.mubr.bf16.mxu0 %v5418_v21  ;;  %v12816_v21 = vld [vmem:[%s17684_s3 + $0xfe0] sm:$0xff]   ;;  %v12841_v45 = vld [vmem:[%s17684_s3 + $0xb10] sm:$0xff]  }
 0x6f4   :  { %12000 = vmatpush3.bf16.msra.mxu1 %v12807_v18  ;;  %12237 = vmatprep.subr.bf16.mxu0 %v12808_v24  ;;  %v12845_v18 = vld [vmem:[%s17684_s3 + $0xb00] sm:$0xff]   ;;  %v12846_v24 = vld [vmem:[%s17684_s3 + $0xc78] sm:$0xff]  }
 0x6f5   :  { %12001 = vmatprep.subr.bf16.mxu1 %v12809_v10  ;;  %v12847_v10 = vld [vmem:[%s17684_s3 + $0xc38] sm:$0xff]  }
 0x6f7   :  { %12238 = vmatpush3.bf16.msra.mxu0 %v12810_v11  ;;  %v12848_v11 = vld [vmem:[%s17684_s3 + $0xc70] sm:$0xff]  }
 0x6f8   :  { %12002 = vmatpush3.bf16.msra.mxu1 %v12811_v60  ;;  %12239 = vmatprep.subr.bf16.mxu0 %v12812_v40  ;;  %v12849_v60 = vld [vmem:[%s17684_s3 + $0xc30] sm:$0xff]   ;;  %v12850_v40 = vld [vmem:[%s17684_s3 + $0xc68] sm:$0xff]  }
 0x6f9   :  { %12003 = vmatprep.subr.bf16.mxu1 %v12813_v41  ;;  %v12857_v41 = vld [vmem:[%s17684_s3 + $0xc10] sm:$0xff]  }
 0x6fb   :  { %12240 = vmatpush3.bf16.msra.mxu0 %v12814_v17  ;;  %v12858_v17 = vld [vmem:[%s17684_s3 + $0xc48] sm:$0xff]  }
 0x6fc   :  { %12004 = vmatpush3.bf16.msra.mxu1 %v12815_v50  ;;  %12241 = vmatprep.subr.bf16.mxu0 %v12816_v21  ;;  %v12859_v50 = vld [vmem:[%s17684_s3 + $0xc08] sm:$0xff]   ;;  %v12860_v21 = vld [vmem:[%s17684_s3 + $0xc40] sm:$0xff]  }
 0x6fd   :  { %12005 = vmatprep.subr.bf16.mxu1 %v12817_v12  ;;  %v12861_v12 = vld [vmem:[%s17684_s3 + $0xc00] sm:$0xff]  }
 0x6ff   :  { %12242 = vmatpush3.bf16.msra.mxu0 %v12818_v59  ;;  %v12862_v59 = vld [vmem:[%s17684_s3 + $0xd78] sm:$0xff]  }
 0x700   :  { %12006 = vmatpush3.bf16.msra.mxu1 %v12819_v56  ;;  %12243 = vmatprep.subr.bf16.mxu0 %v12820_v63  ;;  %v12863_v56 = vld [vmem:[%s17684_s3 + $0xd38] sm:$0xff]   ;;  %v12864_v63 = vld [vmem:[%s17684_s3 + $0xd70] sm:$0xff]  }
 0x701   :  { %12007 = vmatprep.subr.bf16.mxu1 %v12821_v0  ;;  %v12865_v0 = vld [vmem:[%s17684_s3 + $0xd30] sm:$0xff]  }
 0x703   :  { %12244 = vmatpush3.bf16.msra.mxu0 %v12822_v62  ;;  %v12866_v62 = vld [vmem:[%s17684_s3 + $0xd68] sm:$0xff]  }
 0x704   :  { %12008 = vmatpush3.bf16.msra.mxu1 %v12823_v42  ;;  %12245 = vmatprep.subr.bf16.mxu0 %v12824_v8  ;;  %v12873_v42 = vld [vmem:[%s17684_s3 + $0xd10] sm:$0xff]   ;;  %v12874_v8 = vld [vmem:[%s17684_s3 + $0xd48] sm:$0xff]  }
 0x705   :  { %12037 = vmatprep.subr.bf16.mxu1 %v12825_v28  ;;  %v12875_v28 = vld [vmem:[%s17684_s3 + $0xd08] sm:$0xff]  }
 0x707   :  { %10375 = vmatmul.mubr.bf16.vlgmr.msra.gmra.mxu1 %v5395_v47  ;;  %12246 = vmatpush3.bf16.msra.mxu0 %v12826_v4  ;;  %v12835_v47 = vld [vmem:[%s17684_s3 + $0xb28] sm:$0xff]   ;;  %v12876_v4 = vld [vmem:[%s17684_s3 + $0xd40] sm:$0xff]  }
 0x708   :  { %12038 = vmatpush3.bf16.msra.mxu1 %v12827_v52  ;;  %10456 = vmatprep.mubr.bf16.mxu1 %v5400_v33  ;;  %v12838_v33 = vld [vmem:[%s17684_s3 + $0xb58] sm:$0xff]   ;;  %v12877_v52 = vld [vmem:[%s17684_s3 + $0xd00] sm:$0xff]  }
 0x709   :  { %12247 = vmatprep.subr.bf16.mxu0 %v12828_v14  ;;  %12039 = vmatprep.subr.bf16.mxu1 %v12829_v55  ;;  %v12878_v14 = vld [vmem:[%s17684_s3 + $0xe78] sm:$0xff]  }
 0x70a   :  { %v12879_v55 = vld [vmem:[%s17684_s3 + $0xe38] sm:$0xff]  }
 0x70b   :  { %12248 = vmatpush3.bf16.msra.mxu0 %v12830_v22  ;;  %v12880_v22 = vld [vmem:[%s17684_s3 + $0xe70] sm:$0xff]  }
 0x70c   :  { %12040 = vmatpush3.bf16.msra.mxu1 %v12831_v48  ;;  %12249 = vmatprep.subr.bf16.mxu0 %v12832_v39  ;;  %v12881_v48 = vld [vmem:[%s17684_s3 + $0xe30] sm:$0xff]   ;;  %v12882_v39 = vld [vmem:[%s17684_s3 + $0xe68] sm:$0xff]  }
 0x70d   :  { %12041 = vmatprep.subr.bf16.mxu1 %v12833_v2  ;;  %v12889_v2 = vld [vmem:[%s17684_s3 + $0xe10] sm:$0xff]  }
 0x70f   :  { %12250 = vmatpush3.bf16.msra.mxu0 %v12834_v9  ;;  %v12890_v9 = vld [vmem:[%s17684_s3 + $0xe48] sm:$0xff]  }
 0x710   :  { %12042 = vmatpush3.bf16.msra.mxu1 %v12835_v47  ;;  %v12891_v47 = vld [vmem:[%s17684_s3 + $0xe08] sm:$0xff]  }
 0x711   :  { %12043 = vmatprep.subr.bf16.mxu1 %v12836_v30  ;;  %v12892_v30 = vld [vmem:[%s17684_s3 + $0xe40] sm:$0xff]  }
 0x712   :  { %10826 = vmatmul.mubr.bf16.vlgmr.msra.gmra.mxu0 %v5417_v46  ;;  %v12844_v46 = vld [vmem:[%s17684_s3 + $0xb40] sm:$0xff]  }
 0x714   :  { %12044 = vmatpush3.bf16.msra.mxu1 %v12837_v57  ;;  %v12893_v57 = vld [vmem:[%s17684_s3 + $0xe00] sm:$0xff]  }
 0x715   :  { %12045 = vmatprep.subr.bf16.mxu1 %v12838_v33  ;;  %v12894_v33 = vld [vmem:[%s17684_s3 + $0xf78] sm:$0xff]  }
 0x718   :  { %12046 = vmatpush3.bf16.msra.mxu1 %v12839_v7  ;;  %v12895_v7 = vld [vmem:[%s17684_s3 + $0xf38] sm:$0xff]  }
 0x719   :  { %12047 = vmatprep.subr.bf16.mxu1 %v12840_v51  ;;  %v12896_v51 = vld [vmem:[%s17684_s3 + $0xf70] sm:$0xff]  }
 0x71c   :  { %12048 = vmatpush3.bf16.msra.mxu1 %v12841_v45  ;;  %v18905_v45 = vpack.c.bf16 %v16901_v25, %v16899_v53  ;;  %v12899_v53 = vld [vmem:[%s17684_s3 + $0xf28] sm:$0xff]   ;;  %v12900_v25 = vld [vmem:[%s17684_s3 + $0xf60] sm:$0xff]  }
 0x71d   :  { %12049 = vmatprep.subr.bf16.mxu1 %v12842_v49  ;;  %v18906_v49 = vpack.c.bf16 %v17084_v19, %v17082_v54  ;;  %v12901_v54 = vld [vmem:[%s17684_s3 + $0xf20] sm:$0xff]   ;;  %v12902_v19 = vld [vmem:[%s17684_s3 + $0xf58] sm:$0xff]  }
 0x720   :  { %12050 = vmatpush3.bf16.msra.mxu1 %v12843_v23  ;;  %v12897_v23 = vld [vmem:[%s17684_s3 + $0xf30] sm:$0xff]  }
 0x721   :  { %12051 = vmatprep.subr.bf16.mxu1 %v12844_v46  ;;  %v12898_v46 = vld [vmem:[%s17684_s3 + $0xf68] sm:$0xff]  }
 0x724   :  { %12052 = vmatpush3.bf16.msra.mxu1 %v12845_v18  ;;  %v12903_v18 = vld [vmem:[%s17684_s3 + $0xf18] sm:$0xff]  }
 0x725   :  { %12081 = vmatprep.subr.bf16.mxu1 %v12846_v24  ;;  %v12904_v24 = vld [vmem:[%s17684_s3 + $0xf50] sm:$0xff]  }
 0x727   :  { %10457 = vmatmul.mubr.bf16.vlgmr.msra.gmra.mxu1 %v5399_v36  ;;  %v12853_v36 = vld [vmem:[%s17684_s3 + $0xc20] sm:$0xff]  }
 0x728   :  { %12082 = vmatpush3.bf16.msra.mxu1 %v12847_v10  ;;  %10538 = vmatprep.mubr.bf16.mxu1 %v5404_v27  ;;  %v12856_v27 = vld [vmem:[%s17684_s3 + $0xc50] sm:$0xff]  }
 0x729   :  { %12083 = vmatprep.subr.bf16.mxu1 %v12848_v11  ;;  %v12905_v10 = vld [vmem:[%s17684_s3 + $0xf10] sm:$0xff]   ;;  %v12906_v11 = vld [vmem:[%s17684_s3 + $0xf48] sm:$0xff]  }
 0x72c   :  { %12084 = vmatpush3.bf16.msra.mxu1 %v12849_v60  ;;  %v12907_v60 = vld [vmem:[%s17684_s3 + $0xf08] sm:$0xff]  }
 0x72d   :  { %12085 = vmatprep.subr.bf16.mxu1 %v12850_v40  ;;  %v12908_v40 = vld [vmem:[%s17684_s3 + $0xf40] sm:$0xff]  }
 0x730   :  { %12086 = vmatpush3.bf16.msra.mxu1 %v12851_v13  ;;  %v12909_v13 = vld [vmem:[%s17684_s3 + $0xf00] sm:$0xff]  }
 0x731   :  { %12087 = vmatprep.subr.bf16.mxu1 %v12852_v32  ;;  %v18907_v32 = vpack.c.bf16 %v17048_v20, %v17046_v35 }
 0x734   :  { %12088 = vmatpush3.bf16.msra.mxu1 %v12853_v36  ;;  %v11789_v36 = vpop.f32.mrf.mxu1 }
 0x735   :  { %12089 = vmatprep.subr.bf16.mxu1 %v12854_v34 }
 0x736   :  { %v11790_v34 = vpop.f32.mrf.mxu1 }
 0x738   :  { %12090 = vmatpush3.bf16.msra.mxu1 %v12855_v43  ;;  %v11792_v43 = vpop.f32.mrf.mxu1 }
 0x739   :  { %12091 = vmatprep.subr.bf16.mxu1 %v12856_v27 }
 0x73a   :  { %v11793_v27 = vpop.f32.mrf.mxu1 }
 0x73c   :  { %12092 = vmatpush3.bf16.msra.mxu1 %v12857_v41  ;;  %v11811_v41 = vpop.f32.mrf.mxu1 }
 0x73d   :  { %12093 = vmatprep.subr.bf16.mxu1 %v12858_v17 }
 0x73e   :  { %v11812_v17 = vpop.f32.mrf.mxu1 }
 0x740   :  { %12094 = vmatpush3.bf16.msra.mxu1 %v12859_v50  ;;  %v11814_v50 = vpop.f32.mrf.mxu1 }
 0x741   :  { %12095 = vmatprep.subr.bf16.mxu1 %v12860_v21 }
 0x742   :  { %v11815_v21 = vpop.f32.mrf.mxu1 }
 0x744   :  { %12096 = vmatpush3.bf16.msra.mxu1 %v12861_v12  ;;  %v11833_v12 = vpop.f32.mrf.mxu1 }
 0x745   :  { %12125 = vmatprep.subr.bf16.mxu1 %v12862_v59 }
 0x746   :  { %v11834_v59 = vpop.f32.mrf.mxu1 }
 0x747   :  { %10539 = vmatmul.mubr.bf16.vlgmr.msra.gmra.mxu1 %v5403_v29  ;;  %v12869_v29 = vld [vmem:[%s17684_s3 + $0xd20] sm:$0xff]  }
 0x748   :  { %12126 = vmatpush3.bf16.msra.mxu1 %v12863_v56  ;;  %10620 = vmatprep.mubr.bf16.mxu1 %v5408_v15  ;;  %v12872_v15 = vld [vmem:[%s17684_s3 + $0xd50] sm:$0xff]   ;;  %v11836_v56 = vpop.f32.mrf.mxu1 }
 0x749   :  { %12127 = vmatprep.subr.bf16.mxu1 %v12864_v63 }
 0x74a   :  { %v11837_v63 = vpop.f32.mrf.mxu1 }
 0x74c   :  { %12128 = vmatpush3.bf16.msra.mxu1 %v12865_v0  ;;  %v11855_v0 = vpop.f32.mrf.mxu1 }
 0x74d   :  { %12129 = vmatprep.subr.bf16.mxu1 %v12866_v62 }
 0x74e   :  { %v11856_v62 = vpop.f32.mrf.mxu1 }
 0x750   :  { %12130 = vmatpush3.bf16.msra.mxu1 %v12867_v5  ;;  %v11858_v5 = vpop.f32.mrf.mxu1 }
 0x751   :  { %12131 = vmatprep.subr.bf16.mxu1 %v12868_v58  ;;  %v11899_v58 = vpop.f32.mrf.mxu0 }
 0x754   :  { %12132 = vmatpush3.bf16.msra.mxu1 %v12869_v29  ;;  %v11859_v29 = vpop.f32.mrf.mxu1 }
 0x755   :  { %12133 = vmatprep.subr.bf16.mxu1 %v12870_v37  ;;  %v11900_v37 = vpop.f32.mrf.mxu0 }
 0x757   :  { %v17607_v20 = vpop.f32.mrf.mxu0 }
 0x758   :  { %12134 = vmatpush3.bf16.msra.mxu1 %v12871_v26 }
 0x759   :  { %12135 = vmatprep.subr.bf16.mxu1 %v12872_v15  ;;  %v17609_v15 = vpop.f32.mrf.mxu0 }
 0x75c   :  { %12136 = vmatpush3.bf16.msra.mxu1 %v12873_v42 }
 0x75d   :  { %12137 = vmatprep.subr.bf16.mxu1 %v12874_v8  ;;  %v17611_v8 = vpop.f32.mrf.mxu0 }
 0x760   :  { %12138 = vmatpush3.bf16.msra.mxu1 %v12875_v28 }
 0x761   :  { %12139 = vmatprep.subr.bf16.mxu1 %v12876_v4  ;;  %v17613_v4 = vpop.f32.mrf.mxu0 }
 0x764   :  { %12140 = vmatpush3.bf16.msra.mxu1 %v12877_v52 }
 0x765   :  { %12169 = vmatprep.subr.bf16.mxu1 %v12878_v14  ;;  %v17615_v14 = vpop.f32.mrf.mxu0 }
 0x767   :  { %10621 = vmatmul.mubr.bf16.vlgmr.msra.gmra.mxu1 %v5407_v61  ;;  %v12885_v61 = vld [vmem:[%s17684_s3 + $0xe20] sm:$0xff]   ;;  %v11877_v35 = vpop.f32.mrf.mxu1 }
 0x768   :  { %12170 = vmatpush3.bf16.msra.mxu1 %v12879_v55  ;;  %10702 = vmatprep.mubr.bf16.mxu1 %v5412_v3  ;;  %v12888_v3 = vld [vmem:[%s17684_s3 + $0xe50] sm:$0xff]  }
 0x769   :  { %12171 = vmatprep.subr.bf16.mxu1 %v12880_v22  ;;  %v11878_v26 = vpop.f32.mrf.mxu1  ;;  %v17617_v22 = vpop.f32.mrf.mxu0 }
 0x76b   :  { %v11880_v42 = vpop.f32.mrf.mxu1 }
 0x76c   :  { %12172 = vmatpush3.bf16.msra.mxu1 %v12881_v48 }
 0x76d   :  { %12173 = vmatprep.subr.bf16.mxu1 %v12882_v39  ;;  %v11881_v28 = vpop.f32.mrf.mxu1  ;;  %v17619_v39 = vpop.f32.mrf.mxu0 }
 0x770   :  { %12174 = vmatpush3.bf16.msra.mxu1 %v12883_v31 }
 0x771   :  { %12175 = vmatprep.subr.bf16.mxu1 %v12884_v6  ;;  %v17621_v6 = vpop.f32.mrf.mxu0 }
 0x774   :  { %12176 = vmatpush3.bf16.msra.mxu1 %v12885_v61 }
 0x775   :  { %12177 = vmatprep.subr.bf16.mxu1 %v12886_v38  ;;  %v17623_v38 = vpop.f32.mrf.mxu0 }
 0x778   :  { %12178 = vmatpush3.bf16.msra.mxu1 %v12887_v1 }
 0x779   :  { %12179 = vmatprep.subr.bf16.mxu1 %v12888_v3  ;;  %v17625_v3 = vpop.f32.mrf.mxu0 }
 0x77c   :  { %12180 = vmatpush3.bf16.msra.mxu1 %v12889_v2 }
 0x77d   :  { %12181 = vmatprep.subr.bf16.mxu1 %v12890_v9  ;;  %v17627_v9 = vpop.f32.mrf.mxu0 }
 0x780   :  { %12182 = vmatpush3.bf16.msra.mxu1 %v12891_v47 }
 0x781   :  { %12183 = vmatprep.subr.bf16.mxu1 %v12892_v30  ;;  %v17629_v30 = vpop.f32.mrf.mxu0 }
 0x784   :  { %12184 = vmatpush3.bf16.msra.mxu1 %v12893_v57 }
 0x785   :  { %12213 = vmatprep.subr.bf16.mxu1 %v12894_v33  ;;  %v17631_v33 = vpop.f32.mrf.mxu0 }
 0x786   :  { %18908 = vst [vmem:[#allocation54_spill] sm:$0xff] %v17631_v33 }
 0x787   :  { %10703 = vmatmul.mubr.bf16.vlgmr.msra.gmra.mxu1 %v18905_v45  ;;  %v11921_v52 = vpop.f32.mrf.mxu1 }
 0x788   :  { %12214 = vmatpush3.bf16.msra.mxu1 %v12895_v7  ;;  %10784 = vmatprep.mubr.bf16.mxu1 %v18906_v49 }
 0x789   :  { %12215 = vmatprep.subr.bf16.mxu1 %v12896_v51  ;;  %v11922_v55 = vpop.f32.mrf.mxu1  ;;  %v17633_v51 = vpop.f32.mrf.mxu0 }
 0x78a   :  { %18909 = vst [vmem:[#allocation37_spill] sm:$0xff] %v17633_v51 }
 0x78b   :  { %v11924_v48 = vpop.f32.mrf.mxu1  ;;  %v17637_v49 = vpop.f32.mrf.mxu0 }
 0x78c   :  { %12216 = vmatpush3.bf16.msra.mxu1 %v12897_v23  ;;  %18910 = vst [vmem:[#allocation40_spill] sm:$0xff] %v17637_v49  ;;  %v11857_v49 = vadd.f32 %v11856_v62, %v11855_v0 }
 0x78d   :  { %12217 = vmatprep.subr.bf16.mxu1 %v12898_v46  ;;  %v11925_v31 = vpop.f32.mrf.mxu1  ;;  %v17639_v46 = vpop.f32.mrf.mxu0 }
 0x78e   :  { %18911 = vst [vmem:[#allocation158_spill] sm:$0xff] %v17639_v46 }
 0x790   :  { %12218 = vmatpush3.bf16.msra.mxu1 %v12899_v53 }
 0x791   :  { %12219 = vmatprep.subr.bf16.mxu1 %v12900_v25  ;;  %v11791_v25 = vadd.f32 %v11790_v34, %v11789_v36  ;;  %v11838_v36 = vadd.f32 %v11837_v63, %v11836_v56  ;;  %v11879_v34 = vadd.f32 %v11878_v26, %v11877_v35  ;;  %v11904_v56 = vadd.f32 %v17609_v15, %v17607_v20 }
 0x792   :  { %v11926_v35 = vadd.f32 %v11925_v31, %v11924_v48  ;;  %v11989_v15 = vadd.f32 %v17621_v6, %v17619_v39 }
 0x794   :  { %12220 = vmatpush3.bf16.msra.mxu1 %v12901_v54  ;;  %v17643_v54 = vpop.f32.mrf.mxu0 }
 0x795   :  { %12221 = vmatprep.subr.bf16.mxu1 %v12902_v19  ;;  %18913 = vst [vmem:[#allocation159_spill] sm:$0xff] %v17643_v54 }
 0x798   :  { %12222 = vmatpush3.bf16.msra.mxu1 %v12903_v18  ;;  %v11813_v18 = vadd.f32 %v11812_v17, %v11811_v41  ;;  %v11860_v17 = vadd.f32 %v11859_v29, %v11858_v5  ;;  %v11945_v29 = vadd.f32 %v17613_v4, %v17611_v8 }
 0x799   :  { %12223 = vmatprep.subr.bf16.mxu1 %v12904_v24  ;;  %v9967_v24 = vadd.f32 %v11791_v25, %v17127_v44  ;;  %v11901_v25 = vadd.f32 %v11900_v37, %v11899_v58 }
 0x79c   :  { %12224 = vmatpush3.bf16.msra.mxu1 %v12905_v10  ;;  %v11794_v10 = vadd.f32 %v11793_v27, %v11792_v43 }
 0x79d   :  { %12225 = vmatprep.subr.bf16.mxu1 %v12906_v11  ;;  %v11835_v11 = vadd.f32 %v11834_v59, %v11833_v12  ;;  %v11882_v59 = vadd.f32 %v11881_v28, %v11880_v42 }
 0x79e   :  { %v9970_v46 = vadd.f32 %v11794_v10, %v17143_v16 }
 0x7a0   :  { %12226 = vmatpush3.bf16.msra.mxu1 %v12907_v60  ;;  %v17646_v60 = vpop.f32.mrf.mxu0 }
 0x7a1   :  { %12227 = vmatprep.subr.bf16.mxu1 %v12908_v40 }
 0x7a2   :  { %v17648_v51 = vpop.f32.mrf.mxu0 }
 0x7a4   :  { %12228 = vmatpush3.bf16.msra.mxu1 %v12909_v13  ;;  %v10008_v13 = vadd.f32 %v11813_v18, %v9967_v24  ;;  %v17651_v44 = vpop.f32.mrf.mxu0 }
 0x7a6   :  { %v10049_v33 = vadd.f32 %v11835_v11, %v10008_v13  ;;  %v12122_v0 = vpop.f32.mrf.mxu0 }
 0x7a7   :  { %10785 = vmatmul.mubr.bf16.vlgmr.msra.gmra.mxu1 %v18907_v32  ;;  %v11965_v61 = vpop.f32.mrf.mxu1  ;;  %v11816_v32 = vadd.f32 %v11815_v21, %v11814_v50  ;;  %v11923_v21 = vadd.f32 %v11922_v55, %v11921_v52  ;;  %v11948_v52 = vadd.f32 %v17617_v22, %v17615_v14  ;;  %v12033_v14 = vadd.f32 %v17629_v30, %v17627_v9 }
 0x7a8   :  { %v10090_v41 = vadd.f32 %v11857_v49, %v10049_v33  ;;  %v12123_v26 = vpop.f32.mrf.mxu0 }
 0x7a9   :  { %v11966_v1 = vpop.f32.mrf.mxu1 }
 0x7aa   :  { %v10131_v12 = vadd.f32 %v11879_v34, %v10090_v41  ;;  %v11967_v49 = vadd.f32 %v11966_v1, %v11965_v61  ;;  %v12163_v42 = vpop.f32.mrf.mxu0  ;;  %v11992_v1 = vadd.f32 %v17625_v3, %v17623_v38  ;;  %v18917_v3 = vld [vmem:[#allocation40_spill] sm:$0xff] }
 0x7ab   :  { %v11968_v2 = vpop.f32.mrf.mxu1 }
 0x7ac   :  { %v10172_v16 = vadd.f32 %v11901_v25, %v10131_v12  ;;  %v18919_v25 = vld [vmem:[#allocation159_spill] sm:$0xff] }
 0x7ad   :  { %v11969_v47 = vpop.f32.mrf.mxu1 }
 0x7ae   :  { %v10213_v63 = vadd.f32 %v11923_v21, %v10172_v16 }
 0x7b0   :  { %v10254_v37 = vadd.f32 %v11945_v29, %v10213_v63 }
 0x7b2   :  { %v10295_v55 = vadd.f32 %v11967_v49, %v10254_v37 }
 0x7b4   :  { %v10336_v8 = vadd.f32 %v11989_v15, %v10295_v55 }
 0x7c7   :  { %v12009_v57 = vpop.f32.mrf.mxu1 }
 0x7c9   :  { %v12010_v7 = vpop.f32.mrf.mxu1 }
 0x7ca   :  { %v12011_v31 = vadd.f32 %v12010_v7, %v12009_v57 }
 0x7cb   :  { %v17635_v45 = vpop.f32.mrf.mxu1 }
 0x7cc   :  { %v10377_v10 = vadd.f32 %v12011_v31, %v10336_v8 }
 0x7cd   :  { %v12013_v23 = vpop.f32.mrf.mxu1 }
 0x7ce   :  { %v12014_v11 = vadd.f32 %v12013_v23, %v17635_v45  ;;  %v10418_v57 = vadd.f32 %v12033_v14, %v10377_v10 }
 0x7e7   :  { %v17641_v53 = vpop.f32.mrf.mxu1 }
 0x7e8   :  { %18912 = vst [vmem:[#allocation55_spill] sm:$0xff] %v17641_v53  ;;  %v10011_v53 = vadd.f32 %v11816_v32, %v9970_v46  ;;  %v11970_v46 = vadd.f32 %v11969_v47, %v11968_v2  ;;  %v18915_v32 = vld [vmem:[#allocation54_spill] sm:$0xff] }
 0x7e9   :  { %v12054_v19 = vpop.f32.mrf.mxu1 }
 0x7ea   :  { %v10052_v27 = vadd.f32 %v11838_v36, %v10011_v53  ;;  %v12164_v53 = vpop.f32.mrf.mxu0  ;;  %v18916_v36 = vld [vmem:[#allocation37_spill] sm:$0xff] }
 0x7eb   :  { %v12056_v40 = vpop.f32.mrf.mxu1  ;;  %v12036_v34 = vadd.f32 %v18916_v36, %v18915_v32 }
 0x7ec   :  { %v10093_v50 = vadd.f32 %v11860_v17, %v10052_v27  ;;  %v12166_v4 = vpop.f32.mrf.mxu0  ;;  %v18918_v27 = vld [vmem:[#allocation158_spill] sm:$0xff] }
 0x7ed   :  { %v12057_v54 = vpop.f32.mrf.mxu1  ;;  %v12077_v45 = vadd.f32 %v18918_v27, %v18917_v3 }
 0x7ee   :  { %v10134_v18 = vadd.f32 %v11882_v59, %v10093_v50  ;;  %v12167_v13 = vpop.f32.mrf.mxu0  ;;  %v12058_v17 = vadd.f32 %v12057_v54, %v12056_v40  ;;  %v12080_v50 = vadd.f32 %v17646_v60, %v18919_v25  ;;  %v12121_v54 = vadd.f32 %v17651_v44, %v17648_v51 }
 0x7ef   :  { %v18914_v2 = vld [vmem:[#allocation55_spill] sm:$0xff] }
 0x7f0   :  { %v10175_v33 = vadd.f32 %v11904_v56, %v10134_v18  ;;  %v12055_v47 = vadd.f32 %v12054_v19, %v18914_v2  ;;  %v12207_v7 = vpop.f32.mrf.mxu0 }
 0x7f2   :  { %v10216_v58 = vadd.f32 %v11926_v35, %v10175_v33  ;;  %v10459_v41 = vadd.f32 %v12055_v47, %v10418_v57  ;;  %v12208_v9 = vpop.f32.mrf.mxu0 }
 0x7f4   :  { %v10257_v48 = vadd.f32 %v11948_v52, %v10216_v58  ;;  %v10500_v19 = vadd.f32 %v12077_v45, %v10459_v41  ;;  %v12210_v16 = vpop.f32.mrf.mxu0  ;;  %v12165_v52 = vadd.f32 %v12164_v53, %v12163_v42 }
 0x7f6   :  { %v10298_v24 = vadd.f32 %v11970_v46, %v10257_v48  ;;  %v12211_v33 = vpop.f32.mrf.mxu0  ;;  %v12168_v48 = vadd.f32 %v12167_v13, %v12166_v4 }
 0x7f8   :  { %v10339_v22 = vadd.f32 %v11992_v1, %v10298_v24  ;;  %v12251_v37 = vpop.f32.mrf.mxu0 }
 0x7fa   :  { %v10380_v6 = vadd.f32 %v12014_v11, %v10339_v22  ;;  %v12252_v15 = vpop.f32.mrf.mxu0  ;;  %v12212_v11 = vadd.f32 %v12211_v33, %v12210_v16 }
 0x7fb   :  { %v12253_v42 = vadd.f32 %v12252_v15, %v12251_v37 }
 0x7fc   :  { %v10421_v23 = vadd.f32 %v12036_v34, %v10380_v6  ;;  %v12254_v8 = vpop.f32.mrf.mxu0 }
 0x7fe   :  { %v10462_v59 = vadd.f32 %v12058_v17, %v10421_v23  ;;  %v12255_v14 = vpop.f32.mrf.mxu0 }
 0x7ff   :  { %v12256_v4 = vadd.f32 %v12255_v14, %v12254_v8 }
 0x800   :  { %v10503_v40 = vadd.f32 %v12080_v50, %v10462_v59 }
 0x807   :  { %v12097_v43 = vpop.f32.mrf.mxu1 }
 0x809   :  { %v12098_v62 = vpop.f32.mrf.mxu1 }
 0x80a   :  { %v12099_v12 = vadd.f32 %v12098_v62, %v12097_v43  ;;  %v12124_v62 = vadd.f32 %v12123_v26, %v12122_v0 }
 0x80b   :  { %v12100_v5 = vpop.f32.mrf.mxu1 }
 0x80c   :  { %v10541_v21 = vadd.f32 %v12099_v12, %v10500_v19 }
 0x80d   :  { %v12101_v28 = vpop.f32.mrf.mxu1 }
 0x80e   :  { %v12102_v18 = vadd.f32 %v12101_v28, %v12100_v5  ;;  %v10582_v29 = vadd.f32 %v12121_v54, %v10541_v21 }
 0x810   :  { %v10544_v35 = vadd.f32 %v12102_v18, %v10503_v40 }
 0x812   :  { %v10585_v55 = vadd.f32 %v12124_v62, %v10544_v35 }
 0x827   :  { %v12141_v20 = vpop.f32.mrf.mxu1 }
 0x829   :  { %v12142_v61 = vpop.f32.mrf.mxu1 }
 0x82a   :  { %v12143_v63 = vadd.f32 %v12142_v61, %v12141_v20  ;;  %v12209_v20 = vadd.f32 %v12208_v9, %v12207_v7 }
 0x82b   :  { %v12144_v39 = vpop.f32.mrf.mxu1 }
 0x82c   :  { %v10623_v49 = vadd.f32 %v12143_v63, %v10582_v29 }
 0x82d   :  { %v12145_v38 = vpop.f32.mrf.mxu1 }
 0x82e   :  { %v12146_v58 = vadd.f32 %v12145_v38, %v12144_v39  ;;  %v10664_v28 = vadd.f32 %v12165_v52, %v10623_v49 }
 0x830   :  { %v10626_v5 = vadd.f32 %v12146_v58, %v10585_v55 }
 0x832   :  { %v10667_v24 = vadd.f32 %v12168_v48, %v10626_v5 }
 0x847   :  { %v12185_v30 = vpop.f32.mrf.mxu1 }
 0x849   :  { %v12186_v56 = vpop.f32.mrf.mxu1 }
 0x84a   :  { %v12187_v60 = vadd.f32 %v12186_v56, %v12185_v30 }
 0x84b   :  { %v12188_v43 = vpop.f32.mrf.mxu1 }
 0x84c   :  { %v10705_v31 = vadd.f32 %v12187_v60, %v10664_v28 }
 0x84d   :  { %v12189_v46 = vpop.f32.mrf.mxu1 }
 0x84e   :  { %v12190_v51 = vadd.f32 %v12189_v46, %v12188_v43  ;;  %v10746_v0 = vadd.f32 %v12209_v20, %v10705_v31 }
 0x850   :  { %v10708_v1 = vadd.f32 %v12190_v51, %v10667_v24 }
 0x852   :  { %v10749_v47 = vadd.f32 %v12212_v11, %v10708_v1 }
 0x867   :  { %v12229_v44 = vpop.f32.mrf.mxu1 }
 0x869   :  { %v12230_v61 = vpop.f32.mrf.mxu1 }
 0x86a   :  { %v12231_v26 = vadd.f32 %v12230_v61, %v12229_v44 }
 0x86b   :  { %v12232_v10 = vpop.f32.mrf.mxu1 }
 0x86c   :  { %v10787_v53 = vadd.f32 %v12231_v26, %v10746_v0 }
 0x86d   :  { %v12233_v22 = vpop.f32.mrf.mxu1 }
 0x86e   :  { %v10828_v2 = vadd.f32 %v12253_v42, %v10787_v53  ;;  %v12234_v39 = vadd.f32 %v12233_v22, %v12232_v10 }
 0x870   :  { %10834 = vst [vmem:[%s17686_s5] sm:$0xff] %v10828_v2  ;;  %v10790_v13 = vadd.f32 %v12234_v39, %v10749_v47 }
 0x872   :  { %v10831_v6 = vadd.f32 %v12256_v4, %v10790_v13 }
 0x874   :  { %10835 = vst [vmem:[%s17686_s5 + $0x8] sm:$0xff] %v10831_v6 }

</bundles_post_ra>
